<compile_context>
chip_gen: v6e
topology: v6e:2x2x1
jax: 0.10.0
libtpu: 0.0.40
codegen_flags: <defaults>
</compile_context>

<pallas_src>
import functools

import jax
import jax.numpy as jnp
from jax import lax
from jax.experimental import pallas as pl
from jax.experimental.pallas import tpu as pltpu

AFFINE_EPS = 1e-4
HIDDEN = 64          # hidden_channels default
C_RRDB = 320         # in_channels_rrdb
MXU_DTYPE = jnp.bfloat16   # matmul input dtype (accumulation is always f32)
TAP = 16             # per-tap output slot width for the packed layer-3 weight (12 real channels)


# ----------------------------- fused Pallas kernel ---------------------------

def _fused_cond_affine_kernel(comb_ref, z_ref,
                              w1_ref, b1_ref, w2_ref, b2_ref, w3_ref, b3_ref,
                              o_ref, acc3_ref,
                              *, H, W, cnn, cco, C, eps):
    """One batch element: both F(.) branches (3 conv layers, fused to 128 lanes) + both affines."""
    Wp8 = comb_ref.shape[2]            # padded width, multiple of 8
    CIN = comb_ref.shape[3]            # 320 ft + C z channels
    H2 = b1_ref.shape[-1]              # 2 * hidden  (branch A lanes 0:64, branch F lanes 64:128)
    N = H * W

    # ---- layer 1: 3x3 'same' conv over [ft | z].  One matmul per ky (the 3 kx taps are packed into a
    #      3*H2-wide output); the kx realignment happens on the 128-lane f32 output slabs and is
    #      accumulated as a value chain (no scratch read-modify-write).
    acc1 = None
    for ky in range(3):
        rows = comb_ref[0, ky:ky + H, :, :]                               # (H, Wp8, CIN) bf16
        r = jnp.dot(rows.reshape(H * Wp8, CIN), w1_ref[ky],
                    preferred_element_type=jnp.float32)                   # (H*Wp8, 3*H2) f32
        r3 = r.reshape(H, Wp8, 3 * H2)
        for kx in range(3):
            slab = r3[:, kx:kx + W, kx * H2:(kx + 1) * H2]                # (H, W, H2)
            acc1 = slab if acc1 is None else acc1 + slab
    h1 = jnp.maximum(acc1.reshape(N, H2) + b1_ref[...], 0.0)              # (N, 128) f32

    # ---- layer 2: 1x1 conv (block-diagonal across the two branches) + ReLU
    h2 = jnp.dot(h1.astype(w2_ref.dtype), w2_ref[...],
                 preferred_element_type=jnp.float32)
    h2 = jnp.maximum(h2 + b2_ref[...], 0.0)                               # (N, 128) f32

    # ---- layer 3: 3x3 conv as ONE matmul (9 taps packed along the output dim in 16-wide slots),
    #      followed by a shifted scatter-add of the small per-tap slabs into a padded accumulator.
    r = jnp.dot(h2.astype(w3_ref.dtype), w3_ref[...],
                preferred_element_type=jnp.float32)                       # (N, 9*TAP)
    r3 = r.reshape(H, W, 9 * TAP)
    acc3_ref[...] = jnp.zeros_like(acc3_ref)
    for ky in range(3):
        for kx in range(3):
            t = 3 * ky + kx
            acc3_ref[2 - ky:2 - ky + H, 2 - kx:2 - kx + W, :TAP] += r3[:, :, t * TAP:(t + 1) * TAP]
    h3 = acc3_ref[1:H + 1, 1:W + 1, :].reshape(N, acc3_ref.shape[-1]) + b3_ref[...]   # (N, 128)
    h3t = h3.T                                                            # (128, N) channel-major (XLU)

    # ---- fused conditional affines, channel-major, all f32.  h3t row layout (host-permuted):
    #      [shift_A (cco) | scale_A (cco) | shift_F (C) | scale_F (C) | unused]
    z = z_ref[0]                                                          # (C, N) f32
    z1 = z[:cnn, :]
    z2 = z[cnn:, :]

    shift_a = h3t[:cco, :]
    d_a = 1.0 + jnp.exp(-(h3t[cco:2 * cco, :] + 2.0))
    inv_a = d_a * pl.reciprocal(1.0 + eps * d_a, approx=False)            # == 1/(sigmoid(s+2)+eps)
    z2 = z2 * inv_a - shift_a

    shift_f = h3t[2 * cco:2 * cco + C, :]
    d_f = 1.0 + jnp.exp(-(h3t[2 * cco + C:2 * cco + 2 * C, :] + 2.0))
    inv_f = d_f * pl.reciprocal(1.0 + eps * d_f, approx=False)

    znew = jnp.concatenate([z1, z2], axis=0)                              # (C, N)
    o_ref[0] = (znew * inv_f - shift_f).astype(o_ref.dtype)               # single lane-dense store


# ----------------------------- host-side wrapper ------------------------------

def cond_affine_forward(x_nchw, ft_nchw, packed, *, cnn, eps=AFFINE_EPS):
    """Forward pass of CondAffineSeparatedAndCond.  x, ft are NCHW; returns NCHW."""
    B, C, H, W = x_nchw.shape
    CF = ft_nchw.shape[1]
    CIN = CF + C
    Hp = H + 2
    Wp8 = ((W + 2 + 7) // 8) * 8
    N = H * W
    cco = C - cnn
    H2 = packed["w2"].shape[0]
    mxu = packed["w1"].dtype

    # Single host prep pass: NHWC-ify ft, append z's channels, pad spatially (width rounded up to a
    # multiple of 8 so in-kernel reshapes are layout-free), cast to bf16.  z for the affine is passed
    # channel-major straight from NCHW (no transpose), f32.
    comb = jnp.concatenate(
        [jnp.transpose(ft_nchw, (0, 2, 3, 1)), jnp.transpose(x_nchw, (0, 2, 3, 1))], axis=-1)
    comb = jnp.pad(comb.astype(mxu), ((0, 0), (1, 1), (1, Wp8 - W - 1), (0, 0)))   # (B,Hp,Wp8,CIN)
    z_cn = x_nchw.reshape(B, C, N).astype(jnp.float32)                              # (B,C,N) lane-dense

    kernel = functools.partial(_fused_cond_affine_kernel,
                               H=H, W=W, cnn=cnn, cco=cco, C=C, eps=eps)
    out = pl.pallas_call(
        kernel,
        out_shape=jax.ShapeDtypeStruct((B, C, N), jnp.float32),
        grid=(B,),
        in_specs=[
            pl.BlockSpec((1, Hp, Wp8, CIN), lambda b: (b, 0, 0, 0)),   # padded [ft | z]  (bf16)
            pl.BlockSpec((1, C, N), lambda b: (b, 0, 0)),              # z, channel-major (f32)
            # Weights are grid-invariant; Buffered(1) could drop their second buffer on v7x.
            pl.BlockSpec((3, CIN, 3 * H2), lambda b: (0, 0, 0)),       # w1 (kx packed along out dim)
            pl.BlockSpec((1, H2), lambda b: (0, 0)),                   # b1
            pl.BlockSpec((H2, H2), lambda b: (0, 0)),                  # w2 (block-diag)
            pl.BlockSpec((1, H2), lambda b: (0, 0)),                   # b2
            pl.BlockSpec((H2, 9 * TAP), lambda b: (0, 0)),             # w3 (taps packed along out dim)
            pl.BlockSpec((1, H2), lambda b: (0, 0)),                   # b3 (padded to 128)
        ],
        out_specs=pl.BlockSpec((1, C, N), lambda b: (b, 0, 0)),
        scratch_shapes=[
            pltpu.VMEM((Hp, W + 2, H2), jnp.float32),                  # layer-3 scatter accumulator
        ],
        compiler_params=pltpu.CompilerParams(dimension_semantics=("parallel",)),
    )(comb, z_cn,
      packed["w1"], packed["b1"], packed["w2"], packed["b2"], packed["w3"], packed["b3"])

    return out.reshape(B, C, H, W)        # already NCHW; no output transpose needed


# ----------------------------- parameters -------------------------------------

def init_F(key, cin, cout, hidden=HIDDEN):
    k1, k2, k3, k4, k5, k6, k7 = jax.random.split(key, 7)
    w1 = jax.random.normal(k1, (3, 3, cin, hidden), jnp.float32) * 0.05
    b1 = jax.random.normal(k2, (hidden,), jnp.float32) * 0.01
    w2 = jax.random.normal(k3, (hidden, hidden), jnp.float32) * 0.05
    b2 = jax.random.normal(k4, (hidden,), jnp.float32) * 0.01
    w3 = jax.random.normal(k5, (3, 3, hidden, cout), jnp.float32) * 0.05
    b3 = jax.random.normal(k6, (cout,), jnp.float32) * 0.01
    logs = jax.random.normal(k7, (cout,), jnp.float32) * 0.01
    s = jnp.exp(logs * 3.0)  # Conv2dZeros logscale_factor = 3, folded into w3/b3 (linear)
    return dict(w1=w1, b1=b1, w2=w2, b2=b2, w3=w3 * s, b3=b3 * s)


def pack_params(pA, pF, *, cnn, C, mxu_dtype=MXU_DTYPE):
    """Fuse fAffine/fFeatures into combined, block-diagonal, tap-packed, permuted tensors."""
    hid = pA["w2"].shape[0]
    cf = pF["w1"].shape[2]                      # 320
    cco = C - cnn
    coutA, coutF = 2 * cco, 2 * C
    CIN = cf + C
    H2 = 2 * hid

    # split_feature 'cross' (even=shift, odd=scale) -> contiguous [shift | scale] per branch
    permA = jnp.concatenate([jnp.arange(0, coutA, 2), jnp.arange(1, coutA, 2)])
    permF = jnp.concatenate([jnp.arange(0, coutF, 2), jnp.arange(1, coutF, 2)])

    # layer 1: input channel order [ft (cf) | z1 (cnn) | z2 (cco)]; branch A cols 0:hid, F cols hid:2hid;
    # the 3 kx taps packed along the output dim -> (3, CIN, 3*H2)
    w1 = jnp.zeros((3, 3, CIN, H2), jnp.float32)
    w1 = w1.at[:, :, :cf, :hid].set(pA["w1"][:, :, cnn:, :])          # ft rows, branch A
    w1 = w1.at[:, :, cf:cf + cnn, :hid].set(pA["w1"][:, :, :cnn, :])  # z1 rows, branch A
    w1 = w1.at[:, :, :cf, hid:].set(pF["w1"])                         # ft rows, branch F (z rows = 0)
    w1p = jnp.transpose(w1, (0, 2, 1, 3)).reshape(3, CIN, 3 * H2)
    b1 = jnp.concatenate([pA["b1"], pF["b1"]]).reshape(1, H2)

    # layer 2: block-diagonal 1x1
    w2 = jnp.zeros((H2, H2), jnp.float32)
    w2 = w2.at[:hid, :hid].set(pA["w2"])
    w2 = w2.at[hid:, hid:].set(pF["w2"])
    b2 = jnp.concatenate([pA["b2"], pF["b2"]]).reshape(1, H2)

    # layer 3: block-diagonal, columns permuted to [shiftA|scaleA|shiftF|scaleF], then the 9 taps packed
    # along the output dim in TAP-wide slots -> (H2, 9*TAP).  exp(3*logs) already folded (init_F).
    w3 = jnp.zeros((3, 3, H2, coutA + coutF), jnp.float32)
    w3 = w3.at[:, :, :hid, :coutA].set(pA["w3"][:, :, :, permA])
    w3 = w3.at[:, :, hid:, coutA:].set(pF["w3"][:, :, :, permF])
    w3p = jnp.zeros((3, 3, H2, TAP), jnp.float32).at[:, :, :, :coutA + coutF].set(w3)
    w3p = jnp.transpose(w3p, (2, 0, 1, 3)).reshape(H2, 9 * TAP)
    b3 = jnp.zeros((1, H2), jnp.float32)
    b3 = b3.at[0, :coutA].set(pA["b3"][permA])
    b3 = b3.at[0, coutA:coutA + coutF].set(pF["b3"][permF])

    return dict(w1=w1p.astype(mxu_dtype), b1=b1,
                w2=w2.astype(mxu_dtype), b2=b2,
                w3=w3p.astype(mxu_dtype), b3=b3)


# ----------------------------- pure-JAX reference -----------------------------

def _ref_F(x, p, mxu_dtype):
    dn = ("NHWC", "HWIO", "NHWC")
    c = lambda a: a.astype(mxu_dtype)
    y = lax.conv_general_dilated(c(x), c(p["w1"]), (1, 1), "SAME", dimension_numbers=dn,
                                 preferred_element_type=jnp.float32) + p["b1"]
    y = jnp.maximum(y, 0.0)
    y = jnp.einsum("bhwc,cd->bhwd", c(y), c(p["w2"]),
                   preferred_element_type=jnp.float32) + p["b2"]
    y = jnp.maximum(y, 0.0)
    y = lax.conv_general_dilated(c(y), c(p["w3"]), (1, 1), "SAME", dimension_numbers=dn,
                                 preferred_element_type=jnp.float32) + p["b3"]
    return y


def ref_forward(x_nchw, ft_nchw, pA, pF, eps=AFFINE_EPS, mxu_dtype=jnp.float32):
    C = x_nchw.shape[1]
    cnn = C // 2
    z = jnp.transpose(x_nchw, (0, 2, 3, 1)).astype(jnp.float32)
    ft = jnp.transpose(ft_nchw, (0, 2, 3, 1)).astype(jnp.float32)
    z1, z2 = z[..., :cnn], z[..., cnn:]
    h = _ref_F(jnp.concatenate([z1, ft], axis=-1), pA, mxu_dtype)
    shift = h[..., 0::2]
    scale = 1.0 / (1.0 + jnp.exp(-(h[..., 1::2] + 2.0))) + eps
    z2 = z2 / scale - shift
    z = jnp.concatenate([z1, z2], axis=-1)
    hF = _ref_F(ft, pF, mxu_dtype)
    shiftF = hF[..., 0::2]
    scaleF = 1.0 / (1.0 + jnp.exp(-(hF[..., 1::2] + 2.0))) + eps
    z = z / scaleF - shiftF
    return jnp.transpose(z, (0, 3, 1, 2))


# ----------------------------- main --------------------------------------------

if __name__ == "__main__":
    key = jax.random.PRNGKey(0)
    kx, kf, kA, kF = jax.random.split(key, 4)

    B, C, H, W = 2, 4, 16, 16
    cnn = C // 2
    cco = C - cnn

    x = jax.random.normal(kx, (B, C, H, W), jnp.float32)
    ft = jax.random.normal(kf, (B, C_RRDB, H, W), jnp.float32) * 0.1

    pA = init_F(kA, cnn + C_RRDB, 2 * cco)   # fAffine
    pF = init_F(kF, C_RRDB, 2 * C)           # fFeatures
    packed = pack_params(pA, pF, cnn=cnn, C=C, mxu_dtype=MXU_DTYPE)

    fwd = jax.jit(functools.partial(cond_affine_forward, cnn=cnn))
    out = jax.block_until_ready(fwd(x, ft, packed))
    assert out.shape == (B, C, H, W), out.shape

    # Reference with matched numerics (bf16 MXU inputs, f32 accumulation) but independent of the
    # fused/packed weight layout -> checks fusion, tap-packing, permutation and the affine.
    ref_matched = ref_forward(x, ft, pA, pF, mxu_dtype=MXU_DTYPE)
    max_err = float(jnp.max(jnp.abs(out - ref_matched)))
    assert jnp.allclose(out, ref_matched, atol=2e-3, rtol=2e-3), f"max abs err {max_err}"

    # Loose sanity check against the full-f32 reference (bounds bf16 quantization drift).
    ref_f32 = ref_forward(x, ft, pA, pF, mxu_dtype=jnp.float32)
    drift = float(jnp.max(jnp.abs(out - ref_f32)))
    assert drift < 5e-2, f"f32-reference drift {drift}"

    print("KERNEL_OK")
</pallas_src>

<mosaic_0001>
module attributes {stable_mosaic.version = 11 : i64} {
  func.func @_fused_cond_affine_kernel(%arg0: i32, %arg1: memref<1x18x24x324xbf16, #tpu.memory_space<vmem>>, %arg2: memref<1x4x256xf32, #tpu.memory_space<vmem>>, %arg3: memref<3x324x384xbf16, #tpu.memory_space<vmem>>, %arg4: memref<1x128xf32, #tpu.memory_space<vmem>>, %arg5: memref<128x128xbf16, #tpu.memory_space<vmem>>, %arg6: memref<1x128xf32, #tpu.memory_space<vmem>>, %arg7: memref<128x144xbf16, #tpu.memory_space<vmem>>, %arg8: memref<1x128xf32, #tpu.memory_space<vmem>>, %arg9: memref<1x4x256xf32, #tpu.memory_space<vmem>>, %arg10: memref<18x18x128xf32, #tpu.memory_space<vmem>>) attributes {dimension_semantics = [#tpu.dimension_semantics<parallel>], iteration_bounds = array<i64: 2>, scalar_prefetch = 0 : i64, scratch_operands = 1 : i64, tpu.core_type = #tpu.core_type<tc>, window_params = [{transform_indices = @transform_0, window_bounds = array<i64: 1, 18, 24, 324>}, {transform_indices = @transform_1, window_bounds = array<i64: 1, 4, 256>}, {pipeline_mode = #tpu.pipeline_mode<synchronous>, transform_indices = @transform_2, window_bounds = array<i64: 3, 324, 384>}, {pipeline_mode = #tpu.pipeline_mode<synchronous>, transform_indices = @transform_3, window_bounds = array<i64: 1, 128>}, {pipeline_mode = #tpu.pipeline_mode<synchronous>, transform_indices = @transform_4, window_bounds = array<i64: 128, 128>}, {pipeline_mode = #tpu.pipeline_mode<synchronous>, transform_indices = @transform_5, window_bounds = array<i64: 1, 128>}, {pipeline_mode = #tpu.pipeline_mode<synchronous>, transform_indices = @transform_6, window_bounds = array<i64: 128, 144>}, {pipeline_mode = #tpu.pipeline_mode<synchronous>, transform_indices = @transform_7, window_bounds = array<i64: 1, 128>}, {transform_indices = @transform_8, window_bounds = array<i64: 1, 4, 256>}]} {
    %c0 = arith.constant 0 : index
    %c0_0 = arith.constant 0 : index
    %c0_1 = arith.constant 0 : index
    %c0_2 = arith.constant 0 : index
    %0 = vector.load %arg1[%c0, %c0_0, %c0_1, %c0_2] : memref<1x18x24x324xbf16, #tpu.memory_space<vmem>>, vector<1x16x24x324xbf16>
    %1 = vector.shape_cast %0 : vector<1x16x24x324xbf16> to vector<16x24x324xbf16>
    %2 = vector.shape_cast %1 : vector<16x24x324xbf16> to vector<384x324xbf16>
    %c0_3 = arith.constant 0 : index
    %c0_4 = arith.constant 0 : index
    %c0_5 = arith.constant 0 : index
    %3 = vector.load %arg3[%c0_3, %c0_4, %c0_5] : memref<3x324x384xbf16, #tpu.memory_space<vmem>>, vector<1x324x384xbf16>
    %4 = vector.shape_cast %3 : vector<1x324x384xbf16> to vector<324x384xbf16>
    %cst = arith.constant dense<0.000000e+00> : vector<384x384xf32>
    %5 = tpu.matmul %2, %4, %cst {dimension_numbers = #tpu.dot_dimension_numbers<[1], [0], [0], [1], [0, 0, 1, 1], [], []>} : vector<384x324xbf16>, vector<324x384xbf16>, vector<384x384xf32> -> vector<384x384xf32>
    %6 = vector.shape_cast %5 : vector<384x384xf32> to vector<16x24x384xf32>
    %7 = vector.extract_strided_slice %6 {offsets = [0, 0, 0], sizes = [16, 16, 128], strides = [1, 1, 1]} : vector<16x24x384xf32> to vector<16x16x128xf32>
    %8 = vector.extract_strided_slice %6 {offsets = [0, 1, 128], sizes = [16, 16, 128], strides = [1, 1, 1]} : vector<16x24x384xf32> to vector<16x16x128xf32>
    %9 = arith.addf %7, %8 : vector<16x16x128xf32>
    %10 = vector.extract_strided_slice %6 {offsets = [0, 2, 256], sizes = [16, 16, 128], strides = [1, 1, 1]} : vector<16x24x384xf32> to vector<16x16x128xf32>
    %11 = arith.addf %9, %10 : vector<16x16x128xf32>
    %c0_6 = arith.constant 0 : index
    %c1 = arith.constant 1 : index
    %c0_7 = arith.constant 0 : index
    %c0_8 = arith.constant 0 : index
    %12 = vector.load %arg1[%c0_6, %c1, %c0_7, %c0_8] : memref<1x18x24x324xbf16, #tpu.memory_space<vmem>>, vector<1x16x24x324xbf16>
    %13 = vector.shape_cast %12 : vector<1x16x24x324xbf16> to vector<16x24x324xbf16>
    %14 = vector.shape_cast %13 : vector<16x24x324xbf16> to vector<384x324xbf16>
    %c1_9 = arith.constant 1 : index
    %c0_10 = arith.constant 0 : index
    %c0_11 = arith.constant 0 : index
    %15 = vector.load %arg3[%c1_9, %c0_10, %c0_11] : memref<3x324x384xbf16, #tpu.memory_space<vmem>>, vector<1x324x384xbf16>
    %16 = vector.shape_cast %15 : vector<1x324x384xbf16> to vector<324x384xbf16>
    %cst_12 = arith.constant dense<0.000000e+00> : vector<384x384xf32>
    %17 = tpu.matmul %14, %16, %cst_12 {dimension_numbers = #tpu.dot_dimension_numbers<[1], [0], [0], [1], [0, 0, 1, 1], [], []>} : vector<384x324xbf16>, vector<324x384xbf16>, vector<384x384xf32> -> vector<384x384xf32>
    %18 = vector.shape_cast %17 : vector<384x384xf32> to vector<16x24x384xf32>
    %19 = vector.extract_strided_slice %18 {offsets = [0, 0, 0], sizes = [16, 16, 128], strides = [1, 1, 1]} : vector<16x24x384xf32> to vector<16x16x128xf32>
    %20 = arith.addf %11, %19 : vector<16x16x128xf32>
    %21 = vector.extract_strided_slice %18 {offsets = [0, 1, 128], sizes = [16, 16, 128], strides = [1, 1, 1]} : vector<16x24x384xf32> to vector<16x16x128xf32>
    %22 = arith.addf %20, %21 : vector<16x16x128xf32>
    %23 = vector.extract_strided_slice %18 {offsets = [0, 2, 256], sizes = [16, 16, 128], strides = [1, 1, 1]} : vector<16x24x384xf32> to vector<16x16x128xf32>
    %24 = arith.addf %22, %23 : vector<16x16x128xf32>
    %c0_13 = arith.constant 0 : index
    %c2 = arith.constant 2 : index
    %c0_14 = arith.constant 0 : index
    %c0_15 = arith.constant 0 : index
    %25 = vector.load %arg1[%c0_13, %c2, %c0_14, %c0_15] : memref<1x18x24x324xbf16, #tpu.memory_space<vmem>>, vector<1x16x24x324xbf16>
    %26 = vector.shape_cast %25 : vector<1x16x24x324xbf16> to vector<16x24x324xbf16>
    %27 = vector.shape_cast %26 : vector<16x24x324xbf16> to vector<384x324xbf16>
    %c2_16 = arith.constant 2 : index
    %c0_17 = arith.constant 0 : index
    %c0_18 = arith.constant 0 : index
    %28 = vector.load %arg3[%c2_16, %c0_17, %c0_18] : memref<3x324x384xbf16, #tpu.memory_space<vmem>>, vector<1x324x384xbf16>
    %29 = vector.shape_cast %28 : vector<1x324x384xbf16> to vector<324x384xbf16>
    %cst_19 = arith.constant dense<0.000000e+00> : vector<384x384xf32>
    %30 = tpu.matmul %27, %29, %cst_19 {dimension_numbers = #tpu.dot_dimension_numbers<[1], [0], [0], [1], [0, 0, 1, 1], [], []>} : vector<384x324xbf16>, vector<324x384xbf16>, vector<384x384xf32> -> vector<384x384xf32>
    %31 = vector.shape_cast %30 : vector<384x384xf32> to vector<16x24x384xf32>
    %32 = vector.extract_strided_slice %31 {offsets = [0, 0, 0], sizes = [16, 16, 128], strides = [1, 1, 1]} : vector<16x24x384xf32> to vector<16x16x128xf32>
    %33 = arith.addf %24, %32 : vector<16x16x128xf32>
    %34 = vector.extract_strided_slice %31 {offsets = [0, 1, 128], sizes = [16, 16, 128], strides = [1, 1, 1]} : vector<16x24x384xf32> to vector<16x16x128xf32>
    %35 = arith.addf %33, %34 : vector<16x16x128xf32>
    %36 = vector.extract_strided_slice %31 {offsets = [0, 2, 256], sizes = [16, 16, 128], strides = [1, 1, 1]} : vector<16x24x384xf32> to vector<16x16x128xf32>
    %37 = arith.addf %35, %36 : vector<16x16x128xf32>
    %38 = vector.shape_cast %37 : vector<16x16x128xf32> to vector<256x128xf32>
    %c0_20 = arith.constant 0 : index
    %c0_21 = arith.constant 0 : index
    %39 = vector.load %arg4[%c0_20, %c0_21] : memref<1x128xf32, #tpu.memory_space<vmem>>, vector<1x128xf32>
    %40 = vector.broadcast %39 : vector<1x128xf32> to vector<256x128xf32>
    %41 = arith.addf %38, %40 : vector<256x128xf32>
    %cst_22 = arith.constant 0.000000e+00 : f32
    %42 = vector.broadcast %cst_22 : f32 to vector<256x128xf32>
    %43 = arith.maximumf %41, %42 : vector<256x128xf32>
    %44 = arith.truncf %43 : vector<256x128xf32> to vector<256x128xbf16>
    %c0_23 = arith.constant 0 : index
    %c0_24 = arith.constant 0 : index
    %45 = vector.load %arg5[%c0_23, %c0_24] : memref<128x128xbf16, #tpu.memory_space<vmem>>, vector<128x128xbf16>
    %cst_25 = arith.constant dense<0.000000e+00> : vector<256x128xf32>
    %46 = tpu.matmul %44, %45, %cst_25 {dimension_numbers = #tpu.dot_dimension_numbers<[1], [0], [0], [1], [0, 0, 1, 1], [], []>} : vector<256x128xbf16>, vector<128x128xbf16>, vector<256x128xf32> -> vector<256x128xf32>
    %c0_26 = arith.constant 0 : index
    %c0_27 = arith.constant 0 : index
    %47 = vector.load %arg6[%c0_26, %c0_27] : memref<1x128xf32, #tpu.memory_space<vmem>>, vector<1x128xf32>
    %48 = vector.broadcast %47 : vector<1x128xf32> to vector<256x128xf32>
    %49 = arith.addf %46, %48 : vector<256x128xf32>
    %cst_28 = arith.constant 0.000000e+00 : f32
    %50 = vector.broadcast %cst_28 : f32 to vector<256x128xf32>
    %51 = arith.maximumf %49, %50 : vector<256x128xf32>
    %52 = arith.truncf %51 : vector<256x128xf32> to vector<256x128xbf16>
    %c0_29 = arith.constant 0 : index
    %c0_30 = arith.constant 0 : index
    %53 = vector.load %arg7[%c0_29, %c0_30] : memref<128x144xbf16, #tpu.memory_space<vmem>>, vector<128x144xbf16>
    %cst_31 = arith.constant dense<0.000000e+00> : vector<256x144xf32>
    %54 = tpu.matmul %52, %53, %cst_31 {dimension_numbers = #tpu.dot_dimension_numbers<[1], [0], [0], [1], [0, 0, 1, 1], [], []>} : vector<256x128xbf16>, vector<128x144xbf16>, vector<256x144xf32> -> vector<256x144xf32>
    %55 = vector.shape_cast %54 : vector<256x144xf32> to vector<16x16x144xf32>
    %cst_32 = arith.constant 0.000000e+00 : f32
    %56 = vector.broadcast %cst_32 : f32 to vector<18x18x128xf32>
    %c0_33 = arith.constant 0 : index
    %c0_34 = arith.constant 0 : index
    %c0_35 = arith.constant 0 : index
    %57 = vector.load %arg10[%c0_33, %c0_34, %c0_35] : memref<18x18x128xf32, #tpu.memory_space<vmem>>, vector<18x18x128xf32>
    tpu.vector_store %arg10[%c0_33, %c0_34, %c0_35], %56 {strides = array<i32>} : memref<18x18x128xf32, #tpu.memory_space<vmem>>, vector<18x18x128xf32>,
    %c2_36 = arith.constant 2 : index
    %c2_37 = arith.constant 2 : index
    %c0_38 = arith.constant 0 : index
    %58 = vector.load %arg10[%c2_36, %c2_37, %c0_38] : memref<18x18x128xf32, #tpu.memory_space<vmem>>, vector<16x16x16xf32>
    %59 = vector.extract_strided_slice %55 {offsets = [0, 0, 0], sizes = [16, 16, 16], strides = [1, 1, 1]} : vector<16x16x144xf32> to vector<16x16x16xf32>
    %60 = arith.addf %58, %59 : vector<16x16x16xf32>
    %c2_39 = arith.constant 2 : index
    %c2_40 = arith.constant 2 : index
    %c0_41 = arith.constant 0 : index
    %61 = vector.load %arg10[%c2_39, %c2_40, %c0_41] : memref<18x18x128xf32, #tpu.memory_space<vmem>>, vector<16x16x16xf32>
    tpu.vector_store %arg10[%c2_39, %c2_40, %c0_41], %60 {strides = array<i32>} : memref<18x18x128xf32, #tpu.memory_space<vmem>>, vector<16x16x16xf32>,
    %c2_42 = arith.constant 2 : index
    %c1_43 = arith.constant 1 : index
    %c0_44 = arith.constant 0 : index
    %62 = vector.load %arg10[%c2_42, %c1_43, %c0_44] : memref<18x18x128xf32, #tpu.memory_space<vmem>>, vector<16x16x16xf32>
    %63 = vector.extract_strided_slice %55 {offsets = [0, 0, 16], sizes = [16, 16, 16], strides = [1, 1, 1]} : vector<16x16x144xf32> to vector<16x16x16xf32>
    %64 = arith.addf %62, %63 : vector<16x16x16xf32>
    %c2_45 = arith.constant 2 : index
    %c1_46 = arith.constant 1 : index
    %c0_47 = arith.constant 0 : index
    %65 = vector.load %arg10[%c2_45, %c1_46, %c0_47] : memref<18x18x128xf32, #tpu.memory_space<vmem>>, vector<16x16x16xf32>
    tpu.vector_store %arg10[%c2_45, %c1_46, %c0_47], %64 {strides = array<i32>} : memref<18x18x128xf32, #tpu.memory_space<vmem>>, vector<16x16x16xf32>,
    %c2_48 = arith.constant 2 : index
    %c0_49 = arith.constant 0 : index
    %c0_50 = arith.constant 0 : index
    %66 = vector.load %arg10[%c2_48, %c0_49, %c0_50] : memref<18x18x128xf32, #tpu.memory_space<vmem>>, vector<16x16x16xf32>
    %67 = vector.extract_strided_slice %55 {offsets = [0, 0, 32], sizes = [16, 16, 16], strides = [1, 1, 1]} : vector<16x16x144xf32> to vector<16x16x16xf32>
    %68 = arith.addf %66, %67 : vector<16x16x16xf32>
    %c2_51 = arith.constant 2 : index
    %c0_52 = arith.constant 0 : index
    %c0_53 = arith.constant 0 : index
    %69 = vector.load %arg10[%c2_51, %c0_52, %c0_53] : memref<18x18x128xf32, #tpu.memory_space<vmem>>, vector<16x16x16xf32>
    tpu.vector_store %arg10[%c2_51, %c0_52, %c0_53], %68 {strides = array<i32>} : memref<18x18x128xf32, #tpu.memory_space<vmem>>, vector<16x16x16xf32>,
    %c1_54 = arith.constant 1 : index
    %c2_55 = arith.constant 2 : index
    %c0_56 = arith.constant 0 : index
    %70 = vector.load %arg10[%c1_54, %c2_55, %c0_56] : memref<18x18x128xf32, #tpu.memory_space<vmem>>, vector<16x16x16xf32>
    %71 = vector.extract_strided_slice %55 {offsets = [0, 0, 48], sizes = [16, 16, 16], strides = [1, 1, 1]} : vector<16x16x144xf32> to vector<16x16x16xf32>
    %72 = arith.addf %70, %71 : vector<16x16x16xf32>
    %c1_57 = arith.constant 1 : index
    %c2_58 = arith.constant 2 : index
    %c0_59 = arith.constant 0 : index
    %73 = vector.load %arg10[%c1_57, %c2_58, %c0_59] : memref<18x18x128xf32, #tpu.memory_space<vmem>>, vector<16x16x16xf32>
    tpu.vector_store %arg10[%c1_57, %c2_58, %c0_59], %72 {strides = array<i32>} : memref<18x18x128xf32, #tpu.memory_space<vmem>>, vector<16x16x16xf32>,
    %c1_60 = arith.constant 1 : index
    %c1_61 = arith.constant 1 : index
    %c0_62 = arith.constant 0 : index
    %74 = vector.load %arg10[%c1_60, %c1_61, %c0_62] : memref<18x18x128xf32, #tpu.memory_space<vmem>>, vector<16x16x16xf32>
    %75 = vector.extract_strided_slice %55 {offsets = [0, 0, 64], sizes = [16, 16, 16], strides = [1, 1, 1]} : vector<16x16x144xf32> to vector<16x16x16xf32>
    %76 = arith.addf %74, %75 : vector<16x16x16xf32>
    %c1_63 = arith.constant 1 : index
    %c1_64 = arith.constant 1 : index
    %c0_65 = arith.constant 0 : index
    %77 = vector.load %arg10[%c1_63, %c1_64, %c0_65] : memref<18x18x128xf32, #tpu.memory_space<vmem>>, vector<16x16x16xf32>
    tpu.vector_store %arg10[%c1_63, %c1_64, %c0_65], %76 {strides = array<i32>} : memref<18x18x128xf32, #tpu.memory_space<vmem>>, vector<16x16x16xf32>,
    %c1_66 = arith.constant 1 : index
    %c0_67 = arith.constant 0 : index
    %c0_68 = arith.constant 0 : index
    %78 = vector.load %arg10[%c1_66, %c0_67, %c0_68] : memref<18x18x128xf32, #tpu.memory_space<vmem>>, vector<16x16x16xf32>
    %79 = vector.extract_strided_slice %55 {offsets = [0, 0, 80], sizes = [16, 16, 16], strides = [1, 1, 1]} : vector<16x16x144xf32> to vector<16x16x16xf32>
    %80 = arith.addf %78, %79 : vector<16x16x16xf32>
    %c1_69 = arith.constant 1 : index
    %c0_70 = arith.constant 0 : index
    %c0_71 = arith.constant 0 : index
    %81 = vector.load %arg10[%c1_69, %c0_70, %c0_71] : memref<18x18x128xf32, #tpu.memory_space<vmem>>, vector<16x16x16xf32>
    tpu.vector_store %arg10[%c1_69, %c0_70, %c0_71], %80 {strides = array<i32>} : memref<18x18x128xf32, #tpu.memory_space<vmem>>, vector<16x16x16xf32>,
    %c0_72 = arith.constant 0 : index
    %c2_73 = arith.constant 2 : index
    %c0_74 = arith.constant 0 : index
    %82 = vector.load %arg10[%c0_72, %c2_73, %c0_74] : memref<18x18x128xf32, #tpu.memory_space<vmem>>, vector<16x16x16xf32>
    %83 = vector.extract_strided_slice %55 {offsets = [0, 0, 96], sizes = [16, 16, 16], strides = [1, 1, 1]} : vector<16x16x144xf32> to vector<16x16x16xf32>
    %84 = arith.addf %82, %83 : vector<16x16x16xf32>
    %c0_75 = arith.constant 0 : index
    %c2_76 = arith.constant 2 : index
    %c0_77 = arith.constant 0 : index
    %85 = vector.load %arg10[%c0_75, %c2_76, %c0_77] : memref<18x18x128xf32, #tpu.memory_space<vmem>>, vector<16x16x16xf32>
    tpu.vector_store %arg10[%c0_75, %c2_76, %c0_77], %84 {strides = array<i32>} : memref<18x18x128xf32, #tpu.memory_space<vmem>>, vector<16x16x16xf32>,
    %c0_78 = arith.constant 0 : index
    %c1_79 = arith.constant 1 : index
    %c0_80 = arith.constant 0 : index
    %86 = vector.load %arg10[%c0_78, %c1_79, %c0_80] : memref<18x18x128xf32, #tpu.memory_space<vmem>>, vector<16x16x16xf32>
    %87 = vector.extract_strided_slice %55 {offsets = [0, 0, 112], sizes = [16, 16, 16], strides = [1, 1, 1]} : vector<16x16x144xf32> to vector<16x16x16xf32>
    %88 = arith.addf %86, %87 : vector<16x16x16xf32>
    %c0_81 = arith.constant 0 : index
    %c1_82 = arith.constant 1 : index
    %c0_83 = arith.constant 0 : index
    %89 = vector.load %arg10[%c0_81, %c1_82, %c0_83] : memref<18x18x128xf32, #tpu.memory_space<vmem>>, vector<16x16x16xf32>
    tpu.vector_store %arg10[%c0_81, %c1_82, %c0_83], %88 {strides = array<i32>} : memref<18x18x128xf32, #tpu.memory_space<vmem>>, vector<16x16x16xf32>,
    %c0_84 = arith.constant 0 : index
    %c0_85 = arith.constant 0 : index
    %c0_86 = arith.constant 0 : index
    %90 = vector.load %arg10[%c0_84, %c0_85, %c0_86] : memref<18x18x128xf32, #tpu.memory_space<vmem>>, vector<16x16x16xf32>
    %91 = vector.extract_strided_slice %55 {offsets = [0, 0, 128], sizes = [16, 16, 16], strides = [1, 1, 1]} : vector<16x16x144xf32> to vector<16x16x16xf32>
    %92 = arith.addf %90, %91 : vector<16x16x16xf32>
    %c0_87 = arith.constant 0 : index
    %c0_88 = arith.constant 0 : index
    %c0_89 = arith.constant 0 : index
    %93 = vector.load %arg10[%c0_87, %c0_88, %c0_89] : memref<18x18x128xf32, #tpu.memory_space<vmem>>, vector<16x16x16xf32>
    tpu.vector_store %arg10[%c0_87, %c0_88, %c0_89], %92 {strides = array<i32>} : memref<18x18x128xf32, #tpu.memory_space<vmem>>, vector<16x16x16xf32>,
    %c1_90 = arith.constant 1 : index
    %c1_91 = arith.constant 1 : index
    %c0_92 = arith.constant 0 : index
    %94 = vector.load %arg10[%c1_90, %c1_91, %c0_92] : memref<18x18x128xf32, #tpu.memory_space<vmem>>, vector<16x16x128xf32>
    %95 = vector.shape_cast %94 : vector<16x16x128xf32> to vector<256x128xf32>
    %c0_93 = arith.constant 0 : index
    %c0_94 = arith.constant 0 : index
    %96 = vector.load %arg8[%c0_93, %c0_94] : memref<1x128xf32, #tpu.memory_space<vmem>>, vector<1x128xf32>
    %97 = vector.broadcast %96 : vector<1x128xf32> to vector<256x128xf32>
    %98 = arith.addf %95, %97 : vector<256x128xf32>
    %99 = tpu.transpose %98, [1, 0] : vector<256x128xf32> -> vector<128x256xf32>
    %c0_95 = arith.constant 0 : index
    %c0_96 = arith.constant 0 : index
    %c0_97 = arith.constant 0 : index
    %100 = vector.load %arg2[%c0_95, %c0_96, %c0_97] : memref<1x4x256xf32, #tpu.memory_space<vmem>>, vector<1x4x256xf32>
    %101 = vector.shape_cast %100 : vector<1x4x256xf32> to vector<4x256xf32>
    %102 = vector.extract_strided_slice %101 {offsets = [0, 0], sizes = [2, 256], strides = [1, 1]} : vector<4x256xf32> to vector<2x256xf32>
    %103 = vector.extract_strided_slice %101 {offsets = [2, 0], sizes = [2, 256], strides = [1, 1]} : vector<4x256xf32> to vector<2x256xf32>
    %104 = vector.extract_strided_slice %99 {offsets = [0, 0], sizes = [2, 256], strides = [1, 1]} : vector<128x256xf32> to vector<2x256xf32>
    %105 = vector.extract_strided_slice %99 {offsets = [2, 0], sizes = [2, 256], strides = [1, 1]} : vector<128x256xf32> to vector<2x256xf32>
    %cst_98 = arith.constant 2.000000e+00 : f32
    %106 = vector.broadcast %cst_98 : f32 to vector<2x256xf32>
    %107 = arith.addf %105, %106 : vector<2x256xf32>
    %cst_99 = arith.constant 0.000000e+00 : f32
    %108 = vector.broadcast %cst_99 : f32 to vector<2x256xf32>
    %109 = arith.subf %108, %107 : vector<2x256xf32>
    %110 = math.exp %109 : vector<2x256xf32>
    %cst_100 = arith.constant 1.000000e+00 : f32
    %111 = vector.broadcast %cst_100 : f32 to vector<2x256xf32>
    %112 = arith.addf %111, %110 : vector<2x256xf32>
    %cst_101 = arith.constant 9.99999974E-5 : f32
    %113 = vector.broadcast %cst_101 : f32 to vector<2x256xf32>
    %114 = arith.mulf %113, %112 : vector<2x256xf32>
    %cst_102 = arith.constant 1.000000e+00 : f32
    %115 = vector.broadcast %cst_102 : f32 to vector<2x256xf32>
    %116 = arith.addf %115, %114 : vector<2x256xf32>
    %117 = tpu.reciprocal %116 : vector<2x256xf32> -> vector<2x256xf32>
    %118 = arith.mulf %112, %117 : vector<2x256xf32>
    %119 = arith.mulf %103, %118 : vector<2x256xf32>
    %120 = arith.subf %119, %104 : vector<2x256xf32>
    %121 = vector.extract_strided_slice %99 {offsets = [4, 0], sizes = [4, 256], strides = [1, 1]} : vector<128x256xf32> to vector<4x256xf32>
    %122 = vector.extract_strided_slice %99 {offsets = [8, 0], sizes = [4, 256], strides = [1, 1]} : vector<128x256xf32> to vector<4x256xf32>
    %cst_103 = arith.constant 2.000000e+00 : f32
    %123 = vector.broadcast %cst_103 : f32 to vector<4x256xf32>
    %124 = arith.addf %122, %123 : vector<4x256xf32>
    %cst_104 = arith.constant 0.000000e+00 : f32
    %125 = vector.broadcast %cst_104 : f32 to vector<4x256xf32>
    %126 = arith.subf %125, %124 : vector<4x256xf32>
    %127 = math.exp %126 : vector<4x256xf32>
    %cst_105 = arith.constant 1.000000e+00 : f32
    %128 = vector.broadcast %cst_105 : f32 to vector<4x256xf32>
    %129 = arith.addf %128, %127 : vector<4x256xf32>
    %cst_106 = arith.constant 9.99999974E-5 : f32
    %130 = vector.broadcast %cst_106 : f32 to vector<4x256xf32>
    %131 = arith.mulf %130, %129 : vector<4x256xf32>
    %cst_107 = arith.constant 1.000000e+00 : f32
    %132 = vector.broadcast %cst_107 : f32 to vector<4x256xf32>
    %133 = arith.addf %132, %131 : vector<4x256xf32>
    %134 = tpu.reciprocal %133 : vector<4x256xf32> -> vector<4x256xf32>
    %135 = arith.mulf %129, %134 : vector<4x256xf32>
    %136 = tpu.concatenate %102, %120 in 0 : vector<2x256xf32>, vector<2x256xf32> -> vector<4x256xf32>
    %137 = arith.mulf %136, %135 : vector<4x256xf32>
    %138 = arith.subf %137, %121 : vector<4x256xf32>
    %c0_108 = arith.constant 0 : index
    %c0_109 = arith.constant 0 : index
    %c0_110 = arith.constant 0 : index
    %139 = vector.load %arg9[%c0_108, %c0_109, %c0_110] : memref<1x4x256xf32, #tpu.memory_space<vmem>>, vector<1x4x256xf32>
    %140 = vector.shape_cast %139 : vector<1x4x256xf32> to vector<4x256xf32>
    %141 = vector.shape_cast %138 : vector<4x256xf32> to vector<1x4x256xf32>
    tpu.vector_store %arg9[%c0_108, %c0_109, %c0_110], %141 {strides = array<i32>} : memref<1x4x256xf32, #tpu.memory_space<vmem>>, vector<1x4x256xf32>,
    return
  }
  func.func @transform_0(%arg0: i32) -> (i32, i32, i32, i32) {
    %c0_i32 = arith.constant 0 : i32
    %c0_i32_0 = arith.constant 0 : i32
    %c0_i32_1 = arith.constant 0 : i32
    %c0_i32_2 = arith.constant 0 : i32
    return %arg0, %c0_i32, %c0_i32_0, %c0_i32_1 : i32, i32, i32, i32
  }
  func.func @transform_1(%arg0: i32) -> (i32, i32, i32) {
    %c0_i32 = arith.constant 0 : i32
    %c0_i32_0 = arith.constant 0 : i32
    %c0_i32_1 = arith.constant 0 : i32
    return %arg0, %c0_i32, %c0_i32_0 : i32, i32, i32
  }
  func.func @transform_2(%arg0: i32) -> (i32, i32, i32) {
    %c0_i32 = arith.constant 0 : i32
    %c0_i32_0 = arith.constant 0 : i32
    %c0_i32_1 = arith.constant 0 : i32
    %c0_i32_2 = arith.constant 0 : i32
    return %c0_i32, %c0_i32_0, %c0_i32_1 : i32, i32, i32
  }
  func.func @transform_3(%arg0: i32) -> (i32, i32) {
    %c0_i32 = arith.constant 0 : i32
    %c0_i32_0 = arith.constant 0 : i32
    %c0_i32_1 = arith.constant 0 : i32
    return %c0_i32, %c0_i32_0 : i32, i32
  }
  func.func @transform_4(%arg0: i32) -> (i32, i32) {
    %c0_i32 = arith.constant 0 : i32
    %c0_i32_0 = arith.constant 0 : i32
    %c0_i32_1 = arith.constant 0 : i32
    return %c0_i32, %c0_i32_0 : i32, i32
  }
  func.func @transform_5(%arg0: i32) -> (i32, i32) {
    %c0_i32 = arith.constant 0 : i32
    %c0_i32_0 = arith.constant 0 : i32
    %c0_i32_1 = arith.constant 0 : i32
    return %c0_i32, %c0_i32_0 : i32, i32
  }
  func.func @transform_6(%arg0: i32) -> (i32, i32) {
    %c0_i32 = arith.constant 0 : i32
    %c0_i32_0 = arith.constant 0 : i32
    %c0_i32_1 = arith.constant 0 : i32
    return %c0_i32, %c0_i32_0 : i32, i32
  }
  func.func @transform_7(%arg0: i32) -> (i32, i32) {
    %c0_i32 = arith.constant 0 : i32
    %c0_i32_0 = arith.constant 0 : i32
    %c0_i32_1 = arith.constant 0 : i32
    return %c0_i32, %c0_i32_0 : i32, i32
  }
  func.func @transform_8(%arg0: i32) -> (i32, i32, i32) {
    %c0_i32 = arith.constant 0 : i32
    %c0_i32_0 = arith.constant 0 : i32
    %c0_i32_1 = arith.constant 0 : i32
    return %arg0, %c0_i32, %c0_i32_0 : i32, i32, i32
  }
}

</mosaic_0001>

<bundles_post_ra>
// kernel: cond_affine_forward.1
= control target key start
LH: loop header
LB: loop body
LE: loop exit
PB: predicated region body
PF: predicated region fallthrough
CT: control target
= control target key end

     0   :  { %s11913_s27 = smov 0   ;;  %s16544_s0 = inlined_call_operand.vmem [shape: bf16[2,18,24,324], index: 0, kind: input, shape index: {}]   ;;  %s16545_s1 = inlined_call_operand.vmem [shape: f32[2,4,256], index: 1, kind: input, shape index: {}]   ;;  %s16546_s2 = inlined_call_operand.vmem [shape: bf16[3,324,384], index: 2, kind: input, shape index: {}]   ;;  %s16547_s3 = inlined_call_operand.vmem [shape: f32[1,128], index: 3, kind: input, shape index: {}]   ;;  %s16548_s4 = inlined_call_operand.vmem [shape: bf16[128,128], index: 4, kind: input, shape index: {}]   ;;  %s16549_s5 = inlined_call_operand.vmem [shape: f32[1,128], index: 5, kind: input, shape index: {}]   ;;  %s16550_s6 = inlined_call_operand.vmem [shape: bf16[128,144], index: 6, kind: input, shape index: {}]   ;;  %s16551_s7 = inlined_call_operand.vmem [shape: f32[1,128], index: 7, kind: input, shape index: {}]   ;;  %s16552_s8 = inlined_call_operand.vmem [shape: f32[2,4,256], index: 8, kind: output, shape index: {}]  }
   0x1 LB: > { %s9836_s28 = sadd.s32 4294967295, %s11857_s27   ;;  %p9840_p0 = scmp.ge.s32.totalorder %s11857_s27, 1  ;;  %s11857_s27 = sphi %s11913_s27, %s18_s27  }
   0x2   : > { %p272_p1 = scmp.lt.s32.totalorder %s11857_s27, 3 }
   0x4   : > { %p273_p2 = pnand %p9840_p0, %p272_p1 }
   0x6   : > { %276 = sbr.rel (%p273_p2) target bundleno = 2367 (0x93f), region = 52 }
   0xb   : > { %v11149_v0 = vld [vmem:[%s16546_s2 + $0xac] ss:$12 sps:$4 sm:$0xff]   ;;  %v11151_v1 = vld [vmem:[%s16546_s2 + $0xa8] ss:$12 sps:$4 sm:$0xff]   ;;  %v16553_v3 = vmov 0   ;;  %p311_p3 = scmp.lt.s32.totalorder %s9836_s28, 1 }
   0xc   : > { %1276 = vmatprep.subr.bf16.mxu0 %v11149_v0  ;;  %v11152_v2 = vld [vmem:[%s16546_s2 + $0x94] ss:$12 sps:$4 sm:$0xff]   ;;  %1631 = vmatprep.mubr.bf16.mxu1 %v16553_v3  ;;  %v11154_v4 = vld [vmem:[%s16546_s2 + $0x90] ss:$12 sps:$4 sm:$0xff]   ;;  %v11157_v6 = vld [vmem:[%s16546_s2 + $0x78] ss:$12 sps:$4 sm:$0xff]  }
   0xd   : > { %1277 = vmatpush1.bf16.msra.mxu0 %v11151_v1  ;;  %v11155_v5 = vld [vmem:[%s16546_s2 + $0x7c] ss:$12 sps:$4 sm:$0xff]   ;;  %v11158_v7 = vld [vmem:[%s16546_s2 + $0x64] ss:$12 sps:$4 sm:$0xff]   ;;  %v11160_v8 = vld [vmem:[%s16546_s2 + $0x60] ss:$12 sps:$4 sm:$0xff]  }
   0xe   : > { %1278 = vmatprep.subr.bf16.mxu0 %v11152_v2  ;;  %v11161_v9 = vld [vmem:[%s16546_s2 + $0x4c] ss:$12 sps:$4 sm:$0xff]   ;;  %s16953_s28 = smov (!%p311_p3, %s9836_s28), 1  ;;  %v11163_v10 = vld [vmem:[%s16546_s2 + $0x48] ss:$12 sps:$4 sm:$0xff]   ;;  %vm1266_vm0 = vcmask 1041408  }
   0xf   : > { %v11164_v11 = vld [vmem:[%s16546_s2 + $0x34] ss:$12 sps:$4 sm:$0xff]   ;;  %s11131_s9 = smul.u32 648, %s16953_s28  ;;  %v11166_v12 = vld [vmem:[%s16546_s2 + $0x30] ss:$12 sps:$4 sm:$0xff]   ;;  %vm1193_vm1 = vcmask 556032  }
  0x10   : > { %v11167_v13 = vld [vmem:[%s16546_s2 + $0x1c] ss:$12 sps:$4 sm:$0xff]   ;;  %v503_v14 = vld [vmem:[%s16546_s2 + $0x1e0] sm:$0x33]  ;;  %v11980_v18 = vld [vmem:[%s16546_s2 + $0x1cc] ss:$12 sps:$4 sm:$0xff]  }
  0x11   : > { %1279 = vmatpush1.bf16.msra.mxu0 %v11154_v4  ;;  %s11970_s18 = scalar_lea.vmem %s16544_s0, %s11131_s9  ;;  %v11169_v15 = vld [vmem:[%s16546_s2 + $0x18] ss:$12 sps:$4 sm:$0xff]   ;;  %v11975_v16 = vcombine.high %v503_v14, %v503_v14  ;;  %v9978_v17 = vcombine.low %v503_v14, %v503_v14  ;;  %v11995_v22 = vld [vmem:[%s16546_s2 + $0x1c8] ss:$12 sps:$4 sm:$0xff]   ;;  %v11172_v24 = vld [vmem:[%s16546_s2] ss:$12 sps:$4 sm:$0xff]  }
  0x12   : > { %1280 = vmatprep.subr.bf16.mxu0 %v11155_v5  ;;  %v11170_v19 = vld [vmem:[%s16546_s2 + $0x4] ss:$12 sps:$4 sm:$0xff]   ;;  %v12001_v23 = vld [vmem:[%s16546_s2 + $0x1b4] ss:$12 sps:$4 sm:$0xff]   ;;  %v11173_v25 = vld [vmem:[%s16546_s2 + $0x16c] ss:$12 sps:$4 sm:$0xff]  }
  0x13   : > { %11118 = vmatprep.subr.msk.bf16.mxu1 %vm1266_vm0, %v11975_v16  ;;  %v11988_v20 = vsel %vm1266_vm0, %v9978_v17, 0  ;;  %v11203_v21 = vld [vmem:[%s11970_s18 + $0x4] ss:$12 sps:$4 sm:$0xff]   ;;  %v12019_v27 = vld [vmem:[%s16546_s2 + $0x19c] ss:$12 sps:$4 sm:$0xff]   ;;  %vm2288_vm2 = vcmask 1046528  }
  0x14   : > { %11123 = vmatpush1.bf16.msra.mxu1 %v11988_v20  ;;  %1308 = vmatprep.mubr.bf16.mxu0 %v11203_v21  ;;  %v12013_v26 = vld [vmem:[%s16546_s2 + $0x1b0] ss:$12 sps:$4 sm:$0xff]   ;;  %v11175_v28 = vld [vmem:[%s16546_s2 + $0x168] ss:$12 sps:$4 sm:$0xff]   ;;  %v12031_v30 = vld [vmem:[%s16546_s2 + $0x198] ss:$12 sps:$4 sm:$0xff]  }
  0x15   : > { %1281 = vmatpush1.bf16.msra.mxu0 %v11157_v6  ;;  %11119 = vmatprep.subr.bf16.mxu1 %v11980_v18  ;;  %v11176_v29 = vld [vmem:[%s16546_s2 + $0x154] ss:$12 sps:$4 sm:$0xff]   ;;  %v12037_v31 = vld [vmem:[%s16546_s2 + $0x184] ss:$12 sps:$4 sm:$0xff]   ;;  %v11179_v33 = vld [vmem:[%s16546_s2 + $0x13c] ss:$12 sps:$4 sm:$0xff]  }
  0x16   : > { %1282 = vmatprep.subr.bf16.mxu0 %v11158_v7  ;;  %v11178_v32 = vld [vmem:[%s16546_s2 + $0x150] ss:$12 sps:$4 sm:$0xff]   ;;  %v12049_v34 = vld [vmem:[%s16546_s2 + $0x180] ss:$12 sps:$4 sm:$0xff]   ;;  %v11181_v35 = vld [vmem:[%s16546_s2 + $0x138] ss:$12 sps:$4 sm:$0xff]  }
  0x17   : > { %v11217_v36 = vld [vmem:[%s11970_s18 + $0xb0] ss:$12 sps:$4 sm:$0xff]   ;;  %v11184_v38 = vld [vmem:[%s16546_s2 + $0x120] ss:$12 sps:$4 sm:$0xff]   ;;  %v11187_v40 = vld [vmem:[%s16546_s2 + $0x108] ss:$12 sps:$4 sm:$0xff]  }
  0x18   : > { %11124 = vmatpush1.bf16.msra.mxu1 %v11995_v22  ;;  %v11182_v37 = vld [vmem:[%s16546_s2 + $0x124] ss:$12 sps:$4 sm:$0xff]   ;;  %v11185_v39 = vld [vmem:[%s16546_s2 + $0x10c] ss:$12 sps:$4 sm:$0xff]   ;;  %v11221_v41 = vld [vmem:[%s11970_s18 + $0xc8] ss:$12 sps:$4 sm:$0xff]  }
  0x19   : > { %1283 = vmatpush1.bf16.msra.mxu0 %v11160_v8  ;;  %11120 = vmatprep.subr.bf16.mxu1 %v12001_v23  ;;  %v11188_v42 = vld [vmem:[%s16546_s2 + $0xf4] ss:$12 sps:$4 sm:$0xff]   ;;  %v11190_v43 = vld [vmem:[%s16546_s2 + $0xf0] ss:$12 sps:$4 sm:$0xff]   ;;  %v11193_v46 = vld [vmem:[%s16546_s2 + $0xd8] ss:$12 sps:$4 sm:$0xff]  }
  0x1a   : > { %1284 = vmatprep.subr.bf16.mxu0 %v11161_v9  ;;  %v11191_v44 = vld [vmem:[%s16546_s2 + $0xdc] ss:$12 sps:$4 sm:$0xff]   ;;  %v11225_v47 = vld [vmem:[%s11970_s18 + $0xe0] ss:$12 sps:$4 sm:$0xff]   ;;  %v11196_v48 = vld [vmem:[%s16546_s2 + $0xc4] ss:$12 sps:$4 sm:$0xff]  }
  0x1b   : > { %v11256_v45 = vld [vmem:[%s16546_s2 + $0xb0] ss:$12 sps:$4 sm:$0xff]   ;;  %v11258_v49 = vld [vmem:[%s16546_s2 + $0x98] ss:$12 sps:$4 sm:$0xff]   ;;  %v11198_v50 = vld [vmem:[%s16546_s2 + $0xc0] ss:$12 sps:$4 sm:$0xff]  }
  0x1c   : > { %11125 = vmatpush1.bf16.msra.mxu1 %v12013_v26  ;;  %v11262_v51 = vld [vmem:[%s16546_s2 + $0x80] ss:$12 sps:$4 sm:$0xff]   ;;  %v12111_v53 = vld [vmem:[%s11970_s18 + $0x1c] ss:$12 sps:$4 sm:$0xff]   ;;  %v11229_v54 = vld [vmem:[%s11970_s18 + $0xf8] ss:$12 sps:$4 sm:$0xff]  }
  0x1d   : > { %1285 = vmatpush1.bf16.msra.mxu0 %v11163_v10  ;;  %11121 = vmatprep.subr.bf16.mxu1 %v12019_v27  ;;  %v12107_v52 = vld [vmem:[%s11970_s18] ss:$12 sps:$4 sm:$0xff]   ;;  %v11264_v55 = vld [vmem:[%s16546_s2 + $0x68] ss:$12 sps:$4 sm:$0xff]   ;;  %v11268_v56 = vld [vmem:[%s16546_s2 + $0x50] ss:$12 sps:$4 sm:$0xff]  }
  0x1e   : > { %1286 = vmatprep.subr.bf16.mxu0 %v11164_v11  ;;  %v12130_v57 = vld [vmem:[%s11970_s18 + $0x18] ss:$12 sps:$4 sm:$0xff]   ;;  %v12134_v58 = vld [vmem:[%s11970_s18 + $0x34] ss:$12 sps:$4 sm:$0xff]   ;;  %v11233_v59 = vld [vmem:[%s11970_s18 + $0x110] ss:$12 sps:$4 sm:$0xff]  }
  0x1f   : > { %v11270_v60 = vld [vmem:[%s16546_s2 + $0x38] ss:$12 sps:$4 sm:$0xff]   ;;  %v11274_v61 = vld [vmem:[%s16546_s2 + $0x20] ss:$12 sps:$4 sm:$0xff]   ;;  %v12153_v62 = vld [vmem:[%s11970_s18 + $0x30] ss:$12 sps:$4 sm:$0xff]  }
  0x20   : > { %11126 = vmatpush1.bf16.msra.mxu1 %v12031_v30  ;;  %v12157_v63 = vld [vmem:[%s11970_s18 + $0x4c] ss:$12 sps:$4 sm:$0xff]   ;;  %v11237_v0 = vld [vmem:[%s11970_s18 + $0x128] ss:$12 sps:$4 sm:$0xff]   ;;  %v11280_v4 = vld [vmem:[%s16546_s2 + $0x170] ss:$12 sps:$4 sm:$0xff]  }
  0x21   : > { %1287 = vmatpush1.bf16.msra.mxu0 %v11166_v12  ;;  %11122 = vmatprep.subr.bf16.mxu1 %v12037_v31  ;;  %v11276_v1 = vld [vmem:[%s16546_s2 + $0x8] ss:$12 sps:$4 sm:$0xff]   ;;  %v12178_v5 = vld [vmem:[%s11970_s18 + $0x64] ss:$12 sps:$4 sm:$0xff]   ;;  %v11241_v6 = vld [vmem:[%s11970_s18 + $0x140] ss:$12 sps:$4 sm:$0xff]  }
  0x22   : > { %1288 = vmatprep.subr.bf16.mxu0 %v11167_v13  ;;  %v12170_v2 = vld [vmem:[%s11970_s18 + $0x48] ss:$12 sps:$4 sm:$0xff]   ;;  %v11282_v7 = vld [vmem:[%s16546_s2 + $0x158] ss:$12 sps:$4 sm:$0xff]   ;;  %v11286_v8 = vld [vmem:[%s16546_s2 + $0x140] ss:$12 sps:$4 sm:$0xff]  }
  0x23   : > { %v12192_v9 = vld [vmem:[%s11970_s18 + $0x60] ss:$12 sps:$4 sm:$0xff]   ;;  %v12196_v10 = vld [vmem:[%s11970_s18 + $0x7c] ss:$12 sps:$4 sm:$0xff]   ;;  %v11245_v11 = vld [vmem:[%s11970_s18 + $0x158] ss:$12 sps:$4 sm:$0xff]  }
  0x24   : > { %11127 = vmatpush1.bf16.msra.mxu1 %v12049_v34  ;;  %v11288_v12 = vld [vmem:[%s16546_s2 + $0x128] ss:$12 sps:$4 sm:$0xff]   ;;  %v11292_v13 = vld [vmem:[%s16546_s2 + $0x110] ss:$12 sps:$4 sm:$0xff]   ;;  %v12211_v14 = vld [vmem:[%s11970_s18 + $0x78] ss:$12 sps:$4 sm:$0xff]  }
  0x25   : > { %1289 = vmatpush1.bf16.msra.mxu0 %v11169_v15  ;;  %1790 = vmatprep.subr.bf16.mxu1 %v16553_v3  ;;  %v12215_v15 = vld [vmem:[%s11970_s18 + $0x94] ss:$12 sps:$4 sm:$0xff]   ;;  %v11294_v17 = vld [vmem:[%s16546_s2 + $0xf8] ss:$12 sps:$4 sm:$0xff]   ;;  %vm2481_vm3 = vcmask 1045504   ;;  %vm8059_vm4 = vcmask 130048  }
  0x26   : > { %1290 = vmatprep.subr.bf16.mxu0 %v11170_v19  ;;  %v12230_v19 = vld [vmem:[%s11970_s18 + $0x90] ss:$12 sps:$4 sm:$0xff]   ;;  %v11253_v21 = vld [vmem:[%s11970_s18 + $0x188] ss:$12 sps:$4 sm:$0xff]   ;;  %s11861_s12 = smov 112   ;;  %s11862_s13 = smov 96  }
  0x27   : > { %9989 = vmatmul.mubr.msk.bf16.vlgmr.msra.gmra.mxu1 %vm1193_vm1, %v11217_v36  ;;  %v12297_v36 = vld [vmem:[%s11970_s18 + $0x108] ss:$12 sps:$4 sm:$0xff]   ;;  %s11863_s14 = smov 80   ;;  %s11864_s15 = smov 64  }
  0x28   : > { %1640 = vmatprep.mubr.bf16.mxu1 %v16553_v3  ;;  %1791 = vmatpush1.bf16.msra.mxu1 %v11256_v45  ;;  %v12330_v45 = vld [vmem:[%s11970_s18 + $0x150] ss:$12 sps:$4 sm:$0xff]   ;;  %s11865_s16 = smov 48   ;;  %s11866_s17 = smov 32  }
  0x29   : > { %1291 = vmatpush1.bf16.msra.mxu0 %v11172_v24  ;;  %1792 = vmatprep.subr.bf16.mxu1 %v16553_v3  ;;  %v12250_v24 = vld [vmem:[%s11970_s18 + $0xc4] ss:$12 sps:$4 sm:$0xff]   ;;  %s11867_s19 = smov 16   ;;  %s10783_s22 = sshll.u32 %s16953_s28, 3 }
  0x2a   : > { %1292 = vmatprep.subr.bf16.mxu0 %v11173_v25  ;;  %v11259_v25 = vld [vmem:[%s11970_s18 + $0x1a0] ss:$12 sps:$4 sm:$0xff]   ;;  %s320_s24 = scalar_lea.vmem %s16545_s1, %s10783_s22  ;;  %s325_s26 = scalar_lea.vmem %s16552_s8, %s10783_s22 }
  0x2c   : > { %1793 = vmatpush1.bf16.msra.mxu1 %v11258_v49  ;;  %v10206_v49 = vld [vmem:[%s16546_s2 + $0x3cc] sm:$0x33] }
  0x2d   : > { %1293 = vmatpush2.bf16.msra.mxu0 %v11175_v28  ;;  %1794 = vmatprep.subr.bf16.mxu1 %v16553_v3  ;;  %v11265_v28 = vld [vmem:[%s11970_s18 + $0x1b8] ss:$12 sps:$4 sm:$0xff]  }
  0x2e   : > { %1294 = vmatprep.subr.bf16.mxu0 %v11176_v29  ;;  %v12269_v29 = vld [vmem:[%s16546_s2 + $0x1e8] ss:$0 sps:$4 sm:$0x33]  }
  0x2f   : > { %9990 = vmatmul.mubr.msk.bf16.gmra.mxu1 %vm1193_vm1, %v11221_v41  ;;  %v11289_v41 = vld [vmem:[%s11970_s18 + $0x218] ss:$12 sps:$4 sm:$0xff]  }
  0x30   : > { %1649 = vmatprep.mubr.bf16.mxu1 %v16553_v3  ;;  %1795 = vmatpush1.bf16.msra.mxu1 %v11262_v51  ;;  %v10341_v51 = vcombine.high %v10206_v49, %v10206_v49 }
  0x31   : > { %1295 = vmatpush2.bf16.msra.mxu0 %v11178_v32  ;;  %1796 = vmatprep.subr.bf16.mxu1 %v16553_v3  ;;  %v11271_v32 = vld [vmem:[%s11970_s18 + $0x1d0] ss:$12 sps:$4 sm:$0xff]  }
  0x32   : > { %1296 = vmatprep.subr.bf16.mxu0 %v11179_v33  ;;  %v12286_v33 = vld [vmem:[%s11970_s18 + $0xf0] ss:$12 sps:$4 sm:$0xff]  }
  0x34   : > { %1797 = vmatpush1.bf16.msra.mxu1 %v11264_v55 }
  0x35   : > { %1297 = vmatpush2.bf16.msra.mxu0 %v11181_v35  ;;  %1798 = vmatprep.subr.bf16.mxu1 %v16553_v3  ;;  %v11277_v35 = vld [vmem:[%s11970_s18 + $0x1e8] ss:$12 sps:$4 sm:$0xff]  }
  0x36   : > { %1298 = vmatprep.subr.bf16.mxu0 %v11182_v37  ;;  %v12301_v37 = vld [vmem:[%s11970_s18 + $0x124] ss:$12 sps:$4 sm:$0xff]  }
  0x37   : > { %9991 = vmatmul.mubr.msk.bf16.gmra.mxu1 %vm1193_vm1, %v11225_v47  ;;  %v12335_v47 = vld [vmem:[%s11970_s18 + $0x16c] ss:$12 sps:$4 sm:$0xff]  }
  0x38   : > { %1659 = vmatprep.mubr.bf16.mxu1 %v16553_v3  ;;  %1799 = vmatpush1.bf16.msra.mxu1 %v11268_v56  ;;  %v12359_v56 = vld [vmem:[%s11970_s18 + $0x19c] ss:$12 sps:$4 sm:$0xff]  }
  0x39   : > { %1299 = vmatpush2.bf16.msra.mxu0 %v11184_v38  ;;  %1800 = vmatprep.subr.bf16.mxu1 %v16553_v3  ;;  %v11283_v38 = vld [vmem:[%s11970_s18 + $0x200] ss:$12 sps:$4 sm:$0xff]  }
  0x3a   : > { %1300 = vmatprep.subr.bf16.mxu0 %v11185_v39  ;;  %v12308_v39 = vld [vmem:[%s11970_s18 + $0x120] ss:$12 sps:$4 sm:$0xff]  }
  0x3c   : > { %1801 = vmatpush1.bf16.msra.mxu1 %v11270_v60  ;;  %v12386_v60 = vld [vmem:[%s11970_s18 + $0x1c8] ss:$12 sps:$4 sm:$0xff]  }
  0x3d   : > { %1301 = vmatpush2.bf16.msra.mxu0 %v11187_v40  ;;  %1802 = vmatprep.subr.bf16.mxu1 %v16553_v3  ;;  %v12312_v40 = vld [vmem:[%s11970_s18 + $0x13c] ss:$12 sps:$4 sm:$0xff]  }
  0x3e   : > { %1302 = vmatprep.subr.bf16.mxu0 %v11188_v42  ;;  %v12319_v42 = vld [vmem:[%s11970_s18 + $0x138] ss:$12 sps:$4 sm:$0xff]  }
  0x3f   : > { %9992 = vmatmul.mubr.msk.bf16.gmra.mxu1 %vm1193_vm1, %v11229_v54  ;;  %v10340_v54 = vcombine.low %v10206_v49, %v10206_v49 }
  0x40   : > { %1668 = vmatprep.mubr.bf16.mxu1 %v16553_v3  ;;  %1803 = vmatpush1.bf16.msra.mxu1 %v11274_v61  ;;  %v12389_v61 = vld [vmem:[%s11970_s18 + $0x1e4] ss:$12 sps:$4 sm:$0xff]  }
  0x41   : > { %1303 = vmatpush2.bf16.msra.mxu0 %v11190_v43  ;;  %1804 = vmatprep.subr.bf16.mxu1 %v16553_v3  ;;  %v12323_v43 = vld [vmem:[%s11970_s18 + $0x154] ss:$12 sps:$4 sm:$0xff]   ;;  %v3567_v55 = vsel %vm1266_vm0, %v10340_v54, 0 }
  0x42   : > { %1304 = vmatprep.subr.bf16.mxu0 %v11191_v44  ;;  %v11295_v44 = vld [vmem:[%s11970_s18 + $0x230] ss:$12 sps:$4 sm:$0xff]  }
  0x44   : > { %1805 = vmatpush1.bf16.msra.mxu1 %v11276_v1  ;;  %v12405_v1 = vld [vmem:[%s11970_s18 + $0x1fc] ss:$12 sps:$4 sm:$0xff]  }
  0x45   : > { %1305 = vmatpush2.bf16.msra.mxu0 %v11193_v46  ;;  %1806 = vmatprep.subr.bf16.mxu1 %v16553_v3  ;;  %v11735_v46 = vld [vmem:[%s11970_s18 + $0x4] ss:$12 sps:$4 sm:$0xff]  }
  0x46   : > { %1306 = vmatprep.subr.bf16.mxu0 %v11196_v48  ;;  %v12340_v48 = vld [vmem:[%s11970_s18 + $0x168] ss:$12 sps:$4 sm:$0xff]  }
  0x47   : > { %9993 = vmatmul.mubr.msk.bf16.gmra.mxu1 %vm1193_vm1, %v11233_v59  ;;  %v12369_v59 = vld [vmem:[%s11970_s18 + $0x1b4] ss:$12 sps:$4 sm:$0xff]  }
  0x48   : > { %1677 = vmatprep.mubr.bf16.mxu1 %v16553_v3  ;;  %1807 = vmatpush2.bf16.msra.mxu1 %v11280_v4  ;;  %v12416_v4 = vld [vmem:[%s11970_s18 + $0x214] ss:$12 sps:$4 sm:$0xff]  }
  0x49   : > { %1307 = vmatpush2.bf16.msra.mxu0 %v11198_v50  ;;  %1808 = vmatprep.subr.bf16.mxu1 %v16553_v3  ;;  %v12347_v50 = vld [vmem:[%s11970_s18 + $0x184] ss:$12 sps:$4 sm:$0xff]  }
  0x4a   : > { %9981 = vmatprep.subr.msk.bf16.mxu0 %vm1266_vm0, %v11975_v16  ;;  %v11249_v16 = vld [vmem:[%s11970_s18 + $0x170] ss:$12 sps:$4 sm:$0xff]  }
  0x4c   : > { %1309 = vmatmul.mubr.bf16.vlgmr.msra.gmra.mxu0 %v12107_v52  ;;  %1809 = vmatpush2.bf16.msra.mxu1 %v11282_v7 }
  0x4d   : > { %1540 = vmatpush1.bf16.msra.mxu0 %v11988_v20  ;;  %1318 = vmatprep.mubr.bf16.mxu0 %v12111_v53  ;;  %v12234_v20 = vld [vmem:[%s11970_s18 + $0xac] ss:$12 sps:$4 sm:$0xff]  }
  0x4e   : > { %1541 = vmatprep.subr.bf16.mxu0 %v11980_v18  ;;  %1810 = vmatprep.subr.bf16.mxu1 %v16553_v3  ;;  %v11298_v18 = vld [vmem:[%s16546_s2 + $0xe0] ss:$12 sps:$4 sm:$0xff]  }
  0x4f   : > { %9994 = vmatmul.mubr.msk.bf16.gmra.mxu1 %vm1193_vm1, %v11237_v0  ;;  %v11350_v0 = vld [vmem:[%s16546_s2 + $0x3b8] ss:$12 sps:$4 sm:$0xff]  }
  0x50   : > { %1687 = vmatprep.mubr.bf16.mxu1 %v16553_v3  ;;  %1811 = vmatpush2.bf16.msra.mxu1 %v11286_v8  ;;  %v12428_v8 = vld [vmem:[%s11970_s18 + $0x22c] ss:$12 sps:$4 sm:$0xff]  }
  0x51   : > { %1542 = vmatpush1.bf16.msra.mxu0 %v11995_v22  ;;  %1812 = vmatprep.subr.bf16.mxu1 %v16553_v3  ;;  %v11300_v22 = vld [vmem:[%s16546_s2 + $0xc8] ss:$12 sps:$4 sm:$0xff]  }
  0x52   : > { %1543 = vmatprep.subr.bf16.mxu0 %v12001_v23  ;;  %v12246_v23 = vld [vmem:[%s11970_s18 + $0xa8] ss:$12 sps:$4 sm:$0xff]  }
  0x54   : > { %1319 = vmatmul.mubr.bf16.gmra.mxu0 %v12130_v57  ;;  %1813 = vmatpush2.bf16.msra.mxu1 %v11288_v12 }
  0x55   : > { %1327 = vmatprep.mubr.bf16.mxu0 %v12134_v58  ;;  %1544 = vmatpush1.bf16.msra.mxu0 %v12013_v26  ;;  %v12257_v26 = vld [vmem:[%s11970_s18 + $0xc0] ss:$12 sps:$4 sm:$0xff]  }
  0x56   : > { %1545 = vmatprep.subr.bf16.mxu0 %v12019_v27  ;;  %1814 = vmatprep.subr.bf16.mxu1 %v16553_v3  ;;  %v12261_v27 = vld [vmem:[%s11970_s18 + $0xdc] ss:$12 sps:$4 sm:$0xff]  }
  0x57   : > { %9995 = vmatmul.mubr.msk.bf16.gmra.mxu1 %vm1193_vm1, %v11241_v6  ;;  %v12422_v6 = vld [vmem:[%s11970_s18 + $0x210] ss:$12 sps:$4 sm:$0xff]  }
  0x58   : > { %1696 = vmatprep.mubr.bf16.mxu1 %v16553_v3  ;;  %1815 = vmatpush2.bf16.msra.mxu1 %v11292_v13  ;;  %v12443_v13 = vld [vmem:[%s11970_s18 + $0x228] ss:$12 sps:$4 sm:$0xff]  }
  0x59   : > { %1546 = vmatpush1.bf16.msra.mxu0 %v12031_v30  ;;  %1816 = vmatprep.subr.bf16.mxu1 %v16553_v3  ;;  %v12273_v30 = vld [vmem:[%s11970_s18 + $0xd8] ss:$12 sps:$4 sm:$0xff]  }
  0x5a   : > { %1547 = vmatprep.subr.bf16.mxu0 %v12037_v31  ;;  %v12279_v31 = vld [vmem:[%s11970_s18 + $0xf4] ss:$12 sps:$4 sm:$0xff]  }
  0x5c   : > { %1328 = vmatmul.mubr.bf16.gmra.mxu0 %v12153_v62  ;;  %1817 = vmatpush2.bf16.msra.mxu1 %v11294_v17 }
  0x5d   : > { %1336 = vmatprep.mubr.bf16.mxu0 %v12157_v63  ;;  %1548 = vmatpush1.bf16.msra.mxu0 %v12049_v34  ;;  %v12291_v34 = vld [vmem:[%s11970_s18 + $0x10c] ss:$12 sps:$4 sm:$0xff]  }
  0x5e   : > { %1818 = vmatprep.subr.bf16.mxu1 %v16553_v3  ;;  %11128 = vmatprep.subr.msk.bf16.mxu0 %vm1266_vm0, %v12269_v29 }
  0x5f   : > { %9996 = vmatmul.mubr.msk.bf16.gmra.mxu1 %vm1193_vm1, %v11245_v11 }
  0x60   : > { %1705 = vmatprep.mubr.bf16.mxu1 %v16553_v3  ;;  %1819 = vmatpush2.bf16.msra.mxu1 %v11298_v18  ;;  %v12456_v18 = vld [vmem:[%s11970_s18 + $0x8] ss:$12 sps:$4 sm:$0xff]  }
  0x61   : > { %1820 = vmatprep.subr.bf16.mxu1 %v16553_v3 }
  0x64   : > { %1337 = vmatmul.mubr.bf16.gmra.mxu0 %v12170_v2  ;;  %1821 = vmatpush2.bf16.msra.mxu1 %v11300_v22 }
  0x65   : > { %1346 = vmatprep.mubr.bf16.mxu0 %v12178_v5  ;;  %10343 = vmatprep.subr.msk.bf16.mxu1 %vm1266_vm0, %v10341_v51  ;;  %v12516_v51 = vld [vmem:[%s11970_s18 + $0x38] ss:$12 sps:$4 sm:$0xff]  }
  0x67   : > { %9997 = vmatmul.mubr.msk.bf16.gmra.mxu1 %vm1193_vm1, %v11249_v16 }
  0x68   : > { %1715 = vmatprep.mubr.bf16.mxu1 %v16553_v3 }
  0x6c   : > { %1347 = vmatmul.mubr.bf16.gmra.mxu0 %v12192_v9 }
  0x6d   : > { %1355 = vmatprep.mubr.bf16.mxu0 %v12196_v10 }
  0x6f   : > { %9998 = vmatmul.mubr.msk.bf16.gmra.mxu1 %vm1193_vm1, %v11253_v21  ;;  %v11319_v21 = vld [vmem:[%s16546_s2 + $0x1d0] ss:$12 sps:$4 sm:$0xff]  }
  0x70   : > { %1724 = vmatprep.mubr.bf16.mxu1 %v16553_v3 }
  0x74   : > { %1356 = vmatmul.mubr.bf16.gmra.mxu0 %v12211_v14 }
  0x75   : > { %1364 = vmatprep.mubr.bf16.mxu0 %v12215_v15 }
  0x77   : > { %9999 = vmatmul.mubr.msk.bf16.gmra.mxu1 %vm1193_vm1, %v11259_v25  ;;  %v11321_v25 = vld [vmem:[%s16546_s2 + $0x1b8] ss:$12 sps:$4 sm:$0xff]  }
  0x78   : > { %1733 = vmatprep.mubr.bf16.mxu1 %v16553_v3 }
  0x7c   : > { %1365 = vmatmul.mubr.bf16.gmra.mxu0 %v12230_v19 }
  0x7d   : > { %1374 = vmatprep.mubr.bf16.mxu0 %v12234_v20 }
  0x7f   : > { %10000 = vmatmul.mubr.msk.bf16.gmra.mxu1 %vm1193_vm1, %v11265_v28  ;;  %v11371_v28 = vld [vmem:[%s16546_s2 + $0x3a0] ss:$12 sps:$4 sm:$0xff]  }
  0x80   : > { %1743 = vmatprep.mubr.bf16.mxu1 %v16553_v3 }
  0x84   : > { %1375 = vmatmul.mubr.bf16.gmra.mxu0 %v12246_v23 }
  0x85   : > { %1383 = vmatprep.mubr.bf16.mxu0 %v12250_v24 }
  0x87   : > { %10001 = vmatmul.mubr.msk.bf16.gmra.mxu1 %vm1193_vm1, %v11271_v32 }
  0x88   : > { %1752 = vmatprep.mubr.bf16.mxu1 %v16553_v3 }
  0x8c   : > { %1384 = vmatmul.mubr.bf16.gmra.mxu0 %v12257_v26 }
  0x8d   : > { %1392 = vmatprep.mubr.bf16.mxu0 %v12261_v27 }
  0x8f   : > { %10002 = vmatmul.mubr.msk.bf16.gmra.mxu1 %vm1193_vm1, %v11277_v35 }
  0x90   : > { %1761 = vmatprep.mubr.bf16.mxu1 %v16553_v3 }
  0x94   : > { %1393 = vmatmul.mubr.bf16.gmra.mxu0 %v12273_v30 }
  0x95   : > { %1402 = vmatprep.mubr.bf16.mxu0 %v12279_v31 }
  0x97   : > { %10003 = vmatmul.mubr.msk.bf16.gmra.mxu1 %vm1193_vm1, %v11283_v38 }
  0x98   : > { %1771 = vmatprep.mubr.bf16.mxu1 %v16553_v3 }
  0x9c   : > { %1403 = vmatmul.mubr.bf16.gmra.mxu0 %v12286_v33 }
  0x9d   : > { %1411 = vmatprep.mubr.bf16.mxu0 %v12291_v34 }
  0x9f   : > { %10004 = vmatmul.mubr.msk.bf16.gmra.mxu1 %vm1193_vm1, %v11289_v41 }
  0xa0   : > { %1780 = vmatprep.mubr.bf16.mxu1 %v16553_v3 }
  0xa4   : > { %1412 = vmatmul.mubr.bf16.gmra.mxu0 %v12297_v36 }
  0xa5   : > { %1420 = vmatprep.mubr.bf16.mxu0 %v12301_v37 }
  0xa7   : > { %10005 = vmatmul.mubr.msk.bf16.gmra.mxu1 %vm1193_vm1, %v11295_v44  ;;  %v11326_v44 = vld [vmem:[%s16546_s2 + $0x188] ss:$12 sps:$4 sm:$0xff]  }
  0xa8   : > { %1822 = vmatprep.mubr.bf16.mxu1 %v11735_v46 }
  0xac   : > { %1421 = vmatmul.mubr.bf16.gmra.mxu0 %v12308_v39 }
  0xad   : > { %1430 = vmatprep.mubr.bf16.mxu0 %v12312_v40 }
  0xaf   : > { %1823 = vmatmul.mubr.bf16.vlgmr.msra.gmra.mxu1 %v12107_v52  ;;  %v12355_v52 = vld [vmem:[%s11970_s18 + $0x180] ss:$12 sps:$4 sm:$0xff]  }
  0xb0   : > { %1830 = vmatprep.mubr.bf16.mxu1 %v12111_v53  ;;  %3839 = vmatpush1.bf16.msra.mxu1 %v3567_v55  ;;  %v12365_v53 = vld [vmem:[%s11970_s18 + $0x198] ss:$12 sps:$4 sm:$0xff]   ;;  %v11383_v55 = vld [vmem:[%s16546_s2 + $0x388] ss:$12 sps:$4 sm:$0xff]  }
  0xb1   : > { %3840 = vmatprep.subr.bf16.mxu1 %v11350_v0 }
  0xb4   : > { %1431 = vmatmul.mubr.bf16.gmra.mxu0 %v12319_v42 }
  0xb5   : > { %1439 = vmatprep.mubr.bf16.mxu0 %v12323_v43 }
  0xb7   : > { %1831 = vmatmul.mubr.bf16.gmra.mxu1 %v12130_v57  ;;  %v12375_v57 = vld [vmem:[%s11970_s18 + $0x1b0] ss:$12 sps:$4 sm:$0xff]  }
  0xb8   : > { %1838 = vmatprep.mubr.bf16.mxu1 %v12134_v58  ;;  %v12380_v58 = vld [vmem:[%s11970_s18 + $0x1cc] ss:$12 sps:$4 sm:$0xff]  }
  0xbc   : > { %1440 = vmatmul.mubr.bf16.gmra.mxu0 %v12330_v45 }
  0xbd   : > { %1448 = vmatprep.mubr.bf16.mxu0 %v12335_v47 }
  0xbf   : > { %1839 = vmatmul.mubr.bf16.gmra.mxu1 %v12153_v62  ;;  %v11348_v62 = vld [vmem:[%s16546_s2 + $0x3b4] ss:$12 sps:$4 sm:$0xff]  }
  0xc0   : > { %1846 = vmatprep.mubr.bf16.mxu1 %v12157_v63  ;;  %v12398_v63 = vld [vmem:[%s11970_s18 + $0x1e0] ss:$12 sps:$4 sm:$0xff]   ;;  %3841 = vmatpush1.bf16.msra.mxu1 %v11348_v62  ;;  %v11381_v62 = vld [vmem:[%s16546_s2 + $0x384] ss:$12 sps:$4 sm:$0xff]  }
  0xc1   : > { %3842 = vmatprep.subr.bf16.mxu1 %v11371_v28  ;;  %v12551_v28 = vld [vmem:[%s11970_s18 + $0x50] ss:$12 sps:$4 sm:$0xff]  }
  0xc4   : > { %1449 = vmatmul.mubr.bf16.gmra.mxu0 %v12340_v48 }
  0xc5   : > { %1458 = vmatprep.mubr.bf16.mxu0 %v12347_v50 }
  0xc7   : > { %1847 = vmatmul.mubr.bf16.gmra.mxu1 %v12170_v2  ;;  %v12411_v2 = vld [vmem:[%s11970_s18 + $0x1f8] ss:$12 sps:$4 sm:$0xff]  }
  0xc8   : > { %1854 = vmatprep.mubr.bf16.mxu1 %v12178_v5 }
  0xcc   : > { %1459 = vmatmul.mubr.bf16.gmra.mxu0 %v12355_v52 }
  0xcd   : > { %1467 = vmatprep.mubr.bf16.mxu0 %v12359_v56 }
  0xcf   : > { %1855 = vmatmul.mubr.bf16.gmra.mxu1 %v12192_v9 }
  0xd0   : > { %1862 = vmatprep.mubr.bf16.mxu1 %v12196_v10 }
  0xd4   : > { %1468 = vmatmul.mubr.bf16.gmra.mxu0 %v12365_v53 }
  0xd5   : > { %1476 = vmatprep.mubr.bf16.mxu0 %v12369_v59 }
  0xd7   : > { %1863 = vmatmul.mubr.bf16.gmra.mxu1 %v12211_v14 }
  0xd8   : > { %1870 = vmatprep.mubr.bf16.mxu1 %v12215_v15 }
  0xdc   : > { %1477 = vmatmul.mubr.bf16.gmra.mxu0 %v12375_v57 }
  0xdd   : > { %1486 = vmatprep.mubr.bf16.mxu0 %v12380_v58 }
  0xdf   : > { %1871 = vmatmul.mubr.bf16.gmra.mxu1 %v12230_v19 }
  0xe0   : > { %1878 = vmatprep.mubr.bf16.mxu1 %v12234_v20  ;;  %v1274_v20 = vsel %vm1266_vm0, %v12269_v29, 0 }
  0xe4   : > { %1487 = vmatmul.mubr.bf16.gmra.mxu0 %v12386_v60 }
  0xe5   : > { %1495 = vmatprep.mubr.bf16.mxu0 %v12389_v61 }
  0xe7   : > { %v1633_v5 = vpop.f32.mrf.mxu1  ;;  %1879 = vmatmul.mubr.bf16.gmra.mxu1 %v12246_v23 }
  0xe8   : > { %1886 = vmatprep.mubr.bf16.mxu1 %v12250_v24 }
  0xe9   : > { %v12424_v7 = vpop.f32.mrf.mxu1 }
  0xea   : > { %16586 = vst [vmem:[#allocation3_spill] sm:$0xff] %v12424_v7 }
  0xeb   : > { %v12430_v9 = vpop.f32.mrf.mxu1 }
  0xec   : > { %1496 = vmatmul.mubr.bf16.gmra.mxu0 %v12398_v63 }
  0xed   : > { %1504 = vmatprep.mubr.bf16.mxu0 %v12405_v1  ;;  %v12432_v10 = vpop.f32.mrf.mxu1 }
  0xef   : > { %v12436_v11 = vpop.f32.mrf.mxu1  ;;  %1887 = vmatmul.mubr.bf16.gmra.mxu1 %v12257_v26 }
  0xf0   : > { %1894 = vmatprep.mubr.bf16.mxu1 %v12261_v27  ;;  %v11369_v27 = vld [vmem:[%s16546_s2 + $0x39c] ss:$12 sps:$4 sm:$0xff]  }
  0xf1   : > { %v12439_v12 = vpop.f32.mrf.mxu1  ;;  %3843 = vmatpush1.bf16.msra.mxu1 %v11369_v27 }
  0xf2   : > { %3844 = vmatprep.subr.bf16.mxu1 %v11383_v55 }
  0xf3   : > { %v1646_v14 = vpop.f32.mrf.mxu1 }
  0xf4   : > { %1505 = vmatmul.mubr.bf16.gmra.mxu0 %v12411_v2 }
  0xf5   : > { %1514 = vmatprep.mubr.bf16.mxu0 %v12416_v4  ;;  %v12445_v15 = vpop.f32.mrf.mxu1  ;;  %3845 = vmatpush1.bf16.msra.mxu1 %v11381_v62 }
  0xf7   : > { %v12449_v16 = vpop.f32.mrf.mxu1  ;;  %1895 = vmatmul.mubr.bf16.gmra.mxu1 %v12273_v30  ;;  %v12488_v30 = vld [vmem:[%s11970_s18 + $0x20] ss:$12 sps:$4 sm:$0xff]  }
  0xf8   : > { %1902 = vmatprep.mubr.bf16.mxu1 %v12279_v31 }
  0xf9   : > { %v12452_v17 = vpop.f32.mrf.mxu1 }
  0xfb   : > { %v12458_v19 = vpop.f32.mrf.mxu1 }
  0xfc   : > { %1515 = vmatmul.mubr.bf16.gmra.mxu0 %v12422_v6 }
  0xfd   : > { %1523 = vmatprep.mubr.bf16.mxu0 %v12428_v8  ;;  %v12465_v22 = vpop.f32.mrf.mxu1 }
  0xff   : > { %v1661_v26 = vpop.f32.mrf.mxu1  ;;  %1903 = vmatmul.mubr.bf16.gmra.mxu1 %v12286_v33  ;;  %v11324_v33 = vld [vmem:[%s16546_s2 + $0x1a0] ss:$12 sps:$4 sm:$0xff]  }
 0x100   : > { %1910 = vmatprep.mubr.bf16.mxu1 %v12291_v34 }
 0x101   : > { %v12490_v31 = vpop.f32.mrf.mxu1 }
 0x103   : > { %v12497_v34 = vpop.f32.mrf.mxu1 }
 0x104   : > { %1524 = vmatmul.mubr.bf16.gmra.mxu0 %v12443_v13 }
 0x105   : > { %1565 = vmatprep.mubr.bf16.mxu0 %v16553_v3  ;;  %v12501_v38 = vpop.f32.mrf.mxu1 }
 0x107   : > { %v12509_v46 = vpop.f32.mrf.mxu1  ;;  %1911 = vmatmul.mubr.bf16.gmra.mxu1 %v12297_v36 }
 0x108   : > { %1918 = vmatprep.mubr.bf16.mxu1 %v12301_v37  ;;  %v11332_v37 = vld [vmem:[%s16546_s2 + $0x298] ss:$12 sps:$4 sm:$0xff]  }
 0x109   : > { %v12518_v54 = vpop.f32.mrf.mxu1 }
 0x10b   : > { %v1674_v36 = vpop.f32.mrf.mxu1 }
 0x10c   : > { %v12467_v23 = vpop.f32.mrf.mxu0  ;;  %9982 = vmatmul.mubr.msk.bf16.vlgmr.msra.gmra.mxu0 %vm1193_vm1, %v12456_v18 }
 0x10d   : > { %16587 = vst [vmem:[#allocation4_spill] sm:$0xff] %v12467_v23  ;;  %10897 = vmatpush3.bf16.msra.mxu0 %v1274_v20  ;;  %1575 = vmatprep.mubr.bf16.mxu0 %v16553_v3  ;;  %v12535_v14 = vpop.f32.mrf.mxu1  ;;  %v11389_v20 = vld [vmem:[%s16546_s2 + $0x370] ss:$12 sps:$4 sm:$0xff]  }
 0x10e   : > { %v12472_v24 = vpop.f32.mrf.mxu0  ;;  %10898 = vmatprep.subr.bf16.mxu0 %v11319_v21  ;;  %3846 = vmatprep.subr.bf16.mxu1 %v11389_v20 }
 0x10f   : > { %v12546_v26 = vpop.f32.mrf.mxu1  ;;  %1919 = vmatmul.mubr.bf16.gmra.mxu1 %v12308_v39 }
 0x110   : > { %v12485_v29 = vpop.f32.mrf.mxu0  ;;  %1926 = vmatprep.mubr.bf16.mxu1 %v12312_v40 }
 0x111   : > { %16588 = vst [vmem:[#allocation5_spill] sm:$0xff] %v12485_v29  ;;  %10899 = vmatpush3.bf16.msra.mxu0 %v11319_v21  ;;  %v11387_v21 = vld [vmem:[%s16546_s2 + $0x36c] ss:$12 sps:$4 sm:$0xff]  }
 0x112   : > { %v12492_v32 = vpop.f32.mrf.mxu0  ;;  %10900 = vmatprep.subr.bf16.mxu0 %v11321_v25  ;;  %3847 = vmatpush1.bf16.msra.mxu1 %v11387_v21 }
 0x113   : > { %16589 = vst [vmem:[#allocation6_spill] sm:$0xff] %v12492_v32 }
 0x114   : > { %v1320_v35 = vpop.f32.mrf.mxu0  ;;  %9983 = vmatmul.mubr.msk.bf16.gmra.mxu0 %vm1193_vm1, %v12488_v30 }
 0x115   : > { %1584 = vmatprep.mubr.bf16.mxu0 %v16553_v3  ;;  %10901 = vmatpush3.bf16.msra.mxu0 %v11321_v25 }
 0x116   : > { %v12504_v41 = vpop.f32.mrf.mxu0  ;;  %10902 = vmatprep.subr.bf16.mxu0 %v11324_v33 }
 0x117   : > { %16590 = vst [vmem:[#allocation7_spill] sm:$0xff] %v12504_v41  ;;  %1927 = vmatmul.mubr.bf16.gmra.mxu1 %v12319_v42 }
 0x118   : > { %v12513_v49 = vpop.f32.mrf.mxu0  ;;  %1934 = vmatprep.mubr.bf16.mxu1 %v12323_v43 }
 0x119   : > { %16591 = vst [vmem:[#allocation8_spill] sm:$0xff] %v12513_v49  ;;  %10903 = vmatpush3.bf16.msra.mxu0 %v11324_v33  ;;  %v12553_v33 = vpop.f32.mrf.mxu1 }
 0x11a   : > { %v12526_v0 = vpop.f32.mrf.mxu0  ;;  %10904 = vmatprep.subr.bf16.mxu0 %v11326_v44 }
 0x11b   : > { %16592 = vst [vmem:[#allocation9_spill] sm:$0xff] %v12526_v0 }
 0x11c   : > { %v12531_v5 = vpop.f32.mrf.mxu0  ;;  %9984 = vmatmul.mubr.msk.bf16.gmra.mxu0 %vm1193_vm1, %v12516_v51 }
 0x11d   : > { %16593 = vst [vmem:[#allocation10_spill] sm:$0xff] %v12531_v5  ;;  %1593 = vmatprep.mubr.bf16.mxu0 %v16553_v3  ;;  %10905 = vmatpush3.bf16.msra.mxu0 %v11326_v44  ;;  %v12557_v44 = vpop.f32.mrf.mxu1 }
 0x11e   : > { %v12544_v25 = vpop.f32.mrf.mxu0  ;;  %3575 = vmatprep.subr.bf16.mxu0 %v11332_v37  ;;  %v12573_v37 = vld [vmem:[%s11970_s18 + $0x68] ss:$12 sps:$4 sm:$0xff]  }
 0x11f   : > { %16594 = vst [vmem:[#allocation11_spill] sm:$0xff] %v12544_v25  ;;  %v12563_v39 = vpop.f32.mrf.mxu1  ;;  %1935 = vmatmul.mubr.bf16.gmra.mxu1 %v12330_v45  ;;  %v16604_v45 = vmov 0  }
 0x120   : > { %v1333_v27 = vpop.f32.mrf.mxu0  ;;  %1942 = vmatprep.mubr.bf16.mxu1 %v12335_v47 }
 0x121   : > { %v1689_v62 = vpop.f32.mrf.mxu1 }
 0x122   : > { %v12555_v35 = vpop.f32.mrf.mxu0 }
 0x123   : > { %16595 = vst [vmem:[#allocation12_spill] sm:$0xff] %v12555_v35  ;;  %v12575_v20 = vpop.f32.mrf.mxu1 }
 0x124   : > { %v12559_v55 = vpop.f32.mrf.mxu0  ;;  %9985 = vmatmul.mubr.msk.bf16.gmra.mxu0 %vm1193_vm1, %v12551_v28 }
 0x125   : > { %16596 = vst [vmem:[#allocation13_spill] sm:$0xff] %v12559_v55  ;;  %1603 = vmatprep.mubr.bf16.mxu0 %v16553_v3  ;;  %v12579_v27 = vpop.f32.mrf.mxu1  ;;  %v12595_v55 = vld [vmem:[%s11970_s18 + $0x80] ss:$12 sps:$4 sm:$0xff]  }
 0x126   : > { %v12566_v40 = vpop.f32.mrf.mxu0 }
 0x127   : > { %16597 = vst [vmem:[#allocation14_spill] sm:$0xff] %v12566_v40  ;;  %v12583_v62 = vpop.f32.mrf.mxu1  ;;  %1943 = vmatmul.mubr.bf16.gmra.mxu1 %v12340_v48 }
 0x128   : > { %v12570_v36 = vpop.f32.mrf.mxu0  ;;  %1950 = vmatprep.mubr.bf16.mxu1 %v12347_v50 }
 0x129   : > { %16598 = vst [vmem:[#allocation15_spill] sm:$0xff] %v12570_v36  ;;  %v12588_v43 = vpop.f32.mrf.mxu1 }
 0x12a   : > { %v12577_v21 = vpop.f32.mrf.mxu0 }
 0x12b   : > { %16599 = vst [vmem:[#allocation16_spill] sm:$0xff] %v12577_v21 }
 0x12c   : > { %v1348_v7 = vpop.f32.mrf.mxu0  ;;  %9986 = vmatmul.mubr.msk.bf16.gmra.mxu0 %vm1193_vm1, %v12573_v37 }
 0x12d   : > { %1612 = vmatprep.mubr.bf16.mxu0 %v16553_v3  ;;  %v12597_v7 = vpop.f32.mrf.mxu1 }
 0x12e   : > { %v12586_v42 = vpop.f32.mrf.mxu0 }
 0x12f   : > { %16600 = vst [vmem:[#allocation17_spill] sm:$0xff] %v12586_v42  ;;  %v1702_v40 = vpop.f32.mrf.mxu1  ;;  %1951 = vmatmul.mubr.bf16.gmra.mxu1 %v12355_v52 }
 0x130   : > { %v12592_v36 = vpop.f32.mrf.mxu0  ;;  %1958 = vmatprep.mubr.bf16.mxu1 %v12359_v56  ;;  %v11333_v56 = vld [vmem:[%s16546_s2 + $0x27c] ss:$12 sps:$4 sm:$0xff]  }
 0x131   : > { %16601 = vst [vmem:[#allocation18_spill] sm:$0xff] %v12592_v36  ;;  %v12605_v3 = vpop.f32.mrf.mxu1 }
 0x132   : > { %v12599_v21 = vpop.f32.mrf.mxu0 }
 0x133   : > { %16602 = vst [vmem:[#allocation19_spill] sm:$0xff] %v12599_v21  ;;  %v12610_v47 = vpop.f32.mrf.mxu1  ;;  %v12615_v21 = vld [vmem:[%s11970_s18 + $0x98] ss:$12 sps:$4 sm:$0xff]  }
 0x134   : > { %v12601_v5 = vpop.f32.mrf.mxu0  ;;  %9987 = vmatmul.mubr.msk.bf16.gmra.mxu0 %vm1193_vm1, %v12595_v55 }
 0x135   : > { %16603 = vst [vmem:[#allocation20_spill] sm:$0xff] %v12601_v5  ;;  %1621 = vmatprep.mubr.bf16.mxu0 %v16604_v45  ;;  %v12617_v40 = vpop.f32.mrf.mxu1 }
 0x136   : > { %v12608_v42 = vpop.f32.mrf.mxu0 }
 0x137   : > { %16605 = vst [vmem:[#allocation21_spill] sm:$0xff] %v12608_v42  ;;  %v12621_v35 = vpop.f32.mrf.mxu1  ;;  %1959 = vmatmul.mubr.bf16.gmra.mxu1 %v12365_v53 }
 0x138   : > { %v1361_v36 = vpop.f32.mrf.mxu0  ;;  %1966 = vmatprep.mubr.bf16.mxu1 %v12369_v59 }
 0x139   : > { %v12627_v42 = vpop.f32.mrf.mxu1 }
 0x13a   : > { %v12619_v5 = vpop.f32.mrf.mxu0 }
 0x13b   : > { %16606 = vst [vmem:[#allocation22_spill] sm:$0xff] %v12619_v5  ;;  %v1717_v50 = vpop.f32.mrf.mxu1 }
 0x13c   : > { %v12623_v49 = vpop.f32.mrf.mxu0  ;;  %9988 = vmatmul.mubr.msk.bf16.gmra.mxu0 %vm1193_vm1, %v12615_v21 }
 0x13d   : > { %16607 = vst [vmem:[#allocation23_spill] sm:$0xff] %v12623_v49  ;;  %10906 = vmatprep.mubr.msk.bf16.mxu0 %vm1193_vm1, %v12456_v18  ;;  %v12637_v5 = vpop.f32.mrf.mxu1  ;;  %v11330_v49 = vld [vmem:[%s16546_s2 + $0x294] ss:$12 sps:$4 sm:$0xff]  }
 0x13e   : > { %v12631_v48 = vpop.f32.mrf.mxu0  ;;  %v11335_v18 = vld [vmem:[%s16546_s2 + $0x280] ss:$12 sps:$4 sm:$0xff]  }
 0x13f   : > { %16608 = vst [vmem:[#allocation24_spill] sm:$0xff] %v12631_v48  ;;  %v12647_v48 = vpop.f32.mrf.mxu1  ;;  %1967 = vmatmul.mubr.bf16.gmra.mxu1 %v12375_v57  ;;  %v11347_v57 = vld [vmem:[%s16546_s2 + $0x220] ss:$12 sps:$4 sm:$0xff]  }
 0x140   : > { %v12635_v36 = vpop.f32.mrf.mxu0  ;;  %1974 = vmatprep.mubr.bf16.mxu1 %v12380_v58 }
 0x141   : > { %16609 = vst [vmem:[#allocation25_spill] sm:$0xff] %v12635_v36  ;;  %v12651_v52 = vpop.f32.mrf.mxu1 }
 0x142   : > { %v12642_v25 = vpop.f32.mrf.mxu0 }
 0x143   : > { %16610 = vst [vmem:[#allocation26_spill] sm:$0xff] %v12642_v25  ;;  %v12663_v25 = vpop.f32.mrf.mxu1 }
 0x144   : > { %v1376_v50 = vpop.f32.mrf.mxu0  ;;  %10907 = vmatmul.mubr.msk.bf16.vlgmr.msra.gmra.mxu0 %vm1193_vm1, %v12488_v30 }
 0x145   : > { %3576 = vmatpush1.bf16.msra.mxu0 %v11330_v49  ;;  %10910 = vmatprep.mubr.msk.bf16.mxu0 %vm1193_vm1, %v12516_v51  ;;  %v11338_v50 = vld [vmem:[%s16546_s2 + $0x268] ss:$12 sps:$4 sm:$0xff]   ;;  %v12667_v49 = vpop.f32.mrf.mxu1  ;;  %v11336_v51 = vld [vmem:[%s16546_s2 + $0x264] ss:$12 sps:$4 sm:$0xff]  }
 0x146   : > { %v12658_v36 = vpop.f32.mrf.mxu0  ;;  %3577 = vmatprep.subr.bf16.mxu0 %v11335_v18  ;;  %v11341_v18 = vld [vmem:[%s16546_s2 + $0x250] ss:$12 sps:$4 sm:$0xff]  }
 0x147   : > { %16611 = vst [vmem:[#allocation27_spill] sm:$0xff] %v12658_v36  ;;  %v1730_v0 = vpop.f32.mrf.mxu1  ;;  %1975 = vmatmul.mubr.bf16.gmra.mxu1 %v12386_v60  ;;  %v11356_v60 = vld [vmem:[%s16546_s2 + $0x1f0] ss:$12 sps:$4 sm:$0xff]  }
 0x148   : > { %v1379_v30 = vpop.f32.mrf.mxu0  ;;  %v11344_v0 = vld [vmem:[%s16546_s2 + $0x238] ss:$12 sps:$4 sm:$0xff]   ;;  %1982 = vmatprep.mubr.bf16.mxu1 %v12389_v61 }
 0x149   : > { %3578 = vmatpush1.bf16.msra.mxu0 %v11333_v56  ;;  %v12677_v53 = vpop.f32.mrf.mxu1  ;;  %v11339_v56 = vld [vmem:[%s16546_s2 + $0x24c] ss:$12 sps:$4 sm:$0xff]   ;;  %v1637_v23 = vadd.f32 %v12430_v9, %v1379_v30  ;;  %v11345_v30 = vld [vmem:[%s16546_s2 + $0x21c] ss:$12 sps:$4 sm:$0xff]  }
 0x14a   : > { %v1381_v36 = vpop.f32.mrf.mxu0  ;;  %3579 = vmatprep.subr.bf16.mxu0 %v11338_v50 }
 0x14b   : > { %v1639_v59 = vadd.f32 %v12432_v10, %v1381_v36  ;;  %v12688_v41 = vpop.f32.mrf.mxu1 }
 0x14c   : > { %v1385_v29 = vpop.f32.mrf.mxu0  ;;  %10911 = vmatmul.mubr.msk.bf16.gmra.mxu0 %vm1193_vm1, %v12551_v28 }
 0x14d   : > { %3580 = vmatpush1.bf16.msra.mxu0 %v11336_v51  ;;  %10914 = vmatprep.mubr.msk.bf16.mxu0 %vm1193_vm1, %v12573_v37  ;;  %v12693_v37 = vpop.f32.mrf.mxu1  ;;  %v2314_v36 = vrot.slane %v1639_v59, 1 }
 0x14e   : > { %v1387_v50 = vpop.f32.mrf.mxu0  ;;  %3581 = vmatprep.subr.bf16.mxu0 %v11341_v18  ;;  %v11342_v18 = vld [vmem:[%s16546_s2 + $0x234] ss:$12 sps:$4 sm:$0xff]  }
 0x14f   : > { %v1645_v10 = vadd.f32 %v12439_v12, %v1387_v50  ;;  %v12702_v58 = vpop.f32.mrf.mxu1  ;;  %1983 = vmatmul.mubr.bf16.gmra.mxu1 %v12398_v63 }
 0x150   : > { %v1389_v28 = vpop.f32.mrf.mxu0  ;;  %1990 = vmatprep.mubr.bf16.mxu1 %v12405_v1  ;;  %v11362_v1 = vld [vmem:[%s16546_s2 + $0x340] ss:$12 sps:$4 sm:$0xff]  }
 0x151   : > { %v2315_v51 = vrot.slane %v1645_v10, 1  ;;  %3582 = vmatpush1.bf16.msra.mxu0 %v11339_v56  ;;  %v12708_v56 = vpop.f32.mrf.mxu1 }
 0x152   : > { %v1390_v32 = vpop.f32.mrf.mxu0  ;;  %3583 = vmatprep.subr.bf16.mxu0 %v11344_v0  ;;  %v1643_v0 = vadd.f32 %v12436_v11, %v1385_v29  ;;  %v11351_v29 = vld [vmem:[%s16546_s2 + $0x204] ss:$12 sps:$4 sm:$0xff]  }
 0x153   : > { %v2316_v12 = vsel %vm2288_vm2, %v2314_v36, %v2315_v51  ;;  %v1648_v59 = vadd.f32 %v12445_v15, %v1390_v32  ;;  %v11353_v32 = vld [vmem:[%s16546_s2 + $0x208] ss:$12 sps:$4 sm:$0xff]  }
 0x154   : > { %v1394_v50 = vpop.f32.mrf.mxu0  ;;  %10915 = vmatmul.mubr.msk.bf16.gmra.mxu0 %vm1193_vm1, %v12595_v55  ;;  %v12710_v10 = vadd.f32 %v2316_v12, %v1637_v23  ;;  %v1745_v55 = vpop.f32.mrf.mxu1  ;;  %v11736_v12 = vld [vmem:[%s11970_s18 + $0xb0] ss:$12 sps:$4 sm:$0xff]  }
 0x155   : > { %v2317_v9 = vrot.slane %v1648_v59, 1  ;;  %10918 = vmatprep.mubr.msk.bf16.mxu0 %vm1193_vm1, %v12615_v21  ;;  %3584 = vmatpush1.bf16.msra.mxu0 %v11342_v18 }
 0x156   : > { %v1396_v15 = vpop.f32.mrf.mxu0  ;;  %3585 = vmatprep.subr.bf16.mxu0 %v11347_v57  ;;  %v12724_v28 = vpop.f32.mrf.mxu1 }
 0x157   : > { %v2318_v23 = vsel %vm2288_vm2, %v2315_v51, %v2317_v9  ;;  %v1654_v11 = vadd.f32 %v12452_v17, %v1396_v15  ;;  %v1652_v15 = vadd.f32 %v12449_v16, %v1394_v50  ;;  %1991 = vmatmul.mubr.bf16.gmra.mxu1 %v12411_v2  ;;  %v11368_v2 = vld [vmem:[%s16546_s2 + $0x310] ss:$12 sps:$4 sm:$0xff]  }
 0x158   : > { %v1398_v21 = vpop.f32.mrf.mxu0  ;;  %v12726_v36 = vadd.f32 %v2318_v23, %v1643_v0  ;;  %v12735_v61 = vpop.f32.mrf.mxu1  ;;  %v11354_v0 = vld [vmem:[%s16546_s2 + $0x1ec] ss:$12 sps:$4 sm:$0xff]   ;;  %1998 = vmatprep.mubr.bf16.mxu1 %v12416_v4 }
 0x159   : > { %3586 = vmatpush1.bf16.msra.mxu0 %v11345_v30  ;;  %v2319_v59 = vrot.slane %v1654_v11, 1  ;;  %v11737_v30 = vld [vmem:[%s11970_s18 + $0xc8] ss:$12 sps:$4 sm:$0xff]   ;;  %v1656_v63 = vadd.f32 %v12458_v19, %v1398_v21  ;;  %v11739_v19 = vld [vmem:[%s11970_s18 + $0xf8] ss:$12 sps:$4 sm:$0xff]  }
 0x15a   : > { %v1400_v18 = vpop.f32.mrf.mxu0  ;;  %3587 = vmatprep.subr.bf16.mxu0 %v11353_v32  ;;  %v12740_v17 = vpop.f32.mrf.mxu1  ;;  %v11360_v21 = vld [vmem:[%s16546_s2 + $0x33c] ss:$12 sps:$4 sm:$0xff]  }
 0x15b   : > { %v1658_v51 = vadd.f32 %v12465_v22, %v1400_v18  ;;  %v11359_v22 = vld [vmem:[%s16546_s2 + $0x358] ss:$12 sps:$4 sm:$0xff]  }
 0x15c   : > { %v1404_v57 = vpop.f32.mrf.mxu0  ;;  %10919 = vmatmul.mubr.msk.bf16.gmra.mxu0 %vm1193_vm1, %v11736_v12  ;;  %v12751_v55 = vpop.f32.mrf.mxu1 }
 0x15d   : > { %v2320_v9 = vrot.slane %v1658_v51, 1  ;;  %10922 = vmatprep.mubr.msk.bf16.mxu0 %vm1193_vm1, %v11737_v30  ;;  %3588 = vmatpush1.bf16.msra.mxu0 %v11351_v29 }
 0x15e   : > { %v1405_v32 = vpop.f32.mrf.mxu0  ;;  %3589 = vmatprep.subr.bf16.mxu0 %v11356_v60  ;;  %v12757_v18 = vpop.f32.mrf.mxu1  ;;  %v11357_v60 = vld [vmem:[%s16546_s2 + $0x354] ss:$12 sps:$4 sm:$0xff]  }
 0x15f   : > { %v2321_v23 = vsel %vm2288_vm2, %v2319_v59, %v2320_v9  ;;  %v1663_v11 = vadd.f32 %v12490_v31, %v1405_v32  ;;  %v11738_v59 = vld [vmem:[%s11970_s18 + $0xe0] ss:$12 sps:$4 sm:$0xff]   ;;  %1999 = vmatmul.mubr.bf16.gmra.mxu1 %v12422_v6 }
 0x160   : > { %v1407_v29 = vpop.f32.mrf.mxu0  ;;  %v12759_v16 = vadd.f32 %v2321_v23, %v1652_v15  ;;  %v1758_v31 = vpop.f32.mrf.mxu1  ;;  %2006 = vmatprep.mubr.bf16.mxu1 %v12428_v8  ;;  %v11377_v6 = vld [vmem:[%s16546_s2 + $0x2e0] ss:$12 sps:$4 sm:$0xff]  }
 0x161   : > { %v2322_v50 = vrot.slane %v1663_v11, 1  ;;  %3590 = vmatpush1.bf16.msra.mxu0 %v11354_v0 }
 0x162   : > { %v1409_v51 = vpop.f32.mrf.mxu0  ;;  %3591 = vmatprep.subr.bf16.mxu0 %v11359_v22  ;;  %v12771_v30 = vpop.f32.mrf.mxu1 }
 0x163   : > { %v2323_v57 = vsel %vm2288_vm2, %v2320_v9, %v2322_v50  ;;  %v1667_v15 = vadd.f32 %v12501_v38, %v1409_v51  ;;  %v11365_v9 = vld [vmem:[%s16546_s2 + $0x328] ss:$12 sps:$4 sm:$0xff]   ;;  %v1665_v51 = vadd.f32 %v12497_v34, %v1407_v29 }
 0x164   : > { %v1413_v12 = vpop.f32.mrf.mxu0  ;;  %10923 = vmatmul.mubr.msk.bf16.gmra.mxu0 %vm1193_vm1, %v11738_v59  ;;  %v12773_v0 = vadd.f32 %v2323_v57, %v1656_v63  ;;  %v12784_v22 = vpop.f32.mrf.mxu1  ;;  %v11363_v63 = vld [vmem:[%s16546_s2 + $0x324] ss:$12 sps:$4 sm:$0xff]   ;;  %v11741_v29 = vld [vmem:[%s11970_s18 + $0x128] ss:$12 sps:$4 sm:$0xff]  }
 0x165   : > { %10926 = vmatprep.mubr.msk.bf16.mxu0 %vm1193_vm1, %v11739_v19  ;;  %3592 = vmatpush2.bf16.msra.mxu0 %v11357_v60  ;;  %v2324_v50 = vrot.slane %v1667_v15, 1  ;;  %v11740_v59 = vld [vmem:[%s11970_s18 + $0x110] ss:$12 sps:$4 sm:$0xff]  }
 0x166   : > { %v1415_v32 = vpop.f32.mrf.mxu0  ;;  %3593 = vmatprep.subr.bf16.mxu0 %v11362_v1  ;;  %v12789_v11 = vpop.f32.mrf.mxu1 }
 0x167   : > { %v1673_v38 = vadd.f32 %v12518_v54, %v1415_v32  ;;  %v1671_v32 = vadd.f32 %v12509_v46, %v1413_v12  ;;  %v11372_v12 = vld [vmem:[%s16546_s2 + $0x2f4] ss:$12 sps:$4 sm:$0xff]   ;;  %2007 = vmatmul.mubr.bf16.gmra.mxu1 %v12443_v13 }
 0x168   : > { %v1417_v23 = vpop.f32.mrf.mxu0  ;;  %v12798_v4 = vpop.f32.mrf.mxu1  ;;  %3864 = vmatprep.mubr.bf16.mxu1 %v16604_v45 }
 0x169   : > { %v2325_v60 = vrot.slane %v1673_v38, 1  ;;  %3594 = vmatpush2.bf16.msra.mxu0 %v11360_v21  ;;  %v11366_v21 = vld [vmem:[%s16546_s2 + $0x30c] ss:$12 sps:$4 sm:$0xff]  }
 0x16a   : > { %v1418_v1 = vpop.f32.mrf.mxu0  ;;  %3595 = vmatprep.subr.bf16.mxu0 %v11365_v9  ;;  %v12804_v15 = vpop.f32.mrf.mxu1  ;;  %v11374_v9 = vld [vmem:[%s16546_s2 + $0x2f8] ss:$12 sps:$4 sm:$0xff]  }
 0x16b   : > { %v2326_v54 = vsel %vm2288_vm2, %v2324_v50, %v2325_v60  ;;  %v1676_v31 = vadd.f32 %v12535_v14, %v1418_v1 }
 0x16c   : > { %v1422_v57 = vpop.f32.mrf.mxu0  ;;  %10927 = vmatmul.mubr.msk.bf16.gmra.mxu0 %vm1193_vm1, %v11740_v59  ;;  %v12806_v19 = vadd.f32 %v2326_v54, %v1665_v51  ;;  %v1773_v38 = vpop.f32.mrf.mxu1  ;;  %v11742_v54 = vld [vmem:[%s11970_s18 + $0x140] ss:$12 sps:$4 sm:$0xff]  }
 0x16d   : > { %v2327_v34 = vrot.slane %v1676_v31, 1  ;;  %10930 = vmatprep.mubr.msk.bf16.mxu0 %vm1193_vm1, %v11741_v29  ;;  %3596 = vmatpush2.bf16.msra.mxu0 %v11363_v63  ;;  %v11375_v29 = vld [vmem:[%s16546_s2 + $0x2dc] ss:$12 sps:$4 sm:$0xff]  }
 0x16e   : > { %v1424_v14 = vpop.f32.mrf.mxu0  ;;  %3597 = vmatprep.subr.bf16.mxu0 %v11368_v2  ;;  %v12820_v63 = vpop.f32.mrf.mxu1 }
 0x16f   : > { %v2328_v23 = vsel %vm2288_vm2, %v2325_v60, %v2327_v34  ;;  %v1682_v46 = vadd.f32 %v12553_v33, %v1424_v14  ;;  %v11743_v34 = vld [vmem:[%s11970_s18 + $0x158] ss:$12 sps:$4 sm:$0xff]  }
 0x170   : > { %v1426_v50 = vpop.f32.mrf.mxu0  ;;  %v12822_v51 = vadd.f32 %v2328_v23, %v1671_v32  ;;  %v12831_v8 = vpop.f32.mrf.mxu1 }
 0x171   : > { %3598 = vmatpush2.bf16.msra.mxu0 %v11366_v21  ;;  %v2329_v31 = vrot.slane %v1682_v46, 1  ;;  %v1680_v21 = vadd.f32 %v12546_v26, %v1422_v57  ;;  %v1684_v13 = vadd.f32 %v12557_v44, %v1426_v50  ;;  %v11745_v50 = vld [vmem:[%s11970_s18 + $0x188] ss:$12 sps:$4 sm:$0xff]  }
 0x172   : > { %v1428_v1 = vpop.f32.mrf.mxu0  ;;  %3599 = vmatprep.subr.bf16.mxu0 %v11374_v9  ;;  %v12836_v33 = vpop.f32.mrf.mxu1 }
 0x173   : > { %v1686_v60 = vadd.f32 %v12563_v39, %v1428_v1  ;;  %v11380_v39 = vld [vmem:[%s16546_s2 + $0x2c8] ss:$12 sps:$4 sm:$0xff]  }
 0x174   : > { %v1432_v2 = vpop.f32.mrf.mxu0  ;;  %10931 = vmatmul.mubr.msk.bf16.gmra.mxu0 %vm1193_vm1, %v11742_v54  ;;  %v12847_v14 = vpop.f32.mrf.mxu1 }
 0x175   : > { %v2330_v59 = vrot.slane %v1686_v60, 1  ;;  %10934 = vmatprep.mubr.msk.bf16.mxu0 %vm1193_vm1, %v11743_v34  ;;  %3600 = vmatpush2.bf16.msra.mxu0 %v11372_v12  ;;  %v11378_v12 = vld [vmem:[%s16546_s2 + $0x2c4] ss:$12 sps:$4 sm:$0xff]   ;;  %v11390_v60 = vld [vmem:[%s11970_s18 + $0x2c] ss:$12 sps:$4 sm:$0xff]  }
 0x176   : > { %v1433_v32 = vpop.f32.mrf.mxu0  ;;  %3601 = vmatprep.subr.bf16.mxu0 %v11377_v6  ;;  %v12853_v26 = vpop.f32.mrf.mxu1  ;;  %v11386_v6 = vld [vmem:[%s16546_s2 + $0x2b0] ss:$12 sps:$4 sm:$0xff]   ;;  %10344 = vmatmul.mubr.msk.bf16.vlgmr.msra.gmra.mxu1 %vm1193_vm1, %v11390_v60 }
 0x177   : > { %v2331_v9 = vsel %vm2288_vm2, %v2329_v31, %v2330_v59  ;;  %v1691_v38 = vadd.f32 %v12575_v20, %v1433_v32  ;;  %v11744_v31 = vld [vmem:[%s11970_s18 + $0x170] ss:$12 sps:$4 sm:$0xff]   ;;  %3874 = vmatprep.mubr.bf16.mxu1 %v16604_v45 }
 0x178   : > { %v1435_v23 = vpop.f32.mrf.mxu0  ;;  %v12855_v57 = vadd.f32 %v2331_v9, %v1680_v21  ;;  %v1786_v20 = vpop.f32.mrf.mxu1  ;;  %v11384_v21 = vld [vmem:[%s16546_s2 + $0x2ac] ss:$12 sps:$4 sm:$0xff]  }
 0x179   : > { %v2332_v46 = vrot.slane %v1691_v38, 1  ;;  %3602 = vmatpush2.bf16.msra.mxu0 %v11375_v29 }
 0x17a   : > { %16612 = vst [vmem:[#allocation28_spill] sm:$0xff] %v12855_v57  ;;  %v1437_v1 = vpop.f32.mrf.mxu0  ;;  %3603 = vmatprep.subr.bf16.mxu0 %v11380_v39  ;;  %v12868_v34 = vpop.f32.mrf.mxu1  ;;  %v13256_v57 = vld [vmem:[%s11970_s18 + $0x1c4] ss:$12 sps:$4 sm:$0xff]  }
 0x17b   : > { %v2333_v2 = vsel %vm2288_vm2, %v2330_v59, %v2332_v46  ;;  %v1695_v44 = vadd.f32 %v12583_v62, %v1437_v1 }
 0x17c   : > { %v1441_v54 = vpop.f32.mrf.mxu0  ;;  %10935 = vmatmul.mubr.msk.bf16.gmra.mxu0 %vm1193_vm1, %v11744_v31  ;;  %v12870_v29 = vadd.f32 %v2333_v2, %v1684_v13  ;;  %v12878_v59 = vpop.f32.mrf.mxu1  ;;  %v1693_v13 = vadd.f32 %v12579_v27, %v1435_v23 }
 0x17d   : > { %10938 = vmatprep.mubr.msk.bf16.mxu0 %vm1193_vm1, %v11745_v50  ;;  %3604 = vmatpush2.bf16.msra.mxu0 %v11378_v12  ;;  %v2334_v38 = vrot.slane %v1695_v44, 1  ;;  %v11446_v12 = vld [vmem:[%s16546_s2 + $0x3d4] ss:$0 sps:$4 sm:$0x33]   ;;  %v11746_v44 = vld [vmem:[%s11970_s18 + $0x1a0] ss:$12 sps:$4 sm:$0xff]  }
 0x17e   : > { %16613 = vst [vmem:[#allocation29_spill] sm:$0xff] %v12870_v29  ;;  %v1443_v32 = vpop.f32.mrf.mxu0  ;;  %3605 = vmatprep.subr.bf16.mxu0 %v11386_v6  ;;  %v1826_v9 = vpop.f32.mrf.mxu1  ;;  %11129 = vmatprep.subr.msk.bf16.mxu1 %vm1266_vm0, %v11446_v12  ;;  %v3573_v2 = vsel %vm1266_vm0, %v11446_v12, 0 }
 0x17f   : > { %v1701_v39 = vadd.f32 %v12597_v7, %v1443_v32  ;;  %v11395_v7 = vld [vmem:[%s11970_s18 + $0x44] ss:$12 sps:$4 sm:$0xff]   ;;  %10955 = vmatpush3.bf16.msra.mxu1 %v3573_v2 }
 0x180   : > { %v1445_v62 = vpop.f32.mrf.mxu0  ;;  %v12888_v20 = vpop.f32.mrf.mxu1  ;;  %10345 = vmatmul.mubr.msk.bf16.gmra.mxu1 %vm1193_vm1, %v11395_v7  ;;  %v11748_v2 = vld [vmem:[%s11970_s18 + $0x1d0] ss:$12 sps:$4 sm:$0xff]  }
 0x181   : > { %v2335_v46 = vrot.slane %v1701_v39, 1  ;;  %3606 = vmatpush2.bf16.msra.mxu0 %v11384_v21  ;;  %v11747_v21 = vld [vmem:[%s11970_s18 + $0x1b8] ss:$12 sps:$4 sm:$0xff]   ;;  %3883 = vmatprep.mubr.bf16.mxu1 %v16604_v45 }
 0x182   : > { %v1446_v1 = vpop.f32.mrf.mxu0  ;;  %4089 = vmatprep.subr.bf16.mxu0 %v16604_v45  ;;  %v1829_v27 = vpop.f32.mrf.mxu1 }
 0x183   : > { %v2336_v6 = vsel %vm2288_vm2, %v2334_v38, %v2335_v46  ;;  %v1704_v60 = vadd.f32 %v12605_v3, %v1446_v1  ;;  %v1699_v3 = vadd.f32 %v12588_v43, %v1441_v54  ;;  %v11400_v43 = vld [vmem:[%s11970_s18 + $0x5c] ss:$12 sps:$4 sm:$0xff]  }
 0x184   : > { %v1450_v31 = vpop.f32.mrf.mxu0  ;;  %10939 = vmatmul.mubr.msk.bf16.gmra.mxu0 %vm1193_vm1, %v11746_v44  ;;  %v12897_v23 = vadd.f32 %v2336_v6, %v1693_v13  ;;  %v12902_v39 = vpop.f32.mrf.mxu1  ;;  %v11749_v27 = vld [vmem:[%s11970_s18 + $0x1e8] ss:$12 sps:$4 sm:$0xff]  }
 0x185   : > { %v2337_v50 = vrot.slane %v1704_v60, 1  ;;  %10942 = vmatprep.mubr.msk.bf16.mxu0 %vm1193_vm1, %v11747_v21 }
 0x186   : > { %16614 = vst [vmem:[#allocation30_spill] sm:$0xff] %v12897_v23  ;;  %v1452_v32 = vpop.f32.mrf.mxu0  ;;  %v1834_v38 = vpop.f32.mrf.mxu1 }
 0x187   : > { %v2338_v62 = vsel %vm2288_vm2, %v2335_v46, %v2337_v50  ;;  %v1710_v13 = vadd.f32 %v12617_v40, %v1452_v32  ;;  %v1708_v50 = vadd.f32 %v12610_v47, %v1450_v31 }
 0x188   : > { %v1454_v9 = vpop.f32.mrf.mxu0  ;;  %v12907_v12 = vadd.f32 %v2338_v62, %v1699_v3  ;;  %v12910_v6 = vpop.f32.mrf.mxu1  ;;  %10346 = vmatmul.mubr.msk.bf16.gmra.mxu1 %vm1193_vm1, %v11400_v43 }
 0x189   : > { %v2339_v7 = vrot.slane %v1710_v13, 1  ;;  %3892 = vmatprep.mubr.bf16.mxu1 %v16604_v45  ;;  %v1712_v47 = vadd.f32 %v12621_v35, %v1454_v9 }
 0x18a   : > { %16615 = vst [vmem:[#allocation31_spill] sm:$0xff] %v12907_v12  ;;  %v1456_v1 = vpop.f32.mrf.mxu0  ;;  %v1837_v46 = vpop.f32.mrf.mxu1 }
 0x18b   : > { %v1714_v54 = vadd.f32 %v12627_v42, %v1456_v1 }
 0x18c   : > { %v1460_v60 = vpop.f32.mrf.mxu0  ;;  %10943 = vmatmul.mubr.msk.bf16.gmra.mxu0 %vm1193_vm1, %v11748_v2  ;;  %v12919_v21 = vpop.f32.mrf.mxu1  ;;  %v11750_v2 = vld [vmem:[%s11970_s18 + $0x200] ss:$12 sps:$4 sm:$0xff]  }
 0x18d   : > { %v2340_v44 = vrot.slane %v1714_v54, 1  ;;  %10946 = vmatprep.mubr.msk.bf16.mxu0 %vm1193_vm1, %v11749_v27  ;;  %v11404_v54 = vld [vmem:[%s11970_s18 + $0x74] ss:$12 sps:$4 sm:$0xff]   ;;  %v11751_v27 = vld [vmem:[%s11970_s18 + $0x218] ss:$12 sps:$4 sm:$0xff]  }
 0x18e   : > { %v1461_v40 = vpop.f32.mrf.mxu0  ;;  %v1842_v62 = vpop.f32.mrf.mxu1 }
 0x18f   : > { %v2341_v42 = vsel %vm2288_vm2, %v2339_v7, %v2340_v44  ;;  %v1719_v3 = vadd.f32 %v12637_v5, %v1461_v40  ;;  %v11393_v62 = vld [vmem:[%s11970_s18 + $0x28] ss:$12 sps:$4 sm:$0xff]  }
 0x190   : > { %v1463_v32 = vpop.f32.mrf.mxu0  ;;  %v12925_v38 = vadd.f32 %v2341_v42, %v1708_v50  ;;  %v12928_v1 = vpop.f32.mrf.mxu1  ;;  %10347 = vmatmul.mubr.msk.bf16.gmra.mxu1 %vm1193_vm1, %v11404_v54 }
 0x191   : > { %v2342_v13 = vrot.slane %v1719_v3, 1  ;;  %3902 = vmatprep.mubr.bf16.mxu1 %v16604_v45 }
 0x192   : > { %16616 = vst [vmem:[#allocation32_spill] sm:$0xff] %v12925_v38  ;;  %v1465_v31 = vpop.f32.mrf.mxu0  ;;  %v1845_v5 = vpop.f32.mrf.mxu1 }
 0x193   : > { %v2343_v43 = vsel %vm2288_vm2, %v2340_v44, %v2342_v13  ;;  %v1723_v7 = vadd.f32 %v12651_v52, %v1465_v31  ;;  %v1721_v52 = vadd.f32 %v12647_v48, %v1463_v32  ;;  %v11409_v31 = vld [vmem:[%s11970_s18 + $0x8c] ss:$12 sps:$4 sm:$0xff]  }
 0x194   : > { %v1469_v60 = vpop.f32.mrf.mxu0  ;;  %10947 = vmatmul.mubr.msk.bf16.gmra.mxu0 %vm1193_vm1, %v11750_v2  ;;  %v12934_v46 = vadd.f32 %v2343_v43, %v1712_v47  ;;  %v12939_v9 = vpop.f32.mrf.mxu1 }
 0x195   : > { %10950 = vmatprep.mubr.msk.bf16.mxu0 %vm1193_vm1, %v11751_v27  ;;  %v2344_v42 = vrot.slane %v1723_v7, 1  ;;  %v1727_v48 = vadd.f32 %v12663_v25, %v1469_v60  ;;  %v11394_v25 = vld [vmem:[%s16546_s2 + $0x29c] ss:$12 sps:$4 sm:$0xff]   ;;  %v11398_v60 = vld [vmem:[%s11970_s18 + $0x40] ss:$12 sps:$4 sm:$0xff]  }
 0x196   : > { %16617 = vst [vmem:[#allocation33_spill] sm:$0xff] %v12934_v46  ;;  %v1471_v35 = vpop.f32.mrf.mxu0  ;;  %v1850_v40 = vpop.f32.mrf.mxu1 }
 0x197   : > { %v1729_v44 = vadd.f32 %v12667_v49, %v1471_v35  ;;  %v11752_v49 = vld [vmem:[%s11970_s18 + $0x230] ss:$12 sps:$4 sm:$0xff]  }
 0x198   : > { %v1473_v50 = vpop.f32.mrf.mxu0  ;;  %v12946_v47 = vpop.f32.mrf.mxu1  ;;  %10348 = vmatmul.mubr.msk.bf16.gmra.mxu1 %vm1193_vm1, %v11409_v31  ;;  %v11414_v31 = vld [vmem:[%s11970_s18 + $0xa4] ss:$12 sps:$4 sm:$0xff]  }
 0x199   : > { %v2345_v3 = vrot.slane %v1729_v44, 1  ;;  %3911 = vmatprep.mubr.bf16.mxu1 %v16604_v45  ;;  %v11391_v50 = vld [vmem:[%s11970_s18 + $0x24] ss:$12 sps:$4 sm:$0xff]  }
 0x19a   : > { %v1474_v13 = vpop.f32.mrf.mxu0  ;;  %v1853_v5 = vpop.f32.mrf.mxu1 }
 0x19b   : > { %v2346_v43 = vsel %vm2288_vm2, %v2344_v42, %v2345_v3  ;;  %v1732_v54 = vadd.f32 %v12677_v53, %v1474_v13 }
 0x19c   : > { %v1478_v2 = vpop.f32.mrf.mxu0  ;;  %10951 = vmatmul.mubr.msk.bf16.gmra.mxu0 %vm1193_vm1, %v11752_v49  ;;  %v12953_v7 = vadd.f32 %v2346_v43, %v1721_v52  ;;  %v12956_v35 = vpop.f32.mrf.mxu1 }
 0x19d   : > { %v2347_v27 = vrot.slane %v1732_v54, 1  ;;  %3607 = vmatprep.mubr.bf16.mxu0 %v11393_v62 }
 0x19e   : > { %16618 = vst [vmem:[#allocation34_spill] sm:$0xff] %v12953_v7  ;;  %v1480_v32 = vpop.f32.mrf.mxu0  ;;  %v1858_v40 = vpop.f32.mrf.mxu1 }
 0x19f   : > { %v2348_v53 = vsel %vm2288_vm2, %v2345_v3, %v2347_v27  ;;  %v1738_v52 = vadd.f32 %v12693_v37, %v1480_v32  ;;  %v11399_v37 = vld [vmem:[%s16546_s2 + $0x284] ss:$12 sps:$4 sm:$0xff]   ;;  %v1736_v27 = vadd.f32 %v12688_v41, %v1478_v2  ;;  %v11396_v41 = vld [vmem:[%s11970_s18 + $0x3c] ss:$12 sps:$4 sm:$0xff]  }
 0x1a0   : > { %v1482_v44 = vpop.f32.mrf.mxu0  ;;  %v12962_v42 = vadd.f32 %v2348_v53, %v1727_v48  ;;  %v12969_v13 = vpop.f32.mrf.mxu1  ;;  %10349 = vmatmul.mubr.msk.bf16.gmra.mxu1 %vm1193_vm1, %v11414_v31 }
 0x1a1   : > { %v2349_v49 = vrot.slane %v1738_v52, 1  ;;  %3920 = vmatprep.mubr.bf16.mxu1 %v16604_v45 }
 0x1a2   : > { %16619 = vst [vmem:[#allocation35_spill] sm:$0xff] %v12962_v42  ;;  %v1484_v62 = vpop.f32.mrf.mxu0  ;;  %v1861_v54 = vpop.f32.mrf.mxu1  ;;  %v16644_v42 = vld [vmem:[#allocation17_spill] sm:$0xff] }
 0x1a3   : > { %v1742_v3 = vadd.f32 %v12708_v56, %v1484_v62  ;;  %v11408_v62 = vld [vmem:[%s16546_s2 + $0x26c] ss:$12 sps:$4 sm:$0xff]  }
 0x1a4   : > { %v1488_v43 = vpop.f32.mrf.mxu0  ;;  %3608 = vmatmul.mubr.bf16.vlgmr.msra.gmra.mxu0 %v11391_v50  ;;  %v12978_v32 = vpop.f32.mrf.mxu1  ;;  %v11470_v50 = vld [vmem:[%s16546_s2 + $0x3bc] ss:$12 sps:$4 sm:$0xff]  }
 0x1a5   : > { %v2350_v5 = vrot.slane %v1742_v3, 1  ;;  %4090 = vmatpush1.bf16.msra.mxu0 %v11394_v25  ;;  %3617 = vmatprep.mubr.bf16.mxu0 %v11398_v60  ;;  %v11403_v60 = vld [vmem:[%s11970_s18 + $0x58] ss:$12 sps:$4 sm:$0xff]   ;;  %v11418_v43 = vld [vmem:[%s11970_s18 + $0xbc] ss:$12 sps:$4 sm:$0xff]  }
 0x1a6   : > { %v1489_v48 = vpop.f32.mrf.mxu0  ;;  %4091 = vmatprep.subr.bf16.mxu0 %v16604_v45  ;;  %v1866_v2 = vpop.f32.mrf.mxu1  ;;  %10956 = vmatprep.subr.bf16.mxu1 %v11470_v50 }
 0x1a7   : > { %v2351_v56 = vsel %vm2288_vm2, %v2349_v49, %v2350_v5  ;;  %v1747_v53 = vadd.f32 %v12724_v28, %v1489_v48  ;;  %v1740_v28 = vadd.f32 %v12702_v58, %v1482_v44  ;;  %10957 = vmatpush3.bf16.msra.mxu1 %v11470_v50  ;;  %v11413_v58 = vld [vmem:[%s16546_s2 + $0x254] ss:$12 sps:$4 sm:$0xff]  }
 0x1a8   : > { %v1491_v40 = vpop.f32.mrf.mxu0  ;;  %v12988_v52 = vadd.f32 %v2351_v56, %v1736_v27  ;;  %v12996_v3 = vpop.f32.mrf.mxu1  ;;  %10350 = vmatmul.mubr.msk.bf16.gmra.mxu1 %vm1193_vm1, %v11418_v43 }
 0x1a9   : > { %v2352_v25 = vrot.slane %v1747_v53, 1  ;;  %4092 = vmatpush1.bf16.msra.mxu0 %v11399_v37  ;;  %3930 = vmatprep.mubr.bf16.mxu1 %v16604_v45 }
 0x1aa   : > { %16620 = vst [vmem:[#allocation36_spill] sm:$0xff] %v12988_v52  ;;  %v1493_v31 = vpop.f32.mrf.mxu0  ;;  %4093 = vmatprep.subr.bf16.mxu0 %v16604_v45  ;;  %v1869_v37 = vpop.f32.mrf.mxu1 }
 0x1ab   : > { %v2353_v54 = vsel %vm2288_vm2, %v2350_v5, %v2352_v25  ;;  %v1751_v48 = vadd.f32 %v12740_v17, %v1493_v31  ;;  %v11401_v17 = vld [vmem:[%s11970_s18 + $0x54] ss:$12 sps:$4 sm:$0xff]   ;;  %v11407_v25 = vld [vmem:[%s11970_s18 + $0x70] ss:$12 sps:$4 sm:$0xff]  }
 0x1ac   : > { %v1497_v49 = vpop.f32.mrf.mxu0  ;;  %3618 = vmatmul.mubr.bf16.gmra.mxu0 %v11396_v41  ;;  %v13000_v27 = vadd.f32 %v2353_v54, %v1740_v28  ;;  %v13007_v56 = vpop.f32.mrf.mxu1 }
 0x1ad   : > { %3626 = vmatprep.mubr.bf16.mxu0 %v11403_v60  ;;  %4094 = vmatpush1.bf16.msra.mxu0 %v11408_v62  ;;  %v2354_v41 = vrot.slane %v1751_v48, 1  ;;  %v11422_v60 = vld [vmem:[%s16546_s2 + $0x23c] ss:$12 sps:$4 sm:$0xff]   ;;  %v1749_v62 = vadd.f32 %v12735_v61, %v1491_v40  ;;  %v11427_v61 = vld [vmem:[%s16546_s2 + $0x224] ss:$12 sps:$4 sm:$0xff]   ;;  %v1755_v40 = vadd.f32 %v12751_v55, %v1497_v49 }
 0x1ae   : > { %16621 = vst [vmem:[#allocation37_spill] sm:$0xff] %v13000_v27  ;;  %v1499_v44 = vpop.f32.mrf.mxu0  ;;  %4095 = vmatprep.subr.bf16.mxu0 %v16604_v45  ;;  %v1874_v50 = vpop.f32.mrf.mxu1  ;;  %v11412_v55 = vld [vmem:[%s11970_s18 + $0x88] ss:$12 sps:$4 sm:$0xff]   ;;  %v11436_v49 = vld [vmem:[%s16546_s2 + $0x20c] ss:$12 sps:$4 sm:$0xff]  }
 0x1af   : > { %v1757_v5 = vadd.f32 %v12757_v18, %v1499_v44  ;;  %v11423_v18 = vld [vmem:[%s11970_s18 + $0xd4] ss:$12 sps:$4 sm:$0xff]   ;;  %v11405_v50 = vld [vmem:[%s11970_s18 + $0x6c] ss:$12 sps:$4 sm:$0xff]  }
 0x1b0   : > { %v1501_v53 = vpop.f32.mrf.mxu0  ;;  %v13019_v31 = vpop.f32.mrf.mxu1  ;;  %10351 = vmatmul.mubr.msk.bf16.gmra.mxu1 %vm1193_vm1, %v11423_v18  ;;  %v11428_v18 = vld [vmem:[%s11970_s18 + $0xec] ss:$12 sps:$4 sm:$0xff]  }
 0x1b1   : > { %v2355_v2 = vrot.slane %v1757_v5, 1  ;;  %4096 = vmatpush1.bf16.msra.mxu0 %v11413_v58  ;;  %3939 = vmatprep.mubr.bf16.mxu1 %v16604_v45 }
 0x1b2   : > { %v1502_v28 = vpop.f32.mrf.mxu0  ;;  %4097 = vmatprep.subr.bf16.mxu0 %v16604_v45  ;;  %v1877_v48 = vpop.f32.mrf.mxu1 }
 0x1b3   : > { %v2356_v43 = vsel %vm2288_vm2, %v2354_v41, %v2355_v2  ;;  %v1760_v54 = vadd.f32 %v12771_v30, %v1502_v28 }
 0x1b4   : > { %v1506_v37 = vpop.f32.mrf.mxu0  ;;  %3627 = vmatmul.mubr.bf16.gmra.mxu0 %v11401_v17  ;;  %v13024_v58 = vadd.f32 %v2356_v43, %v1749_v62  ;;  %v13030_v53 = vpop.f32.mrf.mxu1 }
 0x1b5   : > { %v2357_v44 = vrot.slane %v1760_v54, 1  ;;  %3635 = vmatprep.mubr.bf16.mxu0 %v11407_v25  ;;  %4098 = vmatpush1.bf16.msra.mxu0 %v11422_v60 }
 0x1b6   : > { %16622 = vst [vmem:[#allocation38_spill] sm:$0xff] %v13024_v58  ;;  %v1508_v5 = vpop.f32.mrf.mxu0  ;;  %4099 = vmatprep.subr.bf16.mxu0 %v16604_v45  ;;  %v1882_v41 = vpop.f32.mrf.mxu1 }
 0x1b7   : > { %v2358_v30 = vsel %vm2288_vm2, %v2355_v2, %v2357_v44  ;;  %v1766_v60 = vadd.f32 %v12789_v11, %v1508_v5  ;;  %v11441_v44 = vld [vmem:[%s16546_s2 + $0x1f4] ss:$12 sps:$4 sm:$0xff]   ;;  %v11410_v41 = vld [vmem:[%s11970_s18 + $0x84] ss:$12 sps:$4 sm:$0xff]  }
 0x1b8   : > { %v1510_v17 = vpop.f32.mrf.mxu0  ;;  %v13037_v25 = vadd.f32 %v2358_v30, %v1755_v40  ;;  %v13044_v28 = vpop.f32.mrf.mxu1  ;;  %10352 = vmatmul.mubr.msk.bf16.gmra.mxu1 %vm1193_vm1, %v11428_v18 }
 0x1b9   : > { %4100 = vmatpush1.bf16.msra.mxu0 %v11427_v61  ;;  %v2359_v48 = vrot.slane %v1766_v60, 1  ;;  %v1764_v61 = vadd.f32 %v12784_v22, %v1506_v37  ;;  %3948 = vmatprep.mubr.bf16.mxu1 %v16604_v45  ;;  %v11417_v37 = vld [vmem:[%s11970_s18 + $0xa0] ss:$12 sps:$4 sm:$0xff]  }
 0x1ba   : > { %16623 = vst [vmem:[#allocation39_spill] sm:$0xff] %v13037_v25  ;;  %v1512_v62 = vpop.f32.mrf.mxu0  ;;  %4101 = vmatprep.subr.bf16.mxu0 %v16604_v45  ;;  %v1885_v54 = vpop.f32.mrf.mxu1 }
 0x1bb   : > { %v1770_v2 = vadd.f32 %v12804_v15, %v1512_v62  ;;  %v1768_v62 = vadd.f32 %v12798_v4, %v1510_v17  ;;  %v11456_v4 = vld [vmem:[%s16546_s2 + $0x344] ss:$12 sps:$4 sm:$0xff]  }
 0x1bc   : > { %v1516_v43 = vpop.f32.mrf.mxu0  ;;  %3636 = vmatmul.mubr.bf16.gmra.mxu0 %v11405_v50  ;;  %v13053_v5 = vpop.f32.mrf.mxu1 }
 0x1bd   : > { %v2360_v11 = vrot.slane %v1770_v2, 1  ;;  %3645 = vmatprep.mubr.bf16.mxu0 %v11412_v55  ;;  %4102 = vmatpush1.bf16.msra.mxu0 %v11436_v49  ;;  %v11451_v49 = vld [vmem:[%s16546_s2 + $0x35c] ss:$12 sps:$4 sm:$0xff]  }
 0x1be   : > { %v1517_v40 = vpop.f32.mrf.mxu0  ;;  %4103 = vmatprep.subr.bf16.mxu0 %v16604_v45  ;;  %v1890_v60 = vpop.f32.mrf.mxu1 }
 0x1bf   : > { %v2361_v15 = vsel %vm2288_vm2, %v2359_v48, %v2360_v11  ;;  %v1775_v30 = vadd.f32 %v12820_v63, %v1517_v40  ;;  %v11432_v63 = vld [vmem:[%s11970_s18 + $0x104] ss:$12 sps:$4 sm:$0xff]  }
 0x1c0   : > { %v1519_v50 = vpop.f32.mrf.mxu0  ;;  %v13061_v55 = vadd.f32 %v2361_v15, %v1764_v61  ;;  %v13068_v2 = vpop.f32.mrf.mxu1  ;;  %10353 = vmatmul.mubr.msk.bf16.gmra.mxu1 %vm1193_vm1, %v11432_v63  ;;  %v11437_v63 = vld [vmem:[%s11970_s18 + $0x11c] ss:$12 sps:$4 sm:$0xff]  }
 0x1c1   : > { %v2362_v22 = vrot.slane %v1775_v30, 1  ;;  %4104 = vmatpush1.bf16.msra.mxu0 %v11441_v44  ;;  %3958 = vmatprep.mubr.bf16.mxu1 %v16604_v45 }
 0x1c2   : > { %16624 = vst [vmem:[#allocation40_spill] sm:$0xff] %v13061_v55  ;;  %v1521_v18 = vpop.f32.mrf.mxu0  ;;  %4105 = vmatprep.subr.bf16.mxu0 %v16604_v45  ;;  %v1893_v48 = vpop.f32.mrf.mxu1  ;;  %v11452_v55 = vld [vmem:[%s11970_s18 + $0x164] ss:$12 sps:$4 sm:$0xff]  }
 0x1c3   : > { %v2363_v43 = vsel %vm2288_vm2, %v2360_v11, %v2362_v22  ;;  %v1779_v44 = vadd.f32 %v12836_v33, %v1521_v18  ;;  %v11415_v33 = vld [vmem:[%s11970_s18 + $0x9c] ss:$12 sps:$4 sm:$0xff]   ;;  %v11421_v22 = vld [vmem:[%s11970_s18 + $0xb8] ss:$12 sps:$4 sm:$0xff]  }
 0x1c4   : > { %v1525_v54 = vpop.f32.mrf.mxu0  ;;  %3646 = vmatmul.mubr.bf16.gmra.mxu0 %v11410_v41  ;;  %v13073_v61 = vadd.f32 %v2363_v43, %v1768_v62  ;;  %v13079_v40 = vpop.f32.mrf.mxu1 }
 0x1c5   : > { %3654 = vmatprep.mubr.bf16.mxu0 %v11417_v37  ;;  %4106 = vmatpush2.bf16.msra.mxu0 %v11451_v49  ;;  %v2364_v41 = vrot.slane %v1779_v44, 1  ;;  %v11465_v37 = vld [vmem:[%s16546_s2 + $0x32c] ss:$12 sps:$4 sm:$0xff]   ;;  %v1777_v49 = vadd.f32 %v12831_v8, %v1519_v50  ;;  %v11471_v8 = vld [vmem:[%s16546_s2 + $0x314] ss:$12 sps:$4 sm:$0xff]  }
 0x1c6   : > { %16625 = vst [vmem:[#allocation41_spill] sm:$0xff] %v13073_v61  ;;  %v1527_v17 = vpop.f32.mrf.mxu0  ;;  %4107 = vmatprep.subr.bf16.mxu0 %v16604_v45  ;;  %v1898_v30 = vpop.f32.mrf.mxu1  ;;  %v11494_v50 = vld [vmem:[%s16546_s2 + $0x3a4] ss:$12 sps:$4 sm:$0xff]  }
 0x1c7   : > { %v1785_v11 = vadd.f32 %v12853_v26, %v1527_v17  ;;  %10958 = vmatprep.subr.bf16.mxu1 %v11494_v50 }
 0x1c8   : > { %v1529_v15 = vpop.f32.mrf.mxu0  ;;  %v13091_v18 = vpop.f32.mrf.mxu1  ;;  %10354 = vmatmul.mubr.msk.bf16.gmra.mxu1 %vm1193_vm1, %v11437_v63 }
 0x1c9   : > { %v2365_v60 = vrot.slane %v1785_v11, 1  ;;  %4108 = vmatpush2.bf16.msra.mxu0 %v11456_v4  ;;  %3967 = vmatprep.mubr.bf16.mxu1 %v16604_v45 }
 0x1ca   : > { %v1530_v62 = vpop.f32.mrf.mxu0  ;;  %4109 = vmatprep.subr.bf16.mxu0 %v16604_v45  ;;  %v1901_v44 = vpop.f32.mrf.mxu1  ;;  %10959 = vmatpush3.bf16.msra.mxu1 %v11494_v50 }
 0x1cb   : > { %v2366_v26 = vsel %vm2288_vm2, %v2364_v41, %v2365_v60  ;;  %v1788_v43 = vadd.f32 %v12868_v34, %v1530_v62  ;;  %v1783_v34 = vadd.f32 %v12847_v14, %v1525_v54  ;;  %v11419_v41 = vld [vmem:[%s11970_s18 + $0xb4] ss:$12 sps:$4 sm:$0xff]   ;;  %v11426_v54 = vld [vmem:[%s11970_s18 + $0xd0] ss:$12 sps:$4 sm:$0xff]  }
 0x1cc   : > { %v1567_v48 = vpop.f32.mrf.mxu0  ;;  %3655 = vmatmul.mubr.bf16.gmra.mxu0 %v11415_v33  ;;  %v13097_v4 = vadd.f32 %v2366_v26, %v1777_v49  ;;  %v13106_v15 = vpop.f32.mrf.mxu1  ;;  %v11480_v49 = vld [vmem:[%s16546_s2 + $0x2fc] ss:$12 sps:$4 sm:$0xff]  }
 0x1cd   : > { %v2367_v17 = vrot.slane %v1788_v43, 1  ;;  %3663 = vmatprep.mubr.bf16.mxu0 %v11421_v22  ;;  %4110 = vmatpush2.bf16.msra.mxu0 %v11465_v37  ;;  %v16628_v26 = vld [vmem:[#allocation6_spill] sm:$0xff] }
 0x1ce   : > { %16626 = vst [vmem:[#allocation42_spill] sm:$0xff] %v13097_v4  ;;  %v1569_v11 = vpop.f32.mrf.mxu0  ;;  %4111 = vmatprep.subr.bf16.mxu0 %v16604_v45  ;;  %v1906_v22 = vpop.f32.mrf.mxu1  ;;  %v11447_v4 = vld [vmem:[%s11970_s18 + $0x14c] ss:$12 sps:$4 sm:$0xff]  }
 0x1cf   : > { %v2368_v33 = vsel %vm2288_vm2, %v2365_v60, %v2367_v17  ;;  %v1570_v14 = vadd.f32 %v1569_v11, %v12472_v24  ;;  %v11442_v60 = vld [vmem:[%s11970_s18 + $0x134] ss:$12 sps:$4 sm:$0xff]  }
 0x1d0   : > { %v1571_v30 = vpop.f32.mrf.mxu0  ;;  %v13113_v37 = vadd.f32 %v2368_v33, %v1783_v34  ;;  %v13120_v63 = vpop.f32.mrf.mxu1  ;;  %v16629_v34 = vld [vmem:[#allocation4_spill] sm:$0xff]  ;;  %10355 = vmatmul.mubr.msk.bf16.gmra.mxu1 %vm1193_vm1, %v11442_v60  ;;  %v11431_v60 = vld [vmem:[%s11970_s18 + $0xe8] ss:$12 sps:$4 sm:$0xff]  }
 0x1d1   : > { %4112 = vmatpush2.bf16.msra.mxu0 %v11471_v8  ;;  %v2289_v50 = vrot.slane %v1570_v14, 1  ;;  %v11485_v8 = vld [vmem:[%s16546_s2 + $0x2e4] ss:$12 sps:$4 sm:$0xff]   ;;  %v1568_v11 = vadd.f32 %v1567_v48, %v16629_v34  ;;  %3976 = vmatprep.mubr.bf16.mxu1 %v16604_v45  ;;  %v11502_v48 = vld [vmem:[%s16546_s2 + $0x38c] ss:$12 sps:$4 sm:$0xff]  }
 0x1d2   : > { %16627 = vst [vmem:[#allocation43_spill] sm:$0xff] %v13113_v37  ;;  %v1573_v62 = vpop.f32.mrf.mxu0  ;;  %4113 = vmatprep.subr.bf16.mxu0 %v16604_v45  ;;  %v1909_v17 = vpop.f32.mrf.mxu1  ;;  %v16630_v14 = vld [vmem:[#allocation7_spill] sm:$0xff]  ;;  %10960 = vmatprep.subr.bf16.mxu1 %v11502_v48  ;;  %v16634_v37 = vld [vmem:[#allocation8_spill] sm:$0xff] }
 0x1d3   : > { %v1574_v43 = vadd.f32 %v1573_v62, %v16628_v26  ;;  %v11424_v62 = vld [vmem:[%s11970_s18 + $0xcc] ss:$12 sps:$4 sm:$0xff]   ;;  %10961 = vmatpush3.bf16.msra.mxu1 %v11502_v48 }
 0x1d4   : > { %v1577_v44 = vpop.f32.mrf.mxu0  ;;  %3664 = vmatmul.mubr.bf16.gmra.mxu0 %v11419_v41  ;;  %v13129_v22 = vpop.f32.mrf.mxu1  ;;  %v11495_v17 = vld [vmem:[%s16546_s2 + $0x2cc] ss:$12 sps:$4 sm:$0xff]  }
 0x1d5   : > { %v2290_v24 = vrot.slane %v1574_v43, 1  ;;  %3673 = vmatprep.mubr.bf16.mxu0 %v11426_v54  ;;  %4114 = vmatpush2.bf16.msra.mxu0 %v11480_v49 }
 0x1d6   : > { %v1578_v33 = vpop.f32.mrf.mxu0  ;;  %4115 = vmatprep.subr.bf16.mxu0 %v16604_v45  ;;  %v1914_v26 = vpop.f32.mrf.mxu1 }
 0x1d7   : > { %v2291_v41 = vsel %vm2288_vm2, %v2289_v50, %v2290_v24  ;;  %v1579_v54 = vadd.f32 %v1578_v33, %v16630_v14  ;;  %v16631_v50 = vld [vmem:[#allocation5_spill] sm:$0xff] }
 0x1d8   : > { %v1580_v49 = vpop.f32.mrf.mxu0  ;;  %v13140_v43 = vadd.f32 %v2291_v41, %v1568_v11  ;;  %v1572_v34 = vadd.f32 %v1571_v30, %v16631_v50  ;;  %v13147_v14 = vpop.f32.mrf.mxu1  ;;  %v11506_v41 = vld [vmem:[%s16546_s2 + $0x374] ss:$12 sps:$4 sm:$0xff]   ;;  %10356 = vmatmul.mubr.msk.bf16.gmra.mxu1 %vm1193_vm1, %v11447_v4 }
 0x1d9   : > { %v2292_v44 = vrot.slane %v1579_v54, 1  ;;  %4116 = vmatpush2.bf16.msra.mxu0 %v11485_v8  ;;  %v16632_v30 = vld [vmem:[#allocation9_spill] sm:$0xff]  ;;  %3986 = vmatprep.mubr.bf16.mxu1 %v16604_v45  ;;  %v1581_v61 = vadd.f32 %v1580_v49, %v16634_v37 }
 0x1da   : > { %v1582_v33 = vpop.f32.mrf.mxu0  ;;  %4117 = vmatprep.subr.bf16.mxu0 %v16604_v45  ;;  %v1917_v8 = vpop.f32.mrf.mxu1  ;;  %10962 = vmatprep.subr.bf16.mxu1 %v11506_v41 }
 0x1db   : > { %v2293_v26 = vsel %vm2288_vm2, %v2290_v24, %v2292_v44  ;;  %v1583_v50 = vadd.f32 %v1582_v33, %v16632_v30  ;;  %v11500_v24 = vld [vmem:[%s16546_s2 + $0x2b4] ss:$12 sps:$4 sm:$0xff]   ;;  %v11429_v33 = vld [vmem:[%s11970_s18 + $0xe4] ss:$12 sps:$4 sm:$0xff]   ;;  %10963 = vmatpush3.bf16.msra.mxu1 %v11506_v41 }
 0x1dc   : > { %v1586_v11 = vpop.f32.mrf.mxu0  ;;  %3674 = vmatmul.mubr.bf16.gmra.mxu0 %v11424_v62  ;;  %v13155_v54 = vadd.f32 %v2293_v26, %v1572_v34  ;;  %v13161_v44 = vpop.f32.mrf.mxu1  ;;  %v16633_v62 = vld [vmem:[#allocation11_spill] sm:$0xff]  ;;  %v11435_v30 = vld [vmem:[%s11970_s18 + $0x100] ss:$12 sps:$4 sm:$0xff]  }
 0x1dd   : > { %3682 = vmatprep.mubr.bf16.mxu0 %v11431_v60  ;;  %4118 = vmatpush2.bf16.msra.mxu0 %v11495_v17  ;;  %v2294_v26 = vrot.slane %v1583_v50, 1  ;;  %v16636_v50 = vld [vmem:[#allocation10_spill] sm:$0xff] }
 0x1de   : > { %v1588_v48 = vpop.f32.mrf.mxu0  ;;  %4119 = vmatprep.subr.bf16.mxu0 %v16604_v45  ;;  %v1922_v17 = vpop.f32.mrf.mxu1 }
 0x1df   : > { %v1589_v34 = vadd.f32 %v1588_v48, %v16633_v62  ;;  %v16635_v48 = vld [vmem:[#allocation12_spill] sm:$0xff] }
 0x1e0   : > { %v1590_v60 = vpop.f32.mrf.mxu0  ;;  %v13170_v4 = vpop.f32.mrf.mxu1  ;;  %10357 = vmatmul.mubr.msk.bf16.gmra.mxu1 %vm1193_vm1, %v11452_v55  ;;  %v11440_v55 = vld [vmem:[%s11970_s18 + $0x118] ss:$12 sps:$4 sm:$0xff]  }
 0x1e1   : > { %v2295_v8 = vrot.slane %v1589_v34, 1  ;;  %4120 = vmatpush2.bf16.msra.mxu0 %v11500_v24  ;;  %v1587_v24 = vadd.f32 %v1586_v11, %v16636_v50  ;;  %3995 = vmatprep.mubr.bf16.mxu1 %v16604_v45 }
 0x1e2   : > { %v1591_v25 = vpop.f32.mrf.mxu0  ;;  %v1925_v60 = vpop.f32.mrf.mxu1 }
 0x1e3   : > { %v2296_v58 = vsel %vm2288_vm2, %v2294_v26, %v2295_v8  ;;  %v1592_v62 = vadd.f32 %v1591_v25, %v16635_v48  ;;  %v13198_v60 = vld [vmem:[%s11970_s18 + $0x17c] ss:$12 sps:$4 sm:$0xff]  }
 0x1e4   : > { %v1595_v27 = vpop.f32.mrf.mxu0  ;;  %3683 = vmatmul.mubr.bf16.gmra.mxu0 %v11429_v33  ;;  %v13175_v17 = vadd.f32 %v2296_v58, %v1581_v61  ;;  %v13178_v49 = vpop.f32.mrf.mxu1  ;;  %v13186_v58 = vld [vmem:[%s16546_s2 + $0x5b8] sm:$0x33]  ;;  %16640 = vst [vmem:[#allocation7_spill] sm:$0xff] %v13198_v60 }
 0x1e5   : > { %v2297_v41 = vrot.slane %v1592_v62, 1  ;;  %3691 = vmatprep.mubr.bf16.mxu0 %v11435_v30  ;;  %16637 = vst [vmem:[#allocation6_spill] sm:$0xff] %v13186_v58  ;;  %v11433_v61 = vld [vmem:[%s11970_s18 + $0xfc] ss:$12 sps:$4 sm:$0xff]   ;;  %v10703_v11 = vcombine.high %v13186_v58, %v13186_v58 }
 0x1e6   : > { %v1597_v37 = vpop.f32.mrf.mxu0  ;;  %v1930_v33 = vpop.f32.mrf.mxu1  ;;  %v16638_v30 = vld [vmem:[#allocation14_spill] sm:$0xff] }
 0x1e7   : > { %v2298_v34 = vsel %vm2288_vm2, %v2295_v8, %v2297_v41  ;;  %v1598_v48 = vadd.f32 %v1597_v37, %v16638_v30  ;;  %10705 = vmatprep.subr.msk.bf16.mxu0 %vm1266_vm0, %v10703_v11  ;;  %v16641_v41 = vld [vmem:[#allocation16_spill] sm:$0xff] }
 0x1e8   : > { %v1599_v25 = vpop.f32.mrf.mxu0  ;;  %v13191_v26 = vadd.f32 %v2298_v34, %v1587_v24  ;;  %v13195_v8 = vpop.f32.mrf.mxu1  ;;  %v16642_v34 = vld [vmem:[#allocation13_spill] sm:$0xff]  ;;  %10358 = vmatmul.mubr.msk.bf16.gmra.mxu1 %vm1193_vm1, %v13198_v60 }
 0x1e9   : > { %16639 = vst [vmem:[#allocation4_spill] sm:$0xff] %v13195_v8  ;;  %v2299_v58 = vrot.slane %v1598_v48, 1  ;;  %v1596_v37 = vadd.f32 %v1595_v27, %v16642_v34  ;;  %4004 = vmatprep.mubr.bf16.mxu1 %v16604_v45  ;;  %v11445_v27 = vld [vmem:[%s11970_s18 + $0x130] ss:$12 sps:$4 sm:$0xff]   ;;  %v11461_v60 = vld [vmem:[%s11970_s18 + $0x194] ss:$12 sps:$4 sm:$0xff]  }
 0x1ea   : > { %v1601_v62 = vpop.f32.mrf.mxu0  ;;  %v1933_v33 = vpop.f32.mrf.mxu1 }
 0x1eb   : > { %v1602_v50 = vadd.f32 %v1601_v62, %v16641_v41 }
 0x1ec   : > { %v1605_v52 = vpop.f32.mrf.mxu0  ;;  %3692 = vmatmul.mubr.bf16.gmra.mxu0 %v11433_v61  ;;  %v13203_v7 = vpop.f32.mrf.mxu1  ;;  %v11438_v61 = vld [vmem:[%s11970_s18 + $0x114] ss:$12 sps:$4 sm:$0xff]  }
 0x1ed   : > { %v2300_v24 = vrot.slane %v1602_v50, 1  ;;  %3701 = vmatprep.mubr.bf16.mxu0 %v11440_v55  ;;  %16643 = vst [vmem:[#allocation5_spill] sm:$0xff] %v13203_v7  ;;  %v16645_v50 = vld [vmem:[#allocation15_spill] sm:$0xff] }
 0x1ee   : > { %v1606_v30 = vpop.f32.mrf.mxu0  ;;  %v1938_v48 = vpop.f32.mrf.mxu1  ;;  %v1600_v33 = vadd.f32 %v1599_v25, %v16645_v50  ;;  %v16649_v25 = vld [vmem:[#allocation21_spill] sm:$0xff] }
 0x1ef   : > { %v2301_v11 = vsel %vm2288_vm2, %v2299_v58, %v2300_v24  ;;  %v1607_v62 = vadd.f32 %v1606_v30, %v16644_v42  ;;  %v16647_v48 = vld [vmem:[#allocation19_spill] sm:$0xff] }
 0x1f0   : > { %v1608_v52 = vpop.f32.mrf.mxu0  ;;  %v13211_v41 = vadd.f32 %v2301_v11, %v1596_v37  ;;  %v13215_v46 = vpop.f32.mrf.mxu1  ;;  %10359 = vmatmul.mubr.msk.bf16.gmra.mxu1 %vm1193_vm1, %v11461_v60 }
 0x1f1   : > { %v2302_v55 = vrot.slane %v1607_v62, 1  ;;  %16646 = vst [vmem:[#allocation9_spill] sm:$0xff] %v13215_v46  ;;  %4014 = vmatprep.mubr.bf16.mxu1 %v16604_v45  ;;  %v16653_v46 = vld [vmem:[#allocation22_spill] sm:$0xff] }
 0x1f2   : > { %v1610_v34 = vpop.f32.mrf.mxu0  ;;  %v1941_v42 = vpop.f32.mrf.mxu1 }
 0x1f3   : > { %v2303_v58 = vsel %vm2288_vm2, %v2300_v24, %v2302_v55  ;;  %v1611_v37 = vadd.f32 %v1610_v34, %v16647_v48  ;;  %v11443_v55 = vld [vmem:[%s11970_s18 + $0x12c] ss:$12 sps:$4 sm:$0xff]  }
 0x1f4   : > { %v1614_v12 = vpop.f32.mrf.mxu0  ;;  %3702 = vmatmul.mubr.bf16.gmra.mxu0 %v11438_v61  ;;  %v13219_v30 = vadd.f32 %v2303_v58, %v1600_v33  ;;  %v13222_v62 = vpop.f32.mrf.mxu1  ;;  %v11450_v33 = vld [vmem:[%s11970_s18 + $0x148] ss:$12 sps:$4 sm:$0xff]  }
 0x1f5   : > { %3710 = vmatprep.mubr.bf16.mxu0 %v11445_v27  ;;  %16648 = vst [vmem:[#allocation11_spill] sm:$0xff] %v13222_v62  ;;  %v2304_v61 = vrot.slane %v1611_v37, 1  ;;  %v16650_v58 = vld [vmem:[#allocation18_spill] sm:$0xff] }
 0x1f6   : > { %v1616_v11 = vpop.f32.mrf.mxu0  ;;  %v1946_v38 = vpop.f32.mrf.mxu1  ;;  %v1609_v23 = vadd.f32 %v1608_v52, %v16650_v58  ;;  %v13233_v27 = vld [vmem:[%s11970_s18 + $0x1ac] ss:$12 sps:$4 sm:$0xff]  }
 0x1f7   : > { %v1617_v50 = vadd.f32 %v1616_v11, %v16649_v25  ;;  %16652 = vst [vmem:[#allocation12_spill] sm:$0xff] %v13233_v27 }
 0x1f8   : > { %v1618_v24 = vpop.f32.mrf.mxu0  ;;  %v13230_v48 = vpop.f32.mrf.mxu1  ;;  %10360 = vmatmul.mubr.msk.bf16.gmra.mxu1 %vm1193_vm1, %v13233_v27 }
 0x1f9   : > { %v2305_v42 = vrot.slane %v1617_v50, 1  ;;  %16651 = vst [vmem:[#allocation8_spill] sm:$0xff] %v13230_v48  ;;  %v16654_v50 = vld [vmem:[#allocation20_spill] sm:$0xff]  ;;  %4023 = vmatprep.mubr.bf16.mxu1 %v16604_v45 }
 0x1fa   : > { %v1619_v34 = vpop.f32.mrf.mxu0  ;;  %v1949_v24 = vpop.f32.mrf.mxu1  ;;  %v1615_v52 = vadd.f32 %v1614_v12, %v16654_v50  ;;  %v11455_v50 = vld [vmem:[%s11970_s18 + $0x160] ss:$12 sps:$4 sm:$0xff]  }
 0x1fb   : > { %v2306_v60 = vsel %vm2288_vm2, %v2304_v61, %v2305_v42  ;;  %v1620_v11 = vadd.f32 %v1619_v34, %v16653_v46  ;;  %v16658_v24 = vld [vmem:[#allocation24_spill] sm:$0xff] }
 0x1fc   : > { %v1623_v25 = vpop.f32.mrf.mxu0  ;;  %3711 = vmatmul.mubr.bf16.gmra.mxu0 %v11443_v55  ;;  %v13237_v38 = vadd.f32 %v2306_v60, %v1609_v23  ;;  %v13240_v48 = vpop.f32.mrf.mxu1  ;;  %v11448_v55 = vld [vmem:[%s11970_s18 + $0x144] ss:$12 sps:$4 sm:$0xff]  }
 0x1fd   : > { %v2307_v37 = vrot.slane %v1620_v11, 1  ;;  %3719 = vmatprep.mubr.bf16.mxu0 %v11450_v33  ;;  %16655 = vst [vmem:[#allocation10_spill] sm:$0xff] %v13240_v48  ;;  %v16656_v60 = vld [vmem:[#allocation27_spill] sm:$0xff] }
 0x1fe   : > { %v1625_v58 = vpop.f32.mrf.mxu0  ;;  %v1954_v34 = vpop.f32.mrf.mxu1  ;;  %v16657_v33 = vld [vmem:[#allocation3_spill] sm:$0xff] }
 0x1ff   : > { %v2308_v61 = vsel %vm2288_vm2, %v2305_v42, %v2307_v37  ;;  %v1635_v11 = vadd.f32 %v16657_v33, %v16656_v60  ;;  %v1626_v12 = vadd.f32 %v1625_v58, %v16658_v24  ;;  %v11511_v42 = vld [vmem:[%s16546_s2 + $0x484] ss:$12 sps:$4 sm:$0xff]   ;;  %v16660_v37 = vld [vmem:[#allocation26_spill] sm:$0xff] }
 0x200   : > { %v1627_v46 = vpop.f32.mrf.mxu0  ;;  %v13247_v23 = vadd.f32 %v2308_v61, %v1615_v52  ;;  %v13253_v48 = vpop.f32.mrf.mxu1  ;;  %5904 = vmatprep.subr.bf16.mxu1 %v11511_v42  ;;  %v16661_v33 = vld [vmem:[#allocation23_spill] sm:$0xff]  ;;  %10361 = vmatmul.mubr.msk.bf16.gmra.mxu1 %vm1193_vm1, %v13256_v57  ;;  %v11460_v42 = vld [vmem:[%s11970_s18 + $0x178] ss:$12 sps:$4 sm:$0xff]  }
 0x201   : > { %16659 = vst [vmem:[#allocation14_spill] sm:$0xff] %v13253_v48  ;;  %v2312_v61 = vrot.slane %v1635_v11, 1  ;;  %v2309_v60 = vrot.slane %v1626_v12, 1  ;;  %v1624_v24 = vadd.f32 %v1623_v25, %v16661_v33  ;;  %v16662_v48 = vld [vmem:[#allocation25_spill] sm:$0xff]  ;;  %4032 = vmatprep.mubr.bf16.mxu1 %v16604_v45  ;;  %v11453_v11 = vld [vmem:[%s11970_s18 + $0x15c] ss:$12 sps:$4 sm:$0xff]  }
 0x202   : > { %v1629_v29 = vpop.f32.mrf.mxu0  ;;  %v1957_v52 = vpop.f32.mrf.mxu1  ;;  %v1628_v7 = vadd.f32 %v1627_v46, %v16662_v48 }
 0x203   : > { %v1630_v27 = vadd.f32 %v1629_v29, %v16660_v37 }
 0x204   : > { %v10908_v34 = vpop.f32.mrf.mxu0  ;;  %3720 = vmatmul.mubr.bf16.gmra.mxu0 %v11448_v55  ;;  %v13264_v8 = vpop.f32.mrf.mxu1 }
 0x205   : > { %v2310_v58 = vrot.slane %v1630_v27, 1  ;;  %3729 = vmatprep.mubr.bf16.mxu0 %v11455_v50  ;;  %v2058_v48 = vadd.f32 %v10908_v34, %v12902_v39 }
 0x206   : > { %v2049_v62 = vpop.f32.mrf.mxu0  ;;  %v1962_v12 = vpop.f32.mrf.mxu1 }
 0x207   : > { %v2311_v29 = vsel %vm2288_vm2, %v2309_v60, %v2310_v58  ;;  %v2313_v55 = vsel %vm2288_vm2, %v2310_v58, %v2312_v61  ;;  %v2050_v46 = vadd.f32 %v2049_v62, %v12878_v59  ;;  %v13282_v60 = vld [vmem:[%s11970_s18 + $0x1dc] ss:$12 sps:$4 sm:$0xff]  }
 0x208   : > { %v10909_v27 = vpop.f32.mrf.mxu0  ;;  %v13272_v50 = vadd.f32 %v2311_v29, %v1624_v24  ;;  %v13274_v25 = vadd.f32 %v2313_v55, %v1628_v7  ;;  %v13279_v52 = vpop.f32.mrf.mxu1  ;;  %v2485_v24 = vrot.slane %v2058_v48, 2  ;;  %10362 = vmatmul.mubr.msk.bf16.gmra.mxu1 %vm1193_vm1, %v13282_v60 }
 0x209   : > { %v2482_v7 = vrot.slane %v2050_v46, 2  ;;  %v2061_v29 = vadd.f32 %v10909_v27, %v12910_v6  ;;  %4042 = vmatprep.mubr.bf16.mxu1 %v16604_v45 }
 0x20a   : > { %v2052_v37 = vpop.f32.mrf.mxu0  ;;  %v1965_v33 = vpop.f32.mrf.mxu1 }
 0x20b   : > { %v2053_v61 = vadd.f32 %v2052_v37, %v12888_v20  ;;  %v13307_v33 = vld [vmem:[%s11970_s18 + $0x1f4] ss:$12 sps:$4 sm:$0xff]  }
 0x20c   : > { %v10912_v58 = vpop.f32.mrf.mxu0  ;;  %3730 = vmatmul.mubr.bf16.gmra.mxu0 %v11453_v11  ;;  %v13286_v62 = vpop.f32.mrf.mxu1  ;;  %v11458_v11 = vld [vmem:[%s11970_s18 + $0x174] ss:$12 sps:$4 sm:$0xff]  }
 0x20d   : > { %v2483_v39 = vrot.slane %v2053_v61, 2  ;;  %3738 = vmatprep.mubr.bf16.mxu0 %v11460_v42  ;;  %v2074_v20 = vadd.f32 %v10912_v58, %v12939_v9  ;;  %v2487_v42 = vrot.slane %v2061_v29, 2 }
 0x20e   : > { %v2065_v59 = vpop.f32.mrf.mxu0  ;;  %v1970_v12 = vpop.f32.mrf.mxu1 }
 0x20f   : > { %v2066_v34 = vadd.f32 %v2065_v59, %v12919_v21  ;;  %v2484_v55 = vsel %vm2481_vm3, %v2482_v7, %v2483_v39  ;;  %v2486_v6 = vsel %vm2481_vm3, %v2483_v39, %v2485_v24  ;;  %v11464_v21 = vld [vmem:[%s11970_s18 + $0x190] ss:$12 sps:$4 sm:$0xff]   ;;  %v2492_v24 = vrot.slane %v2074_v20, 2  ;;  %v11462_v12 = vld [vmem:[%s11970_s18 + $0x18c] ss:$12 sps:$4 sm:$0xff]  }
 0x210   : > { %v10913_v27 = vpop.f32.mrf.mxu0  ;;  %v13297_v48 = vadd.f32 %v2484_v55, %v13140_v43  ;;  %v13300_v46 = vadd.f32 %v2486_v6, %v13155_v54  ;;  %v13304_v58 = vpop.f32.mrf.mxu1  ;;  %10363 = vmatmul.mubr.msk.bf16.gmra.mxu1 %vm1193_vm1, %v13307_v33 }
 0x211   : > { %v2488_v9 = vrot.slane %v2066_v34, 2  ;;  %v2077_v37 = vadd.f32 %v10913_v27, %v12946_v47  ;;  %4051 = vmatprep.mubr.bf16.mxu1 %v16604_v45 }
 0x212   : > { %v2068_v61 = vpop.f32.mrf.mxu0  ;;  %v1973_v54 = vpop.f32.mrf.mxu1 }
 0x213   : > { %v2493_v7 = vrot.slane %v2077_v37, 2  ;;  %v2069_v39 = vadd.f32 %v2068_v61, %v12928_v1  ;;  %v2489_v43 = vsel %vm2481_vm3, %v2487_v42, %v2488_v9 }
 0x214   : > { %v10916_v59 = vpop.f32.mrf.mxu0  ;;  %3739 = vmatmul.mubr.bf16.gmra.mxu0 %v11458_v11  ;;  %v13312_v29 = vadd.f32 %v2489_v43, %v13175_v17  ;;  %v13315_v6 = vpop.f32.mrf.mxu1 }
 0x215   : > { %v2490_v47 = vrot.slane %v2069_v39, 2  ;;  %3747 = vmatprep.mubr.bf16.mxu0 %v11464_v21  ;;  %v2494_v34 = vsel %vm2481_vm3, %v2492_v24, %v2493_v7  ;;  %v2090_v20 = vadd.f32 %v10916_v59, %v12978_v32  ;;  %v11469_v24 = vld [vmem:[%s11970_s18 + $0x1a8] ss:$12 sps:$4 sm:$0xff]   ;;  %v13335_v32 = vld [vmem:[%s11970_s18 + $0x20c] ss:$12 sps:$4 sm:$0xff]  }
 0x216   : > { %v2081_v55 = vpop.f32.mrf.mxu0  ;;  %v13320_v1 = vadd.f32 %v2494_v34, %v13211_v41  ;;  %v1978_v42 = vpop.f32.mrf.mxu1 }
 0x217   : > { %v2082_v17 = vadd.f32 %v2081_v55, %v12956_v35  ;;  %v2491_v27 = vsel %vm2481_vm3, %v2488_v9, %v2490_v47  ;;  %v2498_v35 = vrot.slane %v2090_v20, 2 }
 0x218   : > { %v10917_v11 = vpop.f32.mrf.mxu0  ;;  %v13328_v37 = vadd.f32 %v2491_v27, %v13191_v26  ;;  %v13332_v39 = vpop.f32.mrf.mxu1  ;;  %10364 = vmatmul.mubr.msk.bf16.gmra.mxu1 %vm1193_vm1, %v13335_v32 }
 0x219   : > { %v2495_v21 = vrot.slane %v2082_v17, 2  ;;  %v2093_v61 = vadd.f32 %v10917_v11, %v12996_v3  ;;  %4060 = vmatprep.mubr.bf16.mxu1 %v16604_v45  ;;  %v11467_v17 = vld [vmem:[%s11970_s18 + $0x1a4] ss:$12 sps:$4 sm:$0xff]  }
 0x21a   : > { %v2084_v41 = vpop.f32.mrf.mxu0  ;;  %v1981_v26 = vpop.f32.mrf.mxu1 }
 0x21b   : > { %v2500_v43 = vrot.slane %v2093_v61, 2  ;;  %v2085_v59 = vadd.f32 %v2084_v41, %v12969_v13  ;;  %v2496_v9 = vsel %vm2481_vm3, %v2493_v7, %v2495_v21  ;;  %v11475_v21 = vld [vmem:[%s11970_s18 + $0x1c0] ss:$12 sps:$4 sm:$0xff]  }
 0x21c   : > { %v10920_v54 = vpop.f32.mrf.mxu0  ;;  %3748 = vmatmul.mubr.bf16.gmra.mxu0 %v11462_v12  ;;  %v13340_v47 = vadd.f32 %v2496_v9, %v13219_v30  ;;  %v13343_v20 = vpop.f32.mrf.mxu1 }
 0x21d   : > { %v2497_v3 = vrot.slane %v2085_v59, 2  ;;  %3757 = vmatprep.mubr.bf16.mxu0 %v11469_v24  ;;  %v2501_v34 = vsel %vm2481_vm3, %v2498_v35, %v2500_v43  ;;  %v2106_v12 = vadd.f32 %v10920_v54, %v13030_v53 }
 0x21e   : > { %v2097_v55 = vpop.f32.mrf.mxu0  ;;  %v13348_v13 = vadd.f32 %v2501_v34, %v13247_v23  ;;  %v1986_v27 = vpop.f32.mrf.mxu1  ;;  %v13362_v23 = vld [vmem:[%s11970_s18 + $0x224] ss:$12 sps:$4 sm:$0xff]  }
 0x21f   : > { %v2499_v30 = vsel %vm2481_vm3, %v2497_v3, %v2498_v35  ;;  %v2098_v42 = vadd.f32 %v2097_v55, %v13007_v56  ;;  %v2505_v59 = vrot.slane %v2106_v12, 2  ;;  %v11473_v55 = vld [vmem:[%s11970_s18 + $0x1bc] ss:$12 sps:$4 sm:$0xff]  }
 0x220   : > { %v10921_v7 = vpop.f32.mrf.mxu0  ;;  %v13354_v11 = vadd.f32 %v2499_v30, %v13237_v38  ;;  %v13359_v24 = vpop.f32.mrf.mxu1  ;;  %10365 = vmatmul.mubr.msk.bf16.gmra.mxu1 %vm1193_vm1, %v13362_v23 }
 0x221   : > { %v2502_v9 = vrot.slane %v2098_v42, 2  ;;  %v2109_v38 = vadd.f32 %v10921_v7, %v13044_v28  ;;  %4070 = vmatprep.mubr.bf16.mxu1 %v16604_v45 }
 0x222   : > { %v2100_v61 = vpop.f32.mrf.mxu0  ;;  %v1989_v35 = vpop.f32.mrf.mxu1 }
 0x223   : > { %v2101_v41 = vadd.f32 %v2100_v61, %v13019_v31  ;;  %v2507_v27 = vrot.slane %v2109_v38, 2  ;;  %v13387_v61 = vld [vmem:[%s11970_s18 + $0x23c] ss:$12 sps:$4 sm:$0xff]  }
 0x224   : > { %v10924_v43 = vpop.f32.mrf.mxu0  ;;  %3758 = vmatmul.mubr.bf16.gmra.mxu0 %v11467_v17  ;;  %v13366_v56 = vpop.f32.mrf.mxu1 }
 0x225   : > { %v2503_v26 = vrot.slane %v2101_v41, 2  ;;  %3766 = vmatprep.mubr.bf16.mxu0 %v11475_v21  ;;  %v2122_v54 = vadd.f32 %v10924_v43, %v13079_v40 }
 0x226   : > { %v2113_v53 = vpop.f32.mrf.mxu0  ;;  %v1994_v30 = vpop.f32.mrf.mxu1 }
 0x227   : > { %v2114_v31 = vadd.f32 %v2113_v53, %v13053_v5  ;;  %v2504_v3 = vsel %vm2481_vm3, %v2502_v9, %v2503_v26  ;;  %v2506_v28 = vsel %vm2481_vm3, %v2503_v26, %v2505_v59  ;;  %v11479_v5 = vld [vmem:[%s11970_s18 + $0x1d8] ss:$12 sps:$4 sm:$0xff]   ;;  %v2512_v41 = vrot.slane %v2122_v54, 2 }
 0x228   : > { %v10925_v34 = vpop.f32.mrf.mxu0  ;;  %v13377_v7 = vadd.f32 %v2504_v3, %v13272_v50  ;;  %v13380_v17 = vadd.f32 %v2506_v28, %v13274_v25  ;;  %v13384_v21 = vpop.f32.mrf.mxu1  ;;  %10366 = vmatmul.mubr.msk.bf16.gmra.mxu1 %vm1193_vm1, %v13387_v61  ;;  %v11477_v28 = vld [vmem:[%s11970_s18 + $0x1d4] ss:$12 sps:$4 sm:$0xff]  }
 0x229   : > { %v2508_v40 = vrot.slane %v2114_v31, 2  ;;  %v2125_v12 = vadd.f32 %v10925_v34, %v13091_v18  ;;  %4079 = vmatprep.mubr.bf16.mxu1 %v16604_v45 }
 0x22a   : > { %v2116_v42 = vpop.f32.mrf.mxu0  ;;  %v1997_v25 = vpop.f32.mrf.mxu1 }
 0x22b   : > { %v2513_v43 = vrot.slane %v2125_v12, 2  ;;  %v2117_v35 = vadd.f32 %v2116_v42, %v13068_v2  ;;  %v2509_v50 = vsel %vm2481_vm3, %v2507_v27, %v2508_v40  ;;  %v11484_v12 = vld [vmem:[%s11970_s18 + $0x1f0] ss:$12 sps:$4 sm:$0xff]  }
 0x22c   : > { %v10928_v59 = vpop.f32.mrf.mxu0  ;;  %3767 = vmatmul.mubr.bf16.gmra.mxu0 %v11473_v55  ;;  %v13392_v9 = vadd.f32 %v2509_v50, %v12710_v10  ;;  %v13395_v53 = vpop.f32.mrf.mxu1 }
 0x22d   : > { %v2510_v18 = vrot.slane %v2117_v35, 2  ;;  %3775 = vmatprep.mubr.bf16.mxu0 %v11479_v5  ;;  %v2514_v38 = vsel %vm2481_vm3, %v2512_v41, %v2513_v43  ;;  %v2138_v54 = vadd.f32 %v10928_v59, %v13129_v22  ;;  %v13415_v22 = vld [vmem:[%s11970_s18 + $0x254] ss:$12 sps:$4 sm:$0xff]  }
 0x22e   : > { %v2129_v26 = vpop.f32.mrf.mxu0  ;;  %v13400_v2 = vadd.f32 %v2514_v38, %v12759_v16  ;;  %v2002_v34 = vpop.f32.mrf.mxu1 }
 0x22f   : > { %v2130_v10 = vadd.f32 %v2129_v26, %v13106_v15  ;;  %v2511_v31 = vsel %vm2481_vm3, %v2508_v40, %v2510_v18  ;;  %v2518_v15 = vrot.slane %v2138_v54, 2  ;;  %v11482_v26 = vld [vmem:[%s11970_s18 + $0x1ec] ss:$12 sps:$4 sm:$0xff]  }
 0x230   : > { %v10929_v3 = vpop.f32.mrf.mxu0  ;;  %v13408_v55 = vadd.f32 %v2511_v31, %v12726_v36  ;;  %v13412_v5 = vpop.f32.mrf.mxu1  ;;  %10367 = vmatmul.mubr.msk.bf16.gmra.mxu1 %vm1193_vm1, %v13415_v22 }
 0x231   : > { %v2515_v30 = vrot.slane %v2130_v10, 2  ;;  %v2141_v27 = vadd.f32 %v10929_v3, %v13147_v14 }
 0x232   : > { %v2132_v16 = vpop.f32.mrf.mxu0  ;;  %v2005_v36 = vpop.f32.mrf.mxu1 }
 0x233   : > { %v2520_v42 = vrot.slane %v2141_v27, 2  ;;  %v2133_v40 = vadd.f32 %v2132_v16, %v13120_v63  ;;  %v2516_v41 = vsel %vm2481_vm3, %v2513_v43, %v2515_v30  ;;  %v11753_v43 = vld [vmem:[%s11970_s18 + $0x2c] ss:$12 sps:$4 sm:$0xff]  }
 0x234   : > { %v10932_v35 = vpop.f32.mrf.mxu0  ;;  %3776 = vmatmul.mubr.bf16.gmra.mxu0 %v11477_v28  ;;  %v13420_v50 = vadd.f32 %v2516_v41, %v12773_v0  ;;  %v13423_v18 = vpop.f32.mrf.mxu1  ;;  %10964 = vmatprep.mubr.msk.bf16.mxu1 %vm1193_vm1, %v11753_v43  ;;  %v11489_v28 = vld [vmem:[%s11970_s18 + $0x208] ss:$12 sps:$4 sm:$0xff]   ;;  %v11509_v27 = vld [vmem:[%s16546_s2 + $0x480] ss:$12 sps:$4 sm:$0xff]  }
 0x235   : > { %v2517_v14 = vrot.slane %v2133_v40, 2  ;;  %3785 = vmatprep.mubr.bf16.mxu0 %v11484_v12  ;;  %v2521_v59 = vsel %vm2481_vm3, %v2518_v15, %v2520_v42  ;;  %v2154_v31 = vadd.f32 %v10932_v35, %v13178_v49  ;;  %v11514_v49 = vld [vmem:[%s16546_s2 + $0x46c] ss:$12 sps:$4 sm:$0xff]   ;;  %v11755_v43 = vld [vmem:[%s11970_s18 + $0x5c] ss:$12 sps:$4 sm:$0xff]  }
 0x236   : > { %v2145_v25 = vpop.f32.mrf.mxu0  ;;  %v13428_v63 = vadd.f32 %v2521_v59, %v12822_v51  ;;  %v2010_v54 = vpop.f32.mrf.mxu1  ;;  %v16665_v59 = vld [vmem:[#allocation5_spill] sm:$0xff] }
 0x237   : > { %v2519_v0 = vsel %vm2481_vm3, %v2517_v14, %v2518_v15  ;;  %v2146_v3 = vadd.f32 %v2145_v25, %v13161_v44  ;;  %v2525_v44 = vrot.slane %v2154_v31, 2  ;;  %v16663_v15 = vld [vmem:[#allocation4_spill] sm:$0xff]  ;;  %v11754_v14 = vld [vmem:[%s11970_s18 + $0x44] ss:$12 sps:$4 sm:$0xff]  }
 0x238   : > { %v10933_v38 = vpop.f32.mrf.mxu0  ;;  %v13435_v10 = vadd.f32 %v2519_v0, %v12806_v19  ;;  %v13440_v51 = vpop.f32.mrf.mxu1  ;;  %10965 = vmatmul.mubr.msk.bf16.vlgmr.msra.gmra.mxu1 %vm1193_vm1, %v11754_v14  ;;  %v11512_v0 = vld [vmem:[%s16546_s2 + $0x468] ss:$12 sps:$4 sm:$0xff]   ;;  %v11487_v31 = vld [vmem:[%s11970_s18 + $0x204] ss:$12 sps:$4 sm:$0xff]  }
 0x239   : > { %v2522_v16 = vrot.slane %v2146_v3, 2  ;;  %v2157_v42 = vadd.f32 %v10933_v38, %v16663_v15  ;;  %10968 = vmatprep.mubr.msk.bf16.mxu1 %vm1193_vm1, %v11755_v43  ;;  %5905 = vmatpush1.bf16.msra.mxu1 %v11509_v27  ;;  %v16667_v27 = vld [vmem:[#allocation29_spill] sm:$0xff] }
 0x23a   : > { %v2148_v34 = vpop.f32.mrf.mxu0  ;;  %v2013_v19 = vpop.f32.mrf.mxu1  ;;  %5906 = vmatprep.subr.bf16.mxu1 %v11514_v49 }
 0x23b   : > { %v2149_v30 = vadd.f32 %v2148_v34, %v13170_v4  ;;  %v16664_v4 = vld [vmem:[#allocation11_spill] sm:$0xff]  ;;  %v16666_v34 = vld [vmem:[#allocation28_spill] sm:$0xff]  ;;  %v2527_v19 = vrot.slane %v2157_v42, 2 }
 0x23c   : > { %v10936_v12 = vpop.f32.mrf.mxu0  ;;  %3786 = vmatmul.mubr.bf16.gmra.mxu0 %v11482_v26  ;;  %v13451_v36 = vpop.f32.mrf.mxu1 }
 0x23d   : > { %v2523_v40 = vrot.slane %v2149_v30, 2  ;;  %3794 = vmatprep.mubr.bf16.mxu0 %v11489_v28  ;;  %v2170_v41 = vadd.f32 %v10936_v12, %v16664_v4  ;;  %v11520_v28 = vld [vmem:[%s16546_s2 + $0x454] ss:$12 sps:$4 sm:$0xff]   ;;  %5907 = vmatpush1.bf16.msra.mxu1 %v11512_v0 }
 0x23e   : > { %v2161_v35 = vpop.f32.mrf.mxu0  ;;  %v13464_v3 = vpop.f32.mrf.mxu1  ;;  %5908 = vmatprep.subr.bf16.mxu1 %v11520_v28  ;;  %v16673_v28 = vld [vmem:[#allocation32_spill] sm:$0xff] }
 0x23f   : > { %v2162_v25 = vadd.f32 %v2161_v35, %v16665_v59  ;;  %v2524_v38 = vsel %vm2481_vm3, %v2522_v16, %v2523_v40  ;;  %v2526_v26 = vsel %vm2481_vm3, %v2523_v40, %v2525_v44  ;;  %v16669_v16 = vld [vmem:[#allocation8_spill] sm:$0xff]  ;;  %v11493_v44 = vld [vmem:[%s11970_s18 + $0x220] ss:$12 sps:$4 sm:$0xff]   ;;  %v2532_v14 = vrot.slane %v2170_v41, 2 }
 0x240   : > { %v10937_v54 = vpop.f32.mrf.mxu0  ;;  %v13470_v30 = vadd.f32 %v2524_v38, %v16666_v34  ;;  %v13473_v12 = vadd.f32 %v2526_v26, %v16667_v27  ;;  %v13477_v35 = vpop.f32.mrf.mxu1  ;;  %v16670_v59 = vld [vmem:[#allocation9_spill] sm:$0xff]  ;;  %v11518_v38 = vld [vmem:[%s16546_s2 + $0x450] ss:$12 sps:$4 sm:$0xff]  }
 0x241   : > { %v2528_v15 = vrot.slane %v2162_v25, 2  ;;  %v2173_v4 = vadd.f32 %v10937_v54, %v16669_v16  ;;  %v11523_v41 = vld [vmem:[%s16546_s2 + $0x43c] ss:$12 sps:$4 sm:$0xff]   ;;  %5909 = vmatpush1.bf16.msra.mxu1 %v11518_v38 }
 0x242   : > { %16668 = vst [vmem:[#allocation16_spill] sm:$0xff] %v13473_v12  ;;  %v2164_v40 = vpop.f32.mrf.mxu0  ;;  %v13484_v25 = vpop.f32.mrf.mxu1  ;;  %v16671_v54 = vld [vmem:[#allocation30_spill] sm:$0xff]  ;;  %5910 = vmatprep.subr.bf16.mxu1 %v11523_v41 }
 0x243   : > { %v2533_v49 = vrot.slane %v2173_v4, 2  ;;  %v2165_v43 = vadd.f32 %v2164_v40, %v16670_v59  ;;  %v2529_v26 = vsel %vm2481_vm3, %v2527_v19, %v2528_v15  ;;  %v16675_v59 = vld [vmem:[#allocation10_spill] sm:$0xff] }
 0x244   : > { %v10940_v42 = vpop.f32.mrf.mxu0  ;;  %3795 = vmatmul.mubr.bf16.gmra.mxu0 %v11487_v31  ;;  %v13490_v34 = vadd.f32 %v2529_v26, %v16671_v54  ;;  %v3876_v4 = vpop.f32.mrf.mxu1  ;;  %v11756_v31 = vld [vmem:[%s11970_s18 + $0x74] ss:$12 sps:$4 sm:$0xff]   ;;  %v11757_v26 = vld [vmem:[%s11970_s18 + $0x8c] ss:$12 sps:$4 sm:$0xff]   ;;  %v11526_v54 = vld [vmem:[%s16546_s2 + $0x424] ss:$12 sps:$4 sm:$0xff]  }
 0x245   : > { %v2530_v0 = vrot.slane %v2165_v43, 2  ;;  %v2186_v27 = vadd.f32 %v10940_v42, %v13264_v8  ;;  %3803 = vmatprep.mubr.bf16.mxu0 %v11493_v44  ;;  %v2534_v19 = vsel %vm2481_vm3, %v2532_v14, %v2533_v49  ;;  %10969 = vmatmul.mubr.msk.bf16.gmra.mxu1 %vm1193_vm1, %v11756_v31  ;;  %v11521_v8 = vld [vmem:[%s16546_s2 + $0x438] ss:$12 sps:$4 sm:$0xff]   ;;  %v11491_v43 = vld [vmem:[%s11970_s18 + $0x21c] ss:$12 sps:$4 sm:$0xff]  }
 0x246   : > { %16672 = vst [vmem:[#allocation13_spill] sm:$0xff] %v13490_v34  ;;  %v2177_v16 = vpop.f32.mrf.mxu0  ;;  %v13497_v40 = vadd.f32 %v2534_v19, %v16673_v28  ;;  %10972 = vmatprep.mubr.msk.bf16.mxu1 %vm1193_vm1, %v11757_v26  ;;  %v13507_v42 = vpop.f32.mrf.mxu1  ;;  %v16676_v19 = vld [vmem:[#allocation31_spill] sm:$0xff]  ;;  %v11499_v31 = vld [vmem:[%s11970_s18 + $0x238] ss:$12 sps:$4 sm:$0xff]   ;;  %v16678_v26 = vld [vmem:[#allocation14_spill] sm:$0xff]  ;;  %5911 = vmatpush1.bf16.msra.mxu1 %v11521_v8 }
 0x247   : > { %v2178_v12 = vadd.f32 %v2177_v16, %v16675_v59  ;;  %v2531_v44 = vsel %vm2481_vm3, %v2528_v15, %v2530_v0  ;;  %v2538_v15 = vrot.slane %v2186_v27, 2  ;;  %v11524_v41 = vld [vmem:[%s16546_s2 + $0x420] ss:$12 sps:$4 sm:$0xff]   ;;  %5912 = vmatprep.subr.bf16.mxu1 %v11526_v54  ;;  %v16681_v54 = vld [vmem:[#allocation35_spill] sm:$0xff] }
 0x248   : > { %16674 = vst [vmem:[#allocation17_spill] sm:$0xff] %v13497_v40  ;;  %v10941_v14 = vpop.f32.mrf.mxu0  ;;  %v13513_v16 = vadd.f32 %v2531_v44, %v16676_v19  ;;  %v13517_v59 = vpop.f32.mrf.mxu1  ;;  %v16679_v27 = vld [vmem:[#allocation33_spill] sm:$0xff] }
 0x249   : > { %v2535_v4 = vrot.slane %v2178_v12, 2  ;;  %v2189_v38 = vadd.f32 %v10941_v14, %v13279_v52  ;;  %v11529_v12 = vld [vmem:[%s16546_s2 + $0x40c] ss:$12 sps:$4 sm:$0xff]  }
 0x24a   : > { %16677 = vst [vmem:[#allocation15_spill] sm:$0xff] %v13513_v16  ;;  %v2180_v28 = vpop.f32.mrf.mxu0  ;;  %v13524_v52 = vpop.f32.mrf.mxu1  ;;  %5913 = vmatpush1.bf16.msra.mxu1 %v11524_v41 }
 0x24b   : > { %v2540_v0 = vrot.slane %v2189_v38, 2  ;;  %v2181_v40 = vadd.f32 %v2180_v28, %v16678_v26  ;;  %v2536_v44 = vsel %vm2481_vm3, %v2533_v49, %v2535_v4  ;;  %5914 = vmatprep.subr.bf16.mxu1 %v11529_v12  ;;  %v11530_v12 = vld [vmem:[%s16546_s2 + $0x3f0] ss:$12 sps:$4 sm:$0xff]  }
 0x24c   : > { %v10944_v19 = vpop.f32.mrf.mxu0  ;;  %3804 = vmatmul.mubr.bf16.gmra.mxu0 %v11491_v43  ;;  %v13530_v14 = vadd.f32 %v2536_v44, %v16679_v27  ;;  %v13534_v28 = vpop.f32.mrf.mxu1  ;;  %v11758_v43 = vld [vmem:[%s11970_s18 + $0xa4] ss:$12 sps:$4 sm:$0xff]   ;;  %v11759_v27 = vld [vmem:[%s11970_s18 + $0xbc] ss:$12 sps:$4 sm:$0xff]  }
 0x24d   : > { %v2537_v8 = vrot.slane %v2181_v40, 2  ;;  %v2202_v38 = vadd.f32 %v10944_v19, %v13315_v6  ;;  %3813 = vmatprep.mubr.bf16.mxu0 %v11499_v31  ;;  %v2541_v49 = vsel %vm2481_vm3, %v2538_v15, %v2540_v0  ;;  %10973 = vmatmul.mubr.msk.bf16.gmra.mxu1 %vm1193_vm1, %v11758_v43  ;;  %v11527_v6 = vld [vmem:[%s16546_s2 + $0x408] ss:$12 sps:$4 sm:$0xff]   ;;  %v11505_v43 = vld [vmem:[%s11970_s18 + $0x250] ss:$12 sps:$4 sm:$0xff]  }
 0x24e   : > { %16680 = vst [vmem:[#allocation19_spill] sm:$0xff] %v13530_v14  ;;  %v2193_v4 = vpop.f32.mrf.mxu0  ;;  %v13539_v26 = vadd.f32 %v2541_v49, %v16681_v54  ;;  %10976 = vmatprep.mubr.msk.bf16.mxu1 %vm1193_vm1, %v11759_v27  ;;  %v11497_v0 = vld [vmem:[%s11970_s18 + $0x234] ss:$12 sps:$4 sm:$0xff]   ;;  %v13549_v19 = vpop.f32.mrf.mxu1  ;;  %5915 = vmatpush1.bf16.msra.mxu1 %v11527_v6 }
 0x24f   : > { %v2194_v44 = vadd.f32 %v2193_v4, %v13286_v62  ;;  %v2539_v40 = vsel %vm2481_vm3, %v2537_v8, %v2538_v15  ;;  %v11532_v49 = vld [vmem:[%s16546_s2 + $0x3f4] ss:$12 sps:$4 sm:$0xff]   ;;  %v16683_v62 = vld [vmem:[#allocation34_spill] sm:$0xff] }
 0x250   : > { %16682 = vst [vmem:[#allocation21_spill] sm:$0xff] %v13539_v26  ;;  %v10945_v31 = vpop.f32.mrf.mxu0  ;;  %v13555_v4 = vadd.f32 %v2539_v40, %v16683_v62  ;;  %v3889_v27 = vpop.f32.mrf.mxu1  ;;  %5916 = vmatprep.subr.bf16.mxu1 %v11532_v49  ;;  %v2545_v40 = vrot.slane %v2202_v38, 2  ;;  %v11761_v49 = vld [vmem:[%s11970_s18 + $0xec] ss:$12 sps:$4 sm:$0xff]  }
 0x251   : > { %v2205_v41 = vadd.f32 %v10945_v31, %v13332_v39  ;;  %v11535_v39 = vld [vmem:[%s16546_s2 + $0x3dc] ss:$12 sps:$4 sm:$0xff]   ;;  %v2542_v31 = vrot.slane %v2194_v44, 2  ;;  %v11760_v27 = vld [vmem:[%s11970_s18 + $0xd4] ss:$12 sps:$4 sm:$0xff]  }
 0x252   : > { %16684 = vst [vmem:[#allocation18_spill] sm:$0xff] %v13555_v4  ;;  %v2196_v54 = vpop.f32.mrf.mxu0  ;;  %v13563_v26 = vpop.f32.mrf.mxu1  ;;  %5917 = vmatpush1.bf16.msra.mxu1 %v11530_v12  ;;  %v11533_v38 = vld [vmem:[%s16546_s2 + $0x3d8] ss:$12 sps:$4 sm:$0xff]  }
 0x253   : > { %v2197_v15 = vadd.f32 %v2196_v54, %v13304_v58  ;;  %5918 = vmatprep.subr.bf16.mxu1 %v11535_v39  ;;  %v16687_v12 = vld [vmem:[#allocation37_spill] sm:$0xff]  ;;  %v2547_v4 = vrot.slane %v2205_v41, 2 }
 0x254   : > { %v10948_v8 = vpop.f32.mrf.mxu0  ;;  %3814 = vmatmul.mubr.bf16.gmra.mxu0 %v11497_v0  ;;  %v13569_v54 = vpop.f32.mrf.mxu1 }
 0x255   : > { %v2543_v62 = vrot.slane %v2197_v15, 2  ;;  %v2218_v58 = vadd.f32 %v10948_v8, %v13366_v56  ;;  %3822 = vmatprep.mubr.bf16.mxu0 %v11505_v43  ;;  %10977 = vmatmul.mubr.msk.bf16.gmra.mxu1 %vm1193_vm1, %v11760_v27  ;;  %v11503_v15 = vld [vmem:[%s11970_s18 + $0x24c] ss:$12 sps:$4 sm:$0xff]  }
 0x256   : > { %v2209_v6 = vpop.f32.mrf.mxu0  ;;  %10980 = vmatprep.mubr.msk.bf16.mxu1 %vm1193_vm1, %v11761_v49  ;;  %v13582_v8 = vpop.f32.mrf.mxu1  ;;  %5919 = vmatpush1.bf16.msra.mxu1 %v11533_v38 }
 0x257   : > { %v2210_v0 = vadd.f32 %v2209_v6, %v13343_v20  ;;  %v2544_v44 = vsel %vm2481_vm3, %v2542_v31, %v2543_v62  ;;  %v2546_v56 = vsel %vm2481_vm3, %v2543_v62, %v2545_v40  ;;  %v11538_v20 = vld [vmem:[%s16546_s2 + $0x544] ss:$12 sps:$4 sm:$0xff]   ;;  %v16685_v6 = vld [vmem:[#allocation36_spill] sm:$0xff]  ;;  %v2552_v16 = vrot.slane %v2218_v58, 2  ;;  %v16689_v58 = vld [vmem:[#allocation38_spill] sm:$0xff] }
 0x258   : > { %v10949_v43 = vpop.f32.mrf.mxu0  ;;  %v13588_v27 = vadd.f32 %v2544_v44, %v16685_v6  ;;  %v13591_v49 = vadd.f32 %v2546_v56, %v16687_v12  ;;  %v13594_v62 = vpop.f32.mrf.mxu1  ;;  %v11536_v44 = vld [vmem:[%s16546_s2 + $0x540] ss:$12 sps:$4 sm:$0xff]   ;;  %5920 = vmatprep.subr.bf16.mxu1 %v11538_v20  ;;  %v11762_v6 = vld [vmem:[%s11970_s18 + $0x28] ss:$12 sps:$4 sm:$0xff]   ;;  %v11763_v20 = vld [vmem:[%s11970_s18 + $0x104] ss:$12 sps:$4 sm:$0xff]  }
 0x259   : > { %v2548_v14 = vrot.slane %v2210_v0, 2  ;;  %v2221_v31 = vadd.f32 %v10949_v43, %v13384_v21  ;;  %v11541_v21 = vld [vmem:[%s16546_s2 + $0x52c] ss:$12 sps:$4 sm:$0xff]  }
 0x25a   : > { %16686 = vst [vmem:[#allocation22_spill] sm:$0xff] %v13588_v27  ;;  %16688 = vst [vmem:[#allocation20_spill] sm:$0xff] %v13591_v49  ;;  %v2212_v40 = vpop.f32.mrf.mxu0  ;;  %v13601_v0 = vpop.f32.mrf.mxu1  ;;  %v16691_v49 = vld [vmem:[#allocation40_spill] sm:$0xff]  ;;  %5921 = vmatpush2.bf16.msra.mxu1 %v11536_v44 }
 0x25b   : > { %v2553_v39 = vrot.slane %v2221_v31, 2  ;;  %v2213_v34 = vadd.f32 %v2212_v40, %v13359_v24  ;;  %v2549_v56 = vsel %vm2481_vm3, %v2547_v4, %v2548_v14  ;;  %5922 = vmatprep.subr.bf16.mxu1 %v11541_v21 }
 0x25c   : > { %v10952_v41 = vpop.f32.mrf.mxu0  ;;  %3823 = vmatmul.mubr.bf16.gmra.mxu0 %v11503_v15  ;;  %v13607_v24 = vadd.f32 %v2549_v56, %v16689_v58  ;;  %v16690_v15 = vld [vmem:[#allocation6_spill] sm:$0xff]  ;;  %v3904_v40 = vpop.f32.mrf.mxu1 }
 0x25d   : > { %v2550_v38 = vrot.slane %v2213_v34, 2  ;;  %v2234_v43 = vadd.f32 %v10952_v41, %v13423_v18  ;;  %4121 = vmatprep.mubr.bf16.mxu0 %v11762_v6  ;;  %v2554_v4 = vsel %vm2481_vm3, %v2552_v16, %v2553_v39  ;;  %v10702_v31 = vcombine.low %v16690_v15, %v16690_v15  ;;  %10981 = vmatmul.mubr.msk.bf16.gmra.mxu1 %vm1193_vm1, %v11763_v20  ;;  %v11764_v34 = vld [vmem:[%s11970_s18 + $0x11c] ss:$12 sps:$4 sm:$0xff]  }
 0x25e   : > { %v2225_v12 = vpop.f32.mrf.mxu0  ;;  %v13617_v27 = vadd.f32 %v2554_v4, %v16691_v49  ;;  %10984 = vmatprep.mubr.msk.bf16.mxu1 %vm1193_vm1, %v11764_v34  ;;  %v11539_v18 = vld [vmem:[%s16546_s2 + $0x528] ss:$12 sps:$4 sm:$0xff]   ;;  %v13626_v58 = vpop.f32.mrf.mxu1 }
 0x25f   : > { %v2226_v56 = vadd.f32 %v2225_v12, %v13395_v53  ;;  %v2551_v16 = vsel %vm2481_vm3, %v2548_v14, %v2550_v38  ;;  %v11544_v49 = vld [vmem:[%s16546_s2 + $0x514] ss:$12 sps:$4 sm:$0xff]   ;;  %v5896_v15 = vsel %vm1266_vm0, %v10702_v31, 0  ;;  %v11517_v14 = vld [vmem:[%s16546_s2 + $0x5a4] ss:$12 sps:$4 sm:$0xff]   ;;  %v2558_v21 = vrot.slane %v2234_v43, 2  ;;  %5923 = vmatpush2.bf16.msra.mxu1 %v11539_v18 }
 0x260   : > { %v10953_v41 = vpop.f32.mrf.mxu0  ;;  %v16692_v53 = vld [vmem:[#allocation39_spill] sm:$0xff]  ;;  %v13636_v40 = vpop.f32.mrf.mxu1  ;;  %5924 = vmatprep.subr.bf16.mxu1 %v11544_v49  ;;  %v11547_v43 = vld [vmem:[%s16546_s2 + $0x4fc] ss:$12 sps:$4 sm:$0xff]  }
 0x261   : > { %v13632_v6 = vadd.f32 %v2551_v16, %v16692_v53  ;;  %v2555_v4 = vrot.slane %v2226_v56, 2  ;;  %v2237_v44 = vadd.f32 %v10953_v41, %v13440_v51  ;;  %v11542_v56 = vld [vmem:[%s16546_s2 + $0x510] ss:$12 sps:$4 sm:$0xff]   ;;  %v16693_v41 = vld [vmem:[#allocation41_spill] sm:$0xff] }
 0x262   : > { %v2228_v12 = vpop.f32.mrf.mxu0  ;;  %v11765_v31 = vld [vmem:[%s11970_s18 + $0x24] ss:$12 sps:$4 sm:$0xff]   ;;  %v13647_v16 = vpop.f32.mrf.mxu1 }
 0x263   : > { %v2560_v38 = vrot.slane %v2237_v44, 2  ;;  %v2229_v20 = vadd.f32 %v2228_v12, %v13412_v5  ;;  %v2556_v51 = vsel %vm2481_vm3, %v2553_v39, %v2555_v4  ;;  %v11766_v39 = vld [vmem:[%s11970_s18 + $0x40] ss:$12 sps:$4 sm:$0xff]   ;;  %5925 = vmatpush2.bf16.msra.mxu1 %v11542_v56 }
 0x264   : > { %v3609_v34 = vpop.f32.mrf.mxu0  ;;  %4122 = vmatmul.mubr.bf16.vlgmr.msra.gmra.mxu0 %v11765_v31  ;;  %v13653_v5 = vadd.f32 %v2556_v51, %v16693_v41  ;;  %v11515_v4 = vld [vmem:[%s16546_s2 + $0x5a0] ss:$12 sps:$4 sm:$0xff]   ;;  %v13661_v12 = vpop.f32.mrf.mxu1  ;;  %5926 = vmatprep.subr.bf16.mxu1 %v11547_v43 }
 0x265   : > { %v2557_v18 = vrot.slane %v2229_v20, 2  ;;  %v3867_v53 = vadd.f32 %v13451_v36, %v3609_v34  ;;  %6168 = vmatpush1.bf16.msra.mxu0 %v5896_v15  ;;  %4129 = vmatprep.mubr.bf16.mxu0 %v11766_v39  ;;  %v2561_v49 = vsel %vm2481_vm3, %v2558_v21, %v2560_v38  ;;  %v11767_v31 = vld [vmem:[%s11970_s18 + $0x134] ss:$12 sps:$4 sm:$0xff]   ;;  %v11550_v36 = vld [vmem:[%s16546_s2 + $0x58c] ss:$12 sps:$4 sm:$0xff]  }
 0x266   : > { %v3611_v44 = vpop.f32.mrf.mxu0  ;;  %6169 = vmatprep.subr.bf16.mxu0 %v11517_v14  ;;  %10985 = vmatmul.mubr.msk.bf16.gmra.mxu1 %vm1193_vm1, %v11767_v31  ;;  %v16694_v15 = vld [vmem:[#allocation43_spill] sm:$0xff]  ;;  %v11768_v41 = vld [vmem:[%s11970_s18 + $0x14c] ss:$12 sps:$4 sm:$0xff]   ;;  %v13679_v31 = vpop.f32.mrf.mxu1 }
 0x267   : > { %v13669_v20 = vadd.f32 %v2561_v49, %v16694_v15  ;;  %v4539_v51 = vadd.f32 %v3867_v53, %v13297_v48  ;;  %v3869_v34 = vadd.f32 %v13464_v3, %v3611_v44  ;;  %10988 = vmatprep.mubr.msk.bf16.mxu1 %vm1193_vm1, %v11768_v41  ;;  %v11545_v14 = vld [vmem:[%s16546_s2 + $0x4f8] ss:$12 sps:$4 sm:$0xff]   ;;  %v2559_v38 = vsel %vm2481_vm3, %v2557_v18, %v2558_v21  ;;  %v16695_v3 = vld [vmem:[#allocation42_spill] sm:$0xff]  ;;  %v11574_v43 = vld [vmem:[%s16546_s2 + $0x574] ss:$12 sps:$4 sm:$0xff]  }
 0x268   : > { %v3613_v39 = vpop.f32.mrf.mxu0  ;;  %v11553_v48 = vld [vmem:[%s16546_s2 + $0x4e4] ss:$12 sps:$4 sm:$0xff]   ;;  %v13685_v53 = vadd.f32 %v2559_v38, %v16695_v3  ;;  %v11548_v49 = vld [vmem:[%s16546_s2 + $0x588] ss:$12 sps:$4 sm:$0xff]   ;;  %v3917_v18 = vpop.f32.mrf.mxu1  ;;  %5927 = vmatpush2.bf16.msra.mxu1 %v11545_v14 }
 0x269   : > { %v3871_v56 = vadd.f32 %v13477_v35, %v3613_v39  ;;  %6170 = vmatpush1.bf16.msra.mxu0 %v11515_v4  ;;  %v11551_v35 = vld [vmem:[%s16546_s2 + $0x4e0] ss:$12 sps:$4 sm:$0xff]   ;;  %v11769_v41 = vld [vmem:[%s11970_s18 + $0x3c] ss:$12 sps:$4 sm:$0xff]   ;;  %5928 = vmatprep.subr.bf16.mxu1 %v11553_v48  ;;  %v4619_v39 = vrot.slane %v3869_v34, 1  ;;  %v16696_v34 = vld [vmem:[#allocation7_spill] sm:$0xff] }
 0x26a   : > { %v3615_v21 = vpop.f32.mrf.mxu0  ;;  %6171 = vmatprep.subr.bf16.mxu0 %v11550_v36  ;;  %v13700_v38 = vpop.f32.mrf.mxu1  ;;  %v11556_v36 = vld [vmem:[%s16546_s2 + $0x4cc] ss:$12 sps:$4 sm:$0xff]  }
 0x26b   : > { %v4540_v44 = vadd.f32 %v3871_v56, %v13300_v46  ;;  %v3873_v15 = vadd.f32 %v13484_v25, %v3615_v21  ;;  %v11770_v3 = vld [vmem:[%s11970_s18 + $0x58] ss:$12 sps:$4 sm:$0xff]   ;;  %v11572_v25 = vld [vmem:[%s16546_s2 + $0x570] ss:$12 sps:$4 sm:$0xff]  }
 0x26c   : > { %v3619_v4 = vpop.f32.mrf.mxu0  ;;  %4130 = vmatmul.mubr.bf16.gmra.mxu0 %v11769_v41  ;;  %v13709_v56 = vpop.f32.mrf.mxu1  ;;  %v11771_v21 = vld [vmem:[%s11970_s18 + $0x164] ss:$12 sps:$4 sm:$0xff]   ;;  %5929 = vmatpush2.bf16.msra.mxu1 %v11551_v35 }
 0x26d   : > { %v4620_v46 = vrot.slane %v3873_v15, 1  ;;  %4137 = vmatprep.mubr.bf16.mxu0 %v11770_v3  ;;  %6172 = vmatpush1.bf16.msra.mxu0 %v11548_v49  ;;  %v11554_v49 = vld [vmem:[%s16546_s2 + $0x4c8] ss:$12 sps:$4 sm:$0xff]  }
 0x26e   : > { %v3620_v14 = vpop.f32.mrf.mxu0  ;;  %10989 = vmatmul.mubr.msk.bf16.gmra.mxu1 %vm1193_vm1, %v11771_v21  ;;  %6173 = vmatprep.subr.bf16.mxu0 %v11574_v43  ;;  %v13720_v4 = vpop.f32.mrf.mxu1  ;;  %v11559_v43 = vld [vmem:[%s16546_s2 + $0x4b4] ss:$12 sps:$4 sm:$0xff]  }
 0x26f   : > { %v4621_v48 = vsel %vm2288_vm2, %v4619_v39, %v4620_v46  ;;  %v3878_v18 = vadd.f32 %v13507_v42, %v3620_v14  ;;  %10992 = vmatprep.mubr.msk.bf16.mxu1 %vm1193_vm1, %v16696_v34  ;;  %5930 = vmatprep.subr.bf16.mxu1 %v11556_v36 }
 0x270   : > { %v3622_v15 = vpop.f32.mrf.mxu0  ;;  %v13725_v41 = vadd.f32 %v4621_v48, %v4539_v51  ;;  %v13728_v3 = vpop.f32.mrf.mxu1  ;;  %5931 = vmatpush2.bf16.msra.mxu1 %v11554_v49  ;;  %v11557_v51 = vld [vmem:[%s16546_s2 + $0x4b0] ss:$12 sps:$4 sm:$0xff]  }
 0x271   : > { %v4622_v42 = vrot.slane %v3878_v18, 1  ;;  %v3880_v39 = vadd.f32 %v13517_v59, %v3622_v15  ;;  %6174 = vmatpush1.bf16.msra.mxu0 %v11572_v25  ;;  %v11772_v18 = vld [vmem:[%s11970_s18 + $0x54] ss:$12 sps:$4 sm:$0xff]   ;;  %5932 = vmatprep.subr.bf16.mxu1 %v11559_v43 }
 0x272   : > { %v3624_v35 = vpop.f32.mrf.mxu0  ;;  %v13737_v59 = vpop.f32.mrf.mxu1  ;;  %v11774_v15 = vld [vmem:[%s11970_s18 + $0x194] ss:$12 sps:$4 sm:$0xff]  }
 0x273   : > { %v4623_v14 = vsel %vm2288_vm2, %v4620_v46, %v4622_v42  ;;  %v4541_v21 = vadd.f32 %v3880_v39, %v13312_v29  ;;  %v3882_v36 = vadd.f32 %v13524_v52, %v3624_v35  ;;  %v11562_v46 = vld [vmem:[%s16546_s2 + $0x49c] ss:$12 sps:$4 sm:$0xff]  }
 0x274   : > { %v3628_v48 = vpop.f32.mrf.mxu0  ;;  %4138 = vmatmul.mubr.bf16.gmra.mxu0 %v11772_v18  ;;  %v13742_v25 = vadd.f32 %v4623_v14, %v4540_v44  ;;  %v11773_v52 = vld [vmem:[%s11970_s18 + $0x70] ss:$12 sps:$4 sm:$0xff]   ;;  %v3932_v49 = vpop.f32.mrf.mxu1  ;;  %5933 = vmatpush2.bf16.msra.mxu1 %v11557_v51 }
 0x275   : > { %v3886_v29 = vadd.f32 %v13534_v28, %v3628_v48  ;;  %4145 = vmatprep.mubr.bf16.mxu0 %v11773_v52  ;;  %v16697_v39 = vld [vmem:[#allocation12_spill] sm:$0xff]  ;;  %5934 = vmatprep.subr.bf16.mxu1 %v11562_v46  ;;  %v4624_v14 = vrot.slane %v3882_v36, 1 }
 0x276   : > { %v3630_v34 = vpop.f32.mrf.mxu0  ;;  %10993 = vmatmul.mubr.msk.bf16.gmra.mxu1 %vm1193_vm1, %v11774_v15  ;;  %v11560_v28 = vld [vmem:[%s16546_s2 + $0x498] ss:$12 sps:$4 sm:$0xff]   ;;  %v13755_v35 = vpop.f32.mrf.mxu1  ;;  %v11776_v15 = vld [vmem:[%s11970_s18 + $0x88] ss:$12 sps:$4 sm:$0xff]  }
 0x277   : > { %v4542_v42 = vadd.f32 %v3886_v29, %v13328_v37  ;;  %v3888_v43 = vadd.f32 %v13549_v19, %v3630_v34  ;;  %10996 = vmatprep.mubr.msk.bf16.mxu1 %vm1193_vm1, %v16697_v39  ;;  %v11775_v52 = vld [vmem:[%s11970_s18 + $0x6c] ss:$12 sps:$4 sm:$0xff]  }
 0x278   : > { %v3632_v44 = vpop.f32.mrf.mxu0  ;;  %v13757_v37 = vpop.f32.mrf.mxu1  ;;  %5935 = vmatpush2.bf16.msra.mxu1 %v11560_v28 }
 0x279   : > { %v4625_v48 = vrot.slane %v3888_v43, 1  ;;  %6418 = vmatprep.subr.bf16.mxu1 %v16604_v45 }
 0x27a   : > { %v3633_v18 = vpop.f32.mrf.mxu0  ;;  %v13762_v34 = vpop.f32.mrf.mxu1 }
 0x27b   : > { %v4626_v19 = vsel %vm2288_vm2, %v4624_v14, %v4625_v48  ;;  %v3891_v29 = vadd.f32 %v13563_v26, %v3633_v18 }
 0x27c   : > { %v3637_v51 = vpop.f32.mrf.mxu0  ;;  %4146 = vmatmul.mubr.bf16.gmra.mxu0 %v11775_v52  ;;  %v13765_v49 = vadd.f32 %v4626_v19, %v4541_v21  ;;  %v13769_v39 = vpop.f32.mrf.mxu1 }
 0x27d   : > { %v4627_v46 = vrot.slane %v3891_v29, 1  ;;  %v3895_v36 = vadd.f32 %v13569_v54, %v3637_v51  ;;  %4153 = vmatprep.mubr.bf16.mxu0 %v11776_v15  ;;  %v11777_v51 = vld [vmem:[%s11970_s18 + $0x84] ss:$12 sps:$4 sm:$0xff]  }
 0x27e   : > { %v3639_v43 = vpop.f32.mrf.mxu0  ;;  %10997 = vmatmul.mubr.msk.bf16.gmra.mxu1 %vm1193_vm1, %v13256_v57  ;;  %v13778_v54 = vpop.f32.mrf.mxu1 }
 0x27f   : > { %v4628_v26 = vsel %vm2288_vm2, %v4625_v48, %v4627_v46  ;;  %v4543_v28 = vadd.f32 %v3895_v36, %v13320_v1  ;;  %v3897_v44 = vadd.f32 %v13582_v8, %v3639_v43  ;;  %11000 = vmatprep.mubr.msk.bf16.mxu1 %vm1193_vm1, %v13282_v60  ;;  %v11590_v1 = vld [vmem:[%s16546_s2 + $0x558] ss:$12 sps:$4 sm:$0xff]   ;;  %v11592_v60 = vld [vmem:[%s16546_s2 + $0x55c] ss:$12 sps:$4 sm:$0xff]   ;;  %v11778_v46 = vld [vmem:[%s11970_s18 + $0xa0] ss:$12 sps:$4 sm:$0xff]  }
 0x280   : > { %v3641_v21 = vpop.f32.mrf.mxu0  ;;  %v13780_v14 = vadd.f32 %v4628_v26, %v4542_v42  ;;  %v3945_v57 = vpop.f32.mrf.mxu1  ;;  %6175 = vmatprep.subr.bf16.mxu0 %v11592_v60 }
 0x281   : > { %v3899_v18 = vadd.f32 %v13594_v62, %v3641_v21  ;;  %v4629_v62 = vrot.slane %v3897_v44, 1  ;;  %6176 = vmatpush1.bf16.msra.mxu0 %v11590_v1 }
 0x282   : > { %v3643_v19 = vpop.f32.mrf.mxu0  ;;  %v13792_v42 = vpop.f32.mrf.mxu1 }
 0x283   : > { %v4544_v29 = vadd.f32 %v3899_v18, %v13340_v47  ;;  %v3901_v48 = vadd.f32 %v13601_v0, %v3643_v19 }
 0x284   : > { %v3647_v8 = vpop.f32.mrf.mxu0  ;;  %4154 = vmatmul.mubr.bf16.gmra.mxu0 %v11777_v51  ;;  %v13795_v0 = vpop.f32.mrf.mxu1  ;;  %v11780_v51 = vld [vmem:[%s11970_s18 + $0xb8] ss:$12 sps:$4 sm:$0xff]  }
 0x285   : > { %v4630_v52 = vrot.slane %v3901_v48, 1  ;;  %4161 = vmatprep.mubr.bf16.mxu0 %v11778_v46 }
 0x286   : > { %v3648_v47 = vpop.f32.mrf.mxu0  ;;  %11001 = vmatmul.mubr.msk.bf16.gmra.mxu1 %vm1193_vm1, %v13307_v33  ;;  %v13803_v26 = vpop.f32.mrf.mxu1 }
 0x287   : > { %v4631_v36 = vsel %vm2288_vm2, %v4629_v62, %v4630_v52  ;;  %v3906_v15 = vadd.f32 %v13626_v58, %v3648_v47  ;;  %11004 = vmatprep.mubr.msk.bf16.mxu1 %vm1193_vm1, %v13335_v32  ;;  %v11779_v32 = vld [vmem:[%s11970_s18 + $0x9c] ss:$12 sps:$4 sm:$0xff]  }
 0x288   : > { %v3650_v43 = vpop.f32.mrf.mxu0  ;;  %v13805_v44 = vadd.f32 %v4631_v36, %v4543_v28  ;;  %v13808_v33 = vpop.f32.mrf.mxu1 }
 0x289   : > { %v4632_v21 = vrot.slane %v3906_v15, 1  ;;  %v3908_v18 = vadd.f32 %v13636_v40, %v3650_v43  ;;  %v11565_v43 = vld [vmem:[%s11970_s18 + $0x4c] ss:$12 sps:$4 sm:$0xff]  }
 0x28a   : > { %v3652_v19 = vpop.f32.mrf.mxu0  ;;  %v13814_v60 = vpop.f32.mrf.mxu1 }
 0x28b   : > { %v4633_v57 = vsel %vm2288_vm2, %v4630_v52, %v4632_v21  ;;  %v4545_v48 = vadd.f32 %v3908_v18, %v13354_v11  ;;  %v3910_v58 = vadd.f32 %v13647_v16, %v3652_v19  ;;  %v11781_v21 = vld [vmem:[%s11970_s18 + $0xb4] ss:$12 sps:$4 sm:$0xff]  }
 0x28c   : > { %v3656_v1 = vpop.f32.mrf.mxu0  ;;  %4162 = vmatmul.mubr.bf16.gmra.mxu0 %v11779_v32  ;;  %v13816_v8 = vadd.f32 %v4633_v57, %v4544_v29  ;;  %v3960_v62 = vpop.f32.mrf.mxu1  ;;  %v11782_v57 = vld [vmem:[%s11970_s18 + $0xd0] ss:$12 sps:$4 sm:$0xff]  }
 0x28d   : > { %v3914_v28 = vadd.f32 %v13661_v12, %v3656_v1  ;;  %4169 = vmatprep.mubr.bf16.mxu0 %v11780_v51  ;;  %v4634_v12 = vrot.slane %v3910_v58, 1 }
 0x28e   : > { %v3658_v40 = vpop.f32.mrf.mxu0  ;;  %11005 = vmatmul.mubr.msk.bf16.gmra.mxu1 %vm1193_vm1, %v13362_v23  ;;  %v13826_v52 = vpop.f32.mrf.mxu1 }
 0x28f   : > { %v4546_v11 = vadd.f32 %v3914_v28, %v13348_v13  ;;  %v3916_v16 = vadd.f32 %v13679_v31, %v3658_v40  ;;  %11008 = vmatprep.mubr.msk.bf16.mxu1 %vm1193_vm1, %v13387_v61 }
 0x290   : > { %v3660_v29 = vpop.f32.mrf.mxu0  ;;  %v13828_v36 = vpop.f32.mrf.mxu1 }
 0x291   : > { %v4635_v46 = vrot.slane %v3916_v16, 1  ;;  %v11563_v29 = vld [vmem:[%s11970_s18 + $0x48] ss:$12 sps:$4 sm:$0xff]  }
 0x292   : > { %v3661_v47 = vpop.f32.mrf.mxu0  ;;  %v13834_v31 = vpop.f32.mrf.mxu1 }
 0x293   : > { %v4636_v15 = vsel %vm2288_vm2, %v4634_v12, %v4635_v46  ;;  %v3919_v23 = vadd.f32 %v13700_v38, %v3661_v47  ;;  %v11783_v47 = vld [vmem:[%s11970_s18 + $0xcc] ss:$12 sps:$4 sm:$0xff]  }
 0x294   : > { %v3665_v13 = vpop.f32.mrf.mxu0  ;;  %4170 = vmatmul.mubr.bf16.gmra.mxu0 %v11781_v21  ;;  %v13836_v61 = vadd.f32 %v4636_v15, %v4545_v48  ;;  %v13840_v1 = vpop.f32.mrf.mxu1 }
 0x295   : > { %v4637_v18 = vrot.slane %v3919_v23, 1  ;;  %v3923_v19 = vadd.f32 %v13709_v56, %v3665_v13  ;;  %4177 = vmatprep.mubr.bf16.mxu0 %v11782_v57 }
 0x296   : > { %v3667_v58 = vpop.f32.mrf.mxu0  ;;  %11009 = vmatmul.mubr.msk.bf16.gmra.mxu1 %vm1193_vm1, %v13415_v22  ;;  %v13847_v56 = vpop.f32.mrf.mxu1 }
 0x297   : > { %v4638_v38 = vsel %vm2288_vm2, %v4635_v46, %v4637_v18  ;;  %v4547_v32 = vadd.f32 %v3923_v19, %v13377_v7  ;;  %v3925_v48 = vadd.f32 %v13720_v4, %v3667_v58  ;;  %5936 = vmatprep.mubr.bf16.mxu1 %v11565_v43  ;;  %v11568_v46 = vld [vmem:[%s11970_s18 + $0x64] ss:$12 sps:$4 sm:$0xff]  }
 0x298   : > { %v3669_v28 = vpop.f32.mrf.mxu0  ;;  %v13849_v51 = vadd.f32 %v4638_v38, %v4546_v11  ;;  %v3973_v16 = vpop.f32.mrf.mxu1  ;;  %v11784_v11 = vld [vmem:[%s11970_s18 + $0xe8] ss:$12 sps:$4 sm:$0xff]  }
 0x299   : > { %v3927_v40 = vadd.f32 %v13728_v3, %v3669_v28  ;;  %v4639_v15 = vrot.slane %v3925_v48, 1  ;;  %v11566_v48 = vld [vmem:[%s11970_s18 + $0x60] ss:$12 sps:$4 sm:$0xff]  }
 0x29a   : > { %v3671_v62 = vpop.f32.mrf.mxu0  ;;  %v13857_v4 = vpop.f32.mrf.mxu1 }
 0x29b   : > { %v4548_v22 = vadd.f32 %v3927_v40, %v13380_v17  ;;  %v3929_v12 = vadd.f32 %v13737_v59, %v3671_v62  ;;  %v11571_v62 = vld [vmem:[%s11970_s18 + $0x7c] ss:$12 sps:$4 sm:$0xff]  }
 0x29c   : > { %v3675_v7 = vpop.f32.mrf.mxu0  ;;  %4178 = vmatmul.mubr.bf16.gmra.mxu0 %v11783_v47  ;;  %v13860_v3 = vpop.f32.mrf.mxu1 }
 0x29d   : > { %v4640_v23 = vrot.slane %v3929_v12, 1  ;;  %4185 = vmatprep.mubr.bf16.mxu0 %v11784_v11  ;;  %v11786_v7 = vld [vmem:[%s11970_s18 + $0x100] ss:$12 sps:$4 sm:$0xff]  }
 0x29e   : > { %v3676_v43 = vpop.f32.mrf.mxu0  ;;  %5937 = vmatmul.mubr.bf16.vlgmr.msra.gmra.mxu1 %v11563_v29  ;;  %v13864_v21 = vpop.f32.mrf.mxu1  ;;  %v11785_v29 = vld [vmem:[%s11970_s18 + $0xe4] ss:$12 sps:$4 sm:$0xff]  }
 0x29f   : > { %v4641_v17 = vsel %vm2288_vm2, %v4639_v15, %v4640_v23  ;;  %v3934_v59 = vadd.f32 %v13755_v35, %v3676_v43  ;;  %5946 = vmatprep.mubr.bf16.mxu1 %v11568_v46 }
 0x2a0   : > { %v3678_v13 = vpop.f32.mrf.mxu0  ;;  %v13866_v18 = vadd.f32 %v4641_v17, %v4547_v32  ;;  %v13869_v38 = vpop.f32.mrf.mxu1  ;;  %v11605_v32 = vld [vmem:[%s16546_s2 + $0x488] ss:$12 sps:$4 sm:$0xff]  }
 0x2a1   : > { %v4642_v19 = vrot.slane %v3934_v59, 1  ;;  %v3936_v57 = vadd.f32 %v13757_v37, %v3678_v13  ;;  %6419 = vmatpush1.bf16.msra.mxu1 %v11605_v32 }
 0x2a2   : > { %v3680_v58 = vpop.f32.mrf.mxu0  ;;  %v13880_v12 = vpop.f32.mrf.mxu1  ;;  %6420 = vmatprep.subr.bf16.mxu1 %v16604_v45 }
 0x2a3   : > { %v4643_v28 = vsel %vm2288_vm2, %v4640_v23, %v4642_v19  ;;  %v4549_v40 = vadd.f32 %v3936_v57, %v13392_v9  ;;  %v3938_v35 = vadd.f32 %v13762_v34, %v3680_v58  ;;  %v11577_v19 = vld [vmem:[%s11970_s18 + $0x94] ss:$12 sps:$4 sm:$0xff]   ;;  %v11614_v57 = vld [vmem:[%s16546_s2 + $0x470] ss:$12 sps:$4 sm:$0xff]  }
 0x2a4   : > { %v3684_v16 = vpop.f32.mrf.mxu0  ;;  %4186 = vmatmul.mubr.bf16.gmra.mxu0 %v11785_v29  ;;  %v13882_v37 = vadd.f32 %v4643_v28, %v4548_v22  ;;  %v3988_v34 = vpop.f32.mrf.mxu1 }
 0x2a5   : > { %v3942_v46 = vadd.f32 %v13769_v39, %v3684_v16  ;;  %4193 = vmatprep.mubr.bf16.mxu0 %v11786_v7  ;;  %v13892_v39 = vld [vmem:[%s16546_s2 + $0x5c0] ss:$0 sps:$4 sm:$0x33]   ;;  %v4644_v11 = vrot.slane %v3938_v35, 1  ;;  %v11788_v16 = vld [vmem:[%s11970_s18 + $0x118] ss:$12 sps:$4 sm:$0xff]   ;;  %6421 = vmatpush1.bf16.msra.mxu1 %v11614_v57 }
 0x2a6   : > { %v3686_v9 = vpop.f32.mrf.mxu0  ;;  %5947 = vmatmul.mubr.bf16.gmra.mxu1 %v11566_v48  ;;  %v13894_v23 = vpop.f32.mrf.mxu1  ;;  %11130 = vmatprep.subr.msk.bf16.mxu0 %vm1266_vm0, %v13892_v39  ;;  %v11787_v48 = vld [vmem:[%s11970_s18 + $0xfc] ss:$12 sps:$4 sm:$0xff]  }
 0x2a7   : > { %v4550_v47 = vadd.f32 %v3942_v46, %v13408_v55  ;;  %v3944_v15 = vadd.f32 %v13778_v54, %v3686_v9  ;;  %5955 = vmatprep.mubr.bf16.mxu1 %v11571_v62  ;;  %v11569_v54 = vld [vmem:[%s11970_s18 + $0x78] ss:$12 sps:$4 sm:$0xff]   ;;  %6422 = vmatprep.subr.bf16.mxu1 %v16604_v45 }
 0x2a8   : > { %v3688_v22 = vpop.f32.mrf.mxu0  ;;  %v13898_v55 = vpop.f32.mrf.mxu1 }
 0x2a9   : > { %v4645_v43 = vrot.slane %v3944_v15, 1 }
 0x2aa   : > { %v3689_v17 = vpop.f32.mrf.mxu0  ;;  %v13908_v28 = vpop.f32.mrf.mxu1 }
 0x2ab   : > { %v4646_v59 = vsel %vm2288_vm2, %v4644_v11, %v4645_v43  ;;  %v3947_v13 = vadd.f32 %v13792_v42, %v3689_v17  ;;  %v11575_v17 = vld [vmem:[%s11970_s18 + $0x90] ss:$12 sps:$4 sm:$0xff]  }
 0x2ac   : > { %v3693_v58 = vpop.f32.mrf.mxu0  ;;  %4194 = vmatmul.mubr.bf16.gmra.mxu0 %v11787_v48  ;;  %v13910_v35 = vadd.f32 %v4646_v59, %v4549_v40  ;;  %v13914_v29 = vpop.f32.mrf.mxu1  ;;  %v11580_v59 = vld [vmem:[%s11970_s18 + $0xac] ss:$12 sps:$4 sm:$0xff]  }
 0x2ad   : > { %v4647_v62 = vrot.slane %v3947_v13, 1  ;;  %v3951_v32 = vadd.f32 %v13795_v0, %v3693_v58  ;;  %4201 = vmatprep.mubr.bf16.mxu0 %v11788_v16  ;;  %v11789_v13 = vld [vmem:[%s11970_s18 + $0x114] ss:$12 sps:$4 sm:$0xff]   ;;  %v11790_v58 = vld [vmem:[%s11970_s18 + $0x130] ss:$12 sps:$4 sm:$0xff]  }
 0x2ae   : > { %v3695_v42 = vpop.f32.mrf.mxu0  ;;  %5956 = vmatmul.mubr.bf16.gmra.mxu1 %v11569_v54  ;;  %v13920_v9 = vpop.f32.mrf.mxu1 }
 0x2af   : > { %v4648_v46 = vsel %vm2288_vm2, %v4645_v43, %v4647_v62  ;;  %v4551_v40 = vadd.f32 %v3951_v32, %v13400_v2  ;;  %v3953_v7 = vadd.f32 %v13803_v26, %v3695_v42  ;;  %5964 = vmatprep.mubr.bf16.mxu1 %v11577_v19 }
 0x2b0   : > { %v3697_v0 = vpop.f32.mrf.mxu0  ;;  %v13922_v34 = vadd.f32 %v4648_v46, %v4550_v47  ;;  %v4001_v11 = vpop.f32.mrf.mxu1 }
 0x2b1   : > { %v3955_v15 = vadd.f32 %v13808_v33, %v3697_v0  ;;  %v4649_v19 = vrot.slane %v3953_v7, 1 }
 0x2b2   : > { %v3699_v22 = vpop.f32.mrf.mxu0  ;;  %v13930_v26 = vpop.f32.mrf.mxu1 }
 0x2b3   : > { %v4552_v54 = vadd.f32 %v3955_v15, %v13420_v50  ;;  %v3957_v43 = vadd.f32 %v13814_v60, %v3699_v22  ;;  %v11620_v60 = vld [vmem:[%s16546_s2 + $0x458] ss:$12 sps:$4 sm:$0xff]  }
 0x2b4   : > { %v3703_v2 = vpop.f32.mrf.mxu0  ;;  %4202 = vmatmul.mubr.bf16.gmra.mxu0 %v11789_v13  ;;  %v13933_v33 = vpop.f32.mrf.mxu1  ;;  %6423 = vmatpush1.bf16.msra.mxu1 %v11620_v60  ;;  %v11792_v13 = vld [vmem:[%s11970_s18 + $0x148] ss:$12 sps:$4 sm:$0xff]   ;;  %v11581_v60 = vld [vmem:[%s11970_s18 + $0xc0] ss:$12 sps:$4 sm:$0xff]  }
 0x2b5   : > { %v4650_v57 = vrot.slane %v3957_v43, 1  ;;  %4209 = vmatprep.mubr.bf16.mxu0 %v11790_v58  ;;  %6424 = vmatprep.subr.bf16.mxu1 %v16604_v45  ;;  %v11791_v43 = vld [vmem:[%s11970_s18 + $0x12c] ss:$12 sps:$4 sm:$0xff]  }
 0x2b6   : > { %v3704_v47 = vpop.f32.mrf.mxu0  ;;  %5965 = vmatmul.mubr.bf16.gmra.mxu1 %v11575_v17  ;;  %v13940_v32 = vpop.f32.mrf.mxu1  ;;  %v11583_v17 = vld [vmem:[%s11970_s18 + $0xc4] ss:$12 sps:$4 sm:$0xff]  }
 0x2b7   : > { %v4651_v48 = vsel %vm2288_vm2, %v4649_v19, %v4650_v57  ;;  %v3962_v50 = vadd.f32 %v13826_v52, %v3704_v47  ;;  %5974 = vmatprep.mubr.bf16.mxu1 %v11580_v59  ;;  %v11578_v52 = vld [vmem:[%s11970_s18 + $0xa8] ss:$12 sps:$4 sm:$0xff]  }
 0x2b8   : > { %v3706_v62 = vpop.f32.mrf.mxu0  ;;  %v13942_v16 = vadd.f32 %v4651_v48, %v4551_v40  ;;  %v13945_v0 = vpop.f32.mrf.mxu1 }
 0x2b9   : > { %v4652_v42 = vrot.slane %v3962_v50, 1  ;;  %v3964_v46 = vadd.f32 %v13828_v36, %v3706_v62 }
 0x2ba   : > { %v3708_v7 = vpop.f32.mrf.mxu0  ;;  %v13954_v59 = vpop.f32.mrf.mxu1 }
 0x2bb   : > { %v4653_v15 = vsel %vm2288_vm2, %v4650_v57, %v4652_v42  ;;  %v4553_v22 = vadd.f32 %v3964_v46, %v13435_v10  ;;  %v3966_v11 = vadd.f32 %v13834_v31, %v3708_v7  ;;  %v11586_v46 = vld [vmem:[%s11970_s18 + $0xdc] ss:$12 sps:$4 sm:$0xff]   ;;  %v11793_v7 = vld [vmem:[%s11970_s18 + $0x144] ss:$12 sps:$4 sm:$0xff]  }
 0x2bc   : > { %v3712_v40 = vpop.f32.mrf.mxu0  ;;  %4210 = vmatmul.mubr.bf16.gmra.mxu0 %v11791_v43  ;;  %v13956_v36 = vadd.f32 %v4653_v15, %v4552_v54  ;;  %v4016_v57 = vpop.f32.mrf.mxu1 }
 0x2bd   : > { %v3970_v2 = vadd.f32 %v13840_v1, %v3712_v40  ;;  %4217 = vmatprep.mubr.bf16.mxu0 %v11792_v13  ;;  %v4654_v54 = vrot.slane %v3966_v11, 1  ;;  %v11794_v40 = vld [vmem:[%s11970_s18 + $0x160] ss:$12 sps:$4 sm:$0xff]  }
 0x2be   : > { %v3714_v19 = vpop.f32.mrf.mxu0  ;;  %5975 = vmatmul.mubr.bf16.gmra.mxu1 %v11578_v52  ;;  %v13962_v47 = vpop.f32.mrf.mxu1 }
 0x2bf   : > { %v4554_v10 = vadd.f32 %v3970_v2, %v13428_v63  ;;  %v3972_v31 = vadd.f32 %v13847_v56, %v3714_v19  ;;  %5983 = vmatprep.mubr.bf16.mxu1 %v11583_v17  ;;  %v11628_v63 = vld [vmem:[%s16546_s2 + $0x440] ss:$12 sps:$4 sm:$0xff]  }
 0x2c0   : > { %v3716_v58 = vpop.f32.mrf.mxu0  ;;  %v13964_v1 = vpop.f32.mrf.mxu1  ;;  %6425 = vmatpush1.bf16.msra.mxu1 %v11628_v63  ;;  %v11795_v63 = vld [vmem:[%s11970_s18 + $0x15c] ss:$12 sps:$4 sm:$0xff]  }
 0x2c1   : > { %v4655_v48 = vrot.slane %v3972_v31, 1  ;;  %6426 = vmatprep.subr.bf16.mxu1 %v16604_v45 }
 0x2c2   : > { %v3717_v50 = vpop.f32.mrf.mxu0  ;;  %v13974_v52 = vpop.f32.mrf.mxu1 }
 0x2c3   : > { %v4656_v62 = vsel %vm2288_vm2, %v4654_v54, %v4655_v48  ;;  %v3975_v42 = vadd.f32 %v13857_v4, %v3717_v50  ;;  %v11584_v50 = vld [vmem:[%s11970_s18 + $0xd8] ss:$12 sps:$4 sm:$0xff]  }
 0x2c4   : > { %v3721_v56 = vpop.f32.mrf.mxu0  ;;  %4218 = vmatmul.mubr.bf16.gmra.mxu0 %v11793_v7  ;;  %v13976_v15 = vadd.f32 %v4656_v62, %v4553_v22  ;;  %v13980_v43 = vpop.f32.mrf.mxu1  ;;  %v11796_v7 = vld [vmem:[%s11970_s18 + $0x178] ss:$12 sps:$4 sm:$0xff]  }
 0x2c5   : > { %v4657_v11 = vrot.slane %v3975_v42, 1  ;;  %v3979_v17 = vadd.f32 %v13860_v3, %v3721_v56  ;;  %4225 = vmatprep.mubr.bf16.mxu0 %v11794_v40  ;;  %v11589_v42 = vld [vmem:[%s11970_s18 + $0xf4] ss:$12 sps:$4 sm:$0xff]  }
 0x2c6   : > { %v3723_v4 = vpop.f32.mrf.mxu0  ;;  %5984 = vmatmul.mubr.bf16.gmra.mxu1 %v11581_v60  ;;  %v13986_v19 = vpop.f32.mrf.mxu1  ;;  %v16698_v60 = vld [vmem:[#allocation16_spill] sm:$0xff] }
 0x2c7   : > { %v4658_v2 = vsel %vm2288_vm2, %v4655_v48, %v4657_v11  ;;  %v4555_v22 = vadd.f32 %v3979_v17, %v13470_v30  ;;  %v3981_v13 = vadd.f32 %v13864_v21, %v3723_v4  ;;  %5992 = vmatprep.mubr.bf16.mxu1 %v11586_v46 }
 0x2c8   : > { %v3725_v3 = vpop.f32.mrf.mxu0  ;;  %v13988_v57 = vadd.f32 %v4658_v2, %v4554_v10  ;;  %v4029_v54 = vpop.f32.mrf.mxu1 }
 0x2c9   : > { %v3983_v31 = vadd.f32 %v13869_v38, %v3725_v3  ;;  %v4659_v46 = vrot.slane %v3981_v13, 1 }
 0x2ca   : > { %v3727_v58 = vpop.f32.mrf.mxu0  ;;  %v13996_v21 = vpop.f32.mrf.mxu1 }
 0x2cb   : > { %v4556_v62 = vadd.f32 %v3983_v31, %v16698_v60  ;;  %v3985_v48 = vadd.f32 %v13880_v12, %v3727_v58  ;;  %v11635_v12 = vld [vmem:[%s16546_s2 + $0x428] ss:$12 sps:$4 sm:$0xff]  }
 0x2cc   : > { %v3731_v30 = vpop.f32.mrf.mxu0  ;;  %4226 = vmatmul.mubr.bf16.gmra.mxu0 %v11795_v63  ;;  %v13999_v38 = vpop.f32.mrf.mxu1  ;;  %6427 = vmatpush1.bf16.msra.mxu1 %v11635_v12 }
 0x2cd   : > { %v4660_v56 = vrot.slane %v3985_v48, 1  ;;  %4233 = vmatprep.mubr.bf16.mxu0 %v11796_v7  ;;  %6428 = vmatprep.subr.bf16.mxu1 %v16604_v45  ;;  %v11797_v30 = vld [vmem:[%s11970_s18 + $0x174] ss:$12 sps:$4 sm:$0xff]   ;;  %v11798_v7 = vld [vmem:[%s11970_s18 + $0x190] ss:$12 sps:$4 sm:$0xff]  }
 0x2ce   : > { %v3732_v10 = vpop.f32.mrf.mxu0  ;;  %5993 = vmatmul.mubr.bf16.gmra.mxu1 %v11584_v50  ;;  %v14006_v4 = vpop.f32.mrf.mxu1  ;;  %v16699_v50 = vld [vmem:[#allocation13_spill] sm:$0xff] }
 0x2cf   : > { %v4661_v11 = vsel %vm2288_vm2, %v4659_v46, %v4660_v56  ;;  %v3990_v17 = vadd.f32 %v13894_v23, %v3732_v10  ;;  %6002 = vmatprep.mubr.bf16.mxu1 %v11589_v42  ;;  %v11587_v23 = vld [vmem:[%s11970_s18 + $0xf0] ss:$12 sps:$4 sm:$0xff]   ;;  %v11595_v42 = vld [vmem:[%s11970_s18 + $0x10c] ss:$12 sps:$4 sm:$0xff]  }
 0x2d0   : > { %v3734_v40 = vpop.f32.mrf.mxu0  ;;  %v14008_v2 = vadd.f32 %v4661_v11, %v4555_v22  ;;  %v14011_v58 = vpop.f32.mrf.mxu1 }
 0x2d1   : > { %v4662_v13 = vrot.slane %v3990_v17, 1  ;;  %v3992_v3 = vadd.f32 %v13898_v55, %v3734_v40 }
 0x2d2   : > { %v3736_v31 = vpop.f32.mrf.mxu0  ;;  %v14020_v63 = vpop.f32.mrf.mxu1 }
 0x2d3   : > { %v4663_v54 = vsel %vm2288_vm2, %v4660_v56, %v4662_v13  ;;  %v4557_v60 = vadd.f32 %v3992_v3, %v16699_v50  ;;  %v3994_v48 = vadd.f32 %v13908_v28, %v3736_v31  ;;  %v16700_v56 = vld [vmem:[#allocation15_spill] sm:$0xff] }
 0x2d4   : > { %v3740_v22 = vpop.f32.mrf.mxu0  ;;  %4234 = vmatmul.mubr.bf16.gmra.mxu0 %v11797_v30  ;;  %v14022_v55 = vadd.f32 %v4663_v54, %v4556_v62  ;;  %v4044_v11 = vpop.f32.mrf.mxu1  ;;  %v11640_v62 = vld [vmem:[%s16546_s2 + $0x410] ss:$12 sps:$4 sm:$0xff]  }
 0x2d5   : > { %v3998_v46 = vadd.f32 %v13914_v29, %v3740_v22  ;;  %4241 = vmatprep.mubr.bf16.mxu0 %v11798_v7  ;;  %v4664_v29 = vrot.slane %v3994_v48, 1  ;;  %6429 = vmatpush1.bf16.msra.mxu1 %v11640_v62  ;;  %v11598_v50 = vld [vmem:[%s11970_s18 + $0x124] ss:$12 sps:$4 sm:$0xff]   ;;  %v11799_v48 = vld [vmem:[%s11970_s18 + $0x18c] ss:$12 sps:$4 sm:$0xff]  }
 0x2d6   : > { %v3742_v10 = vpop.f32.mrf.mxu0  ;;  %6003 = vmatmul.mubr.bf16.gmra.mxu1 %v11587_v23  ;;  %v14031_v40 = vpop.f32.mrf.mxu1  ;;  %v11593_v23 = vld [vmem:[%s11970_s18 + $0x108] ss:$12 sps:$4 sm:$0xff]   ;;  %6430 = vmatprep.subr.bf16.mxu1 %v16604_v45  ;;  %v16701_v62 = vld [vmem:[#allocation17_spill] sm:$0xff] }
 0x2d7   : > { %v4558_v17 = vadd.f32 %v3998_v46, %v16700_v56  ;;  %v4000_v28 = vadd.f32 %v13920_v9, %v3742_v10  ;;  %6011 = vmatprep.mubr.bf16.mxu1 %v11595_v42  ;;  %v11645_v42 = vld [vmem:[%s16546_s2 + $0x3f8] ss:$12 sps:$4 sm:$0xff]   ;;  %v11800_v11 = vld [vmem:[%s11970_s18 + $0x1a8] ss:$12 sps:$4 sm:$0xff]  }
 0x2d8   : > { %v3744_v12 = vpop.f32.mrf.mxu0  ;;  %v14033_v31 = vpop.f32.mrf.mxu1 }
 0x2d9   : > { %v4665_v13 = vrot.slane %v4000_v28, 1  ;;  %6431 = vmatpush1.bf16.msra.mxu1 %v11645_v42  ;;  %v11596_v42 = vld [vmem:[%s11970_s18 + $0x120] ss:$12 sps:$4 sm:$0xff]  }
 0x2da   : > { %v3745_v3 = vpop.f32.mrf.mxu0  ;;  %v14044_v30 = vpop.f32.mrf.mxu1  ;;  %6432 = vmatprep.subr.bf16.mxu1 %v16604_v45 }
 0x2db   : > { %v4666_v9 = vsel %vm2288_vm2, %v4664_v29, %v4665_v13  ;;  %v4003_v54 = vadd.f32 %v13930_v26, %v3745_v3 }
 0x2dc   : > { %v3749_v22 = vpop.f32.mrf.mxu0  ;;  %4242 = vmatmul.mubr.bf16.gmra.mxu0 %v11799_v48  ;;  %v14046_v46 = vadd.f32 %v4666_v9, %v4557_v60  ;;  %v14050_v26 = vpop.f32.mrf.mxu1  ;;  %v11601_v48 = vld [vmem:[%s11970_s18 + $0x13c] ss:$12 sps:$4 sm:$0xff]  }
 0x2dd   : > { %v4667_v7 = vrot.slane %v4003_v54, 1  ;;  %v4007_v10 = vadd.f32 %v13933_v33, %v3749_v22  ;;  %4249 = vmatprep.mubr.bf16.mxu0 %v11800_v11  ;;  %v11646_v33 = vld [vmem:[%s16546_s2 + $0x3e0] ss:$12 sps:$4 sm:$0xff]  }
 0x2de   : > { %v3751_v56 = vpop.f32.mrf.mxu0  ;;  %6012 = vmatmul.mubr.bf16.gmra.mxu1 %v11593_v23  ;;  %v14059_v3 = vpop.f32.mrf.mxu1 }
 0x2df   : > { %v4668_v28 = vsel %vm2288_vm2, %v4665_v13, %v4667_v7  ;;  %v4559_v12 = vadd.f32 %v4007_v10, %v16701_v62  ;;  %v4009_v60 = vadd.f32 %v13940_v32, %v3751_v56  ;;  %6020 = vmatprep.mubr.bf16.mxu1 %v11598_v50  ;;  %6433 = vmatpush1.bf16.msra.mxu1 %v11646_v33  ;;  %v16702_v32 = vld [vmem:[#allocation19_spill] sm:$0xff] }
 0x2e0   : > { %v3753_v29 = vpop.f32.mrf.mxu0  ;;  %v14061_v9 = vadd.f32 %v4668_v28, %v4558_v17  ;;  %v4057_v54 = vpop.f32.mrf.mxu1  ;;  %6434 = vmatprep.subr.bf16.mxu1 %v16604_v45  ;;  %v11651_v7 = vld [vmem:[%s16546_s2 + $0x548] ss:$12 sps:$4 sm:$0xff]   ;;  %v11801_v10 = vld [vmem:[%s11970_s18 + $0x1a4] ss:$12 sps:$4 sm:$0xff]   ;;  %v11802_v28 = vld [vmem:[%s11970_s18 + $0x1c0] ss:$12 sps:$4 sm:$0xff]  }
 0x2e1   : > { %v4011_v23 = vadd.f32 %v13945_v0, %v3753_v29  ;;  %v4669_v11 = vrot.slane %v4009_v60, 1  ;;  %v11652_v60 = vld [vmem:[%s16546_s2 + $0x530] ss:$12 sps:$4 sm:$0xff]  }
 0x2e2   : > { %v3755_v13 = vpop.f32.mrf.mxu0  ;;  %v14073_v0 = vpop.f32.mrf.mxu1 }
 0x2e3   : > { %v4560_v50 = vadd.f32 %v4011_v23, %v16702_v32  ;;  %v4013_v22 = vadd.f32 %v13954_v59, %v3755_v13  ;;  %6435 = vmatpush2.bf16.msra.mxu1 %v11651_v7 }
 0x2e4   : > { %v3759_v17 = vpop.f32.mrf.mxu0  ;;  %4250 = vmatmul.mubr.bf16.gmra.mxu0 %v11801_v10  ;;  %v14076_v33 = vpop.f32.mrf.mxu1  ;;  %6436 = vmatprep.subr.bf16.mxu1 %v16604_v45 }
 0x2e5   : > { %v4670_v56 = vrot.slane %v4013_v22, 1  ;;  %4257 = vmatprep.mubr.bf16.mxu0 %v11802_v28  ;;  %v16704_v17 = vld [vmem:[#allocation18_spill] sm:$0xff]  ;;  %v11604_v28 = vld [vmem:[%s11970_s18 + $0x154] ss:$12 sps:$4 sm:$0xff]  }
 0x2e6   : > { %v3760_v62 = vpop.f32.mrf.mxu0  ;;  %6021 = vmatmul.mubr.bf16.gmra.mxu1 %v11596_v42  ;;  %v14084_v13 = vpop.f32.mrf.mxu1 }
 0x2e7   : > { %v4671_v59 = vsel %vm2288_vm2, %v4669_v11, %v4670_v56  ;;  %v4018_v29 = vadd.f32 %v13962_v47, %v3760_v62  ;;  %6030 = vmatprep.mubr.bf16.mxu1 %v11601_v48  ;;  %6437 = vmatpush2.bf16.msra.mxu1 %v11652_v60  ;;  %v11599_v47 = vld [vmem:[%s11970_s18 + $0x138] ss:$12 sps:$4 sm:$0xff]   ;;  %v11803_v62 = vld [vmem:[%s11970_s18 + $0x1bc] ss:$12 sps:$4 sm:$0xff]  }
 0x2e8   : > { %v3762_v23 = vpop.f32.mrf.mxu0  ;;  %v14086_v54 = vadd.f32 %v4671_v59, %v4559_v12  ;;  %v14089_v7 = vpop.f32.mrf.mxu1  ;;  %6438 = vmatprep.subr.bf16.mxu1 %v16604_v45  ;;  %v11657_v12 = vld [vmem:[%s16546_s2 + $0x518] ss:$12 sps:$4 sm:$0xff]  }
 0x2e9   : > { %v4672_v32 = vrot.slane %v4018_v29, 1  ;;  %v4020_v42 = vadd.f32 %v13964_v1, %v3762_v23  ;;  %v11804_v23 = vld [vmem:[%s11970_s18 + $0x1d8] ss:$12 sps:$4 sm:$0xff]  }
 0x2ea   : > { %16703 = vst [vmem:[#allocation27_spill] sm:$0xff] %v14086_v54  ;;  %v3764_v22 = vpop.f32.mrf.mxu0  ;;  %v14101_v59 = vpop.f32.mrf.mxu1  ;;  %v11809_v54 = vld [vmem:[%s11970_s18 + $0x204] ss:$12 sps:$4 sm:$0xff]  }
 0x2eb   : > { %v4673_v48 = vsel %vm2288_vm2, %v4670_v56, %v4672_v32  ;;  %v4561_v10 = vadd.f32 %v4020_v42, %v16704_v17  ;;  %v4022_v11 = vadd.f32 %v13974_v52, %v3764_v22  ;;  %6439 = vmatpush2.bf16.msra.mxu1 %v11657_v12  ;;  %v16706_v32 = vld [vmem:[#allocation21_spill] sm:$0xff] }
 0x2ec   : > { %v3768_v1 = vpop.f32.mrf.mxu0  ;;  %4258 = vmatmul.mubr.bf16.gmra.mxu0 %v11803_v62  ;;  %v14103_v29 = vadd.f32 %v4673_v48, %v4560_v50  ;;  %v4072_v52 = vpop.f32.mrf.mxu1  ;;  %6440 = vmatprep.subr.bf16.mxu1 %v16604_v45  ;;  %v11602_v62 = vld [vmem:[%s11970_s18 + $0x150] ss:$12 sps:$4 sm:$0xff]  }
 0x2ed   : > { %v4026_v60 = vadd.f32 %v13980_v43, %v3768_v1  ;;  %4265 = vmatprep.mubr.bf16.mxu0 %v11804_v23  ;;  %v11658_v43 = vld [vmem:[%s16546_s2 + $0x500] ss:$12 sps:$4 sm:$0xff]   ;;  %v4674_v17 = vrot.slane %v4022_v11, 1  ;;  %v11664_v23 = vld [vmem:[%s16546_s2 + $0x4e8] ss:$12 sps:$4 sm:$0xff]  }
 0x2ee   : > { %16705 = vst [vmem:[#allocation3_spill] sm:$0xff] %v14103_v29  ;;  %v3770_v56 = vpop.f32.mrf.mxu0  ;;  %6031 = vmatmul.mubr.bf16.gmra.mxu1 %v11599_v47  ;;  %v14113_v48 = vpop.f32.mrf.mxu1  ;;  %v11805_v11 = vld [vmem:[%s11970_s18 + $0x1d4] ss:$12 sps:$4 sm:$0xff]  }
 0x2ef   : > { %v4562_v42 = vadd.f32 %v4026_v60, %v16706_v32  ;;  %v4028_v22 = vadd.f32 %v13986_v19, %v3770_v56  ;;  %6039 = vmatprep.mubr.bf16.mxu1 %v11604_v28  ;;  %6441 = vmatpush2.bf16.msra.mxu1 %v11658_v43  ;;  %v11608_v60 = vld [vmem:[%s11970_s18 + $0x16c] ss:$12 sps:$4 sm:$0xff]  }
 0x2f0   : > { %v3772_v50 = vpop.f32.mrf.mxu0  ;;  %v14115_v1 = vpop.f32.mrf.mxu1  ;;  %6442 = vmatprep.subr.bf16.mxu1 %v16604_v45 }
 0x2f1   : > { %v4675_v12 = vrot.slane %v4028_v22, 1  ;;  %v11806_v50 = vld [vmem:[%s11970_s18 + $0x1f0] ss:$12 sps:$4 sm:$0xff]  }
 0x2f2   : > { %v3773_v47 = vpop.f32.mrf.mxu0  ;;  %v14126_v52 = vpop.f32.mrf.mxu1 }
 0x2f3   : > { %v4676_v19 = vsel %vm2288_vm2, %v4674_v17, %v4675_v12  ;;  %v4031_v28 = vadd.f32 %v13996_v21, %v3773_v47  ;;  %6443 = vmatpush2.bf16.msra.mxu1 %v11664_v23 }
 0x2f4   : > { %v3777_v56 = vpop.f32.mrf.mxu0  ;;  %4266 = vmatmul.mubr.bf16.gmra.mxu0 %v11805_v11  ;;  %v14128_v32 = vadd.f32 %v4676_v19, %v4561_v10  ;;  %v14132_v21 = vpop.f32.mrf.mxu1  ;;  %6444 = vmatprep.subr.bf16.mxu1 %v16604_v45  ;;  %v16708_v11 = vld [vmem:[#allocation22_spill] sm:$0xff] }
 0x2f5   : > { %v4677_v22 = vrot.slane %v4031_v28, 1  ;;  %v4035_v43 = vadd.f32 %v13999_v38, %v3777_v56  ;;  %4273 = vmatprep.mubr.bf16.mxu0 %v11806_v50  ;;  %v11665_v38 = vld [vmem:[%s16546_s2 + $0x4d0] ss:$12 sps:$4 sm:$0xff]  }
 0x2f6   : > { %16707 = vst [vmem:[#allocation24_spill] sm:$0xff] %v14128_v32  ;;  %v3779_v17 = vpop.f32.mrf.mxu0  ;;  %6040 = vmatmul.mubr.bf16.gmra.mxu1 %v11602_v62  ;;  %v14141_v28 = vpop.f32.mrf.mxu1  ;;  %v11613_v50 = vld [vmem:[%s11970_s18 + $0x184] ss:$12 sps:$4 sm:$0xff]  }
 0x2f7   : > { %v4678_v47 = vsel %vm2288_vm2, %v4675_v12, %v4677_v22  ;;  %v4563_v29 = vadd.f32 %v4035_v43, %v16708_v11  ;;  %v4037_v10 = vadd.f32 %v14006_v4, %v3779_v17  ;;  %6048 = vmatprep.mubr.bf16.mxu1 %v11608_v60  ;;  %6445 = vmatpush2.bf16.msra.mxu1 %v11665_v38  ;;  %v11606_v22 = vld [vmem:[%s11970_s18 + $0x168] ss:$12 sps:$4 sm:$0xff]   ;;  %v16710_v4 = vld [vmem:[#allocation20_spill] sm:$0xff] }
 0x2f8   : > { %v3781_v19 = vpop.f32.mrf.mxu0  ;;  %v14143_v23 = vadd.f32 %v4678_v47, %v4562_v42  ;;  %v4085_v56 = vpop.f32.mrf.mxu1  ;;  %6446 = vmatprep.subr.bf16.mxu1 %v16604_v45  ;;  %v11670_v17 = vld [vmem:[%s16546_s2 + $0x4b8] ss:$12 sps:$4 sm:$0xff]  }
 0x2f9   : > { %v4039_v62 = vadd.f32 %v14011_v58, %v3781_v19  ;;  %v11807_v47 = vld [vmem:[%s11970_s18 + $0x1ec] ss:$12 sps:$4 sm:$0xff]   ;;  %v4679_v11 = vrot.slane %v4037_v10, 1  ;;  %v11808_v19 = vld [vmem:[%s11970_s18 + $0x208] ss:$12 sps:$4 sm:$0xff]  }
 0x2fa   : > { %16709 = vst [vmem:[#allocation26_spill] sm:$0xff] %v14143_v23  ;;  %v3783_v12 = vpop.f32.mrf.mxu0  ;;  %v14155_v58 = vpop.f32.mrf.mxu1  ;;  %v11671_v10 = vld [vmem:[%s16546_s2 + $0x4a0] ss:$12 sps:$4 sm:$0xff]   ;;  %v11618_v23 = vld [vmem:[%s11970_s18 + $0x19c] ss:$12 sps:$4 sm:$0xff]  }
 0x2fb   : > { %v4564_v60 = vadd.f32 %v4039_v62, %v16710_v4  ;;  %v4041_v43 = vadd.f32 %v14020_v63, %v3783_v12  ;;  %6447 = vmatpush2.bf16.msra.mxu1 %v11670_v17 }
 0x2fc   : > { %v3787_v42 = vpop.f32.mrf.mxu0  ;;  %4274 = vmatmul.mubr.bf16.gmra.mxu0 %v11807_v47  ;;  %v14158_v62 = vpop.f32.mrf.mxu1  ;;  %6448 = vmatprep.subr.bf16.mxu1 %v16604_v45 }
 0x2fd   : > { %v4680_v38 = vrot.slane %v4041_v43, 1  ;;  %4281 = vmatprep.mubr.bf16.mxu0 %v11808_v19 }
 0x2fe   : > { %v3788_v56 = vpop.f32.mrf.mxu0  ;;  %6049 = vmatmul.mubr.bf16.gmra.mxu1 %v11606_v22  ;;  %v14166_v43 = vpop.f32.mrf.mxu1 }
 0x2ff   : > { %v4681_v63 = vsel %vm2288_vm2, %v4679_v11, %v4680_v38  ;;  %v4046_v12 = vadd.f32 %v14031_v40, %v3788_v56  ;;  %6058 = vmatprep.mubr.bf16.mxu1 %v11613_v50  ;;  %6449 = vmatpush2.bf16.msra.mxu1 %v11671_v10  ;;  %v11611_v40 = vld [vmem:[%s11970_s18 + $0x180] ss:$12 sps:$4 sm:$0xff]  }
 0x300   : > { %v3790_v4 = vpop.f32.mrf.mxu0  ;;  %v14168_v17 = vadd.f32 %v4681_v63, %v4563_v29  ;;  %v14171_v11 = vpop.f32.mrf.mxu1 }
 0x301   : > { %v4682_v42 = vrot.slane %v4046_v12, 1  ;;  %v4048_v22 = vadd.f32 %v14033_v31, %v3790_v4  ;;  %v11810_v12 = vld [vmem:[%s11970_s18 + $0x220] ss:$12 sps:$4 sm:$0xff]  }
 0x302   : > { %v3792_v47 = vpop.f32.mrf.mxu0  ;;  %v14179_v29 = vpop.f32.mrf.mxu1 }
 0x303   : > { %v4683_v50 = vsel %vm2288_vm2, %v4680_v38, %v4682_v42  ;;  %v4565_v19 = vadd.f32 %v4048_v22, %v13607_v24  ;;  %v4050_v56 = vadd.f32 %v14044_v30, %v3792_v47  ;;  %v11616_v22 = vld [vmem:[%s11970_s18 + $0x198] ss:$12 sps:$4 sm:$0xff]  }
 0x304   : > { %v3796_v32 = vpop.f32.mrf.mxu0  ;;  %4282 = vmatmul.mubr.bf16.gmra.mxu0 %v11809_v54  ;;  %v14181_v63 = vadd.f32 %v4683_v50, %v4564_v60 }
 0x305   : > { %v4054_v31 = vadd.f32 %v14050_v26, %v3796_v32  ;;  %4289 = vmatprep.mubr.bf16.mxu0 %v11810_v12  ;;  %v14185_v38 = vpop.f32.mrf.mxu1  ;;  %v4684_v60 = vrot.slane %v4050_v56, 1 }
 0x306   : > { %v3798_v10 = vpop.f32.mrf.mxu0  ;;  %6059 = vmatmul.mubr.bf16.gmra.mxu1 %v11611_v40  ;;  %v11623_v40 = vld [vmem:[%s11970_s18 + $0x1b4] ss:$12 sps:$4 sm:$0xff]  }
 0x307   : > { %v4566_v24 = vadd.f32 %v4054_v31, %v13632_v6  ;;  %v4056_v30 = vadd.f32 %v14059_v3, %v3798_v10  ;;  %6067 = vmatprep.mubr.bf16.mxu1 %v11618_v23  ;;  %v14189_v4 = vpop.f32.mrf.mxu1  ;;  %v11811_v6 = vld [vmem:[%s11970_s18 + $0x21c] ss:$12 sps:$4 sm:$0xff]   ;;  %v11812_v10 = vld [vmem:[%s11970_s18 + $0x238] ss:$12 sps:$4 sm:$0xff]  }
 0x308   : > { %v3800_v54 = vpop.f32.mrf.mxu0 }
 0x309   : > { %v4685_v42 = vrot.slane %v4056_v30, 1  ;;  %v14191_v32 = vpop.f32.mrf.mxu1 }
 0x30a   : > { %v3801_v26 = vpop.f32.mrf.mxu0 }
 0x30b   : > { %v4686_v47 = vsel %vm2288_vm2, %v4684_v60, %v4685_v42  ;;  %v4059_v50 = vadd.f32 %v14073_v0, %v3801_v26  ;;  %v14198_v3 = vpop.f32.mrf.mxu1 }
 0x30c   : > { %v3805_v12 = vpop.f32.mrf.mxu0  ;;  %4290 = vmatmul.mubr.bf16.gmra.mxu0 %v11811_v6  ;;  %v14200_v23 = vadd.f32 %v4686_v47, %v4565_v19 }
 0x30d   : > { %v4687_v31 = vrot.slane %v4059_v50, 1  ;;  %v4063_v56 = vadd.f32 %v14076_v33, %v3805_v12  ;;  %4297 = vmatprep.mubr.bf16.mxu0 %v11812_v10  ;;  %v14204_v54 = vpop.f32.mrf.mxu1 }
 0x30e   : > { %v3807_v30 = vpop.f32.mrf.mxu0  ;;  %6068 = vmatmul.mubr.bf16.gmra.mxu1 %v11616_v22  ;;  %v11621_v22 = vld [vmem:[%s11970_s18 + $0x1b0] ss:$12 sps:$4 sm:$0xff]  }
 0x30f   : > { %v4688_v0 = vsel %vm2288_vm2, %v4685_v42, %v4687_v31  ;;  %v4567_v60 = vadd.f32 %v4063_v56, %v13617_v27  ;;  %v4065_v26 = vadd.f32 %v14084_v13, %v3807_v30  ;;  %6076 = vmatprep.mubr.bf16.mxu1 %v11623_v40  ;;  %v14209_v47 = vpop.f32.mrf.mxu1  ;;  %v11627_v27 = vld [vmem:[%s11970_s18 + $0x1cc] ss:$12 sps:$4 sm:$0xff]   ;;  %v11813_v13 = vld [vmem:[%s11970_s18 + $0x234] ss:$12 sps:$4 sm:$0xff]  }
 0x310   : > { %v3809_v19 = vpop.f32.mrf.mxu0  ;;  %v14211_v33 = vadd.f32 %v4688_v0, %v4566_v24  ;;  %v11814_v24 = vld [vmem:[%s11970_s18 + $0x250] ss:$12 sps:$4 sm:$0xff]  }
 0x311   : > { %v4067_v50 = vadd.f32 %v14089_v7, %v3809_v19  ;;  %v14214_v6 = vpop.f32.mrf.mxu1  ;;  %v4689_v56 = vrot.slane %v4065_v26, 1 }
 0x312   : > { %16711 = vst [vmem:[#allocation23_spill] sm:$0xff] %v14211_v33  ;;  %v3811_v12 = vpop.f32.mrf.mxu0 }
 0x313   : > { %v4568_v10 = vadd.f32 %v4067_v50, %v13653_v5  ;;  %v4069_v42 = vadd.f32 %v14101_v59, %v3811_v12  ;;  %v14221_v40 = vpop.f32.mrf.mxu1 }
 0x314   : > { %v3815_v31 = vpop.f32.mrf.mxu0  ;;  %4298 = vmatmul.mubr.bf16.gmra.mxu0 %v11813_v13 }
 0x315   : > { %v4690_v30 = vrot.slane %v4069_v42, 1  ;;  %4305 = vmatprep.mubr.bf16.mxu0 %v11814_v24  ;;  %v14224_v0 = vpop.f32.mrf.mxu1  ;;  %v11625_v24 = vld [vmem:[%s11970_s18 + $0x1c8] ss:$12 sps:$4 sm:$0xff]  }
 0x316   : > { %v3816_v7 = vpop.f32.mrf.mxu0  ;;  %6077 = vmatmul.mubr.bf16.gmra.mxu1 %v11621_v22 }
 0x317   : > { %v4691_v5 = vsel %vm2288_vm2, %v4689_v56, %v4690_v30  ;;  %v4074_v59 = vadd.f32 %v14113_v48, %v3816_v7  ;;  %6086 = vmatprep.mubr.bf16.mxu1 %v11627_v27  ;;  %v14228_v50 = vpop.f32.mrf.mxu1  ;;  %v11632_v48 = vld [vmem:[%s11970_s18 + $0x1e4] ss:$12 sps:$4 sm:$0xff]   ;;  %v11815_v7 = vld [vmem:[%s11970_s18 + $0x24c] ss:$12 sps:$4 sm:$0xff]  }
 0x318   : > { %v3818_v19 = vpop.f32.mrf.mxu0  ;;  %v14230_v12 = vadd.f32 %v4691_v5, %v4567_v60 }
 0x319   : > { %v4692_v26 = vrot.slane %v4074_v59, 1  ;;  %v4076_v42 = vadd.f32 %v14115_v1, %v3818_v19  ;;  %v14233_v13 = vpop.f32.mrf.mxu1 }
 0x31a   : > { %v3820_v31 = vpop.f32.mrf.mxu0 }
 0x31b   : > { %v4693_v22 = vsel %vm2288_vm2, %v4690_v30, %v4692_v26  ;;  %v4569_v56 = vadd.f32 %v4076_v42, %v13685_v53  ;;  %v4078_v33 = vadd.f32 %v14126_v52, %v3820_v31  ;;  %v14241_v60 = vpop.f32.mrf.mxu1  ;;  %v14252_v26 = vld [vmem:[%s11970_s18 + $0x50] ss:$12 sps:$4 sm:$0xff]  }
 0x31c   : > { %v3824_v27 = vpop.f32.mrf.mxu0  ;;  %4306 = vmatmul.mubr.bf16.gmra.mxu0 %v11815_v7  ;;  %v14243_v5 = vadd.f32 %v4693_v22, %v4568_v10  ;;  %16712 = vst [vmem:[#allocation25_spill] sm:$0xff] %v14252_v26  ;;  %v5902_v22 = vsel %vm1266_vm0, %v13892_v39, 0  ;;  %v14269_v7 = vld [vmem:[%s11970_s18 + $0x1fc] ss:$12 sps:$4 sm:$0xff]  }
 0x31d   : > { %v4082_v1 = vadd.f32 %v14132_v21, %v3824_v27  ;;  %6193 = vmatprep.mubr.bf16.mxu0 %v16604_v45  ;;  %v14247_v30 = vpop.f32.mrf.mxu1  ;;  %v4694_v42 = vrot.slane %v4078_v33, 1  ;;  %16714 = vst [vmem:[#allocation11_spill] sm:$0xff] %v14269_v7 }
 0x31e   : > { %v3826_v59 = vpop.f32.mrf.mxu0  ;;  %6087 = vmatmul.mubr.bf16.gmra.mxu1 %v11625_v24  ;;  %v14261_v24 = vld [vmem:[%s11970_s18 + $0x1e0] ss:$12 sps:$4 sm:$0xff]  }
 0x31f   : > { %v4570_v53 = vadd.f32 %v4082_v1, %v13669_v20  ;;  %v4084_v52 = vadd.f32 %v14141_v28, %v3826_v59  ;;  %6095 = vmatprep.mubr.bf16.mxu1 %v11632_v48  ;;  %v14254_v10 = vpop.f32.mrf.mxu1  ;;  %16713 = vst [vmem:[#allocation4_spill] sm:$0xff] %v14261_v24  ;;  %v11633_v20 = vld [vmem:[%s16546_s2 + $0x5a8] ss:$12 sps:$4 sm:$0xff]  }
 0x320   : > { %v3828_v19 = vpop.f32.mrf.mxu0 }
 0x321   : > { %v4695_v21 = vrot.slane %v4084_v52, 1  ;;  %v14258_v27 = vpop.f32.mrf.mxu1 }
 0x322   : > { %v3829_v31 = vpop.f32.mrf.mxu0 }
 0x323   : > { %v4696_v28 = vsel %vm2288_vm2, %v4694_v42, %v4695_v21  ;;  %v4087_v48 = vadd.f32 %v14155_v58, %v3829_v31  ;;  %v14273_v39 = vpop.f32.mrf.mxu1  ;;  %v11659_v42 = vld [vmem:[%s16546_s2 + $0x590] ss:$12 sps:$4 sm:$0xff]   ;;  %v14288_v31 = vld [vmem:[%s11970_s18 + $0x68] ss:$12 sps:$4 sm:$0xff]  }
 0x324   : > { %v4123_v33 = vpop.f32.mrf.mxu0  ;;  %10706 = vmatmul.mubr.msk.bf16.vlgmr.msra.gmra.mxu0 %vm1193_vm1, %v14252_v26  ;;  %v14275_v1 = vadd.f32 %v4696_v28, %v4569_v56  ;;  %16716 = vst [vmem:[#allocation28_spill] sm:$0xff] %v14288_v31 }
 0x325   : > { %v4697_v59 = vrot.slane %v4087_v48, 1  ;;  %v4349_v52 = vadd.f32 %v14166_v43, %v4123_v33  ;;  %11013 = vmatpush3.bf16.msra.mxu0 %v5902_v22  ;;  %6203 = vmatprep.mubr.bf16.mxu0 %v16604_v45 }
 0x326   : > { %16715 = vst [vmem:[#allocation5_spill] sm:$0xff] %v14275_v1  ;;  %v4125_v19 = vpop.f32.mrf.mxu0  ;;  %11014 = vmatprep.subr.bf16.mxu0 %v11633_v20  ;;  %v14279_v58 = vpop.f32.mrf.mxu1  ;;  %6096 = vmatmul.mubr.bf16.gmra.mxu1 %v14261_v24  ;;  %v14298_v24 = vld [vmem:[%s11970_s18 + $0x1f8] ss:$12 sps:$4 sm:$0xff]   ;;  %v14304_v1 = vld [vmem:[%s11970_s18 + $0x214] ss:$12 sps:$4 sm:$0xff]  }
 0x327   : > { %v4698_v56 = vsel %vm2288_vm2, %v4695_v21, %v4697_v59  ;;  %6104 = vmatprep.mubr.bf16.mxu1 %v14269_v7  ;;  %16718 = vst [vmem:[#allocation8_spill] sm:$0xff] %v14298_v24  ;;  %v11675_v21 = vld [vmem:[%s16546_s2 + $0x578] ss:$12 sps:$4 sm:$0xff]   ;;  %v4811_v59 = vrot.slane %v4349_v52, 2  ;;  %16719 = vst [vmem:[#allocation9_spill] sm:$0xff] %v14304_v1 }
 0x328   : > { %v4126_v43 = vpop.f32.mrf.mxu0  ;;  %v14290_v22 = vpop.f32.mrf.mxu1  ;;  %v14292_v28 = vadd.f32 %v4698_v56, %v4570_v53 }
 0x329   : > { %v4352_v48 = vadd.f32 %v14179_v29, %v4126_v43  ;;  %11015 = vmatpush3.bf16.msra.mxu0 %v11633_v20 }
 0x32a   : > { %16717 = vst [vmem:[#allocation29_spill] sm:$0xff] %v14292_v28  ;;  %v4128_v33 = vpop.f32.mrf.mxu0  ;;  %v14295_v19 = vpop.f32.mrf.mxu1  ;;  %11016 = vmatprep.subr.bf16.mxu0 %v11659_v42 }
 0x32b   : > { %v4812_v7 = vrot.slane %v4352_v48, 2 }
 0x32c   : > { %v4131_v53 = vpop.f32.mrf.mxu0  ;;  %10707 = vmatmul.mubr.msk.bf16.gmra.mxu0 %vm1193_vm1, %v14288_v31  ;;  %v14308_v29 = vpop.f32.mrf.mxu1 }
 0x32d   : > { %v4357_v20 = vadd.f32 %v14158_v62, %v4131_v53  ;;  %6212 = vmatprep.mubr.bf16.mxu0 %v16604_v45  ;;  %11017 = vmatpush3.bf16.msra.mxu0 %v11659_v42  ;;  %v4813_v56 = vsel %vm2481_vm3, %v4811_v59, %v4812_v7  ;;  %v14321_v53 = vld [vmem:[%s11970_s18 + $0x80] ss:$12 sps:$4 sm:$0xff]  }
 0x32e   : > { %v4133_v43 = vpop.f32.mrf.mxu0  ;;  %v14313_v52 = vpop.f32.mrf.mxu1  ;;  %6105 = vmatmul.mubr.bf16.gmra.mxu1 %v14298_v24  ;;  %11018 = vmatprep.subr.bf16.mxu0 %v11675_v21  ;;  %v14317_v48 = vadd.f32 %v4813_v56, %v13725_v41  ;;  %16721 = vst [vmem:[#allocation32_spill] sm:$0xff] %v14321_v53  ;;  %v14330_v24 = vld [vmem:[%s11970_s18 + $0x210] ss:$12 sps:$4 sm:$0xff]  }
 0x32f   : > { %v4814_v33 = vrot.slane %v4357_v20, 2  ;;  %6114 = vmatprep.mubr.bf16.mxu1 %v14304_v1  ;;  %16722 = vst [vmem:[#allocation10_spill] sm:$0xff] %v14330_v24  ;;  %v14336_v20 = vld [vmem:[%s11970_s18 + $0x22c] ss:$12 sps:$4 sm:$0xff]  }
 0x330   : > { %16720 = vst [vmem:[#allocation30_spill] sm:$0xff] %v14317_v48  ;;  %v4134_v62 = vpop.f32.mrf.mxu0  ;;  %v14323_v42 = vpop.f32.mrf.mxu1  ;;  %16724 = vst [vmem:[#allocation14_spill] sm:$0xff] %v14336_v20  ;;  %v14358_v48 = vld [vmem:[%s11970_s18 + $0x228] ss:$12 sps:$4 sm:$0xff]  }
 0x331   : > { %v4360_v59 = vadd.f32 %v14171_v11, %v4134_v62  ;;  %11019 = vmatpush3.bf16.msra.mxu0 %v11675_v21  ;;  %v4815_v43 = vsel %vm2481_vm3, %v4812_v7, %v4814_v33  ;;  %v14349_v62 = vld [vmem:[%s11970_s18 + $0x98] ss:$12 sps:$4 sm:$0xff]   ;;  %16726 = vst [vmem:[#allocation35_spill] sm:$0xff] %v14358_v48 }
 0x332   : > { %v4136_v28 = vpop.f32.mrf.mxu0  ;;  %v14327_v31 = vpop.f32.mrf.mxu1  ;;  %v14333_v41 = vadd.f32 %v4815_v43, %v13742_v25  ;;  %16725 = vst [vmem:[#allocation33_spill] sm:$0xff] %v14349_v62 }
 0x333   : > { %v4816_v25 = vrot.slane %v4360_v59, 2 }
 0x334   : > { %16723 = vst [vmem:[#allocation31_spill] sm:$0xff] %v14333_v41  ;;  %v4139_v56 = vpop.f32.mrf.mxu0  ;;  %10708 = vmatmul.mubr.msk.bf16.gmra.mxu0 %vm1193_vm1, %v14321_v53  ;;  %v14340_v1 = vpop.f32.mrf.mxu1 }
 0x335   : > { %v4365_v11 = vadd.f32 %v14189_v4, %v4139_v56  ;;  %6221 = vmatprep.mubr.bf16.mxu0 %v16604_v45 }
 0x336   : > { %v4141_v7 = vpop.f32.mrf.mxu0  ;;  %v14344_v28 = vpop.f32.mrf.mxu1  ;;  %6115 = vmatmul.mubr.bf16.gmra.mxu1 %v14330_v24 }
 0x337   : > { %v4817_v21 = vrot.slane %v4365_v11, 2  ;;  %6123 = vmatprep.mubr.bf16.mxu1 %v14336_v20  ;;  %v14364_v11 = vld [vmem:[%s11970_s18 + $0x244] ss:$12 sps:$4 sm:$0xff]  }
 0x338   : > { %v4142_v33 = vpop.f32.mrf.mxu0  ;;  %v14351_v43 = vpop.f32.mrf.mxu1  ;;  %16728 = vst [vmem:[#allocation36_spill] sm:$0xff] %v14364_v11 }
 0x339   : > { %v4368_v41 = vadd.f32 %v14198_v3, %v4142_v33  ;;  %v4818_v4 = vsel %vm2481_vm3, %v4816_v25, %v4817_v21 }
 0x33a   : > { %v4144_v56 = vpop.f32.mrf.mxu0  ;;  %v14355_v7 = vpop.f32.mrf.mxu1  ;;  %v14361_v24 = vadd.f32 %v4818_v4, %v13765_v49  ;;  %v14384_v4 = vld [vmem:[%s11970_s18 + $0xb0] ss:$12 sps:$4 sm:$0xff]  }
 0x33b   : > { %v4819_v59 = vrot.slane %v4368_v41, 2  ;;  %16730 = vst [vmem:[#allocation38_spill] sm:$0xff] %v14384_v4 }
 0x33c   : > { %16727 = vst [vmem:[#allocation34_spill] sm:$0xff] %v14361_v24  ;;  %v4147_v20 = vpop.f32.mrf.mxu0  ;;  %10709 = vmatmul.mubr.msk.bf16.gmra.mxu0 %vm1193_vm1, %v14349_v62  ;;  %v14368_v53 = vpop.f32.mrf.mxu1  ;;  %v14412_v62 = vld [vmem:[%s11970_s18 + $0xc8] ss:$12 sps:$4 sm:$0xff]  }
 0x33d   : > { %v4373_v3 = vadd.f32 %v14185_v38, %v4147_v20  ;;  %6231 = vmatprep.mubr.bf16.mxu0 %v16604_v45  ;;  %v4820_v25 = vsel %vm2481_vm3, %v4817_v21, %v4819_v59  ;;  %v11681_v38 = vld [vmem:[%s16546_s2 + $0x560] ss:$12 sps:$4 sm:$0xff]   ;;  %16734 = vst [vmem:[#allocation41_spill] sm:$0xff] %v14412_v62 }
 0x33e   : > { %v4149_v33 = vpop.f32.mrf.mxu0  ;;  %v14373_v49 = vpop.f32.mrf.mxu1  ;;  %6124 = vmatmul.mubr.bf16.gmra.mxu1 %v14358_v48  ;;  %v14377_v41 = vadd.f32 %v4820_v25, %v13780_v14  ;;  %11020 = vmatprep.subr.bf16.mxu0 %v11681_v38  ;;  %v14392_v48 = vld [vmem:[%s11970_s18 + $0x240] ss:$12 sps:$4 sm:$0xff]  }
 0x33f   : > { %6132 = vmatprep.mubr.bf16.mxu1 %v14364_v11  ;;  %16731 = vst [vmem:[#allocation6_spill] sm:$0xff] %v14392_v48  ;;  %11021 = vmatpush3.bf16.msra.mxu0 %v11681_v38  ;;  %v4821_v14 = vrot.slane %v4373_v3, 2  ;;  %v14395_v11 = vld [vmem:[%s11970_s18 + $0x25c] ss:$12 sps:$4 sm:$0xff]  }
 0x340   : > { %16729 = vst [vmem:[#allocation37_spill] sm:$0xff] %v14377_v41  ;;  %v4150_v20 = vpop.f32.mrf.mxu0  ;;  %v14386_v56 = vpop.f32.mrf.mxu1  ;;  %16732 = vst [vmem:[#allocation40_spill] sm:$0xff] %v14395_v11 }
 0x341   : > { %v4376_v21 = vadd.f32 %v14191_v32, %v4150_v20 }
 0x342   : > { %v4152_v59 = vpop.f32.mrf.mxu0  ;;  %v14389_v33 = vpop.f32.mrf.mxu1 }
 0x343   : > { %v4822_v25 = vrot.slane %v4376_v21, 2 }
 0x344   : > { %v4155_v41 = vpop.f32.mrf.mxu0  ;;  %10710 = vmatmul.mubr.msk.bf16.gmra.mxu0 %vm1193_vm1, %v14384_v4  ;;  %v14399_v24 = vpop.f32.mrf.mxu1 }
 0x345   : > { %v4381_v32 = vadd.f32 %v14209_v47, %v4155_v41  ;;  %6240 = vmatprep.mubr.bf16.mxu0 %v16604_v45  ;;  %v4823_v20 = vsel %vm2481_vm3, %v4821_v14, %v4822_v25 }
 0x346   : > { %v4157_v38 = vpop.f32.mrf.mxu0  ;;  %v14404_v3 = vpop.f32.mrf.mxu1  ;;  %6133 = vmatmul.mubr.bf16.gmra.mxu1 %v14392_v48  ;;  %v14408_v21 = vadd.f32 %v4823_v20, %v13805_v44  ;;  %v14421_v48 = vld [vmem:[%s11970_s18 + $0x258] ss:$12 sps:$4 sm:$0xff]  }
 0x347   : > { %v4824_v59 = vrot.slane %v4381_v32, 2  ;;  %6142 = vmatprep.mubr.bf16.mxu1 %v14395_v11  ;;  %16735 = vst [vmem:[#allocation43_spill] sm:$0xff] %v14421_v48  ;;  %v14427_v32 = vld [vmem:[%s11970_s18 + $0x274] ss:$12 sps:$4 sm:$0xff]  }
 0x348   : > { %16733 = vst [vmem:[#allocation39_spill] sm:$0xff] %v14408_v21  ;;  %v4158_v4 = vpop.f32.mrf.mxu0  ;;  %v14414_v47 = vpop.f32.mrf.mxu1  ;;  %16737 = vst [vmem:[#allocation7_spill] sm:$0xff] %v14427_v32 }
 0x349   : > { %v4384_v41 = vadd.f32 %v14221_v40, %v4158_v4  ;;  %v4825_v14 = vsel %vm2481_vm3, %v4822_v25, %v4824_v59 }
 0x34a   : > { %v4160_v38 = vpop.f32.mrf.mxu0  ;;  %v14418_v26 = vpop.f32.mrf.mxu1  ;;  %v14424_v44 = vadd.f32 %v4825_v14, %v13816_v8 }
 0x34b   : > { %v4826_v8 = vrot.slane %v4384_v41, 2  ;;  %v14440_v38 = vld [vmem:[%s11970_s18 + $0xe0] ss:$12 sps:$4 sm:$0xff]  }
 0x34c   : > { %16736 = vst [vmem:[#allocation42_spill] sm:$0xff] %v14424_v44  ;;  %v4163_v20 = vpop.f32.mrf.mxu0  ;;  %10711 = vmatmul.mubr.msk.bf16.gmra.mxu0 %vm1193_vm1, %v14412_v62  ;;  %v14431_v11 = vpop.f32.mrf.mxu1  ;;  %16738 = vst [vmem:[#allocation12_spill] sm:$0xff] %v14440_v38  ;;  %v14449_v62 = vld [vmem:[%s11970_s18 + $0x270] ss:$12 sps:$4 sm:$0xff]  }
 0x34d   : > { %v4389_v40 = vadd.f32 %v14204_v54, %v4163_v20  ;;  %6249 = vmatprep.mubr.bf16.mxu0 %v16604_v45  ;;  %16739 = vst [vmem:[#allocation16_spill] sm:$0xff] %v14449_v62 }
 0x34e   : > { %v4165_v4 = vpop.f32.mrf.mxu0  ;;  %v14435_v25 = vpop.f32.mrf.mxu1  ;;  %6143 = vmatmul.mubr.bf16.gmra.mxu1 %v14421_v48 }
 0x34f   : > { %v4827_v59 = vrot.slane %v4389_v40, 2  ;;  %6151 = vmatprep.mubr.bf16.mxu1 %v14427_v32 }
 0x350   : > { %v4166_v14 = vpop.f32.mrf.mxu0  ;;  %v14442_v44 = vpop.f32.mrf.mxu1 }
 0x351   : > { %v4392_v21 = vadd.f32 %v14214_v6, %v4166_v14  ;;  %v4828_v54 = vsel %vm2481_vm3, %v4826_v8, %v4827_v59 }
 0x352   : > { %v4168_v20 = vpop.f32.mrf.mxu0  ;;  %v14446_v4 = vpop.f32.mrf.mxu1  ;;  %v14452_v41 = vadd.f32 %v4828_v54, %v13836_v61 }
 0x353   : > { %v4829_v40 = vrot.slane %v4392_v21, 2  ;;  %v11816_v21 = vld [vmem:[%s11970_s18 + $0x4c] ss:$12 sps:$4 sm:$0xff]  }
 0x354   : > { %16740 = vst [vmem:[#allocation13_spill] sm:$0xff] %v14452_v41  ;;  %v4171_v32 = vpop.f32.mrf.mxu0  ;;  %10712 = vmatmul.mubr.msk.bf16.gmra.mxu0 %vm1193_vm1, %v14440_v38  ;;  %v14456_v48 = vpop.f32.mrf.mxu1  ;;  %v14469_v41 = vld [vmem:[%s11970_s18 + $0xf8] ss:$12 sps:$4 sm:$0xff]  }
 0x355   : > { %v4397_v6 = vadd.f32 %v14228_v50, %v4171_v32  ;;  %6259 = vmatprep.mubr.bf16.mxu0 %v16604_v45  ;;  %v4830_v8 = vsel %vm2481_vm3, %v4827_v59, %v4829_v40  ;;  %16742 = vst [vmem:[#allocation17_spill] sm:$0xff] %v14469_v41 }
 0x356   : > { %v4173_v14 = vpop.f32.mrf.mxu0  ;;  %v14461_v20 = vpop.f32.mrf.mxu1  ;;  %6152 = vmatmul.mubr.bf16.gmra.mxu1 %v14449_v62  ;;  %v14465_v61 = vadd.f32 %v4830_v8, %v13849_v51 }
 0x357   : > { %6450 = vmatprep.mubr.bf16.mxu1 %v11816_v21  ;;  %v4831_v40 = vrot.slane %v4397_v6, 2 }
 0x358   : > { %16741 = vst [vmem:[#allocation15_spill] sm:$0xff] %v14465_v61  ;;  %v4174_v54 = vpop.f32.mrf.mxu0  ;;  %v14471_v38 = vpop.f32.mrf.mxu1  ;;  %v11818_v61 = vld [vmem:[%s11970_s18 + $0x64] ss:$12 sps:$4 sm:$0xff]  }
 0x359   : > { %v4400_v50 = vadd.f32 %v14241_v60, %v4174_v54 }
 0x35a   : > { %v4176_v32 = vpop.f32.mrf.mxu0  ;;  %v14474_v59 = vpop.f32.mrf.mxu1 }
 0x35b   : > { %16743 = vst [vmem:[#allocation19_spill] sm:$0xff] %v14474_v59  ;;  %v4832_v14 = vrot.slane %v4400_v50, 2  ;;  %v11817_v32 = vld [vmem:[%s11970_s18 + $0x48] ss:$12 sps:$4 sm:$0xff]   ;;  %v14491_v59 = vld [vmem:[%s11970_s18 + $0x110] ss:$12 sps:$4 sm:$0xff]  }
 0x35c   : > { %v4179_v62 = vpop.f32.mrf.mxu0  ;;  %10713 = vmatmul.mubr.msk.bf16.gmra.mxu0 %vm1193_vm1, %v14469_v41  ;;  %v14478_v51 = vpop.f32.mrf.mxu1  ;;  %16745 = vst [vmem:[#allocation21_spill] sm:$0xff] %v14491_v59 }
 0x35d   : > { %v4405_v8 = vadd.f32 %v14224_v0, %v4179_v62  ;;  %6268 = vmatprep.mubr.bf16.mxu0 %v16604_v45  ;;  %v4833_v21 = vsel %vm2481_vm3, %v4831_v40, %v4832_v14 }
 0x35e   : > { %v4181_v60 = vpop.f32.mrf.mxu0  ;;  %v14483_v54 = vpop.f32.mrf.mxu1  ;;  %6451 = vmatmul.mubr.bf16.vlgmr.msra.gmra.mxu1 %v11817_v32  ;;  %v14487_v6 = vadd.f32 %v4833_v21, %v13866_v18 }
 0x35f   : > { %v4834_v50 = vrot.slane %v4405_v8, 2  ;;  %6458 = vmatprep.mubr.bf16.mxu1 %v11818_v61 }
 0x360   : > { %16744 = vst [vmem:[#allocation18_spill] sm:$0xff] %v14487_v6  ;;  %v4182_v41 = vpop.f32.mrf.mxu0  ;;  %v14493_v0 = vpop.f32.mrf.mxu1 }
 0x361   : > { %v4835_v62 = vsel %vm2481_vm3, %v4832_v14, %v4834_v50  ;;  %v4408_v18 = vadd.f32 %v14233_v13, %v4182_v41  ;;  %v14511_v13 = vld [vmem:[%s11970_s18 + $0x128] ss:$12 sps:$4 sm:$0xff]  }
 0x362   : > { %v4184_v40 = vpop.f32.mrf.mxu0  ;;  %v14496_v60 = vpop.f32.mrf.mxu1  ;;  %v14499_v32 = vadd.f32 %v4835_v62, %v13882_v37  ;;  %v11820_v62 = vld [vmem:[%s11970_s18 + $0x7c] ss:$12 sps:$4 sm:$0xff]   ;;  %16747 = vst [vmem:[#allocation20_spill] sm:$0xff] %v14511_v13 }
 0x363   : > { %v11819_v40 = vld [vmem:[%s11970_s18 + $0x60] ss:$12 sps:$4 sm:$0xff]   ;;  %v4836_v6 = vrot.slane %v4408_v18, 2 }
 0x364   : > { %16746 = vst [vmem:[#allocation22_spill] sm:$0xff] %v14499_v32  ;;  %v4187_v8 = vpop.f32.mrf.mxu0  ;;  %10714 = vmatmul.mubr.msk.bf16.gmra.mxu0 %vm1193_vm1, %v14491_v59  ;;  %v14504_v61 = vpop.f32.mrf.mxu1 }
 0x365   : > { %v4413_v21 = vadd.f32 %v14254_v10, %v4187_v8  ;;  %6277 = vmatprep.mubr.bf16.mxu0 %v16604_v45 }
 0x366   : > { %v4189_v14 = vpop.f32.mrf.mxu0  ;;  %v5948_v50 = vpop.f32.mrf.mxu1  ;;  %6459 = vmatmul.mubr.bf16.gmra.mxu1 %v11819_v40 }
 0x367   : > { %v4837_v37 = vrot.slane %v4413_v21, 2  ;;  %6466 = vmatprep.mubr.bf16.mxu1 %v11820_v62  ;;  %v11821_v62 = vld [vmem:[%s11970_s18 + $0x78] ss:$12 sps:$4 sm:$0xff]  }
 0x368   : > { %v4190_v32 = vpop.f32.mrf.mxu0  ;;  %v14513_v41 = vpop.f32.mrf.mxu1 }
 0x369   : > { %v4416_v59 = vadd.f32 %v14273_v39, %v4190_v32  ;;  %v4838_v10 = vsel %vm2481_vm3, %v4836_v6, %v4837_v37 }
 0x36a   : > { %v4192_v8 = vpop.f32.mrf.mxu0  ;;  %v14517_v14 = vpop.f32.mrf.mxu1  ;;  %v14520_v50 = vadd.f32 %v4838_v10, %v13910_v35  ;;  %v11822_v10 = vld [vmem:[%s11970_s18 + $0x94] ss:$12 sps:$4 sm:$0xff]  }
 0x36b   : > { %v4839_v18 = vrot.slane %v4416_v59, 2 }
 0x36c   : > { %16748 = vst [vmem:[#allocation44_spill] sm:$0xff] %v14520_v50  ;;  %v4195_v21 = vpop.f32.mrf.mxu0  ;;  %10715 = vmatmul.mubr.msk.bf16.gmra.mxu0 %vm1193_vm1, %v14511_v13  ;;  %v14524_v40 = vpop.f32.mrf.mxu1  ;;  %v14537_v50 = vld [vmem:[%s11970_s18 + $0x140] ss:$12 sps:$4 sm:$0xff]  }
 0x36d   : > { %6287 = vmatprep.mubr.bf16.mxu0 %v16604_v45  ;;  %v4840_v39 = vsel %vm2481_vm3, %v4837_v37, %v4839_v18  ;;  %v4421_v59 = vadd.f32 %v14247_v30, %v4195_v21 }
 0x36e   : > { %v4197_v6 = vpop.f32.mrf.mxu0  ;;  %v14528_v32 = vpop.f32.mrf.mxu1  ;;  %6467 = vmatmul.mubr.bf16.gmra.mxu1 %v11821_v62  ;;  %v14532_v35 = vadd.f32 %v4840_v39, %v13922_v34 }
 0x36f   : > { %16749 = vst [vmem:[#allocation45_spill] sm:$0xff] %v14528_v32  ;;  %6474 = vmatprep.mubr.bf16.mxu1 %v11822_v10  ;;  %v4841_v32 = vrot.slane %v4421_v59, 2 }
 0x370   : > { %16750 = vst [vmem:[#allocation46_spill] sm:$0xff] %v14532_v35  ;;  %v4198_v8 = vpop.f32.mrf.mxu0  ;;  %v14539_v13 = vpop.f32.mrf.mxu1  ;;  %v14557_v35 = vld [vmem:[%s11970_s18 + $0x158] ss:$12 sps:$4 sm:$0xff]  }
 0x371   : > { %v4424_v37 = vadd.f32 %v14258_v27, %v4198_v8  ;;  %v11823_v8 = vld [vmem:[%s11970_s18 + $0x90] ss:$12 sps:$4 sm:$0xff]   ;;  %16752 = vst [vmem:[#allocation48_spill] sm:$0xff] %v14557_v35 }
 0x372   : > { %v4200_v18 = vpop.f32.mrf.mxu0  ;;  %v5961_v6 = vpop.f32.mrf.mxu1 }
 0x373   : > { %v4842_v62 = vrot.slane %v4424_v37, 2  ;;  %v11824_v18 = vld [vmem:[%s11970_s18 + $0xac] ss:$12 sps:$4 sm:$0xff]  }
 0x374   : > { %v4203_v34 = vpop.f32.mrf.mxu0  ;;  %10716 = vmatmul.mubr.msk.bf16.gmra.mxu0 %vm1193_vm1, %v14537_v50  ;;  %v14544_v30 = vpop.f32.mrf.mxu1 }
 0x375   : > { %v4429_v21 = vadd.f32 %v14290_v22, %v4203_v34  ;;  %6296 = vmatprep.mubr.bf16.mxu0 %v16604_v45  ;;  %v4843_v39 = vsel %vm2481_vm3, %v4841_v32, %v4842_v62 }
 0x376   : > { %v4205_v10 = vpop.f32.mrf.mxu0  ;;  %v14549_v27 = vpop.f32.mrf.mxu1  ;;  %6475 = vmatmul.mubr.bf16.gmra.mxu1 %v11823_v8  ;;  %v14553_v59 = vadd.f32 %v4843_v39, %v13942_v16 }
 0x377   : > { %v4844_v37 = vrot.slane %v4429_v21, 2  ;;  %6482 = vmatprep.mubr.bf16.mxu1 %v11824_v18 }
 0x378   : > { %16751 = vst [vmem:[#allocation47_spill] sm:$0xff] %v14553_v59  ;;  %v4206_v6 = vpop.f32.mrf.mxu0  ;;  %v14559_v22 = vpop.f32.mrf.mxu1 }
 0x379   : > { %v4845_v34 = vsel %vm2481_vm3, %v4842_v62, %v4844_v37  ;;  %v4432_v16 = vadd.f32 %v14308_v29, %v4206_v6  ;;  %v14577_v29 = vld [vmem:[%s11970_s18 + $0x170] ss:$12 sps:$4 sm:$0xff]  }
 0x37a   : > { %v4208_v32 = vpop.f32.mrf.mxu0  ;;  %v14562_v10 = vpop.f32.mrf.mxu1  ;;  %v14565_v8 = vadd.f32 %v4845_v34, %v13956_v36  ;;  %v11826_v34 = vld [vmem:[%s11970_s18 + $0xc4] ss:$12 sps:$4 sm:$0xff]   ;;  %16754 = vst [vmem:[#allocation50_spill] sm:$0xff] %v14577_v29 }
 0x37b   : > { %v11825_v32 = vld [vmem:[%s11970_s18 + $0xa8] ss:$12 sps:$4 sm:$0xff]   ;;  %v4846_v59 = vrot.slane %v4432_v16, 2 }
 0x37c   : > { %16753 = vst [vmem:[#allocation49_spill] sm:$0xff] %v14565_v8  ;;  %v4211_v21 = vpop.f32.mrf.mxu0  ;;  %10717 = vmatmul.mubr.msk.bf16.gmra.mxu0 %vm1193_vm1, %v14557_v35  ;;  %v14570_v39 = vpop.f32.mrf.mxu1 }
 0x37d   : > { %v4437_v18 = vadd.f32 %v14279_v58, %v4211_v21  ;;  %6305 = vmatprep.mubr.bf16.mxu0 %v16604_v45 }
 0x37e   : > { %v4213_v62 = vpop.f32.mrf.mxu0  ;;  %v5976_v37 = vpop.f32.mrf.mxu1  ;;  %6483 = vmatmul.mubr.bf16.gmra.mxu1 %v11825_v32 }
 0x37f   : > { %v4847_v36 = vrot.slane %v4437_v18, 2  ;;  %6490 = vmatprep.mubr.bf16.mxu1 %v11826_v34  ;;  %v11827_v34 = vld [vmem:[%s11970_s18 + $0xc0] ss:$12 sps:$4 sm:$0xff]  }
 0x380   : > { %v4214_v8 = vpop.f32.mrf.mxu0  ;;  %v14579_v6 = vpop.f32.mrf.mxu1 }
 0x381   : > { %v4440_v35 = vadd.f32 %v14295_v19, %v4214_v8  ;;  %v4848_v58 = vsel %vm2481_vm3, %v4846_v59, %v4847_v36 }
 0x382   : > { %v4216_v21 = vpop.f32.mrf.mxu0  ;;  %v14583_v62 = vpop.f32.mrf.mxu1  ;;  %v14586_v37 = vadd.f32 %v4848_v58, %v13976_v15  ;;  %v11828_v58 = vld [vmem:[%s11970_s18 + $0xdc] ss:$12 sps:$4 sm:$0xff]  }
 0x383   : > { %v4849_v16 = vrot.slane %v4440_v35, 2 }
 0x384   : > { %16755 = vst [vmem:[#allocation51_spill] sm:$0xff] %v14586_v37  ;;  %v4219_v18 = vpop.f32.mrf.mxu0  ;;  %10718 = vmatmul.mubr.msk.bf16.gmra.mxu0 %vm1193_vm1, %v14577_v29  ;;  %v14590_v32 = vpop.f32.mrf.mxu1  ;;  %v14603_v37 = vld [vmem:[%s11970_s18 + $0x188] ss:$12 sps:$4 sm:$0xff]  }
 0x385   : > { %6315 = vmatprep.mubr.bf16.mxu0 %v16604_v45  ;;  %v4850_v19 = vsel %vm2481_vm3, %v4847_v36, %v4849_v16  ;;  %v4445_v35 = vadd.f32 %v14323_v42, %v4219_v18 }
 0x386   : > { %v4221_v59 = vpop.f32.mrf.mxu0  ;;  %v14594_v8 = vpop.f32.mrf.mxu1  ;;  %6491 = vmatmul.mubr.bf16.gmra.mxu1 %v11827_v34  ;;  %v14598_v15 = vadd.f32 %v4850_v19, %v13988_v57 }
 0x387   : > { %16756 = vst [vmem:[#allocation52_spill] sm:$0xff] %v14594_v8  ;;  %6498 = vmatprep.mubr.bf16.mxu1 %v11828_v58  ;;  %v4851_v8 = vrot.slane %v4445_v35, 2 }
 0x388   : > { %16757 = vst [vmem:[#allocation53_spill] sm:$0xff] %v14598_v15  ;;  %v4222_v21 = vpop.f32.mrf.mxu0  ;;  %v14605_v29 = vpop.f32.mrf.mxu1  ;;  %v14623_v15 = vld [vmem:[%s11970_s18 + $0x1a0] ss:$12 sps:$4 sm:$0xff]  }
 0x389   : > { %v4448_v36 = vadd.f32 %v14340_v1, %v4222_v21  ;;  %v11829_v21 = vld [vmem:[%s11970_s18 + $0xd8] ss:$12 sps:$4 sm:$0xff]  }
 0x38a   : > { %v4224_v16 = vpop.f32.mrf.mxu0  ;;  %v5989_v59 = vpop.f32.mrf.mxu1 }
 0x38b   : > { %v4852_v34 = vrot.slane %v4448_v36, 2  ;;  %v11830_v16 = vld [vmem:[%s11970_s18 + $0xf4] ss:$12 sps:$4 sm:$0xff]  }
 0x38c   : > { %v4227_v57 = vpop.f32.mrf.mxu0  ;;  %10719 = vmatmul.mubr.msk.bf16.gmra.mxu0 %vm1193_vm1, %v14603_v37  ;;  %v14610_v42 = vpop.f32.mrf.mxu1 }
 0x38d   : > { %v4453_v18 = vadd.f32 %v14313_v52, %v4227_v57  ;;  %6324 = vmatprep.mubr.bf16.mxu0 %v16604_v45  ;;  %v4853_v19 = vsel %vm2481_vm3, %v4851_v8, %v4852_v34 }
 0x38e   : > { %v4229_v58 = vpop.f32.mrf.mxu0  ;;  %v14615_v1 = vpop.f32.mrf.mxu1  ;;  %6499 = vmatmul.mubr.bf16.gmra.mxu1 %v11829_v21  ;;  %v14619_v35 = vadd.f32 %v4853_v19, %v14008_v2 }
 0x38f   : > { %v4854_v36 = vrot.slane %v4453_v18, 2  ;;  %6506 = vmatprep.mubr.bf16.mxu1 %v11830_v16 }
 0x390   : > { %16758 = vst [vmem:[#allocation54_spill] sm:$0xff] %v14619_v35  ;;  %v4230_v59 = vpop.f32.mrf.mxu0  ;;  %v14625_v52 = vpop.f32.mrf.mxu1 }
 0x391   : > { %v4855_v57 = vsel %vm2481_vm3, %v4852_v34, %v4854_v36  ;;  %v4456_v2 = vadd.f32 %v14327_v31, %v4230_v59  ;;  %v14643_v31 = vld [vmem:[%s11970_s18 + $0x1b8] ss:$12 sps:$4 sm:$0xff]  }
 0x392   : > { %v4232_v8 = vpop.f32.mrf.mxu0  ;;  %v14628_v58 = vpop.f32.mrf.mxu1  ;;  %v14631_v21 = vadd.f32 %v4855_v57, %v14022_v55  ;;  %v11832_v57 = vld [vmem:[%s11970_s18 + $0x10c] ss:$12 sps:$4 sm:$0xff]  }
 0x393   : > { %v11831_v8 = vld [vmem:[%s11970_s18 + $0xf0] ss:$12 sps:$4 sm:$0xff]   ;;  %v4856_v35 = vrot.slane %v4456_v2, 2 }
 0x394   : > { %16759 = vst [vmem:[#allocation55_spill] sm:$0xff] %v14631_v21  ;;  %v4235_v18 = vpop.f32.mrf.mxu0  ;;  %10720 = vmatmul.mubr.msk.bf16.gmra.mxu0 %vm1193_vm1, %v14623_v15  ;;  %v14636_v19 = vpop.f32.mrf.mxu1 }
 0x395   : > { %16760 = vst [vmem:[#allocation56_spill] sm:$0xff] %v14636_v19  ;;  %v4461_v16 = vadd.f32 %v14351_v43, %v4235_v18  ;;  %6333 = vmatprep.mubr.bf16.mxu0 %v16604_v45 }
 0x396   : > { %v4237_v34 = vpop.f32.mrf.mxu0  ;;  %v6004_v36 = vpop.f32.mrf.mxu1  ;;  %6507 = vmatmul.mubr.bf16.gmra.mxu1 %v11831_v8 }
 0x397   : > { %v4857_v55 = vrot.slane %v4461_v16, 2  ;;  %6514 = vmatprep.mubr.bf16.mxu1 %v11832_v57  ;;  %v11833_v57 = vld [vmem:[%s11970_s18 + $0x108] ss:$12 sps:$4 sm:$0xff]  }
 0x398   : > { %v4238_v21 = vpop.f32.mrf.mxu0  ;;  %v14645_v59 = vpop.f32.mrf.mxu1 }
 0x399   : > { %v4464_v19 = vadd.f32 %v14368_v53, %v4238_v21  ;;  %v4858_v43 = vsel %vm2481_vm3, %v4856_v35, %v4857_v55 }
 0x39a   : > { %v4240_v18 = vpop.f32.mrf.mxu0  ;;  %v14649_v34 = vpop.f32.mrf.mxu1  ;;  %v14652_v36 = vadd.f32 %v4858_v43, %v14046_v46  ;;  %v11834_v43 = vld [vmem:[%s11970_s18 + $0x124] ss:$12 sps:$4 sm:$0xff]  }
 0x39b   : > { %v4859_v2 = vrot.slane %v4464_v19, 2 }
 0x39c   : > { %16761 = vst [vmem:[#allocation57_spill] sm:$0xff] %v14652_v36  ;;  %v4243_v16 = vpop.f32.mrf.mxu0  ;;  %10721 = vmatmul.mubr.msk.bf16.gmra.mxu0 %vm1193_vm1, %v14643_v31  ;;  %v14656_v8 = vpop.f32.mrf.mxu1  ;;  %v14669_v36 = vld [vmem:[%s11970_s18 + $0x1d0] ss:$12 sps:$4 sm:$0xff]  }
 0x39d   : > { %16762 = vst [vmem:[#allocation58_spill] sm:$0xff] %v14656_v8  ;;  %6343 = vmatprep.mubr.bf16.mxu0 %v16604_v45  ;;  %v4860_v53 = vsel %vm2481_vm3, %v4857_v55, %v4859_v2  ;;  %v4469_v19 = vadd.f32 %v14344_v28, %v4243_v16 }
 0x39e   : > { %v4245_v35 = vpop.f32.mrf.mxu0  ;;  %v14660_v21 = vpop.f32.mrf.mxu1  ;;  %6515 = vmatmul.mubr.bf16.gmra.mxu1 %v11833_v57  ;;  %v14664_v46 = vadd.f32 %v4860_v53, %v14061_v9 }
 0x39f   : > { %16763 = vst [vmem:[#allocation59_spill] sm:$0xff] %v14660_v21  ;;  %6522 = vmatprep.mubr.bf16.mxu1 %v11834_v43  ;;  %v4861_v21 = vrot.slane %v4469_v19, 2  ;;  %v16767_v19 = vld [vmem:[#allocation27_spill] sm:$0xff] }
 0x3a0   : > { %16764 = vst [vmem:[#allocation60_spill] sm:$0xff] %v14664_v46  ;;  %v4246_v18 = vpop.f32.mrf.mxu0  ;;  %v14671_v8 = vpop.f32.mrf.mxu1 }
 0x3a1   : > { %v4472_v55 = vadd.f32 %v14355_v7, %v4246_v18  ;;  %v11835_v18 = vld [vmem:[%s11970_s18 + $0x120] ss:$12 sps:$4 sm:$0xff]  }
 0x3a2   : > { %v4248_v2 = vpop.f32.mrf.mxu0  ;;  %v6017_v35 = vpop.f32.mrf.mxu1 }
 0x3a3   : > { %v4862_v57 = vrot.slane %v4472_v55, 2  ;;  %v11836_v35 = vld [vmem:[%s11970_s18 + $0x13c] ss:$12 sps:$4 sm:$0xff]  }
 0x3a4   : > { %v4251_v9 = vpop.f32.mrf.mxu0  ;;  %10722 = vmatmul.mubr.msk.bf16.gmra.mxu0 %vm1193_vm1, %v14669_v36  ;;  %v14676_v28 = vpop.f32.mrf.mxu1 }
 0x3a5   : > { %16765 = vst [vmem:[#allocation61_spill] sm:$0xff] %v14676_v28  ;;  %v4477_v16 = vadd.f32 %v14386_v56, %v4251_v9  ;;  %6352 = vmatprep.mubr.bf16.mxu0 %v16604_v45  ;;  %v4863_v53 = vsel %vm2481_vm3, %v4861_v21, %v4862_v57  ;;  %v14689_v28 = vld [vmem:[%s11970_s18 + $0x1e8] ss:$12 sps:$4 sm:$0xff]  }
 0x3a6   : > { %v4253_v43 = vpop.f32.mrf.mxu0  ;;  %v14681_v7 = vpop.f32.mrf.mxu1  ;;  %6523 = vmatmul.mubr.bf16.gmra.mxu1 %v11835_v18  ;;  %v14685_v55 = vadd.f32 %v4863_v53, %v16767_v19 }
 0x3a7   : > { %16766 = vst [vmem:[#allocation62_spill] sm:$0xff] %v14681_v7  ;;  %v4864_v2 = vrot.slane %v4477_v16, 2  ;;  %6530 = vmatprep.mubr.bf16.mxu1 %v11836_v35  ;;  %v16769_v7 = vld [vmem:[#allocation3_spill] sm:$0xff] }
 0x3a8   : > { %16768 = vst [vmem:[#allocation27_spill] sm:$0xff] %v14685_v55  ;;  %v4254_v46 = vpop.f32.mrf.mxu0  ;;  %v14691_v56 = vpop.f32.mrf.mxu1 }
 0x3a9   : > { %v4865_v9 = vsel %vm2481_vm3, %v4862_v57, %v4864_v2  ;;  %v4480_v16 = vadd.f32 %v14399_v24, %v4254_v46  ;;  %v14709_v24 = vld [vmem:[%s11970_s18 + $0x200] ss:$12 sps:$4 sm:$0xff]  }
 0x3aa   : > { %v4256_v21 = vpop.f32.mrf.mxu0  ;;  %v14694_v43 = vpop.f32.mrf.mxu1  ;;  %v14697_v18 = vadd.f32 %v4865_v9, %v16769_v7  ;;  %v11838_v9 = vld [vmem:[%s11970_s18 + $0x154] ss:$12 sps:$4 sm:$0xff]  }
 0x3ab   : > { %v11837_v21 = vld [vmem:[%s11970_s18 + $0x138] ss:$12 sps:$4 sm:$0xff]   ;;  %v4866_v55 = vrot.slane %v4480_v16, 2 }
 0x3ac   : > { %16770 = vst [vmem:[#allocation3_spill] sm:$0xff] %v14697_v18  ;;  %v4259_v53 = vpop.f32.mrf.mxu0  ;;  %10723 = vmatmul.mubr.msk.bf16.gmra.mxu0 %vm1193_vm1, %v14689_v28  ;;  %v14702_v19 = vpop.f32.mrf.mxu1 }
 0x3ad   : > { %16771 = vst [vmem:[#allocation63_spill] sm:$0xff] %v14702_v19  ;;  %v4485_v35 = vadd.f32 %v14373_v49, %v4259_v53  ;;  %6361 = vmatprep.mubr.bf16.mxu0 %v16604_v45 }
 0x3ae   : > { %v4261_v57 = vpop.f32.mrf.mxu0  ;;  %v6032_v2 = vpop.f32.mrf.mxu1  ;;  %6531 = vmatmul.mubr.bf16.gmra.mxu1 %v11837_v21 }
 0x3af   : > { %v4867_v7 = vrot.slane %v4485_v35, 2  ;;  %6538 = vmatprep.mubr.bf16.mxu1 %v11838_v9  ;;  %v16774_v2 = vld [vmem:[#allocation24_spill] sm:$0xff] }
 0x3b0   : > { %v4262_v18 = vpop.f32.mrf.mxu0  ;;  %v14711_v46 = vpop.f32.mrf.mxu1 }
 0x3b1   : > { %16772 = vst [vmem:[#allocation64_spill] sm:$0xff] %v14711_v46  ;;  %v4488_v19 = vadd.f32 %v14389_v33, %v4262_v18  ;;  %v4868_v49 = vsel %vm2481_vm3, %v4866_v55, %v4867_v7  ;;  %v14735_v46 = vld [vmem:[%s11970_s18 + $0x218] ss:$12 sps:$4 sm:$0xff]  }
 0x3b2   : > { %v4264_v53 = vpop.f32.mrf.mxu0  ;;  %v14715_v57 = vpop.f32.mrf.mxu1  ;;  %v14718_v21 = vadd.f32 %v4868_v49, %v16774_v2  ;;  %v11840_v2 = vld [vmem:[%s11970_s18 + $0x16c] ss:$12 sps:$4 sm:$0xff]  }
 0x3b3   : > { %16773 = vst [vmem:[#allocation65_spill] sm:$0xff] %v14715_v57  ;;  %v4869_v16 = vrot.slane %v4488_v19, 2  ;;  %v11839_v53 = vld [vmem:[%s11970_s18 + $0x150] ss:$12 sps:$4 sm:$0xff]   ;;  %v16778_v57 = vld [vmem:[#allocation26_spill] sm:$0xff] }
 0x3b4   : > { %16775 = vst [vmem:[#allocation24_spill] sm:$0xff] %v14718_v21  ;;  %v4267_v35 = vpop.f32.mrf.mxu0  ;;  %10724 = vmatmul.mubr.msk.bf16.gmra.mxu0 %vm1193_vm1, %v14709_v24  ;;  %v14722_v9 = vpop.f32.mrf.mxu1 }
 0x3b5   : > { %16776 = vst [vmem:[#allocation66_spill] sm:$0xff] %v14722_v9  ;;  %6371 = vmatprep.mubr.bf16.mxu0 %v16604_v45  ;;  %v4870_v33 = vsel %vm2481_vm3, %v4867_v7, %v4869_v16  ;;  %v4493_v19 = vadd.f32 %v14414_v47, %v4267_v35 }
 0x3b6   : > { %v4269_v55 = vpop.f32.mrf.mxu0  ;;  %v14726_v18 = vpop.f32.mrf.mxu1  ;;  %6539 = vmatmul.mubr.bf16.gmra.mxu1 %v11839_v53  ;;  %v14730_v49 = vadd.f32 %v4870_v33, %v16778_v57 }
 0x3b7   : > { %16777 = vst [vmem:[#allocation67_spill] sm:$0xff] %v14726_v18  ;;  %6546 = vmatprep.mubr.bf16.mxu1 %v11840_v2  ;;  %v4871_v18 = vrot.slane %v4493_v19, 2 }
 0x3b8   : > { %16779 = vst [vmem:[#allocation26_spill] sm:$0xff] %v14730_v49  ;;  %v4270_v21 = vpop.f32.mrf.mxu0  ;;  %v14737_v9 = vpop.f32.mrf.mxu1  ;;  %v14755_v49 = vld [vmem:[%s11970_s18 + $0x230] ss:$12 sps:$4 sm:$0xff]  }
 0x3b9   : > { %v4496_v7 = vadd.f32 %v14431_v11, %v4270_v21  ;;  %v11841_v21 = vld [vmem:[%s11970_s18 + $0x168] ss:$12 sps:$4 sm:$0xff]  }
 0x3ba   : > { %v4272_v16 = vpop.f32.mrf.mxu0  ;;  %v6045_v55 = vpop.f32.mrf.mxu1 }
 0x3bb   : > { %v4872_v53 = vrot.slane %v4496_v7, 2  ;;  %v11842_v16 = vld [vmem:[%s11970_s18 + $0x184] ss:$12 sps:$4 sm:$0xff]  }
 0x3bc   : > { %v4275_v57 = vpop.f32.mrf.mxu0  ;;  %10725 = vmatmul.mubr.msk.bf16.gmra.mxu0 %vm1193_vm1, %v14735_v46  ;;  %v14742_v47 = vpop.f32.mrf.mxu1 }
 0x3bd   : > { %v4501_v35 = vadd.f32 %v14404_v3, %v4275_v57  ;;  %6380 = vmatprep.mubr.bf16.mxu0 %v16604_v45  ;;  %v4873_v33 = vsel %vm2481_vm3, %v4871_v18, %v4872_v53 }
 0x3be   : > { %v4277_v2 = vpop.f32.mrf.mxu0  ;;  %v14747_v11 = vpop.f32.mrf.mxu1  ;;  %6547 = vmatmul.mubr.bf16.gmra.mxu1 %v11841_v21  ;;  %v14751_v19 = vadd.f32 %v4873_v33, %v14168_v17 }
 0x3bf   : > { %v4874_v7 = vrot.slane %v4501_v35, 2  ;;  %6554 = vmatprep.mubr.bf16.mxu1 %v11842_v16 }
 0x3c0   : > { %16780 = vst [vmem:[#allocation68_spill] sm:$0xff] %v14751_v19  ;;  %v4278_v55 = vpop.f32.mrf.mxu0  ;;  %v14757_v3 = vpop.f32.mrf.mxu1 }
 0x3c1   : > { %v4875_v57 = vsel %vm2481_vm3, %v4872_v53, %v4874_v7  ;;  %v4504_v17 = vadd.f32 %v14418_v26, %v4278_v55  ;;  %v14775_v26 = vld [vmem:[%s11970_s18 + $0x248] ss:$12 sps:$4 sm:$0xff]  }
 0x3c2   : > { %v4280_v18 = vpop.f32.mrf.mxu0  ;;  %v14760_v2 = vpop.f32.mrf.mxu1  ;;  %v14763_v21 = vadd.f32 %v4875_v57, %v14181_v63  ;;  %v11844_v57 = vld [vmem:[%s11970_s18 + $0x19c] ss:$12 sps:$4 sm:$0xff]  }
 0x3c3   : > { %v11843_v18 = vld [vmem:[%s11970_s18 + $0x180] ss:$12 sps:$4 sm:$0xff]   ;;  %v4876_v19 = vrot.slane %v4504_v17, 2 }
 0x3c4   : > { %16781 = vst [vmem:[#allocation69_spill] sm:$0xff] %v14763_v21  ;;  %v4283_v35 = vpop.f32.mrf.mxu0  ;;  %10726 = vmatmul.mubr.msk.bf16.gmra.mxu0 %vm1193_vm1, %v14755_v49  ;;  %v14768_v33 = vpop.f32.mrf.mxu1 }
 0x3c5   : > { %16782 = vst [vmem:[#allocation70_spill] sm:$0xff] %v14768_v33  ;;  %v4509_v16 = vadd.f32 %v14442_v44, %v4283_v35  ;;  %6389 = vmatprep.mubr.bf16.mxu0 %v16604_v45 }
 0x3c6   : > { %v4285_v53 = vpop.f32.mrf.mxu0  ;;  %v6060_v7 = vpop.f32.mrf.mxu1  ;;  %6555 = vmatmul.mubr.bf16.gmra.mxu1 %v11843_v18 }
 0x3c7   : > { %v4877_v63 = vrot.slane %v4509_v16, 2  ;;  %6562 = vmatprep.mubr.bf16.mxu1 %v11844_v57  ;;  %v11845_v57 = vld [vmem:[%s11970_s18 + $0x198] ss:$12 sps:$4 sm:$0xff]  }
 0x3c8   : > { %v4286_v21 = vpop.f32.mrf.mxu0  ;;  %v14777_v55 = vpop.f32.mrf.mxu1 }
 0x3c9   : > { %v4512_v33 = vadd.f32 %v14456_v48, %v4286_v21  ;;  %v4878_v44 = vsel %vm2481_vm3, %v4876_v19, %v4877_v63 }
 0x3ca   : > { %v4288_v35 = vpop.f32.mrf.mxu0  ;;  %v14781_v53 = vpop.f32.mrf.mxu1  ;;  %v14784_v7 = vadd.f32 %v4878_v44, %v14200_v23  ;;  %v11846_v44 = vld [vmem:[%s11970_s18 + $0x1b4] ss:$12 sps:$4 sm:$0xff]  }
 0x3cb   : > { %16783 = vst [vmem:[#allocation71_spill] sm:$0xff] %v14781_v53  ;;  %v4879_v17 = vrot.slane %v4512_v33, 2  ;;  %v16787_v35 = vld [vmem:[#allocation23_spill] sm:$0xff]  ;;  %v14801_v53 = vld [vmem:[%s11970_s18 + $0x260] ss:$12 sps:$4 sm:$0xff]  }
 0x3cc   : > { %16784 = vst [vmem:[#allocation72_spill] sm:$0xff] %v14784_v7  ;;  %v4291_v16 = vpop.f32.mrf.mxu0  ;;  %10727 = vmatmul.mubr.msk.bf16.gmra.mxu0 %vm1193_vm1, %v14775_v26  ;;  %v14788_v18 = vpop.f32.mrf.mxu1 }
 0x3cd   : > { %16785 = vst [vmem:[#allocation73_spill] sm:$0xff] %v14788_v18  ;;  %6399 = vmatprep.mubr.bf16.mxu0 %v16604_v45  ;;  %v4880_v48 = vsel %vm2481_vm3, %v4877_v63, %v4879_v17  ;;  %v4517_v33 = vadd.f32 %v14435_v25, %v4291_v16 }
 0x3ce   : > { %v4293_v19 = vpop.f32.mrf.mxu0  ;;  %v14792_v21 = vpop.f32.mrf.mxu1  ;;  %6563 = vmatmul.mubr.bf16.gmra.mxu1 %v11845_v57  ;;  %v14796_v23 = vadd.f32 %v4880_v48, %v16787_v35 }
 0x3cf   : > { %16786 = vst [vmem:[#allocation74_spill] sm:$0xff] %v14792_v21  ;;  %6570 = vmatprep.mubr.bf16.mxu1 %v11846_v44  ;;  %v4881_v21 = vrot.slane %v4517_v33, 2 }
 0x3d0   : > { %16788 = vst [vmem:[#allocation23_spill] sm:$0xff] %v14796_v23  ;;  %v4294_v7 = vpop.f32.mrf.mxu0  ;;  %v14803_v18 = vpop.f32.mrf.mxu1  ;;  %v14821_v23 = vld [vmem:[%s11970_s18 + $0x278] ss:$12 sps:$4 sm:$0xff]  }
 0x3d1   : > { %v4520_v63 = vadd.f32 %v14446_v4, %v4294_v7  ;;  %v11847_v7 = vld [vmem:[%s11970_s18 + $0x1b0] ss:$12 sps:$4 sm:$0xff]  }
 0x3d2   : > { %v4296_v17 = vpop.f32.mrf.mxu0  ;;  %v6073_v19 = vpop.f32.mrf.mxu1 }
 0x3d3   : > { %v4882_v57 = vrot.slane %v4520_v63, 2  ;;  %v11848_v17 = vld [vmem:[%s11970_s18 + $0x1cc] ss:$12 sps:$4 sm:$0xff]  }
 0x3d4   : > { %v4299_v48 = vpop.f32.mrf.mxu0  ;;  %10728 = vmatmul.mubr.msk.bf16.gmra.mxu0 %vm1193_vm1, %v14801_v53  ;;  %v14808_v25 = vpop.f32.mrf.mxu1 }
 0x3d5   : > { %v4525_v16 = vadd.f32 %v14471_v38, %v4299_v48  ;;  %6408 = vmatprep.mubr.bf16.mxu0 %v16604_v45  ;;  %v4883_v35 = vsel %vm2481_vm3, %v4881_v21, %v4882_v57 }
 0x3d6   : > { %v4301_v44 = vpop.f32.mrf.mxu0  ;;  %v14813_v4 = vpop.f32.mrf.mxu1  ;;  %6571 = vmatmul.mubr.bf16.gmra.mxu1 %v11847_v7  ;;  %v14817_v33 = vadd.f32 %v4883_v35, %v14230_v12 }
 0x3d7   : > { %16789 = vst [vmem:[#allocation75_spill] sm:$0xff] %v14813_v4  ;;  %v4884_v63 = vrot.slane %v4525_v16, 2  ;;  %6578 = vmatprep.mubr.bf16.mxu1 %v11848_v17 }
 0x3d8   : > { %16790 = vst [vmem:[#allocation76_spill] sm:$0xff] %v14817_v33  ;;  %v4302_v19 = vpop.f32.mrf.mxu0  ;;  %v14823_v38 = vpop.f32.mrf.mxu1  ;;  %v16795_v33 = vld [vmem:[#allocation25_spill] sm:$0xff] }
 0x3d9   : > { %16791 = vst [vmem:[#allocation77_spill] sm:$0xff] %v14823_v38  ;;  %v4885_v48 = vsel %vm2481_vm3, %v4882_v57, %v4884_v63  ;;  %v4528_v12 = vadd.f32 %v14478_v51, %v4302_v19 }
 0x3da   : > { %v4304_v21 = vpop.f32.mrf.mxu0  ;;  %v14826_v44 = vpop.f32.mrf.mxu1  ;;  %v14829_v7 = vadd.f32 %v4885_v48, %v14243_v5  ;;  %v11850_v48 = vld [vmem:[%s11970_s18 + $0x1e4] ss:$12 sps:$4 sm:$0xff]  }
 0x3db   : > { %16792 = vst [vmem:[#allocation78_spill] sm:$0xff] %v14826_v44  ;;  %v11849_v21 = vld [vmem:[%s11970_s18 + $0x1c8] ss:$12 sps:$4 sm:$0xff]   ;;  %v4886_v44 = vrot.slane %v4528_v12, 2  ;;  %v11686_v12 = vld [vmem:[%s16548_s4 + $0x38] sm:$0xff]  }
 0x3dc   : > { %16793 = vst [vmem:[#allocation79_spill] sm:$0xff] %v14829_v7  ;;  %v4307_v16 = vpop.f32.mrf.mxu0  ;;  %10729 = vmatmul.mubr.msk.bf16.gmra.mxu0 %vm1193_vm1, %v14821_v23  ;;  %v14834_v35 = vpop.f32.mrf.mxu1  ;;  %v16797_v7 = vld [vmem:[#allocation19_spill] sm:$0xff]  ;;  %11070 = vmatprep.subr.bf16.mxu0 %v11686_v12 }
 0x3dd   : > { %16794 = vst [vmem:[#allocation80_spill] sm:$0xff] %v14834_v35  ;;  %v4533_v17 = vadd.f32 %v14461_v20, %v4307_v16  ;;  %11022 = vmatprep.mubr.msk.bf16.mxu0 %vm1193_vm1, %v16795_v33  ;;  %v16799_v16 = vld [vmem:[#allocation5_spill] sm:$0xff] }
 0x3de   : > { %v4309_v57 = vpop.f32.mrf.mxu0  ;;  %v6088_v63 = vpop.f32.mrf.mxu1  ;;  %6579 = vmatmul.mubr.bf16.gmra.mxu1 %v11849_v21 }
 0x3df   : > { %v4887_v5 = vrot.slane %v4533_v17, 2  ;;  %6586 = vmatprep.mubr.bf16.mxu1 %v11850_v48  ;;  %v16801_v63 = vld [vmem:[#allocation28_spill] sm:$0xff] }
 0x3e0   : > { %v4310_v51 = vpop.f32.mrf.mxu0  ;;  %v14841_v19 = vpop.f32.mrf.mxu1  ;;  %v16805_v48 = vld [vmem:[#allocation4_spill] sm:$0xff] }
 0x3e1   : > { %16796 = vst [vmem:[#allocation25_spill] sm:$0xff] %v14841_v19  ;;  %v4536_v38 = vadd.f32 %v16797_v7, %v4310_v51  ;;  %v4888_v35 = vsel %vm2481_vm3, %v4886_v44, %v4887_v5  ;;  %v16803_v44 = vld [vmem:[#allocation32_spill] sm:$0xff]  ;;  %v16806_v51 = vld [vmem:[#allocation29_spill] sm:$0xff] }
 0x3e2   : > { %v4312_v4 = vpop.f32.mrf.mxu0  ;;  %v14845_v20 = vpop.f32.mrf.mxu1  ;;  %v14848_v33 = vadd.f32 %v4888_v35, %v16799_v16 }
 0x3e3   : > { %16798 = vst [vmem:[#allocation19_spill] sm:$0xff] %v14845_v20  ;;  %v4889_v57 = vrot.slane %v4536_v38, 2 }
 0x3e4   : > { %16800 = vst [vmem:[#allocation5_spill] sm:$0xff] %v14848_v33  ;;  %v6195_v17 = vpop.f32.mrf.mxu0  ;;  %11023 = vmatmul.mubr.msk.bf16.vlgmr.msra.gmra.mxu0 %vm1193_vm1, %v16801_v63  ;;  %v14855_v21 = vpop.f32.mrf.mxu1  ;;  %v16808_v63 = vld [vmem:[#allocation30_spill] sm:$0xff] }
 0x3e5   : > { %16802 = vst [vmem:[#allocation28_spill] sm:$0xff] %v14855_v21  ;;  %v6196_v7 = vadd.f32 %v6195_v17, %v14483_v54  ;;  %11026 = vmatprep.mubr.msk.bf16.mxu0 %vm1193_vm1, %v16803_v44  ;;  %v4890_v4 = vsel %vm2481_vm3, %v4887_v5, %v4889_v57  ;;  %11071 = vmatpush3.bf16.msra.mxu0 %v11686_v12  ;;  %v16809_v21 = vld [vmem:[#allocation11_spill] sm:$0xff] }
 0x3e6   : > { %v6197_v35 = vpop.f32.mrf.mxu0  ;;  %v14861_v38 = vpop.f32.mrf.mxu1  ;;  %6587 = vmatmul.mubr.bf16.gmra.mxu1 %v16805_v48  ;;  %v14865_v16 = vadd.f32 %v4890_v4, %v16806_v51  ;;  %v16811_v4 = vld [vmem:[#allocation33_spill] sm:$0xff] }
 0x3e7   : > { %16804 = vst [vmem:[#allocation32_spill] sm:$0xff] %v14861_v38  ;;  %v6868_v33 = vadd.f32 %v6196_v7, %v16808_v63  ;;  %6594 = vmatprep.mubr.bf16.mxu1 %v16809_v21  ;;  %v6198_v44 = vadd.f32 %v6197_v35, %v14493_v0  ;;  %v16810_v38 = vld [vmem:[#allocation31_spill] sm:$0xff]  ;;  %v16812_v63 = vld [vmem:[#allocation38_spill] sm:$0xff] }
 0x3e8   : > { %16807 = vst [vmem:[#allocation4_spill] sm:$0xff] %v14865_v16  ;;  %v6199_v54 = vpop.f32.mrf.mxu0  ;;  %v14869_v17 = vpop.f32.mrf.mxu1 }
 0x3e9   : > { %v6200_v5 = vadd.f32 %v6199_v54, %v14496_v60  ;;  %v6948_v21 = vrot.slane %v6198_v44, 1  ;;  %v16813_v60 = vld [vmem:[#allocation8_spill] sm:$0xff]  ;;  %v11687_v54 = vld [vmem:[%s16548_s4 + $0x30] sm:$0xff]  }
 0x3ea   : > { %v6201_v57 = vpop.f32.mrf.mxu0  ;;  %v6101_v20 = vpop.f32.mrf.mxu1  ;;  %11072 = vmatprep.subr.bf16.mxu0 %v11687_v54 }
 0x3eb   : > { %v6869_v19 = vadd.f32 %v6200_v5, %v16810_v38  ;;  %v6202_v12 = vadd.f32 %v6201_v57, %v14504_v61  ;;  %v16814_v38 = vld [vmem:[#allocation9_spill] sm:$0xff]  ;;  %11073 = vmatpush3.bf16.msra.mxu0 %v11687_v54 }
 0x3ec   : > { %v6205_v48 = vpop.f32.mrf.mxu0  ;;  %11027 = vmatmul.mubr.msk.bf16.gmra.mxu0 %vm1193_vm1, %v16811_v4  ;;  %v14877_v7 = vpop.f32.mrf.mxu1 }
 0x3ed   : > { %v6949_v51 = vrot.slane %v6202_v12, 1  ;;  %11030 = vmatprep.mubr.msk.bf16.mxu0 %vm1193_vm1, %v16812_v63 }
 0x3ee   : > { %v6206_v0 = vpop.f32.mrf.mxu0  ;;  %v14881_v35 = vpop.f32.mrf.mxu1  ;;  %6595 = vmatmul.mubr.bf16.gmra.mxu1 %v16813_v60 }
 0x3ef   : > { %v6950_v20 = vsel %vm2288_vm2, %v6948_v21, %v6949_v51  ;;  %v6207_v61 = vadd.f32 %v6206_v0, %v14513_v41  ;;  %6602 = vmatprep.mubr.bf16.mxu1 %v16814_v38  ;;  %v16816_v21 = vld [vmem:[#allocation34_spill] sm:$0xff] }
 0x3f0   : > { %v14890_v44 = vadd.f32 %v6950_v20, %v6868_v33  ;;  %v6208_v5 = vpop.f32.mrf.mxu0  ;;  %v14892_v57 = vpop.f32.mrf.mxu1  ;;  %v16818_v33 = vld [vmem:[#allocation41_spill] sm:$0xff] }
 0x3f1   : > { %v6951_v12 = vrot.slane %v6207_v61, 1  ;;  %v6209_v48 = vadd.f32 %v6208_v5, %v14517_v14  ;;  %v16819_v14 = vld [vmem:[#allocation45_spill] sm:$0xff] }
 0x3f2   : > { %16815 = vst [vmem:[#allocation29_spill] sm:$0xff] %v14890_v44  ;;  %v6210_v4 = vpop.f32.mrf.mxu0  ;;  %v14895_v63 = vpop.f32.mrf.mxu1  ;;  %v16820_v44 = vld [vmem:[#allocation12_spill] sm:$0xff] }
 0x3f3   : > { %v6952_v41 = vsel %vm2288_vm2, %v6949_v51, %v6951_v12  ;;  %v6870_v0 = vadd.f32 %v6209_v48, %v16816_v21  ;;  %v6211_v61 = vadd.f32 %v6210_v4, %v14524_v40  ;;  %v16821_v51 = vld [vmem:[#allocation10_spill] sm:$0xff]  ;;  %v16822_v12 = vld [vmem:[#allocation37_spill] sm:$0xff] }
 0x3f4   : > { %v14899_v60 = vadd.f32 %v6952_v41, %v6869_v19  ;;  %v6214_v38 = vpop.f32.mrf.mxu0  ;;  %11031 = vmatmul.mubr.msk.bf16.gmra.mxu0 %vm1193_vm1, %v16818_v33  ;;  %v14903_v20 = vpop.f32.mrf.mxu1  ;;  %v16823_v41 = vld [vmem:[#allocation14_spill] sm:$0xff] }
 0x3f5   : > { %v6215_v5 = vadd.f32 %v6214_v38, %v16819_v14  ;;  %11034 = vmatprep.mubr.msk.bf16.mxu0 %vm1193_vm1, %v16820_v44  ;;  %v11688_v14 = vld [vmem:[%s16548_s4 + $0x28] sm:$0xff]  }
 0x3f6   : > { %16817 = vst [vmem:[#allocation30_spill] sm:$0xff] %v14899_v60  ;;  %v6216_v54 = vpop.f32.mrf.mxu0  ;;  %v6116_v16 = vpop.f32.mrf.mxu1  ;;  %6603 = vmatmul.mubr.bf16.gmra.mxu1 %v16821_v51  ;;  %v6953_v60 = vrot.slane %v6211_v61, 1  ;;  %11074 = vmatprep.subr.bf16.mxu0 %v11688_v14 }
 0x3f7   : > { %v6871_v19 = vadd.f32 %v6215_v5, %v16822_v12  ;;  %v6217_v48 = vadd.f32 %v6216_v54, %v14539_v13  ;;  %6610 = vmatprep.mubr.bf16.mxu1 %v16823_v41  ;;  %v16825_v54 = vld [vmem:[#allocation17_spill] sm:$0xff]  ;;  %v16829_v41 = vld [vmem:[#allocation35_spill] sm:$0xff]  ;;  %11075 = vmatpush3.bf16.msra.mxu0 %v11688_v14 }
 0x3f8   : > { %v6218_v21 = vpop.f32.mrf.mxu0  ;;  %v14913_v33 = vpop.f32.mrf.mxu1 }
 0x3f9   : > { %v6954_v40 = vrot.slane %v6217_v48, 1  ;;  %v16827_v48 = vld [vmem:[#allocation21_spill] sm:$0xff]  ;;  %v16830_v21 = vld [vmem:[#allocation39_spill] sm:$0xff] }
 0x3fa   : > { %v6219_v4 = vpop.f32.mrf.mxu0  ;;  %v14915_v38 = vpop.f32.mrf.mxu1 }
 0x3fb   : > { %v6955_v44 = vsel %vm2288_vm2, %v6953_v60, %v6954_v40  ;;  %v6220_v16 = vadd.f32 %v6219_v4, %v14544_v30 }
 0x3fc   : > { %v14922_v5 = vadd.f32 %v6955_v44, %v6870_v0  ;;  %v6223_v13 = vpop.f32.mrf.mxu0  ;;  %11035 = vmatmul.mubr.msk.bf16.gmra.mxu0 %vm1193_vm1, %v16825_v54  ;;  %v14926_v51 = vpop.f32.mrf.mxu1  ;;  %v16831_v44 = vld [vmem:[#allocation36_spill] sm:$0xff] }
 0x3fd   : > { %16826 = vst [vmem:[#allocation31_spill] sm:$0xff] %v14926_v51  ;;  %v6956_v61 = vrot.slane %v6220_v16, 1  ;;  %v6224_v12 = vadd.f32 %v6223_v13, %v14549_v27  ;;  %11038 = vmatprep.mubr.msk.bf16.mxu0 %vm1193_vm1, %v16827_v48  ;;  %v16832_v51 = vld [vmem:[#allocation42_spill] sm:$0xff] }
 0x3fe   : > { %16824 = vst [vmem:[#allocation11_spill] sm:$0xff] %v14922_v5  ;;  %v6225_v30 = vpop.f32.mrf.mxu0  ;;  %v14931_v60 = vpop.f32.mrf.mxu1  ;;  %6611 = vmatmul.mubr.bf16.gmra.mxu1 %v16829_v41 }
 0x3ff   : > { %16828 = vst [vmem:[#allocation33_spill] sm:$0xff] %v14931_v60  ;;  %v6957_v0 = vsel %vm2288_vm2, %v6954_v40, %v6956_v61  ;;  %v6872_v4 = vadd.f32 %v6224_v12, %v16830_v21  ;;  %6618 = vmatprep.mubr.bf16.mxu1 %v16831_v44  ;;  %v6226_v13 = vadd.f32 %v6225_v30, %v14559_v22  ;;  %v16833_v61 = vld [vmem:[#allocation20_spill] sm:$0xff] }
 0x400   : > { %v14937_v54 = vadd.f32 %v6957_v0, %v6871_v19  ;;  %v6227_v16 = vpop.f32.mrf.mxu0  ;;  %v14939_v27 = vpop.f32.mrf.mxu1 }
 0x401   : > { %v6228_v48 = vadd.f32 %v6227_v16, %v14562_v10  ;;  %v6958_v19 = vrot.slane %v6226_v13, 1  ;;  %v16834_v10 = vld [vmem:[#allocation6_spill] sm:$0xff] }
 0x402   : > { %v6229_v5 = vpop.f32.mrf.mxu0  ;;  %v6129_v60 = vpop.f32.mrf.mxu1 }
 0x403   : > { %v6873_v41 = vadd.f32 %v6228_v48, %v16832_v51  ;;  %v6230_v14 = vadd.f32 %v6229_v5, %v14570_v39  ;;  %v16835_v5 = vld [vmem:[#allocation40_spill] sm:$0xff]  ;;  %v11689_v60 = vld [vmem:[%s16548_s4 + $0x20] sm:$0xff]  }
 0x404   : > { %v6233_v40 = vpop.f32.mrf.mxu0  ;;  %11039 = vmatmul.mubr.msk.bf16.gmra.mxu0 %vm1193_vm1, %v16833_v61  ;;  %v14947_v12 = vpop.f32.mrf.mxu1  ;;  %11076 = vmatprep.subr.bf16.mxu0 %v11689_v60 }
 0x405   : > { %v6959_v0 = vrot.slane %v6230_v14, 1  ;;  %11042 = vmatprep.mubr.msk.bf16.mxu0 %vm1193_vm1, %v14537_v50  ;;  %11077 = vmatpush3.bf16.msra.mxu0 %v11689_v60  ;;  %v16836_v40 = vld [vmem:[#allocation13_spill] sm:$0xff] }
 0x406   : > { %v6234_v22 = vpop.f32.mrf.mxu0  ;;  %v14951_v30 = vpop.f32.mrf.mxu1  ;;  %6619 = vmatmul.mubr.bf16.gmra.mxu1 %v16834_v10 }
 0x407   : > { %v6960_v51 = vsel %vm2288_vm2, %v6958_v19, %v6959_v0  ;;  %v6235_v39 = vadd.f32 %v6234_v22, %v14579_v6  ;;  %6626 = vmatprep.mubr.bf16.mxu1 %v16835_v5  ;;  %v16840_v5 = vld [vmem:[#allocation50_spill] sm:$0xff] }
 0x408   : > { %v14960_v21 = vadd.f32 %v6960_v51, %v6872_v4  ;;  %v6236_v44 = vpop.f32.mrf.mxu0  ;;  %v14962_v16 = vpop.f32.mrf.mxu1  ;;  %v16838_v4 = vld [vmem:[#allocation48_spill] sm:$0xff] }
 0x409   : > { %v6961_v50 = vrot.slane %v6235_v39, 1  ;;  %v6237_v13 = vadd.f32 %v6236_v44, %v14583_v62  ;;  %v16839_v62 = vld [vmem:[#allocation52_spill] sm:$0xff] }
 0x40a   : > { %v6238_v48 = vpop.f32.mrf.mxu0  ;;  %v14965_v14 = vpop.f32.mrf.mxu1 }
 0x40b   : > { %v6962_v6 = vsel %vm2288_vm2, %v6959_v0, %v6961_v50  ;;  %v6874_v61 = vadd.f32 %v6237_v13, %v16836_v40  ;;  %v6239_v51 = vadd.f32 %v6238_v48, %v14590_v32  ;;  %v16841_v0 = vld [vmem:[#allocation43_spill] sm:$0xff] }
 0x40c   : > { %v14969_v19 = vadd.f32 %v6962_v6, %v6873_v41  ;;  %v6242_v22 = vpop.f32.mrf.mxu0  ;;  %11043 = vmatmul.mubr.msk.bf16.gmra.mxu0 %vm1193_vm1, %v16838_v4  ;;  %v14973_v10 = vpop.f32.mrf.mxu1  ;;  %v16842_v50 = vld [vmem:[#allocation15_spill] sm:$0xff] }
 0x40d   : > { %v6243_v39 = vadd.f32 %v6242_v22, %v16839_v62  ;;  %11046 = vmatprep.mubr.msk.bf16.mxu0 %vm1193_vm1, %v16840_v5  ;;  %v16843_v6 = vld [vmem:[#allocation7_spill] sm:$0xff] }
 0x40e   : > { %16837 = vst [vmem:[#allocation38_spill] sm:$0xff] %v14969_v19  ;;  %v6244_v60 = vpop.f32.mrf.mxu0  ;;  %v6144_v44 = vpop.f32.mrf.mxu1  ;;  %6627 = vmatmul.mubr.bf16.gmra.mxu1 %v16841_v0  ;;  %v6963_v19 = vrot.slane %v6239_v51, 1 }
 0x40f   : > { %v6875_v41 = vadd.f32 %v6243_v39, %v16842_v50  ;;  %v6245_v13 = vadd.f32 %v6244_v60, %v14605_v29  ;;  %6634 = vmatprep.mubr.bf16.mxu1 %v16843_v6  ;;  %v11690_v39 = vld [vmem:[%s16548_s4 + $0x18] sm:$0xff]  }
 0x410   : > { %v6246_v40 = vpop.f32.mrf.mxu0  ;;  %v14983_v4 = vpop.f32.mrf.mxu1  ;;  %11078 = vmatprep.subr.bf16.mxu0 %v11690_v39  ;;  %v16845_v50 = vld [vmem:[#allocation16_spill] sm:$0xff] }
 0x411   : > { %v6964_v32 = vrot.slane %v6245_v13, 1  ;;  %11079 = vmatpush3.bf16.msra.mxu0 %v11690_v39  ;;  %v16846_v13 = vld [vmem:[#allocation18_spill] sm:$0xff]  ;;  %v16848_v39 = vld [vmem:[#allocation56_spill] sm:$0xff] }
 0x412   : > { %v6247_v48 = vpop.f32.mrf.mxu0  ;;  %v14985_v22 = vpop.f32.mrf.mxu1 }
 0x413   : > { %v6965_v62 = vsel %vm2288_vm2, %v6963_v19, %v6964_v32  ;;  %v6248_v5 = vadd.f32 %v6247_v48, %v14610_v42 }
 0x414   : > { %v14992_v44 = vadd.f32 %v6965_v62, %v6874_v61  ;;  %v6251_v29 = vpop.f32.mrf.mxu0  ;;  %11047 = vmatmul.mubr.msk.bf16.gmra.mxu0 %vm1193_vm1, %v14603_v37  ;;  %v14996_v60 = vpop.f32.mrf.mxu1 }
 0x415   : > { %v6966_v51 = vrot.slane %v6248_v5, 1  ;;  %v6252_v0 = vadd.f32 %v6251_v29, %v14615_v1  ;;  %11050 = vmatprep.mubr.msk.bf16.mxu0 %vm1193_vm1, %v14623_v15  ;;  %v16847_v29 = vld [vmem:[#allocation22_spill] sm:$0xff] }
 0x416   : > { %16844 = vst [vmem:[#allocation8_spill] sm:$0xff] %v14992_v44  ;;  %v6253_v42 = vpop.f32.mrf.mxu0  ;;  %v15001_v19 = vpop.f32.mrf.mxu1  ;;  %6635 = vmatmul.mubr.bf16.gmra.mxu1 %v16845_v50 }
 0x417   : > { %v6967_v61 = vsel %vm2288_vm2, %v6964_v32, %v6966_v51  ;;  %v6876_v6 = vadd.f32 %v6252_v0, %v16846_v13  ;;  %7779 = vmatprep.mubr.bf16.mxu1 %v16604_v45  ;;  %v6254_v15 = vadd.f32 %v6253_v42, %v14625_v52  ;;  %v11691_v13 = vld [vmem:[%s16548_s4 + $0x10] sm:$0xff]  }
 0x418   : > { %v15007_v37 = vadd.f32 %v6967_v61, %v6875_v41  ;;  %v6255_v40 = vpop.f32.mrf.mxu0  ;;  %v15009_v1 = vpop.f32.mrf.mxu1  ;;  %11080 = vmatprep.subr.bf16.mxu0 %v11691_v13 }
 0x419   : > { %v6256_v48 = vadd.f32 %v6255_v40, %v14628_v58  ;;  %v6968_v41 = vrot.slane %v6254_v15, 1  ;;  %11081 = vmatpush3.bf16.msra.mxu0 %v11691_v13 }
 0x41a   : > { %v6257_v62 = vpop.f32.mrf.mxu0  ;;  %v6157_v5 = vpop.f32.mrf.mxu1 }
 0x41b   : > { %v6877_v50 = vadd.f32 %v6256_v48, %v16847_v29  ;;  %v6258_v44 = vadd.f32 %v6257_v62, %v16848_v39  ;;  %v16849_v29 = vld [vmem:[#allocation44_spill] sm:$0xff] }
 0x41c   : > { %v6261_v32 = vpop.f32.mrf.mxu0  ;;  %11051 = vmatmul.mubr.msk.bf16.gmra.mxu0 %vm1193_vm1, %v14643_v31  ;;  %v15017_v51 = vpop.f32.mrf.mxu1 }
 0x41d   : > { %v6969_v0 = vrot.slane %v6258_v44, 1  ;;  %11054 = vmatprep.mubr.msk.bf16.mxu0 %vm1193_vm1, %v14669_v36 }
 0x41e   : > { %v6262_v52 = vpop.f32.mrf.mxu0  ;;  %v15021_v42 = vpop.f32.mrf.mxu1 }
 0x41f   : > { %v6970_v58 = vsel %vm2288_vm2, %v6968_v41, %v6969_v0  ;;  %v6263_v61 = vadd.f32 %v6262_v52, %v14645_v59  ;;  %v16851_v41 = vld [vmem:[#allocation58_spill] sm:$0xff] }
 0x420   : > { %v15028_v40 = vadd.f32 %v6970_v58, %v6876_v6  ;;  %v6264_v31 = vpop.f32.mrf.mxu0  ;;  %v6454_v48 = vpop.f32.mrf.mxu1  ;;  %v16852_v58 = vld [vmem:[#allocation59_spill] sm:$0xff] }
 0x421   : > { %v6971_v15 = vrot.slane %v6263_v61, 1  ;;  %v6265_v44 = vadd.f32 %v6264_v31, %v14649_v34 }
 0x422   : > { %v6266_v36 = vpop.f32.mrf.mxu0  ;;  %v15031_v62 = vpop.f32.mrf.mxu1 }
 0x423   : > { %v6972_v5 = vsel %vm2288_vm2, %v6969_v0, %v6971_v15  ;;  %v6878_v59 = vadd.f32 %v6265_v44, %v16849_v29  ;;  %v6267_v52 = vadd.f32 %v6266_v36, %v16851_v41  ;;  %v16853_v0 = vld [vmem:[#allocation46_spill] sm:$0xff] }
 0x424   : > { %v15035_v39 = vadd.f32 %v6972_v5, %v6877_v50  ;;  %v6270_v32 = vpop.f32.mrf.mxu0  ;;  %11055 = vmatmul.mubr.msk.bf16.gmra.mxu0 %vm1193_vm1, %v14689_v28  ;;  %v6457_v6 = vpop.f32.mrf.mxu1 }
 0x425   : > { %v6271_v34 = vadd.f32 %v6270_v32, %v16852_v58  ;;  %11058 = vmatprep.mubr.msk.bf16.mxu0 %vm1193_vm1, %v14709_v24  ;;  %v6973_v44 = vrot.slane %v6267_v52, 1  ;;  %v16854_v32 = vld [vmem:[#allocation61_spill] sm:$0xff]  ;;  %v11692_v24 = vld [vmem:[%s16548_s4 + $0x8] sm:$0xff]  }
 0x426   : > { %16850 = vst [vmem:[#allocation9_spill] sm:$0xff] %v15035_v39  ;;  %v6272_v61 = vpop.f32.mrf.mxu0  ;;  %v15043_v13 = vpop.f32.mrf.mxu1  ;;  %11082 = vmatprep.subr.bf16.mxu0 %v11692_v24 }
 0x427   : > { %v6879_v31 = vadd.f32 %v6271_v34, %v16853_v0  ;;  %v6273_v50 = vadd.f32 %v6272_v61, %v14671_v8  ;;  %v16856_v34 = vld [vmem:[#allocation62_spill] sm:$0xff]  ;;  %11083 = vmatpush3.bf16.msra.mxu0 %v11692_v24 }
 0x428   : > { %v6274_v48 = vpop.f32.mrf.mxu0  ;;  %v6462_v15 = vpop.f32.mrf.mxu1 }
 0x429   : > { %v6974_v5 = vrot.slane %v6273_v50, 1 }
 0x42a   : > { %v6275_v28 = vpop.f32.mrf.mxu0  ;;  %v15047_v29 = vpop.f32.mrf.mxu1 }
 0x42b   : > { %v6975_v36 = vsel %vm2288_vm2, %v6973_v44, %v6974_v5  ;;  %v6276_v6 = vadd.f32 %v6275_v28, %v16854_v32 }
 0x42c   : > { %v15054_v41 = vadd.f32 %v6975_v36, %v6878_v59  ;;  %v6279_v58 = vpop.f32.mrf.mxu0  ;;  %11059 = vmatmul.mubr.msk.bf16.gmra.mxu0 %vm1193_vm1, %v14735_v46  ;;  %v6465_v8 = vpop.f32.mrf.mxu1  ;;  %v16857_v59 = vld [vmem:[#allocation47_spill] sm:$0xff] }
 0x42d   : > { %v6976_v52 = vrot.slane %v6276_v6, 1  ;;  %v6280_v61 = vadd.f32 %v6279_v58, %v16856_v34  ;;  %11062 = vmatprep.mubr.msk.bf16.mxu0 %vm1193_vm1, %v14755_v49  ;;  %v16859_v49 = vld [vmem:[#allocation49_spill] sm:$0xff]  ;;  %v16860_v34 = vld [vmem:[#allocation63_spill] sm:$0xff] }
 0x42e   : > { %16855 = vst [vmem:[#allocation34_spill] sm:$0xff] %v15054_v41  ;;  %v6281_v0 = vpop.f32.mrf.mxu0  ;;  %v15061_v50 = vpop.f32.mrf.mxu1 }
 0x42f   : > { %v6977_v48 = vsel %vm2288_vm2, %v6974_v5, %v6976_v52  ;;  %v6880_v15 = vadd.f32 %v6280_v61, %v16857_v59  ;;  %v6282_v36 = vadd.f32 %v6281_v0, %v14691_v56  ;;  %v16861_v0 = vld [vmem:[#allocation64_spill] sm:$0xff] }
 0x430   : > { %v15065_v44 = vadd.f32 %v6977_v48, %v6879_v31  ;;  %v6283_v28 = vpop.f32.mrf.mxu0  ;;  %v6470_v46 = vpop.f32.mrf.mxu1 }
 0x431   : > { %v6284_v32 = vadd.f32 %v6283_v28, %v14694_v43  ;;  %v6978_v31 = vrot.slane %v6282_v36, 1 }
 0x432   : > { %16858 = vst [vmem:[#allocation41_spill] sm:$0xff] %v15065_v44  ;;  %v6285_v6 = vpop.f32.mrf.mxu0  ;;  %v15069_v58 = vpop.f32.mrf.mxu1 }
 0x433   : > { %v6881_v8 = vadd.f32 %v6284_v32, %v16859_v49  ;;  %v6286_v45 = vadd.f32 %v6285_v6, %v16860_v34  ;;  %v16863_v6 = vld [vmem:[#allocation65_spill] sm:$0xff]  ;;  %v16864_v34 = vld [vmem:[#allocation51_spill] sm:$0xff] }
 0x434   : > { %v6289_v24 = vpop.f32.mrf.mxu0  ;;  %11063 = vmatmul.mubr.msk.bf16.gmra.mxu0 %vm1193_vm1, %v14775_v26  ;;  %v6473_v5 = vpop.f32.mrf.mxu1 }
 0x435   : > { %v6979_v52 = vrot.slane %v6286_v45, 1  ;;  %11066 = vmatprep.mubr.msk.bf16.mxu0 %vm1193_vm1, %v14801_v53  ;;  %v11693_v45 = vld [vmem:[%s16548_s4] sm:$0xff]  }
 0x436   : > { %v6290_v56 = vpop.f32.mrf.mxu0  ;;  %v15077_v61 = vpop.f32.mrf.mxu1  ;;  %11084 = vmatprep.subr.bf16.mxu0 %v11693_v45 }
 0x437   : > { %v6980_v43 = vsel %vm2288_vm2, %v6978_v31, %v6979_v52  ;;  %v6291_v48 = vadd.f32 %v6290_v56, %v16861_v0  ;;  %v16866_v56 = vld [vmem:[#allocation66_spill] sm:$0xff]  ;;  %v16867_v0 = vld [vmem:[#allocation67_spill] sm:$0xff]  ;;  %11085 = vmatpush3.bf16.msra.mxu0 %v11693_v45 }
 0x438   : > { %v15081_v59 = vadd.f32 %v6980_v43, %v6880_v15  ;;  %v6292_v28 = vpop.f32.mrf.mxu0  ;;  %v6478_v46 = vpop.f32.mrf.mxu1 }
 0x439   : > { %v6981_v32 = vrot.slane %v6291_v48, 1  ;;  %v6293_v26 = vadd.f32 %v6292_v28, %v16863_v6  ;;  %v16868_v6 = vld [vmem:[#allocation53_spill] sm:$0xff] }
 0x43a   : > { %16862 = vst [vmem:[#allocation45_spill] sm:$0xff] %v15081_v59  ;;  %v6294_v49 = vpop.f32.mrf.mxu0  ;;  %v15084_v36 = vpop.f32.mrf.mxu1  ;;  %v16885_v59 = vld [vmem:[#allocation77_spill] sm:$0xff] }
 0x43b   : > { %v6982_v53 = vsel %vm2288_vm2, %v6979_v52, %v6981_v32  ;;  %v6882_v24 = vadd.f32 %v6293_v26, %v16864_v34  ;;  %v6295_v43 = vadd.f32 %v6294_v49, %v16866_v56 }
 0x43c   : > { %v15091_v5 = vadd.f32 %v6982_v53, %v6881_v8  ;;  %v6298_v15 = vpop.f32.mrf.mxu0  ;;  %11067 = vmatmul.mubr.msk.bf16.gmra.mxu0 %vm1193_vm1, %v14821_v23  ;;  %v6481_v31 = vpop.f32.mrf.mxu1 }
 0x43d   : > { %v6299_v48 = vadd.f32 %v6298_v15, %v16867_v0  ;;  %v6983_v53 = vrot.slane %v6295_v43, 1 }
 0x43e   : > { %16865 = vst [vmem:[#allocation12_spill] sm:$0xff] %v15091_v5  ;;  %v6300_v28 = vpop.f32.mrf.mxu0  ;;  %v15097_v46 = vpop.f32.mrf.mxu1 }
 0x43f   : > { %v6883_v52 = vadd.f32 %v6299_v48, %v16868_v6  ;;  %v6301_v32 = vadd.f32 %v6300_v28, %v14737_v9  ;;  %v16870_v28 = vld [vmem:[#allocation54_spill] sm:$0xff] }
 0x440   : > { %v6302_v8 = vpop.f32.mrf.mxu0  ;;  %v6486_v26 = vpop.f32.mrf.mxu1 }
 0x441   : > { %v6984_v34 = vrot.slane %v6301_v32, 1 }
 0x442   : > { %v6303_v5 = vpop.f32.mrf.mxu0  ;;  %v15101_v23 = vpop.f32.mrf.mxu1 }
 0x443   : > { %v6985_v31 = vsel %vm2288_vm2, %v6983_v53, %v6984_v34  ;;  %v6304_v49 = vadd.f32 %v6303_v5, %v14742_v47 }
 0x444   : > { %v15105_v15 = vadd.f32 %v6985_v31, %v6882_v24  ;;  %v6307_v45 = vpop.f32.mrf.mxu0  ;;  %v6489_v56 = vpop.f32.mrf.mxu1 }
 0x445   : > { %v6986_v0 = vrot.slane %v6304_v49, 1  ;;  %v6308_v48 = vadd.f32 %v6307_v45, %v14747_v11  ;;  %v16872_v49 = vld [vmem:[#allocation55_spill] sm:$0xff]  ;;  %v16873_v45 = vld [vmem:[#allocation70_spill] sm:$0xff] }
 0x446   : > { %16869 = vst [vmem:[#allocation10_spill] sm:$0xff] %v15105_v15  ;;  %v6309_v6 = vpop.f32.mrf.mxu0  ;;  %v15108_v9 = vpop.f32.mrf.mxu1 }
 0x447   : > { %v6987_v43 = vsel %vm2288_vm2, %v6984_v34, %v6986_v0  ;;  %v6884_v32 = vadd.f32 %v6308_v48, %v16870_v28  ;;  %v6310_v47 = vadd.f32 %v6309_v6, %v14757_v3 }
 0x448   : > { %v15112_v8 = vadd.f32 %v6987_v43, %v6883_v52  ;;  %v6311_v26 = vpop.f32.mrf.mxu0  ;;  %v6494_v53 = vpop.f32.mrf.mxu1 }
 0x449   : > { %v6312_v24 = vadd.f32 %v6311_v26, %v14760_v2  ;;  %v6988_v34 = vrot.slane %v6310_v47, 1  ;;  %v16875_v53 = vld [vmem:[#allocation71_spill] sm:$0xff] }
 0x44a   : > { %16871 = vst [vmem:[#allocation37_spill] sm:$0xff] %v15112_v8  ;;  %v6313_v5 = vpop.f32.mrf.mxu0  ;;  %v15116_v31 = vpop.f32.mrf.mxu1 }
 0x44b   : > { %v6885_v11 = vadd.f32 %v6312_v24, %v16872_v49  ;;  %v6314_v56 = vadd.f32 %v6313_v5, %v16873_v45 }
 0x44c   : > { %v6317_v15 = vpop.f32.mrf.mxu0  ;;  %v6497_v44 = vpop.f32.mrf.mxu1 }
 0x44d   : > { %v6989_v0 = vrot.slane %v6314_v56, 1  ;;  %v16876_v15 = vld [vmem:[#allocation57_spill] sm:$0xff] }
 0x44e   : > { %v6318_v48 = vpop.f32.mrf.mxu0  ;;  %v15120_v52 = vpop.f32.mrf.mxu1 }
 0x44f   : > { %v6990_v43 = vsel %vm2288_vm2, %v6988_v34, %v6989_v0  ;;  %v6319_v3 = vadd.f32 %v6318_v48, %v14777_v55  ;;  %v11694_v55 = vld [vmem:[%s16550_s6 + $0x70] ss:$8 sps:$4 sm:$0xff]   ;;  %v16878_v48 = vld [vmem:[#allocation73_spill] sm:$0xff] }
 0x450   : > { %v15124_v6 = vadd.f32 %v6990_v43, %v6884_v32  ;;  %v6320_v2 = vpop.f32.mrf.mxu0  ;;  %v6502_v28 = vpop.f32.mrf.mxu1  ;;  %v11696_v32 = vld [vmem:[%s16550_s6 + $0x74] ss:$8 sps:$4 sm:$0xff]  }
 0x451   : > { %v6991_v26 = vrot.slane %v6319_v3, 1  ;;  %v6321_v24 = vadd.f32 %v6320_v2, %v16875_v53  ;;  %v16879_v3 = vld [vmem:[#allocation74_spill] sm:$0xff]  ;;  %7747 = vmatprep.subr.bf16.mxu1 %v11696_v32 }
 0x452   : > { %16874 = vst [vmem:[#allocation14_spill] sm:$0xff] %v15124_v6  ;;  %v6322_v49 = vpop.f32.mrf.mxu0  ;;  %v15127_v5 = vpop.f32.mrf.mxu1  ;;  %7748 = vmatpush1.bf16.msra.mxu1 %v11694_v55 }
 0x453   : > { %v6992_v44 = vsel %vm2288_vm2, %v6989_v0, %v6991_v26  ;;  %v6886_v47 = vadd.f32 %v6321_v24, %v16876_v15  ;;  %v6323_v43 = vadd.f32 %v6322_v49, %v16878_v48 }
 0x454   : > { %v15131_v45 = vadd.f32 %v6992_v44, %v6885_v11  ;;  %v6326_v56 = vpop.f32.mrf.mxu0  ;;  %v6505_v34 = vpop.f32.mrf.mxu1  ;;  %v16880_v11 = vld [vmem:[#allocation60_spill] sm:$0xff] }
 0x455   : > { %v6327_v2 = vadd.f32 %v6326_v56, %v16879_v3  ;;  %v6993_v15 = vrot.slane %v6323_v43, 1 }
 0x456   : > { %16877 = vst [vmem:[#allocation17_spill] sm:$0xff] %v15131_v45  ;;  %v6328_v28 = vpop.f32.mrf.mxu0  ;;  %v15141_v0 = vpop.f32.mrf.mxu1 }
 0x457   : > { %v6887_v26 = vadd.f32 %v6327_v2, %v16880_v11  ;;  %v6329_v53 = vadd.f32 %v6328_v28, %v14803_v18  ;;  %v16882_v2 = vld [vmem:[#allocation75_spill] sm:$0xff] }
 0x458   : > { %v6330_v24 = vpop.f32.mrf.mxu0  ;;  %v6510_v44 = vpop.f32.mrf.mxu1  ;;  %v16883_v28 = vld [vmem:[#allocation27_spill] sm:$0xff] }
 0x459   : > { %v6994_v34 = vrot.slane %v6329_v53, 1 }
 0x45a   : > { %v6331_v45 = vpop.f32.mrf.mxu0  ;;  %v15145_v6 = vpop.f32.mrf.mxu1 }
 0x45b   : > { %v6995_v49 = vsel %vm2288_vm2, %v6993_v15, %v6994_v34  ;;  %v6332_v56 = vadd.f32 %v6331_v45, %v14808_v25 }
 0x45c   : > { %v15149_v48 = vadd.f32 %v6995_v49, %v6886_v47  ;;  %v6335_v3 = vpop.f32.mrf.mxu0  ;;  %v6513_v32 = vpop.f32.mrf.mxu1  ;;  %v16886_v47 = vld [vmem:[#allocation78_spill] sm:$0xff] }
 0x45d   : > { %v6996_v8 = vrot.slane %v6332_v56, 1  ;;  %v6336_v11 = vadd.f32 %v6335_v3, %v16882_v2  ;;  %v16887_v56 = vld [vmem:[#allocation3_spill] sm:$0xff]  ;;  %v16888_v2 = vld [vmem:[#allocation80_spill] sm:$0xff] }
 0x45e   : > { %16881 = vst [vmem:[#allocation21_spill] sm:$0xff] %v15149_v48  ;;  %v6337_v18 = vpop.f32.mrf.mxu0  ;;  %v15152_v55 = vpop.f32.mrf.mxu1 }
 0x45f   : > { %v6997_v43 = vsel %vm2288_vm2, %v6994_v34, %v6996_v8  ;;  %v6888_v53 = vadd.f32 %v6336_v11, %v16883_v28  ;;  %v6338_v25 = vadd.f32 %v6337_v18, %v16885_v59  ;;  %v16889_v28 = vld [vmem:[#allocation25_spill] sm:$0xff] }
 0x460   : > { %v15156_v24 = vadd.f32 %v6997_v43, %v6887_v26  ;;  %v6339_v44 = vpop.f32.mrf.mxu0  ;;  %v6518_v15 = vpop.f32.mrf.mxu1 }
 0x461   : > { %v6340_v45 = vadd.f32 %v6339_v44, %v16886_v47  ;;  %v6998_v8 = vrot.slane %v6338_v25, 1 }
 0x462   : > { %16884 = vst [vmem:[#allocation35_spill] sm:$0xff] %v15156_v24  ;;  %v6341_v49 = vpop.f32.mrf.mxu0  ;;  %v15160_v32 = vpop.f32.mrf.mxu1  ;;  %v16891_v24 = vld [vmem:[#allocation19_spill] sm:$0xff] }
 0x463   : > { %v6889_v3 = vadd.f32 %v6340_v45, %v16887_v56  ;;  %v6342_v48 = vadd.f32 %v6341_v49, %v16888_v2 }
 0x464   : > { %v6345_v41 = vpop.f32.mrf.mxu0  ;;  %v6521_v39 = vpop.f32.mrf.mxu1 }
 0x465   : > { %v6999_v34 = vrot.slane %v6342_v48, 1  ;;  %v16892_v41 = vld [vmem:[#allocation24_spill] sm:$0xff] }
 0x466   : > { %v6346_v11 = vpop.f32.mrf.mxu0  ;;  %v15164_v26 = vpop.f32.mrf.mxu1 }
 0x467   : > { %v7000_v43 = vsel %vm2288_vm2, %v6998_v8, %v6999_v34  ;;  %v6347_v59 = vadd.f32 %v6346_v11, %v16889_v28  ;;  %v11699_v11 = vld [vmem:[%s16550_s6 + $0x64] ss:$8 sps:$4 sm:$0xff]   ;;  %v16895_v28 = vld [vmem:[#allocation32_spill] sm:$0xff] }
 0x468   : > { %v15168_v18 = vadd.f32 %v7000_v43, %v6888_v53  ;;  %v6348_v44 = vpop.f32.mrf.mxu0  ;;  %v6526_v15 = vpop.f32.mrf.mxu1  ;;  %v11697_v53 = vld [vmem:[%s16550_s6 + $0x60] ss:$8 sps:$4 sm:$0xff]   ;;  %7749 = vmatprep.subr.bf16.mxu1 %v11699_v11 }
 0x469   : > { %v7001_v47 = vrot.slane %v6347_v59, 1  ;;  %v6349_v45 = vadd.f32 %v6348_v44, %v16891_v24  ;;  %v16894_v24 = vld [vmem:[#allocation28_spill] sm:$0xff]  ;;  %7750 = vmatpush1.bf16.msra.mxu1 %v11697_v53 }
 0x46a   : > { %16890 = vst [vmem:[#allocation39_spill] sm:$0xff] %v15168_v18  ;;  %v6350_v56 = vpop.f32.mrf.mxu0  ;;  %v15171_v49 = vpop.f32.mrf.mxu1 }
 0x46b   : > { %v7002_v39 = vsel %vm2288_vm2, %v6999_v34, %v7001_v47  ;;  %v6890_v48 = vadd.f32 %v6349_v45, %v16892_v41  ;;  %v6351_v43 = vadd.f32 %v6350_v56, %v16894_v24 }
 0x46c   : > { %v15175_v25 = vadd.f32 %v7002_v39, %v6889_v3  ;;  %v6354_v2 = vpop.f32.mrf.mxu0  ;;  %v6529_v8 = vpop.f32.mrf.mxu1  ;;  %v16897_v3 = vld [vmem:[#allocation26_spill] sm:$0xff] }
 0x46d   : > { %v6355_v59 = vadd.f32 %v6354_v2, %v16895_v28  ;;  %v7003_v41 = vrot.slane %v6351_v43, 1 }
 0x46e   : > { %16893 = vst [vmem:[#allocation36_spill] sm:$0xff] %v15175_v25  ;;  %v6356_v44 = vpop.f32.mrf.mxu0  ;;  %v15185_v34 = vpop.f32.mrf.mxu1 }
 0x46f   : > { %16896 = vst [vmem:[#allocation42_spill] sm:$0xff] %v15185_v34  ;;  %v6891_v15 = vadd.f32 %v6355_v59, %v16897_v3  ;;  %v6357_v47 = vadd.f32 %v6356_v44, %v14869_v17  ;;  %v16898_v44 = vld [vmem:[#allocation68_spill] sm:$0xff] }
 0x470   : > { %v6358_v45 = vpop.f32.mrf.mxu0  ;;  %v6534_v39 = vpop.f32.mrf.mxu1 }
 0x471   : > { %v7004_v8 = vrot.slane %v6357_v47, 1 }
 0x472   : > { %v6359_v25 = vpop.f32.mrf.mxu0  ;;  %v15189_v18 = vpop.f32.mrf.mxu1 }
 0x473   : > { %v7005_v56 = vsel %vm2288_vm2, %v7003_v41, %v7004_v8  ;;  %v6360_v2 = vadd.f32 %v6359_v25, %v14877_v7 }
 0x474   : > { %v15193_v24 = vadd.f32 %v7005_v56, %v6890_v48  ;;  %v6363_v28 = vpop.f32.mrf.mxu0  ;;  %v6537_v11 = vpop.f32.mrf.mxu1  ;;  %v16899_v56 = vld [vmem:[#allocation69_spill] sm:$0xff] }
 0x475   : > { %v7006_v34 = vrot.slane %v6360_v2, 1  ;;  %v6364_v59 = vadd.f32 %v6363_v28, %v14881_v35 }
 0x476   : > { %v6365_v17 = vpop.f32.mrf.mxu0  ;;  %v15196_v53 = vpop.f32.mrf.mxu1 }
 0x477   : > { %v7007_v43 = vsel %vm2288_vm2, %v7004_v8, %v7006_v34  ;;  %v6892_v3 = vadd.f32 %v6364_v59, %v16898_v44  ;;  %v6366_v7 = vadd.f32 %v6365_v17, %v14892_v57 }
 0x478   : > { %v15200_v47 = vadd.f32 %v7007_v43, %v6891_v15  ;;  %v6367_v45 = vpop.f32.mrf.mxu0  ;;  %v6542_v39 = vpop.f32.mrf.mxu1 }
 0x479   : > { %v6368_v48 = vadd.f32 %v6367_v45, %v14895_v63  ;;  %v7008_v34 = vrot.slane %v6366_v7, 1 }
 0x47a   : > { %v6369_v25 = vpop.f32.mrf.mxu0  ;;  %v15204_v41 = vpop.f32.mrf.mxu1 }
 0x47b   : > { %v6893_v35 = vadd.f32 %v6368_v48, %v16899_v56  ;;  %v6370_v2 = vadd.f32 %v6369_v25, %v14903_v20  ;;  %v16901_v25 = vld [vmem:[#allocation72_spill] sm:$0xff] }
 0x47c   : > { %v6373_v28 = vpop.f32.mrf.mxu0  ;;  %v6545_v11 = vpop.f32.mrf.mxu1 }
 0x47d   : > { %v7009_v8 = vrot.slane %v6370_v2, 1 }
 0x47e   : > { %v6374_v59 = vpop.f32.mrf.mxu0  ;;  %v15208_v15 = vpop.f32.mrf.mxu1 }
 0x47f   : > { %v7010_v43 = vsel %vm2288_vm2, %v7008_v34, %v7009_v8  ;;  %v6375_v57 = vadd.f32 %v6374_v59, %v14913_v33  ;;  %v11700_v33 = vld [vmem:[%s16550_s6 + $0x50] ss:$8 sps:$4 sm:$0xff]   ;;  %v16904_v59 = vld [vmem:[#allocation33_spill] sm:$0xff] }
 0x480   : > { %v15212_v17 = vadd.f32 %v7010_v43, %v6892_v3  ;;  %v6376_v63 = vpop.f32.mrf.mxu0  ;;  %v6550_v44 = vpop.f32.mrf.mxu1  ;;  %v11702_v3 = vld [vmem:[%s16550_s6 + $0x54] ss:$8 sps:$4 sm:$0xff]  }
 0x481   : > { %v7011_v45 = vrot.slane %v6375_v57, 1  ;;  %v6377_v39 = vadd.f32 %v6376_v63, %v14915_v38  ;;  %v16903_v38 = vld [vmem:[#allocation31_spill] sm:$0xff]  ;;  %7751 = vmatprep.subr.bf16.mxu1 %v11702_v3 }
 0x482   : > { %16900 = vst [vmem:[#allocation20_spill] sm:$0xff] %v15212_v17  ;;  %v6378_v48 = vpop.f32.mrf.mxu0  ;;  %v15215_v20 = vpop.f32.mrf.mxu1  ;;  %7752 = vmatpush1.bf16.msra.mxu1 %v11700_v33 }
 0x483   : > { %v7012_v7 = vsel %vm2288_vm2, %v7009_v8, %v7011_v45  ;;  %v6894_v56 = vadd.f32 %v6377_v39, %v16901_v25  ;;  %v6379_v34 = vadd.f32 %v6378_v48, %v16903_v38 }
 0x484   : > { %v15219_v2 = vadd.f32 %v7012_v7, %v6893_v35  ;;  %v6382_v28 = vpop.f32.mrf.mxu0  ;;  %v6553_v11 = vpop.f32.mrf.mxu1  ;;  %v16905_v35 = vld [vmem:[#allocation23_spill] sm:$0xff] }
 0x485   : > { %v6383_v43 = vadd.f32 %v6382_v28, %v16904_v59  ;;  %v7013_v7 = vrot.slane %v6379_v34, 1 }
 0x486   : > { %16902 = vst [vmem:[#allocation6_spill] sm:$0xff] %v15219_v2  ;;  %v6384_v57 = vpop.f32.mrf.mxu0  ;;  %v15229_v8 = vpop.f32.mrf.mxu1 }
 0x487   : > { %v6895_v63 = vadd.f32 %v6383_v43, %v16905_v35  ;;  %v6385_v44 = vadd.f32 %v6384_v57, %v14939_v27  ;;  %v16906_v57 = vld [vmem:[#allocation76_spill] sm:$0xff] }
 0x488   : > { %v6386_v45 = vpop.f32.mrf.mxu0  ;;  %v6558_v39 = vpop.f32.mrf.mxu1 }
 0x489   : > { %v7014_v25 = vrot.slane %v6385_v44, 1 }
 0x48a   : > { %v6387_v11 = vpop.f32.mrf.mxu0  ;;  %v15233_v2 = vpop.f32.mrf.mxu1 }
 0x48b   : > { %v7015_v48 = vsel %vm2288_vm2, %v7013_v7, %v7014_v25  ;;  %v6388_v28 = vadd.f32 %v6387_v11, %v14947_v12  ;;  %v11703_v12 = vld [vmem:[%s16550_s6 + $0x40] ss:$8 sps:$4 sm:$0xff]   ;;  %v16907_v11 = vld [vmem:[#allocation79_spill] sm:$0xff] }
 0x48c   : > { %v15237_v38 = vadd.f32 %v7015_v48, %v6894_v56  ;;  %v6391_v59 = vpop.f32.mrf.mxu0  ;;  %v6561_v3 = vpop.f32.mrf.mxu1  ;;  %v11705_v56 = vld [vmem:[%s16550_s6 + $0x44] ss:$8 sps:$4 sm:$0xff]  }
 0x48d   : > { %v7016_v17 = vrot.slane %v6388_v28, 1  ;;  %v6392_v43 = vadd.f32 %v6391_v59, %v14951_v30  ;;  %7753 = vmatprep.subr.bf16.mxu1 %v11705_v56  ;;  %v11706_v59 = vld [vmem:[%s16550_s6 + $0x30] ss:$8 sps:$4 sm:$0xff]  }
 0x48e   : > { %v6393_v27 = vpop.f32.mrf.mxu0  ;;  %v15240_v33 = vpop.f32.mrf.mxu1  ;;  %7754 = vmatpush1.bf16.msra.mxu1 %v11703_v12 }
 0x48f   : > { %v7017_v34 = vsel %vm2288_vm2, %v7014_v25, %v7016_v17  ;;  %v6896_v35 = vadd.f32 %v6392_v43, %v16906_v57  ;;  %v6394_v30 = vadd.f32 %v6393_v27, %v14962_v16  ;;  %v11708_v17 = vld [vmem:[%s16550_s6 + $0x34] ss:$8 sps:$4 sm:$0xff]  }
 0x490   : > { %v15244_v44 = vadd.f32 %v7017_v34, %v6895_v63  ;;  %v6395_v45 = vpop.f32.mrf.mxu0  ;;  %v6566_v39 = vpop.f32.mrf.mxu1  ;;  %7755 = vmatprep.subr.bf16.mxu1 %v11708_v17 }
 0x491   : > { %v6396_v7 = vadd.f32 %v6395_v45, %v14965_v14  ;;  %v11711_v14 = vld [vmem:[%s16550_s6 + $0x24] ss:$8 sps:$4 sm:$0xff]   ;;  %v7018_v43 = vrot.slane %v6394_v30, 1  ;;  %v11709_v39 = vld [vmem:[%s16550_s6 + $0x20] ss:$8 sps:$4 sm:$0xff]  }
 0x492   : > { %v6397_v63 = vpop.f32.mrf.mxu0  ;;  %v15257_v25 = vpop.f32.mrf.mxu1  ;;  %7756 = vmatpush1.bf16.msra.mxu1 %v11706_v59  ;;  %v11714_v30 = vld [vmem:[%s16550_s6 + $0x14] ss:$8 sps:$4 sm:$0xff]   ;;  %v16908_v59 = vld [vmem:[#allocation5_spill] sm:$0xff] }
 0x493   : > { %v6897_v48 = vadd.f32 %v6396_v7, %v16907_v11  ;;  %v6398_v28 = vadd.f32 %v6397_v63, %v14973_v10  ;;  %7757 = vmatprep.subr.bf16.mxu1 %v11711_v14 }
 0x494   : > { %v6401_v16 = vpop.f32.mrf.mxu0  ;;  %v6569_v3 = vpop.f32.mrf.mxu1 }
 0x495   : > { %v7019_v27 = vrot.slane %v6398_v28, 1 }
 0x496   : > { %v6402_v34 = vpop.f32.mrf.mxu0  ;;  %v15267_v57 = vpop.f32.mrf.mxu1  ;;  %7758 = vmatpush1.bf16.msra.mxu1 %v11709_v39  ;;  %v16909_v39 = vld [vmem:[#allocation4_spill] sm:$0xff] }
 0x497   : > { %v7020_v45 = vsel %vm2288_vm2, %v7018_v43, %v7019_v27  ;;  %v6403_v10 = vadd.f32 %v6402_v34, %v14983_v4  ;;  %7759 = vmatprep.subr.bf16.mxu1 %v11714_v30 }
 0x498   : > { %v15274_v12 = vadd.f32 %v7020_v45, %v6896_v35  ;;  %v6404_v56 = vpop.f32.mrf.mxu0  ;;  %v6574_v7 = vpop.f32.mrf.mxu1  ;;  %v11712_v35 = vld [vmem:[%s16550_s6 + $0x10] ss:$8 sps:$4 sm:$0xff]  }
 0x499   : > { %v7021_v17 = vrot.slane %v6403_v10, 1  ;;  %v6405_v63 = vadd.f32 %v6404_v56, %v14985_v22  ;;  %v11717_v22 = vld [vmem:[%s16550_s6 + $0x4] ss:$8 sps:$4 sm:$0xff]  }
 0x49a   : > { %v6406_v11 = vpop.f32.mrf.mxu0  ;;  %v15280_v28 = vpop.f32.mrf.mxu1  ;;  %7760 = vmatpush1.bf16.msra.mxu1 %v11712_v35 }
 0x49b   : > { %v7022_v4 = vsel %vm2288_vm2, %v7019_v27, %v7021_v17  ;;  %v6898_v16 = vadd.f32 %v6405_v63, %v16908_v59  ;;  %v6407_v34 = vadd.f32 %v6406_v11, %v14996_v60  ;;  %7761 = vmatprep.subr.bf16.mxu1 %v11717_v22 }
 0x49c   : > { %v15287_v3 = vadd.f32 %v7022_v4, %v6897_v48  ;;  %v6410_v14 = vpop.f32.mrf.mxu0  ;;  %v6577_v43 = vpop.f32.mrf.mxu1  ;;  %v11715_v48 = vld [vmem:[%s16550_s6] ss:$8 sps:$4 sm:$0xff]  }
 0x49d   : > { %v6411_v27 = vadd.f32 %v6410_v14, %v15001_v19  ;;  %v7023_v63 = vrot.slane %v6407_v34, 1 }
 0x49e   : > { %v6412_v45 = vpop.f32.mrf.mxu0  ;;  %v15294_v10 = vpop.f32.mrf.mxu1  ;;  %7762 = vmatpush1.bf16.msra.mxu1 %v11715_v48 }
 0x49f   : > { %v6899_v56 = vadd.f32 %v6411_v27, %v16909_v39  ;;  %v6413_v7 = vadd.f32 %v6412_v45, %v15009_v1 }
 0x4a0   : > { %v6414_v30 = vpop.f32.mrf.mxu0  ;;  %v6582_v17 = vpop.f32.mrf.mxu1 }
 0x4a1   : > { %v7024_v4 = vrot.slane %v6413_v7, 1 }
 0x4a2   : > { %v6415_v60 = vpop.f32.mrf.mxu0  ;;  %v15301_v11 = vpop.f32.mrf.mxu1 }
 0x4a3   : > { %v7025_v19 = vsel %vm2288_vm2, %v7023_v63, %v7024_v4  ;;  %v6416_v59 = vadd.f32 %v6415_v60, %v15017_v51 }
 0x4a4   : > { %v15305_v14 = vadd.f32 %v7025_v19, %v6898_v16  ;;  %v11024_v1 = vpop.f32.mrf.mxu0  ;;  %v6585_v35 = vpop.f32.mrf.mxu1 }
 0x4a5   : > { %v7026_v43 = vrot.slane %v6416_v59, 1  ;;  %v6686_v30 = vadd.f32 %v11024_v1, %v15043_v13 }
 0x4a6   : > { %16910 = vst [vmem:[#allocation40_spill] sm:$0xff] %v15305_v14  ;;  %v6677_v27 = vpop.f32.mrf.mxu0  ;;  %v15307_v45 = vpop.f32.mrf.mxu1 }
 0x4a7   : > { %v7027_v22 = vsel %vm2288_vm2, %v7024_v4, %v7026_v43  ;;  %v6678_v17 = vadd.f32 %v6677_v27, %v15021_v42  ;;  %v7143_v19 = vrot.slane %v6686_v30, 2  ;;  %v16912_v27 = vld [vmem:[#allocation29_spill] sm:$0xff] }
 0x4a8   : > { %v15310_v34 = vadd.f32 %v7027_v22, %v6899_v56  ;;  %v11025_v39 = vpop.f32.mrf.mxu0  ;;  %v6590_v7 = vpop.f32.mrf.mxu1 }
 0x4a9   : > { %v7140_v59 = vrot.slane %v6678_v17, 2  ;;  %v6689_v35 = vadd.f32 %v11025_v39, %v15047_v29  ;;  %v16913_v29 = vld [vmem:[#allocation30_spill] sm:$0xff] }
 0x4aa   : > { %16911 = vst [vmem:[#allocation13_spill] sm:$0xff] %v15310_v34  ;;  %v6680_v51 = vpop.f32.mrf.mxu0  ;;  %v15314_v48 = vpop.f32.mrf.mxu1 }
 0x4ab   : > { %v6681_v16 = vadd.f32 %v6680_v51, %v15031_v62  ;;  %v15327_v62 = vld [vmem:[%s16547_s3] ss:$0 sm:$0xff]  ;;  %v7145_v51 = vrot.slane %v6689_v35, 2 }
 0x4ac   : > { %v11028_v63 = vpop.f32.mrf.mxu0  ;;  %v6593_v60 = vpop.f32.mrf.mxu1 }
 0x4ad   : > { %v7141_v4 = vrot.slane %v6681_v16, 2  ;;  %v6702_v42 = vadd.f32 %v11028_v63, %v15077_v61 }
 0x4ae   : > { %v6693_v56 = vpop.f32.mrf.mxu0  ;;  %v15318_v43 = vpop.f32.mrf.mxu1 }
 0x4af   : > { %v7142_v22 = vsel %vm2481_vm3, %v7140_v59, %v7141_v4  ;;  %v7144_v13 = vsel %vm2481_vm3, %v7141_v4, %v7143_v19  ;;  %v6694_v1 = vadd.f32 %v6693_v56, %v15061_v50  ;;  %v7150_v59 = vrot.slane %v6702_v42, 2 }
 0x4b0   : > { %v7252_v7 = vadd.f32 %v7142_v22, %v16912_v27  ;;  %v7253_v39 = vadd.f32 %v7144_v13, %v16913_v29  ;;  %v11029_v30 = vpop.f32.mrf.mxu0  ;;  %v6598_v17 = vpop.f32.mrf.mxu1  ;;  %v16914_v13 = vld [vmem:[#allocation11_spill] sm:$0xff] }
 0x4b1   : > { %v7146_v16 = vrot.slane %v6694_v1, 2  ;;  %v6705_v60 = vadd.f32 %v11029_v30, %v15084_v36 }
 0x4b2   : > { %v6696_v19 = vpop.f32.mrf.mxu0  ;;  %v7291_v61 = vadd.f32 %v15327_v62, %v7252_v7  ;;  %v7292_v50 = vadd.f32 %v15327_v62, %v7253_v39  ;;  %v15334_v63 = vpop.f32.mrf.mxu1 }
 0x4b3   : > { %v7147_v4 = vsel %vm2481_vm3, %v7145_v51, %v7146_v16  ;;  %v7151_v56 = vrot.slane %v6705_v60, 2  ;;  %v6697_v22 = vadd.f32 %v6696_v19, %v15069_v58 }
 0x4b4   : > { %v7254_v27 = vadd.f32 %v7147_v4, %v16914_v13  ;;  %v11032_v29 = vpop.f32.mrf.mxu0  ;;  %v7323_v35 = vmax.f32 %v7291_v61, 0.0  ;;  %v7324_v1 = vmax.f32 %v7292_v50, 0.0  ;;  %v6601_v17 = vpop.f32.mrf.mxu1 }
 0x4b5   : > { %v7152_v36 = vsel %vm2481_vm3, %v7150_v59, %v7151_v56  ;;  %v7148_v30 = vrot.slane %v6697_v22, 2  ;;  %v6718_v7 = vadd.f32 %v11032_v29, %v15108_v9 }
 0x4b6   : > { %v6709_v39 = vpop.f32.mrf.mxu0  ;;  %v7355_v14 = vpack.c.bf16 %v7324_v1, %v7323_v35  ;;  %v15341_v34 = vpop.f32.mrf.mxu1  ;;  %v7293_v58 = vadd.f32 %v15327_v62, %v7254_v27  ;;  %v7256_v60 = vadd.f32 %v7152_v36, %v14960_v21 }
 0x4b7   : > { %v7149_v42 = vsel %vm2481_vm3, %v7146_v16, %v7148_v30  ;;  %v6710_v51 = vadd.f32 %v6709_v39, %v15097_v46  ;;  %v7156_v59 = vrot.slane %v6718_v7, 2 }
 0x4b8   : > { %v7255_v19 = vadd.f32 %v7149_v42, %v14937_v54  ;;  %v11033_v61 = vpop.f32.mrf.mxu0  ;;  %11086 = vmatprep.mubr.bf16.mxu0 %v7355_v14  ;;  %v6606_v50 = vpop.f32.mrf.mxu1  ;;  %v7325_v21 = vmax.f32 %v7293_v58, 0.0  ;;  %v16915_v54 = vld [vmem:[#allocation38_spill] sm:$0xff]  ;;  %v7295_v17 = vadd.f32 %v15327_v62, %v7256_v60 }
 0x4b9   : > { %v7153_v4 = vrot.slane %v6710_v51, 2  ;;  %v6721_v9 = vadd.f32 %v11033_v61, %v15116_v31  ;;  %v16916_v61 = vld [vmem:[#allocation8_spill] sm:$0xff] }
 0x4ba   : > { %v7294_v22 = vadd.f32 %v15327_v62, %v7255_v19  ;;  %v6712_v13 = vpop.f32.mrf.mxu0  ;;  %v15350_v29 = vpop.f32.mrf.mxu1 }
 0x4bb   : > { %v7154_v46 = vsel %vm2481_vm3, %v7151_v56, %v7153_v4  ;;  %v7158_v16 = vrot.slane %v6721_v9, 2  ;;  %v6713_v27 = vadd.f32 %v6712_v13, %v15101_v23  ;;  %v7327_v9 = vmax.f32 %v7295_v17, 0.0 }
 0x4bc   : > { %v7326_v35 = vmax.f32 %v7294_v22, 0.0  ;;  %v7257_v1 = vadd.f32 %v7154_v46, %v16915_v54  ;;  %v11036_v14 = vpop.f32.mrf.mxu0  ;;  %v6609_v36 = vpop.f32.mrf.mxu1 }
 0x4bd   : > { %v7159_v31 = vsel %vm2481_vm3, %v7156_v59, %v7158_v16  ;;  %v7155_v30 = vrot.slane %v6713_v27, 2  ;;  %v6734_v58 = vadd.f32 %v11036_v14, %v15141_v0 }
 0x4be   : > { %v7356_v7 = vpack.c.bf16 %v7326_v35, %v7325_v21  ;;  %v7259_v39 = vadd.f32 %v7159_v31, %v15007_v37  ;;  %v6725_v42 = vpop.f32.mrf.mxu0  ;;  %v7296_v56 = vadd.f32 %v15327_v62, %v7257_v1  ;;  %v15359_v51 = vpop.f32.mrf.mxu1 }
 0x4bf   : > { %v7157_v23 = vsel %vm2481_vm3, %v7155_v30, %v7156_v59  ;;  %v6726_v19 = vadd.f32 %v6725_v42, %v15120_v52  ;;  %v7163_v59 = vrot.slane %v6734_v58, 2 }
 0x4c0   : > { %v7298_v60 = vadd.f32 %v15327_v62, %v7259_v39  ;;  %v7258_v50 = vadd.f32 %v7157_v23, %v16916_v61  ;;  %v11037_v4 = vpop.f32.mrf.mxu0  ;;  %11087 = vmatmul.mubr.bf16.vlgmr.msra.gmra.mxu0 %v7356_v7  ;;  %v7328_v22 = vmax.f32 %v7296_v56, 0.0  ;;  %v6614_v37 = vpop.f32.mrf.mxu1  ;;  %v16917_v23 = vld [vmem:[#allocation9_spill] sm:$0xff] }
 0x4c1   : > { %v7160_v21 = vrot.slane %v6726_v19, 2  ;;  %v6737_v0 = vadd.f32 %v11037_v4, %v15145_v6 }
 0x4c2   : > { %v7297_v13 = vadd.f32 %v15327_v62, %v7258_v50  ;;  %v6728_v46 = vpop.f32.mrf.mxu0  ;;  %v7357_v16 = vpack.c.bf16 %v7328_v22, %v7327_v9  ;;  %v15367_v27 = vpop.f32.mrf.mxu1  ;;  %v7330_v35 = vmax.f32 %v7298_v60, 0.0 }
 0x4c3   : > { %v6729_v52 = vadd.f32 %v6728_v46, %v15127_v5  ;;  %v7165_v39 = vrot.slane %v6737_v0, 2  ;;  %v16918_v46 = vld [vmem:[#allocation34_spill] sm:$0xff] }
 0x4c4   : > { %v7329_v54 = vmax.f32 %v7297_v13, 0.0  ;;  %v11040_v1 = vpop.f32.mrf.mxu0  ;;  %11090 = vmatprep.mubr.bf16.mxu0 %v7357_v16  ;;  %v6617_v14 = vpop.f32.mrf.mxu1 }
 0x4c5   : > { %v7161_v17 = vrot.slane %v6729_v52, 2  ;;  %v6750_v36 = vadd.f32 %v11040_v1, %v15164_v26 }
 0x4c6   : > { %v6741_v31 = vpop.f32.mrf.mxu0  ;;  %v7358_v30 = vpack.c.bf16 %v7330_v35, %v7329_v54  ;;  %v15372_v7 = vpop.f32.mrf.mxu1 }
 0x4c7   : > { %v7162_v42 = vsel %vm2481_vm3, %v7160_v21, %v7161_v17  ;;  %v7164_v56 = vsel %vm2481_vm3, %v7161_v17, %v7163_v59  ;;  %v6742_v6 = vadd.f32 %v6741_v31, %v15152_v55  ;;  %v7170_v61 = vrot.slane %v6750_v36, 2  ;;  %v16919_v31 = vld [vmem:[#allocation42_spill] sm:$0xff] }
 0x4c8   : > { %v7260_v5 = vadd.f32 %v7162_v42, %v15028_v40  ;;  %v7261_v58 = vadd.f32 %v7164_v56, %v16917_v23  ;;  %v11041_v19 = vpop.f32.mrf.mxu0  ;;  %11091 = vmatmul.mubr.bf16.gmra.mxu0 %v7358_v30  ;;  %v6622_v60 = vpop.f32.mrf.mxu1  ;;  %v16921_v56 = vld [vmem:[#allocation41_spill] sm:$0xff] }
 0x4c9   : > { %v7166_v26 = vrot.slane %v6742_v6, 2  ;;  %v6753_v50 = vadd.f32 %v11041_v19, %v15171_v49 }
 0x4ca   : > { %v6744_v4 = vpop.f32.mrf.mxu0  ;;  %v7299_v9 = vadd.f32 %v15327_v62, %v7260_v5  ;;  %v7300_v22 = vadd.f32 %v15327_v62, %v7261_v58  ;;  %v15382_v37 = vpop.f32.mrf.mxu1 }
 0x4cb   : > { %v7167_v55 = vsel %vm2481_vm3, %v7165_v39, %v7166_v26  ;;  %v7171_v13 = vrot.slane %v6753_v50, 2  ;;  %v6745_v40 = vadd.f32 %v6744_v4, %v15160_v32  ;;  %v16920_v39 = vld [vmem:[#allocation45_spill] sm:$0xff] }
 0x4cc   : > { %v7262_v16 = vadd.f32 %v7167_v55, %v16918_v46  ;;  %v11044_v59 = vpop.f32.mrf.mxu0  ;;  %v7331_v21 = vmax.f32 %v7299_v9, 0.0  ;;  %v7332_v0 = vmax.f32 %v7300_v22, 0.0  ;;  %v6625_v52 = vpop.f32.mrf.mxu1 }
 0x4cd   : > { %v7172_v49 = vsel %vm2481_vm3, %v7170_v61, %v7171_v13  ;;  %v7168_v35 = vrot.slane %v6745_v40, 2  ;;  %v6766_v54 = vadd.f32 %v11044_v59, %v15196_v53  ;;  %v16922_v40 = vld [vmem:[#allocation12_spill] sm:$0xff]  ;;  %v16923_v52 = vld [vmem:[#allocation37_spill] sm:$0xff] }
 0x4ce   : > { %v6757_v1 = vpop.f32.mrf.mxu0  ;;  %v7359_v14 = vpack.c.bf16 %v7332_v0, %v7331_v21  ;;  %v15389_v17 = vpop.f32.mrf.mxu1  ;;  %v7301_v32 = vadd.f32 %v15327_v62, %v7262_v16  ;;  %v7264_v42 = vadd.f32 %v7172_v49, %v16920_v39 }
 0x4cf   : > { %v7169_v36 = vsel %vm2481_vm3, %v7166_v26, %v7168_v35  ;;  %v6758_v30 = vadd.f32 %v6757_v1, %v16919_v31  ;;  %v7176_v58 = vrot.slane %v6766_v54, 2 }
 0x4d0   : > { %v7263_v6 = vadd.f32 %v7169_v36, %v16921_v56  ;;  %v11045_v5 = vpop.f32.mrf.mxu0  ;;  %11094 = vmatprep.mubr.bf16.mxu0 %v7359_v14  ;;  %v6630_v23 = vpop.f32.mrf.mxu1  ;;  %v7333_v22 = vmax.f32 %v7301_v32, 0.0  ;;  %v7303_v59 = vadd.f32 %v15327_v62, %v7264_v42 }
 0x4d1   : > { %v7173_v19 = vrot.slane %v6758_v30, 2  ;;  %v6769_v53 = vadd.f32 %v11045_v5, %v15204_v41  ;;  %v16924_v30 = vld [vmem:[#allocation10_spill] sm:$0xff] }
 0x4d2   : > { %v7302_v60 = vadd.f32 %v15327_v62, %v7263_v6  ;;  %v6760_v61 = vpop.f32.mrf.mxu0  ;;  %v15398_v50 = vpop.f32.mrf.mxu1  ;;  %v7335_v42 = vmax.f32 %v7303_v59, 0.0 }
 0x4d3   : > { %v7174_v26 = vsel %vm2481_vm3, %v7171_v13, %v7173_v19  ;;  %v7178_v4 = vrot.slane %v6769_v53, 2  ;;  %v6761_v9 = vadd.f32 %v6760_v61, %v15189_v18 }
 0x4d4   : > { %v7334_v55 = vmax.f32 %v7302_v60, 0.0  ;;  %v7265_v46 = vadd.f32 %v7174_v26, %v16922_v40  ;;  %v11048_v16 = vpop.f32.mrf.mxu0  ;;  %v6633_v21 = vpop.f32.mrf.mxu1 }
 0x4d5   : > { %v7179_v41 = vsel %vm2481_vm3, %v7176_v58, %v7178_v4  ;;  %v7175_v0 = vrot.slane %v6761_v9, 2  ;;  %v6782_v14 = vadd.f32 %v11048_v16, %v15229_v8 }
 0x4d6   : > { %v7267_v49 = vadd.f32 %v7179_v41, %v16923_v52  ;;  %v6773_v35 = vpop.f32.mrf.mxu0  ;;  %v7360_v54 = vpack.c.bf16 %v7334_v55, %v7333_v22  ;;  %v7304_v13 = vadd.f32 %v15327_v62, %v7265_v46  ;;  %v15407_v1 = vpop.f32.mrf.mxu1 }
 0x4d7   : > { %v7177_v18 = vsel %vm2481_vm3, %v7175_v0, %v7176_v58  ;;  %v6774_v36 = vadd.f32 %v6773_v35, %v15208_v15  ;;  %v7183_v58 = vrot.slane %v6782_v14, 2 }
 0x4d8   : > { %v7306_v31 = vadd.f32 %v15327_v62, %v7267_v49  ;;  %v7266_v32 = vadd.f32 %v7177_v18, %v16924_v30  ;;  %v11049_v39 = vpop.f32.mrf.mxu0  ;;  %11095 = vmatmul.mubr.bf16.gmra.mxu0 %v7360_v54  ;;  %v7336_v56 = vmax.f32 %v7304_v13, 0.0  ;;  %v6638_v6 = vpop.f32.mrf.mxu1  ;;  %v16927_v30 = vld [vmem:[#allocation21_spill] sm:$0xff] }
 0x4d9   : > { %v7180_v60 = vrot.slane %v6774_v36, 2  ;;  %v6785_v8 = vadd.f32 %v11049_v39, %v15233_v2  ;;  %v16925_v2 = vld [vmem:[#allocation14_spill] sm:$0xff] }
 0x4da   : > { %v7305_v5 = vadd.f32 %v15327_v62, %v7266_v32  ;;  %v6776_v23 = vpop.f32.mrf.mxu0  ;;  %v7361_v19 = vpack.c.bf16 %v7336_v56, %v7335_v42  ;;  %v15415_v53 = vpop.f32.mrf.mxu1  ;;  %v7338_v61 = vmax.f32 %v7306_v31, 0.0 }
 0x4db   : > { %v6777_v15 = vadd.f32 %v6776_v23, %v15215_v20  ;;  %v7185_v16 = vrot.slane %v6785_v8, 2  ;;  %v16926_v20 = vld [vmem:[#allocation17_spill] sm:$0xff] }
 0x4dc   : > { %v7337_v26 = vmax.f32 %v7305_v5, 0.0  ;;  %v11052_v4 = vpop.f32.mrf.mxu0  ;;  %11098 = vmatprep.mubr.bf16.mxu0 %v7361_v19  ;;  %v6641_v9 = vpop.f32.mrf.mxu1 }
 0x4dd   : > { %v7181_v22 = vrot.slane %v6777_v15, 2  ;;  %v6798_v55 = vadd.f32 %v11052_v4, %v15267_v57  ;;  %v16928_v15 = vld [vmem:[#allocation39_spill] sm:$0xff] }
 0x4de   : > { %v6789_v40 = vpop.f32.mrf.mxu0  ;;  %v7362_v46 = vpack.c.bf16 %v7338_v61, %v7337_v26  ;;  %v16929_v61 = vld [vmem:[#allocation35_spill] sm:$0xff] }
 0x4df   : > { %v7182_v59 = vsel %vm2481_vm3, %v7180_v60, %v7181_v22  ;;  %v7184_v21 = vsel %vm2481_vm3, %v7181_v22, %v7183_v58  ;;  %v6790_v41 = vadd.f32 %v6789_v40, %v15240_v33  ;;  %v7190_v35 = vrot.slane %v6798_v55, 2 }
 0x4e0   : > { %v7268_v0 = vadd.f32 %v7182_v59, %v16925_v2  ;;  %v7269_v52 = vadd.f32 %v7184_v21, %v16926_v20  ;;  %v11053_v49 = vpop.f32.mrf.mxu0  ;;  %11099 = vmatmul.mubr.bf16.gmra.mxu0 %v7362_v46 }
 0x4e1   : > { %v7186_v54 = vrot.slane %v6790_v41, 2  ;;  %v6801_v13 = vadd.f32 %v11053_v49, %v15280_v28  ;;  %v16930_v41 = vld [vmem:[#allocation36_spill] sm:$0xff] }
 0x4e2   : > { %v6792_v57 = vpop.f32.mrf.mxu0  ;;  %v7307_v18 = vadd.f32 %v15327_v62, %v7268_v0  ;;  %v7308_v14 = vadd.f32 %v15327_v62, %v7269_v52 }
 0x4e3   : > { %v7187_v36 = vsel %vm2481_vm3, %v7185_v16, %v7186_v54  ;;  %v7191_v31 = vrot.slane %v6801_v13, 2  ;;  %v6793_v33 = vadd.f32 %v6792_v57, %v15257_v25 }
 0x4e4   : > { %v7270_v32 = vadd.f32 %v7187_v36, %v16927_v30  ;;  %v11056_v39 = vpop.f32.mrf.mxu0  ;;  %v7339_v42 = vmax.f32 %v7307_v18, 0.0  ;;  %v7340_v56 = vmax.f32 %v7308_v14, 0.0 }
 0x4e5   : > { %v7192_v6 = vsel %vm2481_vm3, %v7190_v35, %v7191_v31  ;;  %v7188_v5 = vrot.slane %v6793_v33, 2  ;;  %v6814_v28 = vadd.f32 %v11056_v39, %v15307_v45 }
 0x4e6   : > { %v6805_v23 = vpop.f32.mrf.mxu0  ;;  %v7363_v19 = vpack.c.bf16 %v7340_v56, %v7339_v42  ;;  %v7309_v8 = vadd.f32 %v15327_v62, %v7270_v32  ;;  %v7272_v25 = vadd.f32 %v7192_v6, %v16928_v15 }
 0x4e7   : > { %v7189_v58 = vsel %vm2481_vm3, %v7186_v54, %v7188_v5  ;;  %v6806_v60 = vadd.f32 %v6805_v23, %v15294_v10  ;;  %v7196_v9 = vrot.slane %v6814_v28, 2 }
 0x4e8   : > { %v7271_v26 = vadd.f32 %v7189_v58, %v16929_v61  ;;  %v11057_v4 = vpop.f32.mrf.mxu0  ;;  %11102 = vmatprep.mubr.bf16.mxu0 %v7363_v19  ;;  %v7341_v59 = vmax.f32 %v7309_v8, 0.0  ;;  %v7311_v20 = vadd.f32 %v15327_v62, %v7272_v25  ;;  %v16931_v61 = vld [vmem:[#allocation20_spill] sm:$0xff] }
 0x4e9   : > { %v7193_v22 = vrot.slane %v6806_v60, 2  ;;  %v6817_v55 = vadd.f32 %v11057_v4, %v15314_v48 }
 0x4ea   : > { %v7310_v45 = vadd.f32 %v15327_v62, %v7271_v26  ;;  %v6808_v40 = vpop.f32.mrf.mxu0  ;;  %v7343_v33 = vmax.f32 %v7311_v20, 0.0  ;;  %v16932_v26 = vld [vmem:[#allocation6_spill] sm:$0xff] }
 0x4eb   : > { %v7194_v46 = vsel %vm2481_vm3, %v7191_v31, %v7193_v22  ;;  %v7198_v16 = vrot.slane %v6817_v55, 2  ;;  %v6809_v10 = vadd.f32 %v6808_v40, %v15301_v11 }
 0x4ec   : > { %v7342_v21 = vmax.f32 %v7310_v45, 0.0  ;;  %v7273_v2 = vadd.f32 %v7194_v46, %v16930_v41  ;;  %v11060_v0 = vpop.f32.mrf.mxu0 }
 0x4ed   : > { %v7199_v52 = vsel %vm2481_vm3, %v7196_v9, %v7198_v16  ;;  %v7195_v49 = vrot.slane %v6809_v10, 2  ;;  %v6830_v11 = vadd.f32 %v11060_v0, %v15341_v34 }
 0x4ee   : > { %v7275_v48 = vadd.f32 %v7199_v52, %v15200_v47  ;;  %v6821_v35 = vpop.f32.mrf.mxu0  ;;  %v7364_v54 = vpack.c.bf16 %v7342_v21, %v7341_v59  ;;  %v7312_v13 = vadd.f32 %v15327_v62, %v7273_v2 }
 0x4ef   : > { %v7197_v57 = vsel %vm2481_vm3, %v7195_v49, %v7196_v9  ;;  %v6822_v18 = vadd.f32 %v6821_v35, %v15318_v43  ;;  %v7203_v42 = vrot.slane %v6830_v11, 2 }
 0x4f0   : > { %v7314_v14 = vadd.f32 %v15327_v62, %v7275_v48  ;;  %v7274_v36 = vadd.f32 %v7197_v57, %v15193_v24  ;;  %v11061_v31 = vpop.f32.mrf.mxu0  ;;  %11103 = vmatmul.mubr.bf16.gmra.mxu0 %v7364_v54  ;;  %v7344_v30 = vmax.f32 %v7312_v13, 0.0 }
 0x4f1   : > { %v7200_v56 = vrot.slane %v6822_v18, 2  ;;  %v6833_v6 = vadd.f32 %v11061_v31, %v15350_v29 }
 0x4f2   : > { %v7313_v47 = vadd.f32 %v15327_v62, %v7274_v36  ;;  %v6824_v32 = vpop.f32.mrf.mxu0  ;;  %v7365_v39 = vpack.c.bf16 %v7344_v30, %v7343_v33  ;;  %v7346_v5 = vmax.f32 %v7314_v14, 0.0 }
 0x4f3   : > { %v6825_v34 = vadd.f32 %v6824_v32, %v15334_v63  ;;  %v7205_v60 = vrot.slane %v6833_v6, 2  ;;  %v16933_v32 = vld [vmem:[#allocation13_spill] sm:$0xff] }
 0x4f4   : > { %v7345_v43 = vmax.f32 %v7313_v47, 0.0  ;;  %v11064_v28 = vpop.f32.mrf.mxu0  ;;  %11106 = vmatprep.mubr.bf16.mxu0 %v7365_v39 }
 0x4f5   : > { %v7201_v23 = vrot.slane %v6825_v34, 2  ;;  %v6846_v24 = vadd.f32 %v11064_v28, %v15372_v7  ;;  %v16934_v34 = vld [vmem:[#allocation40_spill] sm:$0xff] }
 0x4f6   : > { %v6837_v19 = vpop.f32.mrf.mxu0  ;;  %v7366_v58 = vpack.c.bf16 %v7346_v5, %v7345_v43 }
 0x4f7   : > { %v7202_v8 = vsel %vm2481_vm3, %v7200_v56, %v7201_v23  ;;  %v7204_v15 = vsel %vm2481_vm3, %v7201_v23, %v7203_v42  ;;  %v6838_v25 = vadd.f32 %v6837_v19, %v15359_v51  ;;  %v7210_v9 = vrot.slane %v6846_v24, 2 }
 0x4f8   : > { %v7276_v29 = vadd.f32 %v7202_v8, %v16931_v61  ;;  %v7277_v63 = vadd.f32 %v7204_v15, %v16932_v26  ;;  %v11065_v4 = vpop.f32.mrf.mxu0  ;;  %11107 = vmatmul.mubr.bf16.gmra.mxu0 %v7366_v58  ;;  %v15490_v8 = vld [vmem:[%s16549_s5] ss:$0 sm:$0xff] }
 0x4f9   : > { %v7206_v22 = vrot.slane %v6838_v25, 2  ;;  %v6849_v55 = vadd.f32 %v11065_v4, %v15382_v37 }
 0x4fa   : > { %v6840_v7 = vpop.f32.mrf.mxu0  ;;  %v7315_v45 = vadd.f32 %v15327_v62, %v7276_v29  ;;  %v7316_v40 = vadd.f32 %v15327_v62, %v7277_v63 }
 0x4fb   : > { %v7207_v46 = vsel %vm2481_vm3, %v7205_v60, %v7206_v22  ;;  %v7211_v16 = vrot.slane %v6849_v55, 2  ;;  %v6841_v51 = vadd.f32 %v6840_v7, %v15367_v27 }
 0x4fc   : > { %v7278_v10 = vadd.f32 %v7207_v46, %v15237_v38  ;;  %v11068_v59 = vpop.f32.mrf.mxu0  ;;  %v7347_v21 = vmax.f32 %v7315_v45, 0.0  ;;  %v7348_v41 = vmax.f32 %v7316_v40, 0.0  ;;  %v16935_v45 = vmov 0  }
 0x4fd   : > { %v7212_v2 = vsel %vm2481_vm3, %v7210_v9, %v7211_v16  ;;  %v7208_v0 = vrot.slane %v6841_v51, 2  ;;  %v6862_v37 = vadd.f32 %v11068_v59, %v15407_v1 }
 0x4fe   : > { %v6853_v20 = vpop.f32.mrf.mxu0  ;;  %v7367_v52 = vpack.c.bf16 %v7348_v41, %v7347_v21  ;;  %v7317_v35 = vadd.f32 %v15327_v62, %v7278_v10  ;;  %v7280_v27 = vadd.f32 %v7212_v2, %v15274_v12 }
 0x4ff   : > { %v7209_v49 = vsel %vm2481_vm3, %v7206_v22, %v7208_v0  ;;  %v6854_v48 = vadd.f32 %v6853_v20, %v15389_v17  ;;  %v7216_v13 = vrot.slane %v6862_v37, 2 }
 0x500   : > { %v7279_v38 = vadd.f32 %v7209_v49, %v15244_v44  ;;  %v11069_v54 = vpop.f32.mrf.mxu0  ;;  %11110 = vmatprep.mubr.bf16.mxu0 %v7367_v52  ;;  %v7349_v31 = vmax.f32 %v7317_v35, 0.0  ;;  %v7319_v44 = vadd.f32 %v15327_v62, %v7280_v27 }
 0x501   : > { %v7213_v57 = vrot.slane %v6854_v48, 2  ;;  %v6865_v11 = vadd.f32 %v11069_v54, %v15415_v53 }
 0x502   : > { %v7318_v1 = vadd.f32 %v15327_v62, %v7279_v38  ;;  %v6856_v18 = vpop.f32.mrf.mxu0  ;;  %v7351_v5 = vmax.f32 %v7319_v44, 0.0 }
 0x503   : > { %v7214_v14 = vsel %vm2481_vm3, %v7211_v16, %v7213_v57  ;;  %v7218_v36 = vrot.slane %v6865_v11, 2  ;;  %v6857_v17 = vadd.f32 %v6856_v18, %v15398_v50 }
 0x504   : > { %v7350_v33 = vmax.f32 %v7318_v1, 0.0  ;;  %v7281_v12 = vadd.f32 %v7214_v14, %v15287_v3 }
 0x505   : > { %v7219_v30 = vsel %vm2481_vm3, %v7216_v13, %v7218_v36  ;;  %v7215_v47 = vrot.slane %v6857_v17, 2 }
 0x506   : > { %v7283_v39 = vadd.f32 %v7219_v30, %v16933_v32  ;;  %v7368_v53 = vpack.c.bf16 %v7350_v33, %v7349_v31  ;;  %v7320_v42 = vadd.f32 %v15327_v62, %v7281_v12 }
 0x507   : > { %v7217_v56 = vsel %vm2481_vm3, %v7215_v47, %v7216_v13 }
 0x508   : > { %v7322_v6 = vadd.f32 %v15327_v62, %v7283_v39  ;;  %v7282_v50 = vadd.f32 %v7217_v56, %v16934_v34  ;;  %11111 = vmatmul.mubr.bf16.gmra.mxu0 %v7368_v53  ;;  %v7352_v43 = vmax.f32 %v7320_v42, 0.0 }
 0x50a   : > { %v7321_v3 = vadd.f32 %v15327_v62, %v7282_v50  ;;  %v7369_v28 = vpack.c.bf16 %v7352_v43, %v7351_v5  ;;  %v7354_v23 = vmax.f32 %v7322_v6, 0.0 }
 0x50c   : > { %v7353_v24 = vmax.f32 %v7321_v3, 0.0  ;;  %11114 = vmatprep.mubr.bf16.mxu0 %v7369_v28 }
 0x50e   : > { %v7370_v19 = vpack.c.bf16 %v7354_v23, %v7353_v24 }
 0x510   : > { %11115 = vmatmul.mubr.bf16.gmra.mxu0 %v7370_v19 }
 0x580   : > { %v11088_v58 = vpop.f32.mrf.mxu0 }
 0x581   : > { %v7485_v7 = vadd.f32 %v11088_v58, %v15490_v8 }
 0x582   : > { %v7476_v60 = vpop.f32.mrf.mxu0 }
 0x583   : > { %v7477_v25 = vadd.f32 %v15490_v8, %v7476_v60  ;;  %v7605_v16 = vmax.f32 %v7485_v7, 0.0  ;;  %v11860_v60 = vmov 0.0  }
 0x584   : > { %v11089_v15 = vpop.f32.mrf.mxu0  ;;  %7946 = vst [vmem:[#allocation2 + $0x30] sm:$0xff] %v11860_v60  ;;  %7947 = vst [vmem:[#allocation2 + $0x38] sm:$0xff] %v11860_v60 }
 0x585   : > { %v7603_v26 = vmax.f32 %v7477_v25, 0.0  ;;  %v7488_v9 = vadd.f32 %v11089_v15, %v15490_v8  ;;  %7940 = vst [vmem:[#allocation2] sm:$0xff] %v11860_v60  ;;  %7941 = vst [vmem:[#allocation2 + $0x8] sm:$0xff] %v11860_v60 }
 0x586   : > { %v7479_v61 = vpop.f32.mrf.mxu0  ;;  %7942 = vst [vmem:[#allocation2 + $0x10] sm:$0x3] %v11860_v60  ;;  %7943 = vst [vmem:[#allocation2 + $0x18] sm:$0xff] %v11860_v60 }
 0x587   : > { %v7480_v29 = vadd.f32 %v15490_v8, %v7479_v61  ;;  %v7606_v40 = vmax.f32 %v7488_v9, 0.0  ;;  %7944 = vst [vmem:[#allocation2 + $0x20] sm:$0xff] %v11860_v60  ;;  %7945 = vst [vmem:[#allocation2 + $0x28] sm:$0x3] %v11860_v60 }
 0x588   : > { %v11092_v62 = vpop.f32.mrf.mxu0  ;;  %7948 = vst [vmem:[#allocation2 + $0x40] sm:$0x3] %v11860_v60  ;;  %7949 = vst [vmem:[#allocation2 + $0x48] sm:$0xff] %v11860_v60 }
 0x589   : > { %v7604_v63 = vmax.f32 %v7480_v29, 0.0  ;;  %v7636_v51 = vpack.c.bf16 %v7606_v40, %v7605_v16  ;;  %v7501_v49 = vadd.f32 %v11092_v62, %v15490_v8  ;;  %7950 = vst [vmem:[#allocation2 + $0x50] sm:$0xff] %v11860_v60  ;;  %7951 = vst [vmem:[#allocation2 + $0x58] sm:$0x3] %v11860_v60 }
 0x58a   : > { %v7492_v4 = vpop.f32.mrf.mxu0  ;;  %7952 = vst [vmem:[#allocation2 + $0x60] sm:$0xff] %v11860_v60  ;;  %7953 = vst [vmem:[#allocation2 + $0x68] sm:$0xff] %v11860_v60 }
 0x58b   : > { %v7635_v22 = vpack.c.bf16 %v7604_v63, %v7603_v26  ;;  %v7493_v59 = vadd.f32 %v15490_v8, %v7492_v4  ;;  %v7609_v27 = vmax.f32 %v7501_v49, 0.0  ;;  %7954 = vst [vmem:[#allocation2 + $0x70] sm:$0x3] %v11860_v60  ;;  %7955 = vst [vmem:[#allocation2 + $0x78] sm:$0xff] %v11860_v60 }
 0x58c   : > { %v11093_v55 = vpop.f32.mrf.mxu0  ;;  %7956 = vst [vmem:[#allocation2 + $0x80] sm:$0xff] %v11860_v60  ;;  %7957 = vst [vmem:[#allocation2 + $0x88] sm:$0x3] %v11860_v60 }
 0x58d   : > { %7780 = vmatmul.mubr.bf16.vlgmr.msra.gmra.mxu1 %v7635_v22  ;;  %v7607_v2 = vmax.f32 %v7493_v59, 0.0  ;;  %v7504_v37 = vadd.f32 %v11093_v55, %v15490_v8  ;;  %7958 = vst [vmem:[#allocation2 + $0x90] sm:$0xff] %v11860_v60  ;;  %7959 = vst [vmem:[#allocation2 + $0x98] sm:$0xff] %v11860_v60 }
 0x58e   : > { %7789 = vmatprep.mubr.bf16.mxu1 %v16935_v45  ;;  %v7495_v46 = vpop.f32.mrf.mxu0  ;;  %7960 = vst [vmem:[#allocation2 + $0xa0] sm:$0x3] %v11860_v60  ;;  %7961 = vst [vmem:[#allocation2 + $0xa8] sm:$0xff] %v11860_v60 }
 0x58f   : > { %v7496_v10 = vadd.f32 %v15490_v8, %v7495_v46  ;;  %v7610_v48 = vmax.f32 %v7504_v37, 0.0  ;;  %7962 = vst [vmem:[#allocation2 + $0xb0] sm:$0xff] %v11860_v60  ;;  %7963 = vst [vmem:[#allocation2 + $0xb8] sm:$0x3] %v11860_v60 }
 0x590   : > { %7964 = vst [vmem:[#allocation2 + $0xc0] sm:$0xff] %v11860_v60  ;;  %7965 = vst [vmem:[#allocation2 + $0xc8] sm:$0xff] %v11860_v60 }
 0x591   : > { %v7608_v21 = vmax.f32 %v7496_v10, 0.0  ;;  %v7638_v38 = vpack.c.bf16 %v7610_v48, %v7609_v27  ;;  %7966 = vst [vmem:[#allocation2 + $0xd0] sm:$0x3] %v11860_v60  ;;  %7967 = vst [vmem:[#allocation2 + $0xd8] sm:$0xff] %v11860_v60 }
 0x592   : > { %7968 = vst [vmem:[#allocation2 + $0xe0] sm:$0xff] %v11860_v60  ;;  %7969 = vst [vmem:[#allocation2 + $0xe8] sm:$0x3] %v11860_v60 }
 0x593   : > { %v7637_v20 = vpack.c.bf16 %v7608_v21, %v7607_v2  ;;  %7970 = vst [vmem:[#allocation2 + $0xf0] sm:$0xff] %v11860_v60  ;;  %7971 = vst [vmem:[#allocation2 + $0xf8] sm:$0xff] %v11860_v60 }
 0x594   : > { %7972 = vst [vmem:[#allocation2 + $0x100] sm:$0x3] %v11860_v60  ;;  %7973 = vst [vmem:[#allocation2 + $0x108] sm:$0xff] %v11860_v60 }
 0x595   : > { %7790 = vmatmul.mubr.bf16.gmra.mxu1 %v7636_v51  ;;  %7974 = vst [vmem:[#allocation2 + $0x110] sm:$0xff] %v11860_v60  ;;  %7975 = vst [vmem:[#allocation2 + $0x118] sm:$0x3] %v11860_v60 }
 0x596   : > { %7799 = vmatprep.mubr.bf16.mxu1 %v16935_v45  ;;  %7976 = vst [vmem:[#allocation2 + $0x120] sm:$0xff] %v11860_v60  ;;  %7977 = vst [vmem:[#allocation2 + $0x128] sm:$0xff] %v11860_v60 }
 0x597   : > { %7978 = vst [vmem:[#allocation2 + $0x130] sm:$0x3] %v11860_v60  ;;  %7979 = vst [vmem:[#allocation2 + $0x138] sm:$0xff] %v11860_v60 }
 0x598   : > { %v11096_v41 = vpop.f32.mrf.mxu0  ;;  %7980 = vst [vmem:[#allocation2 + $0x140] sm:$0xff] %v11860_v60  ;;  %7981 = vst [vmem:[#allocation2 + $0x148] sm:$0x3] %v11860_v60 }
 0x599   : > { %v7517_v31 = vadd.f32 %v11096_v41, %v15490_v8  ;;  %7982 = vst [vmem:[#allocation2 + $0x150] sm:$0xff] %v11860_v60  ;;  %7983 = vst [vmem:[#allocation2 + $0x158] sm:$0xff] %v11860_v60 }
 0x59a   : > { %v7508_v0 = vpop.f32.mrf.mxu0  ;;  %7984 = vst [vmem:[#allocation2 + $0x160] sm:$0x3] %v11860_v60  ;;  %7985 = vst [vmem:[#allocation2 + $0x168] sm:$0xff] %v11860_v60 }
 0x59b   : > { %v7509_v57 = vadd.f32 %v15490_v8, %v7508_v0  ;;  %v7613_v44 = vmax.f32 %v7517_v31, 0.0  ;;  %7986 = vst [vmem:[#allocation2 + $0x170] sm:$0xff] %v11860_v60  ;;  %7987 = vst [vmem:[#allocation2 + $0x178] sm:$0x3] %v11860_v60 }
 0x59c   : > { %v11097_v52 = vpop.f32.mrf.mxu0  ;;  %7988 = vst [vmem:[#allocation2 + $0x180] sm:$0xff] %v11860_v60  ;;  %7989 = vst [vmem:[#allocation2 + $0x188] sm:$0xff] %v11860_v60 }
 0x59d   : > { %7800 = vmatmul.mubr.bf16.gmra.mxu1 %v7637_v20  ;;  %v7611_v18 = vmax.f32 %v7509_v57, 0.0  ;;  %v7520_v14 = vadd.f32 %v11097_v52, %v15490_v8  ;;  %7990 = vst [vmem:[#allocation2 + $0x190] sm:$0x3] %v11860_v60  ;;  %7991 = vst [vmem:[#allocation2 + $0x198] sm:$0xff] %v11860_v60 }
 0x59e   : > { %7809 = vmatprep.mubr.bf16.mxu1 %v16935_v45  ;;  %v7511_v35 = vpop.f32.mrf.mxu0  ;;  %7992 = vst [vmem:[#allocation2 + $0x1a0] sm:$0xff] %v11860_v60  ;;  %7993 = vst [vmem:[#allocation2 + $0x1a8] sm:$0x3] %v11860_v60 }
 0x59f   : > { %v7512_v54 = vadd.f32 %v15490_v8, %v7511_v35  ;;  %v7614_v33 = vmax.f32 %v7520_v14, 0.0 }
 0x5a0   : > { %v11100_v13 = vpop.f32.mrf.mxu0 }
 0x5a1   : > { %v7612_v11 = vmax.f32 %v7512_v54, 0.0  ;;  %v7640_v30 = vpack.c.bf16 %v7614_v33, %v7613_v44  ;;  %v7533_v5 = vadd.f32 %v11100_v13, %v15490_v8 }
 0x5a2   : > { %v7524_v1 = vpop.f32.mrf.mxu0 }
 0x5a3   : > { %v7639_v36 = vpack.c.bf16 %v7612_v11, %v7611_v18  ;;  %v7525_v39 = vadd.f32 %v15490_v8, %v7524_v1  ;;  %v7617_v28 = vmax.f32 %v7533_v5, 0.0 }
 0x5a4   : > { %v11101_v17 = vpop.f32.mrf.mxu0 }
 0x5a5   : > { %7810 = vmatmul.mubr.bf16.gmra.mxu1 %v7638_v38  ;;  %v7615_v56 = vmax.f32 %v7525_v39, 0.0  ;;  %v7536_v6 = vadd.f32 %v11101_v17, %v15490_v8 }
 0x5a6   : > { %7819 = vmatprep.mubr.bf16.mxu1 %v16935_v45  ;;  %v7527_v12 = vpop.f32.mrf.mxu0 }
 0x5a7   : > { %v7528_v47 = vadd.f32 %v15490_v8, %v7527_v12  ;;  %v7618_v43 = vmax.f32 %v7536_v6, 0.0 }
 0x5a9   : > { %v7616_v53 = vmax.f32 %v7528_v47, 0.0  ;;  %v7642_v23 = vpack.c.bf16 %v7618_v43, %v7617_v28 }
 0x5ab   : > { %v7641_v34 = vpack.c.bf16 %v7616_v53, %v7615_v56  ;;  %v7995_v56 = vld [vmem:[#allocation2 + $0x32] sm:$0xff] }
 0x5ad   : > { %7820 = vmatmul.mubr.bf16.gmra.mxu1 %v7639_v36 }
 0x5ae   : > { %7829 = vmatprep.mubr.bf16.mxu1 %v16935_v45 }
 0x5b0   : > { %v15510_v32 = vpop.f32.mrf.mxu0 }
 0x5b1   : > { %v7549_v63 = vadd.f32 %v15510_v32, %v15490_v8 }
 0x5b2   : > { %v7540_v42 = vpop.f32.mrf.mxu0 }
 0x5b3   : > { %v15525_v58 = vadd.f32 %v15490_v8, %v7540_v42  ;;  %v7621_v22 = vmax.f32 %v7549_v63, 0.0 }
 0x5b4   : > { %v15515_v50 = vpop.f32.mrf.mxu0 }
 0x5b5   : > { %7830 = vmatmul.mubr.bf16.gmra.mxu1 %v7640_v30  ;;  %v7619_v61 = vmax.f32 %v15525_v58, 0.0  ;;  %v7552_v29 = vadd.f32 %v15515_v50, %v15490_v8 }
 0x5b6   : > { %7839 = vmatprep.mubr.bf16.mxu1 %v16935_v45  ;;  %v7543_v3 = vpop.f32.mrf.mxu0 }
 0x5b7   : > { %v15520_v24 = vadd.f32 %v15490_v8, %v7543_v3  ;;  %v7622_v4 = vmax.f32 %v7552_v29, 0.0  ;;  %v7997_v3 = vld [vmem:[#allocation2 + $0x4a] sm:$0xff] }
 0x5b8   : > { %v15522_v19 = vpop.f32.mrf.mxu0 }
 0x5b9   : > { %v7620_v15 = vmax.f32 %v15520_v24, 0.0  ;;  %v7644_v55 = vpack.c.bf16 %v7622_v4, %v7621_v22  ;;  %v7565_v2 = vadd.f32 %v15522_v19, %v15490_v8  ;;  %v7998_v19 = vld [vmem:[#allocation2 + $0x52] sm:$0xff]  ;;  %v8001_v22 = vld [vmem:[#allocation2 + $0x7a] sm:$0xff] }
 0x5ba   : > { %v7556_v25 = vpop.f32.mrf.mxu0 }
 0x5bb   : > { %v7643_v62 = vpack.c.bf16 %v7620_v15, %v7619_v61  ;;  %v7557_v46 = vadd.f32 %v15490_v8, %v7556_v25  ;;  %v7625_v20 = vmax.f32 %v7565_v2, 0.0  ;;  %v7999_v25 = vld [vmem:[#allocation2 + $0x62] sm:$0xff] }
 0x5bc   : > { %v11109_v26 = vpop.f32.mrf.mxu0 }
 0x5bd   : > { %7840 = vmatmul.mubr.bf16.gmra.mxu1 %v7641_v34  ;;  %v7623_v10 = vmax.f32 %v7557_v46, 0.0  ;;  %v7568_v59 = vadd.f32 %v11109_v26, %v15490_v8  ;;  %v8000_v26 = vld [vmem:[#allocation2 + $0x6a] sm:$0xff]  ;;  %v8002_v46 = vld [vmem:[#allocation2 + $0x82] sm:$0xff] }
 0x5be   : > { %7849 = vmatprep.mubr.bf16.mxu1 %v16935_v45  ;;  %v7559_v9 = vpop.f32.mrf.mxu0 }
 0x5bf   : > { %v7560_v7 = vadd.f32 %v15490_v8, %v7559_v9  ;;  %v7626_v0 = vmax.f32 %v7568_v59, 0.0  ;;  %v8003_v59 = vld [vmem:[#allocation2 + $0x92] sm:$0xff] }
 0x5c1   : > { %v7624_v16 = vmax.f32 %v7560_v7, 0.0  ;;  %v7646_v52 = vpack.c.bf16 %v7626_v0, %v7625_v20  ;;  %v8004_v0 = vld [vmem:[#allocation2 + $0x9a] sm:$0xff] }
 0x5c3   : > { %v7645_v21 = vpack.c.bf16 %v7624_v16, %v7623_v10 }
 0x5c5   : > { %7850 = vmatmul.mubr.bf16.gmra.mxu1 %v7642_v23 }
 0x5c6   : > { %7859 = vmatprep.mubr.bf16.mxu1 %v16935_v45 }
 0x5c8   : > { %v11112_v40 = vpop.f32.mrf.mxu0 }
 0x5c9   : > { %v7581_v1 = vadd.f32 %v11112_v40, %v15490_v8 }
 0x5ca   : > { %v7572_v51 = vpop.f32.mrf.mxu0 }
 0x5cb   : > { %v7573_v35 = vadd.f32 %v15490_v8, %v7572_v51  ;;  %v7629_v36 = vmax.f32 %v7581_v1, 0.0 }
 0x5cc   : > { %v11113_v41 = vpop.f32.mrf.mxu0 }
 0x5cd   : > { %7860 = vmatmul.mubr.bf16.gmra.mxu1 %v7643_v62  ;;  %v7627_v54 = vmax.f32 %v7573_v35, 0.0  ;;  %v7584_v13 = vadd.f32 %v11113_v41, %v15490_v8 }
 0x5ce   : > { %7869 = vmatprep.mubr.bf16.mxu1 %v16935_v45  ;;  %v7575_v37 = vpop.f32.mrf.mxu0 }
 0x5cf   : > { %v7576_v49 = vadd.f32 %v15490_v8, %v7575_v37  ;;  %v7630_v18 = vmax.f32 %v7584_v13, 0.0 }
 0x5d0   : > { %v11116_v48 = vpop.f32.mrf.mxu0 }
 0x5d1   : > { %v7628_v27 = vmax.f32 %v7576_v49, 0.0  ;;  %v7648_v17 = vpack.c.bf16 %v7630_v18, %v7629_v36  ;;  %v7597_v32 = vadd.f32 %v11116_v48, %v15490_v8  ;;  %v8005_v49 = vld [vmem:[#allocation2 + $0xaa] sm:$0xff] }
 0x5d2   : > { %v7588_v38 = vpop.f32.mrf.mxu0  ;;  %v8008_v36 = vld [vmem:[#allocation2 + $0xca] sm:$0xff] }
 0x5d3   : > { %v7647_v57 = vpack.c.bf16 %v7628_v27, %v7627_v54  ;;  %v7589_v33 = vadd.f32 %v15490_v8, %v7588_v38  ;;  %v7633_v53 = vmax.f32 %v7597_v32, 0.0  ;;  %v8006_v38 = vld [vmem:[#allocation2 + $0xb2] sm:$0xff]  ;;  %v8010_v32 = vld [vmem:[#allocation2 + $0xe2] sm:$0xff] }
 0x5d4   : > { %v11117_v11 = vpop.f32.mrf.mxu0 }
 0x5d5   : > { %7870 = vmatmul.mubr.bf16.gmra.mxu1 %v7644_v55  ;;  %v7631_v44 = vmax.f32 %v7589_v33, 0.0  ;;  %v7600_v30 = vadd.f32 %v11117_v11, %v15490_v8  ;;  %v8007_v11 = vld [vmem:[#allocation2 + $0xc2] sm:$0xff] }
 0x5d6   : > { %7879 = vmatprep.mubr.bf16.mxu1 %v16935_v45  ;;  %v7591_v14 = vpop.f32.mrf.mxu0 }
 0x5d7   : > { %v7592_v31 = vadd.f32 %v15490_v8, %v7591_v14  ;;  %v7634_v39 = vmax.f32 %v7600_v30, 0.0  ;;  %v7996_v8 = vld [vmem:[#allocation2 + $0x3a] sm:$0xff] }
 0x5d9   : > { %v7632_v12 = vmax.f32 %v7592_v31, 0.0  ;;  %v7650_v42 = vpack.c.bf16 %v7634_v39, %v7633_v53 }
 0x5db   : > { %v7649_v47 = vpack.c.bf16 %v7632_v12, %v7631_v44  ;;  %v8009_v12 = vld [vmem:[#allocation2 + $0xda] sm:$0xff] }
 0x5dd   : > { %7880 = vmatmul.mubr.bf16.gmra.mxu1 %v7645_v21 }
 0x5de   : > { %7889 = vmatprep.mubr.bf16.mxu1 %v16935_v45 }
 0x5e5   : > { %7890 = vmatmul.mubr.bf16.gmra.mxu1 %v7646_v52 }
 0x5e6   : > { %7899 = vmatprep.mubr.bf16.mxu1 %v16935_v45 }
 0x5ed   : > { %7900 = vmatmul.mubr.bf16.gmra.mxu1 %v7647_v57 }
 0x5ee   : > { %7909 = vmatprep.mubr.bf16.mxu1 %v16935_v45 }
 0x5f5   : > { %7910 = vmatmul.mubr.bf16.gmra.mxu1 %v7648_v17 }
 0x5f6   : > { %7919 = vmatprep.mubr.bf16.mxu1 %v16935_v45 }
 0x5fd   : > { %7920 = vmatmul.mubr.bf16.gmra.mxu1 %v7649_v47 }
 0x5fe   : > { %7929 = vmatprep.mubr.bf16.mxu1 %v16935_v45 }
 0x605   : > { %7930 = vmatmul.mubr.bf16.gmra.mxu1 %v7650_v42 }
 0x64d   : > { %v15554_v6 = vpop.f32.mrf.mxu1 }
 0x64e   : > { %16936 = vst [vmem:[#allocation48_spill] sm:$0xff] %v15554_v6  ;;  %v8027_v34 = vadd.f32 %v7995_v56, %v15554_v6  ;;  %8156 = vrot.lane.b32.xlu0 %v15554_v6, %s11861_s12  ;;  %v8011_v56 = vld [vmem:[#allocation2 + $0xf2] sm:$0xff] }
 0x64f   : > { %v15559_v50 = vpop.f32.mrf.mxu1 }
 0x650   : > { %16937 = vst [vmem:[#allocation52_spill] sm:$0xff] %v15559_v50  ;;  %8060 = vst.msk [vmem:[#allocation2 + $0x32] sm:$0xff] %vm8059_vm4, %v8027_v34 }
 0x651   : > { %v15562_v45 = vpop.f32.mrf.mxu1 }
 0x652   : > { %16938 = vst [vmem:[#allocation50_spill] sm:$0xff] %v15562_v45  ;;  %v8028_v5 = vadd.f32 %v7996_v8, %v15562_v45  ;;  %8348 = vrot.lane.b32.xlu0 %v15554_v6, %s11862_s13  ;;  %8350 = vrot.lane.b32.xlu1 %v15562_v45, %s11862_s13 }
 0x653   : > { %v15569_v43 = vpop.f32.mrf.mxu1 }
 0x654   : > { %16939 = vst [vmem:[#allocation43_spill] sm:$0xff] %v15569_v43  ;;  %8061 = vst.msk [vmem:[#allocation2 + $0x3a] sm:$0xff] %vm8059_vm4, %v8028_v5 }
 0x655   : > { %v15572_v28 = vpop.f32.mrf.mxu1 }
 0x656   : > { %v8029_v23 = vadd.f32 %v7997_v3, %v15572_v28  ;;  %8541 = vrot.lane.b32.xlu0 %v15554_v6, %s11863_s14  ;;  %8543 = vrot.lane.b32.xlu1 %v15562_v45, %s11863_s14  ;;  %v8012_v3 = vld [vmem:[#allocation2 + $0xfa] sm:$0xff] }
 0x657   : > { %v15579_v24 = vpop.f32.mrf.mxu1 }
 0x658   : > { %8062 = vst.msk [vmem:[#allocation2 + $0x4a] sm:$0xff] %vm8059_vm4, %v8029_v23 }
 0x659   : > { %v15582_v58 = vpop.f32.mrf.mxu1 }
 0x65a   : > { %v8030_v60 = vadd.f32 %v7998_v19, %v15582_v58  ;;  %8733 = vrot.lane.b32.xlu0 %v15554_v6, %s11864_s15  ;;  %8735 = vrot.lane.b32.xlu1 %v15562_v45, %s11864_s15 }
 0x65b   : > { %v15589_v15 = vpop.f32.mrf.mxu1 }
 0x65c   : > { %8063 = vst.msk [vmem:[#allocation2 + $0x52] sm:$0xff] %vm8059_vm4, %v8030_v60 }
 0x65d   : > { %v15592_v61 = vpop.f32.mrf.mxu1 }
 0x65e   : > { %v8031_v29 = vadd.f32 %v7999_v25, %v15592_v61  ;;  %8925 = vrot.lane.b32.xlu0 %v15554_v6, %s11865_s16  ;;  %8927 = vrot.lane.b32.xlu1 %v15562_v45, %s11865_s16 }
 0x65f   : > { %v15599_v62 = vpop.f32.mrf.mxu1 }
 0x660   : > { %8064 = vst.msk [vmem:[#allocation2 + $0x62] sm:$0xff] %vm8059_vm4, %v8031_v29 }
 0x661   : > { %v15602_v63 = vpop.f32.mrf.mxu1 }
 0x662   : > { %v8032_v4 = vadd.f32 %v8000_v26, %v15602_v63  ;;  %9117 = vrot.lane.b32.xlu0 %v15554_v6, %s11866_s17  ;;  %9119 = vrot.lane.b32.xlu1 %v15562_v45, %s11866_s17  ;;  %v8014_v26 = vld [vmem:[#allocation2 + $0x112] sm:$0xff] }
 0x663   : > { %v15609_v9 = vpop.f32.mrf.mxu1 }
 0x664   : > { %8065 = vst.msk [vmem:[#allocation2 + $0x6a] sm:$0xff] %vm8059_vm4, %v8032_v4 }
 0x665   : > { %v15612_v55 = vpop.f32.mrf.mxu1 }
 0x666   : > { %v8033_v7 = vadd.f32 %v8001_v22, %v15612_v55  ;;  %8158 = vrot.lane.b32.xlu0 %v15562_v45, %s11861_s12  ;;  %8160 = vrot.lane.b32.xlu1 %v15572_v28, %s11861_s12 }
 0x667   : > { %v15619_v40 = vpop.f32.mrf.mxu1 }
 0x668   : > { %8066 = vst.msk [vmem:[#allocation2 + $0x7a] sm:$0xff] %vm8059_vm4, %v8033_v7 }
 0x669   : > { %v15622_v16 = vpop.f32.mrf.mxu1 }
 0x66a   : > { %v8034_v51 = vadd.f32 %v8002_v46, %v15622_v16  ;;  %8352 = vrot.lane.b32.xlu0 %v15572_v28, %s11862_s13  ;;  %8162 = vrot.lane.b32.xlu1 %v15582_v58, %s11861_s12  ;;  %v8015_v46 = vld [vmem:[#allocation2 + $0x122] sm:$0xff] }
 0x66b   : > { %v15629_v10 = vpop.f32.mrf.mxu1 }
 0x66c   : > { %8067 = vst.msk [vmem:[#allocation2 + $0x82] sm:$0xff] %vm8059_vm4, %v8034_v51 }
 0x66d   : > { %v15632_v21 = vpop.f32.mrf.mxu1 }
 0x66e   : > { %v8035_v41 = vadd.f32 %v8003_v59, %v15632_v21  ;;  %8545 = vrot.lane.b32.xlu0 %v15572_v28, %s11863_s14  ;;  %8354 = vrot.lane.b32.xlu1 %v15582_v58, %s11862_s13 }
 0x66f   : > { %v15639_v2 = vpop.f32.mrf.mxu1 }
 0x670   : > { %8068 = vst.msk [vmem:[#allocation2 + $0x92] sm:$0xff] %vm8059_vm4, %v8035_v41 }
 0x671   : > { %v15642_v37 = vpop.f32.mrf.mxu1 }
 0x672   : > { %v8036_v20 = vadd.f32 %v8004_v0, %v15642_v37  ;;  %8737 = vrot.lane.b32.xlu0 %v15572_v28, %s11864_s15  ;;  %8547 = vrot.lane.b32.xlu1 %v15582_v58, %s11863_s14 }
 0x673   : > { %v15649_v52 = vpop.f32.mrf.mxu1 }
 0x674   : > { %8069 = vst.msk [vmem:[#allocation2 + $0x9a] sm:$0xff] %vm8059_vm4, %v8036_v20 }
 0x675   : > { %v15652_v48 = vpop.f32.mrf.mxu1 }
 0x676   : > { %v8037_v35 = vadd.f32 %v8005_v49, %v15652_v48  ;;  %8929 = vrot.lane.b32.xlu0 %v15572_v28, %s11865_s16  ;;  %8739 = vrot.lane.b32.xlu1 %v15582_v58, %s11864_s15 }
 0x677   : > { %v15659_v27 = vpop.f32.mrf.mxu1 }
 0x678   : > { %8070 = vst.msk [vmem:[#allocation2 + $0xaa] sm:$0xff] %vm8059_vm4, %v8037_v35 }
 0x679   : > { %v15662_v54 = vpop.f32.mrf.mxu1 }
 0x67a   : > { %v8038_v13 = vadd.f32 %v8006_v38, %v15662_v54  ;;  %9121 = vrot.lane.b32.xlu0 %v15572_v28, %s11866_s17  ;;  %8931 = vrot.lane.b32.xlu1 %v15582_v58, %s11865_s16 }
 0x67b   : > { %v15669_v57 = vpop.f32.mrf.mxu1 }
 0x67c   : > { %8071 = vst.msk [vmem:[#allocation2 + $0xb2] sm:$0xff] %vm8059_vm4, %v8038_v13 }
 0x67d   : > { %v15672_v1 = vpop.f32.mrf.mxu1 }
 0x67e   : > { %v8039_v18 = vadd.f32 %v8007_v11, %v15672_v1  ;;  %9313 = vrot.lane.b32.xlu0 %v15572_v28, %s11867_s19  ;;  %9123 = vrot.lane.b32.xlu1 %v15582_v58, %s11866_s17  ;;  %v8018_v11 = vld [vmem:[#allocation2 + $0x142] sm:$0xff] }
 0x67f   : > { %v15679_v14 = vpop.f32.mrf.mxu1 }
 0x680   : > { %8072 = vst.msk [vmem:[#allocation2 + $0xc2] sm:$0xff] %vm8059_vm4, %v8039_v18 }
 0x681   : > { %v15682_v17 = vpop.f32.mrf.mxu1 }
 0x682   : > { %v8040_v31 = vadd.f32 %v8008_v36, %v15682_v17  ;;  %9315 = vrot.lane.b32.xlu1 %v15582_v58, %s11867_s19  ;;  %8164 = vrot.lane.b32.xlu0 %v15592_v61, %s11861_s12  ;;  %v8013_v58 = vld [vmem:[#allocation2 + $0x10a] sm:$0xff] }
 0x683   : > { %v15689_v33 = vpop.f32.mrf.mxu1 }
 0x684   : > { %8073 = vst.msk [vmem:[#allocation2 + $0xca] sm:$0xff] %vm8059_vm4, %v8040_v31 }
 0x685   : > { %v15692_v44 = vpop.f32.mrf.mxu1 }
 0x686   : > { %v8041_v30 = vadd.f32 %v8009_v12, %v15692_v44  ;;  %8356 = vrot.lane.b32.xlu0 %v15592_v61, %s11862_s13  ;;  %8166 = vrot.lane.b32.xlu1 %v15602_v63, %s11861_s12  ;;  %v8019_v12 = vld [vmem:[#allocation2 + $0x152] sm:$0xff] }
 0x687   : > { %v15699_v47 = vpop.f32.mrf.mxu1 }
 0x688   : > { %8074 = vst.msk [vmem:[#allocation2 + $0xda] sm:$0xff] %vm8059_vm4, %v8041_v30 }
 0x689   : > { %v15702_v39 = vpop.f32.mrf.mxu1 }
 0x68a   : > { %v8042_v53 = vadd.f32 %v8010_v32, %v15702_v39  ;;  %8549 = vrot.lane.b32.xlu0 %v15592_v61, %s11863_s14  ;;  %8358 = vrot.lane.b32.xlu1 %v15602_v63, %s11862_s13 }
 0x68b   : > { %v15709_v42 = vpop.f32.mrf.mxu1 }
 0x68c   : > { %8075 = vst.msk [vmem:[#allocation2 + $0xe2] sm:$0xff] %vm8059_vm4, %v8042_v53 }
 0x68d   : > { %v15712_v34 = vpop.f32.mrf.mxu1 }
 0x68e   : > { %v8043_v8 = vadd.f32 %v8011_v56, %v15712_v34  ;;  %8741 = vrot.lane.b32.xlu0 %v15592_v61, %s11864_s15  ;;  %8551 = vrot.lane.b32.xlu1 %v15602_v63, %s11863_s14  ;;  %v8020_v56 = vld [vmem:[#allocation2 + $0x15a] sm:$0xff] }
 0x68f   : > { %v15719_v5 = vpop.f32.mrf.mxu1 }
 0x690   : > { %8076 = vst.msk [vmem:[#allocation2 + $0xf2] sm:$0xff] %vm8059_vm4, %v8043_v8 }
 0x691   : > { %v15722_v28 = vpop.f32.mrf.mxu1 }
 0x692   : > { %v8044_v23 = vadd.f32 %v8012_v3, %v15722_v28  ;;  %8933 = vrot.lane.b32.xlu0 %v15592_v61, %s11865_s16  ;;  %8743 = vrot.lane.b32.xlu1 %v15602_v63, %s11864_s15 }
 0x693   : > { %v15729_v19 = vpop.f32.mrf.mxu1 }
 0x694   : > { %8077 = vst.msk [vmem:[#allocation2 + $0xfa] sm:$0xff] %vm8059_vm4, %v8044_v23 }
 0x695   : > { %v15732_v60 = vpop.f32.mrf.mxu1 }
 0x696   : > { %v8045_v25 = vadd.f32 %v8013_v58, %v15732_v60  ;;  %9125 = vrot.lane.b32.xlu0 %v15592_v61, %s11866_s17  ;;  %8935 = vrot.lane.b32.xlu1 %v15602_v63, %s11865_s16  ;;  %v8021_v58 = vld [vmem:[#allocation2 + $0x16a] sm:$0xff] }
 0x697   : > { %v15739_v29 = vpop.f32.mrf.mxu1 }
 0x698   : > { %8078 = vst.msk [vmem:[#allocation2 + $0x10a] sm:$0xff] %vm8059_vm4, %v8045_v25 }
 0x699   : > { %v15742_v4 = vpop.f32.mrf.mxu1 }
 0x69a   : > { %v8046_v22 = vadd.f32 %v8014_v26, %v15742_v4  ;;  %9317 = vrot.lane.b32.xlu0 %v15592_v61, %s11867_s19  ;;  %9127 = vrot.lane.b32.xlu1 %v15602_v63, %s11866_s17  ;;  %v8016_v61 = vld [vmem:[#allocation2 + $0x12a] sm:$0xff] }
 0x69b   : > { %v15749_v7 = vpop.f32.mrf.mxu1 }
 0x69c   : > { %8079 = vst.msk [vmem:[#allocation2 + $0x112] sm:$0xff] %vm8059_vm4, %v8046_v22 }
 0x69d   : > { %v15752_v51 = vpop.f32.mrf.mxu1 }
 0x69e   : > { %v8047_v59 = vadd.f32 %v8015_v46, %v15752_v51  ;;  %9319 = vrot.lane.b32.xlu1 %v15602_v63, %s11867_s19  ;;  %8168 = vrot.lane.b32.xlu0 %v15612_v55, %s11861_s12  ;;  %v8017_v63 = vld [vmem:[#allocation2 + $0x13a] sm:$0xff]  ;;  %v8022_v46 = vld [vmem:[#allocation2 + $0x172] sm:$0xff] }
 0x69f   : > { %v15759_v41 = vpop.f32.mrf.mxu1 }
 0x6a0   : > { %8080 = vst.msk [vmem:[#allocation2 + $0x122] sm:$0xff] %vm8059_vm4, %v8047_v59 }
 0x6a1   : > { %v15762_v0 = vpop.f32.mrf.mxu1 }
 0x6a2   : > { %v8048_v20 = vadd.f32 %v8016_v61, %v15762_v0  ;;  %8360 = vrot.lane.b32.xlu0 %v15612_v55, %s11862_s13  ;;  %8170 = vrot.lane.b32.xlu1 %v15622_v16, %s11861_s12 }
 0x6a3   : > { %v15769_v49 = vpop.f32.mrf.mxu1 }
 0x6a4   : > { %8081 = vst.msk [vmem:[#allocation2 + $0x12a] sm:$0xff] %vm8059_vm4, %v8048_v20 }
 0x6a5   : > { %v15772_v35 = vpop.f32.mrf.mxu1 }
 0x6a6   : > { %v8049_v38 = vadd.f32 %v8017_v63, %v15772_v35  ;;  %8553 = vrot.lane.b32.xlu0 %v15612_v55, %s11863_s14  ;;  %8362 = vrot.lane.b32.xlu1 %v15622_v16, %s11862_s13 }
 0x6a7   : > { %v15779_v13 = vpop.f32.mrf.mxu1 }
 0x6a8   : > { %8082 = vst.msk [vmem:[#allocation2 + $0x13a] sm:$0xff] %vm8059_vm4, %v8049_v38 }
 0x6a9   : > { %v15782_v18 = vpop.f32.mrf.mxu1 }
 0x6aa   : > { %v8050_v36 = vadd.f32 %v8018_v11, %v15782_v18  ;;  %8745 = vrot.lane.b32.xlu0 %v15612_v55, %s11864_s15  ;;  %8555 = vrot.lane.b32.xlu1 %v15622_v16, %s11863_s14 }
 0x6ab   : > { %v15789_v31 = vpop.f32.mrf.mxu1 }
 0x6ac   : > { %8083 = vst.msk [vmem:[#allocation2 + $0x142] sm:$0xff] %vm8059_vm4, %v8050_v36 }
 0x6ad   : > { %v15792_v30 = vpop.f32.mrf.mxu1 }
 0x6ae   : > { %v8051_v32 = vadd.f32 %v8019_v12, %v15792_v30  ;;  %8937 = vrot.lane.b32.xlu0 %v15612_v55, %s11865_s16  ;;  %8747 = vrot.lane.b32.xlu1 %v15622_v16, %s11864_s15  ;;  %v8092_v12 = vld [vmem:[#allocation2 + $0x31] sm:$0xff] }
 0x6af   : > { %v15799_v53 = vpop.f32.mrf.mxu1 }
 0x6b0   : > { %8084 = vst.msk [vmem:[#allocation2 + $0x152] sm:$0xff] %vm8059_vm4, %v8051_v32 }
 0x6b1   : > { %v15802_v8 = vpop.f32.mrf.mxu1 }
 0x6b2   : > { %v8052_v3 = vadd.f32 %v8020_v56, %v15802_v8  ;;  %9129 = vrot.lane.b32.xlu0 %v15612_v55, %s11866_s17  ;;  %8939 = vrot.lane.b32.xlu1 %v15622_v16, %s11865_s16 }
 0x6b3   : > { %v15809_v23 = vpop.f32.mrf.mxu1 }
 0x6b4   : > { %8085 = vst.msk [vmem:[#allocation2 + $0x15a] sm:$0xff] %vm8059_vm4, %v8052_v3 }
 0x6b5   : > { %v15812_v25 = vpop.f32.mrf.mxu1 }
 0x6b6   : > { %v8053_v26 = vadd.f32 %v8021_v58, %v15812_v25  ;;  %9321 = vrot.lane.b32.xlu0 %v15612_v55, %s11867_s19  ;;  %9131 = vrot.lane.b32.xlu1 %v15622_v16, %s11866_s17  ;;  %v8023_v55 = vld [vmem:[#allocation2 + $0x182] sm:$0xff] }
 0x6b7   : > { %v15819_v22 = vpop.f32.mrf.mxu1 }
 0x6b8   : > { %8086 = vst.msk [vmem:[#allocation2 + $0x16a] sm:$0xff] %vm8059_vm4, %v8053_v26  ;;  %v8025_v26 = vld [vmem:[#allocation2 + $0x19a] sm:$0xff] }
 0x6b9   : > { %v15822_v59 = vpop.f32.mrf.mxu1 }
 0x6ba   : > { %v8054_v61 = vadd.f32 %v8022_v46, %v15822_v59  ;;  %9323 = vrot.lane.b32.xlu1 %v15622_v16, %s11867_s19  ;;  %8172 = vrot.lane.b32.xlu0 %v15632_v21, %s11861_s12  ;;  %v8024_v16 = vld [vmem:[#allocation2 + $0x18a] sm:$0xff] }
 0x6bb   : > { %v15829_v20 = vpop.f32.mrf.mxu1 }
 0x6bc   : > { %16940 = vst [vmem:[#allocation15_spill] sm:$0xff] %v15829_v20  ;;  %8087 = vst.msk [vmem:[#allocation2 + $0x172] sm:$0xff] %vm8059_vm4, %v8054_v61 }
 0x6bd   : > { %v15832_v63 = vpop.f32.mrf.mxu1 }
 0x6be   : > { %v8055_v38 = vadd.f32 %v8023_v55, %v15832_v63  ;;  %8364 = vrot.lane.b32.xlu0 %v15632_v21, %s11862_s13  ;;  %8174 = vrot.lane.b32.xlu1 %v15642_v37, %s11861_s12 }
 0x6bf   : > { %v15839_v11 = vpop.f32.mrf.mxu1 }
 0x6c0   : > { %16941 = vst [vmem:[#allocation7_spill] sm:$0xff] %v15839_v11  ;;  %8088 = vst.msk [vmem:[#allocation2 + $0x182] sm:$0xff] %vm8059_vm4, %v8055_v38  ;;  %v8157_v36 = vpop.permute.xlu0 %8156  ;;  %v8509_v38 = vld [vmem:[#allocation2 + $0x1a] sm:$0xff] }
 0x6c1   : > { %v8252_v32 = vadd.f32 %v8157_v36, %v8092_v12  ;;  %v15842_v56 = vpop.f32.mrf.mxu1 }
 0x6c2   : > { %v8056_v3 = vadd.f32 %v8024_v16, %v15842_v56  ;;  %8557 = vrot.lane.b32.xlu0 %v15632_v21, %s11863_s14  ;;  %8366 = vrot.lane.b32.xlu1 %v15642_v37, %s11862_s13  ;;  %v8510_v16 = vld [vmem:[#allocation2 + $0x22] sm:$0xff] }
 0x6c3   : > { %8284 = vst.msk [vmem:[#allocation2 + $0x31] sm:$0xff] %vm8059_vm4, %v8252_v32  ;;  %v15850_v58 = vpop.f32.mrf.mxu1  ;;  %v8026_v32 = vld [vmem:[#allocation2 + $0x1a2] sm:$0xff] }
 0x6c4   : > { %16942 = vst [vmem:[#allocation16_spill] sm:$0xff] %v15850_v58  ;;  %8089 = vst.msk [vmem:[#allocation2 + $0x18a] sm:$0xff] %vm8059_vm4, %v8056_v3  ;;  %v8349_v46 = vpop.permute.xlu0 %8348  ;;  %v15853_v61 = vpop.permute.xlu1 %8350 }
 0x6c5   : > { %v15855_v55 = vpop.f32.mrf.mxu1 }
 0x6c6   : > { %8749 = vrot.lane.b32.xlu0 %v15632_v21, %s11864_s15  ;;  %8559 = vrot.lane.b32.xlu1 %v15642_v37, %s11863_s14  ;;  %v8057_v36 = vadd.f32 %v8025_v26, %v15855_v55 }
 0x6c7   : > { %v15862_v12 = vpop.f32.mrf.mxu1 }
 0x6c8   : > { %16943 = vst [vmem:[#allocation18_spill] sm:$0xff] %v15862_v12  ;;  %v8542_v43 = vpop.permute.xlu0 %8541  ;;  %v8544_v3 = vpop.permute.xlu1 %8543  ;;  %8090 = vst.msk [vmem:[#allocation2 + $0x19a] sm:$0xff] %vm8059_vm4, %v8057_v36 }
 0x6c9   : > { %v8637_v50 = vadd.f32 %v8542_v43, %v8509_v38  ;;  %v8638_v45 = vadd.f32 %v8544_v3, %v8510_v16  ;;  %v15865_v6 = vpop.f32.mrf.mxu1 }
 0x6ca   : > { %v8316_v58 = vld [vmem:[#allocation2 + $0x30] sm:$0xff]  ;;  %v8058_v11 = vadd.f32 %v8026_v32, %v15865_v6  ;;  %8941 = vrot.lane.b32.xlu0 %v15632_v21, %s11865_s16  ;;  %8751 = vrot.lane.b32.xlu1 %v15642_v37, %s11864_s15  ;;  %v9085_v32 = vld [vmem:[#allocation2 + $0x2] sm:$0xff] }
 0x6cb   : > { %v8444_v26 = vadd.f32 %v8349_v46, %v8316_v58  ;;  %8669 = vst.msk [vmem:[#allocation2 + $0x1a] sm:$0xff] %vm8059_vm4, %v8637_v50  ;;  %8670 = vst.msk [vmem:[#allocation2 + $0x22] sm:$0xff] %vm8059_vm4, %v8638_v45  ;;  %v9086_v50 = vld [vmem:[#allocation2 + $0xa] sm:$0xff] }
 0x6cc   : > { %8091 = vst.msk [vmem:[#allocation2 + $0x1a2] sm:$0xff] %vm8059_vm4, %v8058_v11  ;;  %v8734_v43 = vpop.permute.xlu0 %8733  ;;  %v8736_v38 = vpop.permute.xlu1 %8735 }
 0x6cd   : > { %8476 = vst.msk [vmem:[#allocation2 + $0x30] sm:$0xff] %vm8059_vm4, %v8444_v26 }
 0x6ce   : > { %9133 = vrot.lane.b32.xlu0 %v15632_v21, %s11866_s17  ;;  %8943 = vrot.lane.b32.xlu1 %v15642_v37, %s11865_s16 }
 0x6d0   : > { %v8926_v16 = vpop.permute.xlu0 %8925  ;;  %v8928_v36 = vpop.permute.xlu1 %8927 }
 0x6d2   : > { %v8701_v58 = vld [vmem:[#allocation2 + $0x19] sm:$0xff]  ;;  %v8702_v46 = vld [vmem:[#allocation2 + $0x21] sm:$0xff]  ;;  %9325 = vrot.lane.b32.xlu0 %v15632_v21, %s11867_s19  ;;  %9135 = vrot.lane.b32.xlu1 %v15642_v37, %s11866_s17 }
 0x6d3   : > { %v8829_v45 = vadd.f32 %v8734_v43, %v8701_v58  ;;  %v8830_v11 = vadd.f32 %v8736_v38, %v8702_v46  ;;  %v8093_v43 = vld [vmem:[#allocation2 + $0x39] sm:$0xff]  ;;  %v8094_v58 = vld [vmem:[#allocation2 + $0x49] sm:$0xff] }
 0x6d4   : > { %v9118_v3 = vpop.permute.xlu0 %9117  ;;  %v9120_v26 = vpop.permute.xlu1 %9119 }
 0x6d5   : > { %8861 = vst.msk [vmem:[#allocation2 + $0x19] sm:$0xff] %vm8059_vm4, %v8829_v45  ;;  %8862 = vst.msk [vmem:[#allocation2 + $0x21] sm:$0xff] %vm8059_vm4, %v8830_v11  ;;  %v9213_v12 = vadd.f32 %v9118_v3, %v9085_v32  ;;  %v9214_v20 = vadd.f32 %v9120_v26, %v9086_v50  ;;  %v8095_v50 = vld [vmem:[#allocation2 + $0x51] sm:$0xff] }
 0x6d6   : > { %9327 = vrot.lane.b32.xlu1 %v15642_v37, %s11867_s19  ;;  %8176 = vrot.lane.b32.xlu0 %v15652_v48, %s11861_s12 }
 0x6d7   : > { %9245 = vst.msk [vmem:[#allocation2 + $0x2] sm:$0xff] %vm8059_vm4, %v9213_v12  ;;  %9246 = vst.msk [vmem:[#allocation2 + $0xa] sm:$0xff] %vm8059_vm4, %v9214_v20 }
 0x6d8   : > { %v8159_v21 = vpop.permute.xlu0 %8158  ;;  %v8161_v38 = vpop.permute.xlu1 %8160 }
 0x6d9   : > { %v8253_v46 = vadd.f32 %v8159_v21, %v8093_v43  ;;  %v8254_v45 = vadd.f32 %v8161_v38, %v8094_v58 }
 0x6da   : > { %8368 = vrot.lane.b32.xlu0 %v15652_v48, %s11862_s13  ;;  %8178 = vrot.lane.b32.xlu1 %v15662_v54, %s11861_s12 }
 0x6db   : > { %8285 = vst.msk [vmem:[#allocation2 + $0x39] sm:$0xff] %vm8059_vm4, %v8253_v46  ;;  %8286 = vst.msk [vmem:[#allocation2 + $0x49] sm:$0xff] %vm8059_vm4, %v8254_v45 }
 0x6dc   : > { %v8893_v37 = vld [vmem:[#allocation2 + $0x18] sm:$0xff]  ;;  %v8894_v12 = vld [vmem:[#allocation2 + $0x20] sm:$0xff]  ;;  %v8353_v32 = vpop.permute.xlu0 %8352  ;;  %v8163_v20 = vpop.permute.xlu1 %8162 }
 0x6dd   : > { %v9021_v11 = vadd.f32 %v8926_v16, %v8893_v37  ;;  %v9022_v3 = vadd.f32 %v8928_v36, %v8894_v12  ;;  %v8255_v26 = vadd.f32 %v8163_v20, %v8095_v50 }
 0x6de   : > { %8561 = vrot.lane.b32.xlu0 %v15652_v48, %s11863_s14  ;;  %8370 = vrot.lane.b32.xlu1 %v15662_v54, %s11862_s13 }
 0x6df   : > { %9053 = vst.msk [vmem:[#allocation2 + $0x18] sm:$0xff] %vm8059_vm4, %v9021_v11  ;;  %9054 = vst.msk [vmem:[#allocation2 + $0x20] sm:$0xff] %vm8059_vm4, %v9022_v3 }
 0x6e0   : > { %8287 = vst.msk [vmem:[#allocation2 + $0x51] sm:$0xff] %vm8059_vm4, %v8255_v26  ;;  %v8546_v21 = vpop.permute.xlu0 %8545  ;;  %v8355_v43 = vpop.permute.xlu1 %8354 }
 0x6e2   : > { %v8317_v38 = vld [vmem:[#allocation2 + $0x38] sm:$0xff]  ;;  %v8318_v58 = vld [vmem:[#allocation2 + $0x48] sm:$0xff]  ;;  %8753 = vrot.lane.b32.xlu0 %v15652_v48, %s11864_s15  ;;  %8563 = vrot.lane.b32.xlu1 %v15662_v54, %s11863_s14 }
 0x6e3   : > { %v8445_v16 = vadd.f32 %v15853_v61, %v8317_v38  ;;  %v8446_v36 = vadd.f32 %v8353_v32, %v8318_v58 }
 0x6e4   : > { %v8738_v46 = vpop.permute.xlu0 %8737  ;;  %v8548_v45 = vpop.permute.xlu1 %8547 }
 0x6e5   : > { %8477 = vst.msk [vmem:[#allocation2 + $0x38] sm:$0xff] %vm8059_vm4, %v8445_v16  ;;  %8478 = vst.msk [vmem:[#allocation2 + $0x48] sm:$0xff] %vm8059_vm4, %v8446_v36 }
 0x6e6   : > { %8945 = vrot.lane.b32.xlu0 %v15652_v48, %s11865_s16  ;;  %8755 = vrot.lane.b32.xlu1 %v15662_v54, %s11864_s15  ;;  %v9087_v11 = vld [vmem:[#allocation2 + $0x1a] sm:$0xff]  ;;  %v9088_v36 = vld [vmem:[#allocation2 + $0x22] sm:$0xff] }
 0x6e7   : > { %v8319_v37 = vld [vmem:[#allocation2 + $0x50] sm:$0xff] }
 0x6e8   : > { %v8447_v12 = vadd.f32 %v8355_v43, %v8319_v37  ;;  %v15916_v20 = vpop.permute.xlu0 %8929  ;;  %v8740_v50 = vpop.permute.xlu1 %8739 }
 0x6ea   : > { %8479 = vst.msk [vmem:[#allocation2 + $0x50] sm:$0xff] %vm8059_vm4, %v8447_v12  ;;  %9137 = vrot.lane.b32.xlu0 %v15652_v48, %s11866_s17  ;;  %8947 = vrot.lane.b32.xlu1 %v15662_v54, %s11865_s16 }
 0x6ec   : > { %v8511_v61 = vld [vmem:[#allocation2 + $0x32] sm:$0xff]  ;;  %v8512_v32 = vld [vmem:[#allocation2 + $0x3a] sm:$0xff]  ;;  %v9122_v3 = vpop.permute.xlu0 %9121  ;;  %v8932_v26 = vpop.permute.xlu1 %8931 }
 0x6ed   : > { %v8639_v38 = vadd.f32 %v8546_v21, %v8511_v61  ;;  %v8640_v58 = vadd.f32 %v8548_v45, %v8512_v32  ;;  %v9215_v16 = vadd.f32 %v9122_v3, %v9087_v11  ;;  %v8096_v45 = vld [vmem:[#allocation2 + $0x61] sm:$0xff] }
 0x6ee   : > { %9329 = vrot.lane.b32.xlu0 %v15652_v48, %s11867_s19  ;;  %9139 = vrot.lane.b32.xlu1 %v15662_v54, %s11866_s17 }
 0x6ef   : > { %8671 = vst.msk [vmem:[#allocation2 + $0x32] sm:$0xff] %vm8059_vm4, %v8639_v38  ;;  %8672 = vst.msk [vmem:[#allocation2 + $0x3a] sm:$0xff] %vm8059_vm4, %v8640_v58 }
 0x6f0   : > { %9247 = vst.msk [vmem:[#allocation2 + $0x1a] sm:$0xff] %vm8059_vm4, %v9215_v16  ;;  %v9314_v43 = vpop.permute.xlu0 %9313  ;;  %v9124_v37 = vpop.permute.xlu1 %9123 }
 0x6f1   : > { %v9216_v12 = vadd.f32 %v9124_v37, %v9088_v36  ;;  %v8097_v37 = vld [vmem:[#allocation2 + $0x69] sm:$0xff] }
 0x6f2   : > { %9331 = vrot.lane.b32.xlu1 %v15662_v54, %s11867_s19  ;;  %8180 = vrot.lane.b32.xlu0 %v15672_v1, %s11861_s12 }
 0x6f3   : > { %9248 = vst.msk [vmem:[#allocation2 + $0x22] sm:$0xff] %vm8059_vm4, %v9216_v12 }
 0x6f4   : > { %v9316_v48 = vpop.permute.xlu1 %9315  ;;  %v8165_v21 = vpop.permute.xlu0 %8164 }
 0x6f5   : > { %v8256_v61 = vadd.f32 %v8165_v21, %v8096_v45 }
 0x6f6   : > { %v8703_v32 = vld [vmem:[#allocation2 + $0x31] sm:$0xff]  ;;  %v8704_v11 = vld [vmem:[#allocation2 + $0x39] sm:$0xff]  ;;  %8372 = vrot.lane.b32.xlu0 %v15672_v1, %s11862_s13  ;;  %8182 = vrot.lane.b32.xlu1 %v15682_v17, %s11861_s12 }
 0x6f7   : > { %v9279_v3 = vld [vmem:[#allocation2 + $0x19] sm:$0xff]  ;;  %v8831_v38 = vadd.f32 %v8738_v46, %v8703_v32  ;;  %v8832_v54 = vadd.f32 %v8740_v50, %v8704_v11  ;;  %8288 = vst.msk [vmem:[#allocation2 + $0x61] sm:$0xff] %vm8059_vm4, %v8256_v61  ;;  %v8513_v50 = vld [vmem:[#allocation2 + $0x4a] sm:$0xff] }
 0x6f8   : > { %v9407_v58 = vadd.f32 %v9314_v43, %v9279_v3  ;;  %v8357_v16 = vpop.permute.xlu0 %8356  ;;  %v8167_v36 = vpop.permute.xlu1 %8166  ;;  %v8514_v3 = vld [vmem:[#allocation2 + $0x52] sm:$0xff] }
 0x6f9   : > { %8863 = vst.msk [vmem:[#allocation2 + $0x31] sm:$0xff] %vm8059_vm4, %v8831_v38  ;;  %8864 = vst.msk [vmem:[#allocation2 + $0x39] sm:$0xff] %vm8059_vm4, %v8832_v54  ;;  %v8257_v12 = vadd.f32 %v8167_v36, %v8097_v37 }
 0x6fa   : > { %9439 = vst.msk [vmem:[#allocation2 + $0x19] sm:$0xff] %vm8059_vm4, %v9407_v58  ;;  %v9280_v21 = vld [vmem:[#allocation2 + $0x21] sm:$0xff]  ;;  %8565 = vrot.lane.b32.xlu0 %v15672_v1, %s11863_s14  ;;  %8374 = vrot.lane.b32.xlu1 %v15682_v17, %s11862_s13 }
 0x6fb   : > { %v9408_v46 = vadd.f32 %v9316_v48, %v9280_v21  ;;  %8289 = vst.msk [vmem:[#allocation2 + $0x69] sm:$0xff] %vm8059_vm4, %v8257_v12 }
 0x6fc   : > { %v8550_v43 = vpop.permute.xlu0 %8549  ;;  %v8359_v45 = vpop.permute.xlu1 %8358 }
 0x6fd   : > { %9440 = vst.msk [vmem:[#allocation2 + $0x21] sm:$0xff] %vm8059_vm4, %v9408_v46  ;;  %v8641_v61 = vadd.f32 %v8550_v43, %v8513_v50 }
 0x6fe   : > { %v8320_v32 = vld [vmem:[#allocation2 + $0x60] sm:$0xff]  ;;  %8757 = vrot.lane.b32.xlu0 %v15672_v1, %s11864_s15  ;;  %8567 = vrot.lane.b32.xlu1 %v15682_v17, %s11863_s14 }
 0x6ff   : > { %v8448_v11 = vadd.f32 %v8357_v16, %v8320_v32  ;;  %8673 = vst.msk [vmem:[#allocation2 + $0x4a] sm:$0xff] %vm8059_vm4, %v8641_v61 }
 0x700   : > { %v8895_v48 = vld [vmem:[#allocation2 + $0x30] sm:$0xff]  ;;  %v8896_v38 = vld [vmem:[#allocation2 + $0x38] sm:$0xff]  ;;  %v8742_v58 = vpop.permute.xlu0 %8741  ;;  %v8552_v36 = vpop.permute.xlu1 %8551 }
 0x701   : > { %v9471_v54 = vld [vmem:[#allocation2 + $0x18] sm:$0xff]  ;;  %v9023_v37 = vadd.f32 %v15916_v20, %v8895_v48  ;;  %v9024_v12 = vadd.f32 %v8932_v26, %v8896_v38  ;;  %8480 = vst.msk [vmem:[#allocation2 + $0x60] sm:$0xff] %vm8059_vm4, %v8448_v11  ;;  %v8642_v46 = vadd.f32 %v8552_v36, %v8514_v3 }
 0x702   : > { %v9503_v21 = vadd.f32 %v9471_v54, %v15579_v24  ;;  %v8321_v50 = vld [vmem:[#allocation2 + $0x68] sm:$0xff]  ;;  %8949 = vrot.lane.b32.xlu0 %v15672_v1, %s11865_s16  ;;  %8759 = vrot.lane.b32.xlu1 %v15682_v17, %s11864_s15 }
 0x703   : > { %9055 = vst.msk [vmem:[#allocation2 + $0x30] sm:$0xff] %vm8059_vm4, %v9023_v37  ;;  %9056 = vst.msk [vmem:[#allocation2 + $0x38] sm:$0xff] %vm8059_vm4, %v9024_v12  ;;  %v8449_v20 = vadd.f32 %v8359_v45, %v8321_v50 }
 0x704   : > { %9535 = vst.msk [vmem:[#allocation2 + $0x18] sm:$0xff] %vm8059_vm4, %v9503_v21  ;;  %8674 = vst.msk [vmem:[#allocation2 + $0x52] sm:$0xff] %vm8059_vm4, %v8642_v46  ;;  %v9472_v24 = vld [vmem:[#allocation2 + $0x20] sm:$0xff]  ;;  %v8934_v26 = vpop.permute.xlu0 %8933  ;;  %v8744_v16 = vpop.permute.xlu1 %8743 }
 0x705   : > { %v9504_v43 = vadd.f32 %v9472_v24, %v15589_v15  ;;  %8481 = vst.msk [vmem:[#allocation2 + $0x68] sm:$0xff] %vm8059_vm4, %v8449_v20  ;;  %v8098_v46 = vld [vmem:[#allocation2 + $0x79] sm:$0xff] }
 0x706   : > { %v8705_v61 = vld [vmem:[#allocation2 + $0x49] sm:$0xff]  ;;  %9141 = vrot.lane.b32.xlu0 %v15672_v1, %s11866_s17  ;;  %8951 = vrot.lane.b32.xlu1 %v15682_v17, %s11865_s16 }
 0x707   : > { %9536 = vst.msk [vmem:[#allocation2 + $0x20] sm:$0xff] %vm8059_vm4, %v9504_v43  ;;  %v8833_v32 = vadd.f32 %v8742_v58, %v8705_v61  ;;  %v8099_v61 = vld [vmem:[#allocation2 + $0x81] sm:$0xff] }
 0x708   : > { %v9126_v45 = vpop.permute.xlu0 %9125  ;;  %v8936_v11 = vpop.permute.xlu1 %8935 }
 0x709   : > { %8865 = vst.msk [vmem:[#allocation2 + $0x49] sm:$0xff] %vm8059_vm4, %v8833_v32 }
 0x70a   : > { %v9089_v48 = vld [vmem:[#allocation2 + $0x32] sm:$0xff]  ;;  %9333 = vrot.lane.b32.xlu0 %v15672_v1, %s11867_s19  ;;  %9143 = vrot.lane.b32.xlu1 %v15682_v17, %s11866_s17  ;;  %v9090_v36 = vld [vmem:[#allocation2 + $0x3a] sm:$0xff] }
 0x70b   : > { %v8706_v3 = vld [vmem:[#allocation2 + $0x51] sm:$0xff]  ;;  %v9217_v38 = vadd.f32 %v9126_v45, %v9089_v48 }
 0x70c   : > { %v8834_v15 = vadd.f32 %v8744_v16, %v8706_v3  ;;  %v9318_v54 = vpop.permute.xlu0 %9317  ;;  %v9128_v37 = vpop.permute.xlu1 %9127 }
 0x70d   : > { %9249 = vst.msk [vmem:[#allocation2 + $0x32] sm:$0xff] %vm8059_vm4, %v9217_v38  ;;  %v9218_v58 = vadd.f32 %v9128_v37, %v9090_v36 }
 0x70e   : > { %8866 = vst.msk [vmem:[#allocation2 + $0x51] sm:$0xff] %vm8059_vm4, %v8834_v15  ;;  %9335 = vrot.lane.b32.xlu1 %v15682_v17, %s11867_s19  ;;  %8184 = vrot.lane.b32.xlu0 %v15692_v44, %s11861_s12  ;;  %v8515_v15 = vld [vmem:[#allocation2 + $0x62] sm:$0xff] }
 0x70f   : > { %9250 = vst.msk [vmem:[#allocation2 + $0x3a] sm:$0xff] %vm8059_vm4, %v9218_v58 }
 0x710   : > { %v8897_v1 = vld [vmem:[#allocation2 + $0x48] sm:$0xff]  ;;  %v9320_v12 = vpop.permute.xlu1 %9319  ;;  %v8169_v21 = vpop.permute.xlu0 %8168 }
 0x711   : > { %v9025_v50 = vadd.f32 %v8934_v26, %v8897_v1  ;;  %v8258_v20 = vadd.f32 %v8169_v21, %v8098_v46  ;;  %v8516_v1 = vld [vmem:[#allocation2 + $0x6a] sm:$0xff] }
 0x712   : > { %8376 = vrot.lane.b32.xlu0 %v15692_v44, %s11862_s13  ;;  %8186 = vrot.lane.b32.xlu1 %v15702_v39, %s11861_s12 }
 0x713   : > { %9057 = vst.msk [vmem:[#allocation2 + $0x48] sm:$0xff] %vm8059_vm4, %v9025_v50  ;;  %8290 = vst.msk [vmem:[#allocation2 + $0x79] sm:$0xff] %vm8059_vm4, %v8258_v20 }
 0x714   : > { %v9281_v24 = vld [vmem:[#allocation2 + $0x31] sm:$0xff]  ;;  %v8361_v16 = vpop.permute.xlu0 %8360  ;;  %v8171_v43 = vpop.permute.xlu1 %8170 }
 0x715   : > { %v8898_v17 = vld [vmem:[#allocation2 + $0x50] sm:$0xff]  ;;  %v9409_v45 = vadd.f32 %v9318_v54, %v9281_v24  ;;  %v8259_v3 = vadd.f32 %v8171_v43, %v8099_v61 }
 0x716   : > { %v9026_v32 = vadd.f32 %v8936_v11, %v8898_v17  ;;  %v9282_v26 = vld [vmem:[#allocation2 + $0x39] sm:$0xff]  ;;  %8569 = vrot.lane.b32.xlu0 %v15692_v44, %s11863_s14  ;;  %8378 = vrot.lane.b32.xlu1 %v15702_v39, %s11862_s13 }
 0x717   : > { %9441 = vst.msk [vmem:[#allocation2 + $0x31] sm:$0xff] %vm8059_vm4, %v9409_v45  ;;  %v9410_v48 = vadd.f32 %v9320_v12, %v9282_v26  ;;  %8291 = vst.msk [vmem:[#allocation2 + $0x81] sm:$0xff] %vm8059_vm4, %v8259_v3 }
 0x718   : > { %9058 = vst.msk [vmem:[#allocation2 + $0x50] sm:$0xff] %vm8059_vm4, %v9026_v32  ;;  %v8554_v38 = vpop.permute.xlu0 %8553  ;;  %v8363_v36 = vpop.permute.xlu1 %8362 }
 0x719   : > { %9442 = vst.msk [vmem:[#allocation2 + $0x39] sm:$0xff] %vm8059_vm4, %v9410_v48  ;;  %v8643_v11 = vadd.f32 %v8554_v38, %v8515_v15 }
 0x71a   : > { %v8322_v54 = vld [vmem:[#allocation2 + $0x78] sm:$0xff]  ;;  %8761 = vrot.lane.b32.xlu0 %v15692_v44, %s11864_s15  ;;  %8571 = vrot.lane.b32.xlu1 %v15702_v39, %s11863_s14 }
 0x71b   : > { %v8450_v37 = vadd.f32 %v8361_v16, %v8322_v54  ;;  %8675 = vst.msk [vmem:[#allocation2 + $0x62] sm:$0xff] %vm8059_vm4, %v8643_v11 }
 0x71c   : > { %v8746_v58 = vpop.permute.xlu0 %8745  ;;  %v8556_v12 = vpop.permute.xlu1 %8555 }
 0x71d   : > { %8482 = vst.msk [vmem:[#allocation2 + $0x78] sm:$0xff] %vm8059_vm4, %v8450_v37  ;;  %v8644_v21 = vadd.f32 %v8556_v12, %v8516_v1  ;;  %v8100_v1 = vld [vmem:[#allocation2 + $0x91] sm:$0xff] }
 0x71e   : > { %v9473_v46 = vld [vmem:[#allocation2 + $0x30] sm:$0xff]  ;;  %v8323_v50 = vld [vmem:[#allocation2 + $0x80] sm:$0xff]  ;;  %8953 = vrot.lane.b32.xlu0 %v15692_v44, %s11865_s16  ;;  %8763 = vrot.lane.b32.xlu1 %v15702_v39, %s11864_s15 }
 0x71f   : > { %v9505_v20 = vadd.f32 %v9473_v46, %v15599_v62  ;;  %v8451_v17 = vadd.f32 %v8363_v36, %v8323_v50  ;;  %8676 = vst.msk [vmem:[#allocation2 + $0x6a] sm:$0xff] %vm8059_vm4, %v8644_v21  ;;  %v9091_v45 = vld [vmem:[#allocation2 + $0x4a] sm:$0xff]  ;;  %v9092_v36 = vld [vmem:[#allocation2 + $0x52] sm:$0xff] }
 0x720   : > { %v9474_v24 = vld [vmem:[#allocation2 + $0x38] sm:$0xff]  ;;  %v8938_v16 = vpop.permute.xlu0 %8937  ;;  %v8748_v43 = vpop.permute.xlu1 %8747 }
 0x721   : > { %9537 = vst.msk [vmem:[#allocation2 + $0x30] sm:$0xff] %vm8059_vm4, %v9505_v20  ;;  %v9506_v61 = vadd.f32 %v9474_v24, %v15609_v9  ;;  %8483 = vst.msk [vmem:[#allocation2 + $0x80] sm:$0xff] %vm8059_vm4, %v8451_v17  ;;  %v8101_v24 = vld [vmem:[#allocation2 + $0x99] sm:$0xff] }
 0x722   : > { %v8707_v32 = vld [vmem:[#allocation2 + $0x61] sm:$0xff]  ;;  %9145 = vrot.lane.b32.xlu0 %v15692_v44, %s11866_s17  ;;  %8955 = vrot.lane.b32.xlu1 %v15702_v39, %s11865_s16 }
 0x723   : > { %9538 = vst.msk [vmem:[#allocation2 + $0x38] sm:$0xff] %vm8059_vm4, %v9506_v61  ;;  %v8835_v62 = vadd.f32 %v8746_v58, %v8707_v32 }
 0x724   : > { %v9130_v3 = vpop.permute.xlu0 %9129  ;;  %v8940_v26 = vpop.permute.xlu1 %8939 }
 0x725   : > { %8867 = vst.msk [vmem:[#allocation2 + $0x61] sm:$0xff] %vm8059_vm4, %v8835_v62  ;;  %v9219_v48 = vadd.f32 %v9130_v3, %v9091_v45 }
 0x726   : > { %v8708_v15 = vld [vmem:[#allocation2 + $0x69] sm:$0xff]  ;;  %9337 = vrot.lane.b32.xlu0 %v15692_v44, %s11867_s19  ;;  %9147 = vrot.lane.b32.xlu1 %v15702_v39, %s11866_s17 }
 0x727   : > { %v8836_v9 = vadd.f32 %v8748_v43, %v8708_v15  ;;  %9251 = vst.msk [vmem:[#allocation2 + $0x4a] sm:$0xff] %vm8059_vm4, %v9219_v48 }
 0x728   : > { %v9322_v38 = vpop.permute.xlu0 %9321  ;;  %v9132_v11 = vpop.permute.xlu1 %9131  ;;  %v8517_v62 = vld [vmem:[#allocation2 + $0x7a] sm:$0xff] }
 0x729   : > { %8868 = vst.msk [vmem:[#allocation2 + $0x69] sm:$0xff] %vm8059_vm4, %v8836_v9  ;;  %v9220_v54 = vadd.f32 %v9132_v11, %v9092_v36  ;;  %v8518_v36 = vld [vmem:[#allocation2 + $0x82] sm:$0xff] }
 0x72a   : > { %9339 = vrot.lane.b32.xlu1 %v15702_v39, %s11867_s19  ;;  %8188 = vrot.lane.b32.xlu0 %v15712_v34, %s11861_s12 }
 0x72b   : > { %9252 = vst.msk [vmem:[#allocation2 + $0x52] sm:$0xff] %vm8059_vm4, %v9220_v54 }
 0x72c   : > { %v8899_v44 = vld [vmem:[#allocation2 + $0x60] sm:$0xff]  ;;  %v9324_v37 = vpop.permute.xlu1 %9323  ;;  %v8173_v58 = vpop.permute.xlu0 %8172 }
 0x72d   : > { %v9027_v12 = vadd.f32 %v8938_v16, %v8899_v44  ;;  %v8260_v21 = vadd.f32 %v8173_v58, %v8100_v1 }
 0x72e   : > { %v9283_v46 = vld [vmem:[#allocation2 + $0x49] sm:$0xff]  ;;  %8380 = vrot.lane.b32.xlu0 %v15712_v34, %s11862_s13  ;;  %8190 = vrot.lane.b32.xlu1 %v15722_v28, %s11861_s12 }
 0x72f   : > { %9059 = vst.msk [vmem:[#allocation2 + $0x60] sm:$0xff] %vm8059_vm4, %v9027_v12  ;;  %v9411_v39 = vadd.f32 %v9322_v38, %v9283_v46  ;;  %8292 = vst.msk [vmem:[#allocation2 + $0x91] sm:$0xff] %vm8059_vm4, %v8260_v21 }
 0x730   : > { %v8900_v50 = vld [vmem:[#allocation2 + $0x68] sm:$0xff]  ;;  %v8365_v20 = vpop.permute.xlu0 %8364  ;;  %v8175_v17 = vpop.permute.xlu1 %8174 }
 0x731   : > { %v9028_v43 = vadd.f32 %v8940_v26, %v8900_v50  ;;  %9443 = vst.msk [vmem:[#allocation2 + $0x49] sm:$0xff] %vm8059_vm4, %v9411_v39  ;;  %v8261_v16 = vadd.f32 %v8175_v17, %v8101_v24 }
 0x732   : > { %v9284_v61 = vld [vmem:[#allocation2 + $0x51] sm:$0xff]  ;;  %8573 = vrot.lane.b32.xlu0 %v15712_v34, %s11863_s14  ;;  %8382 = vrot.lane.b32.xlu1 %v15722_v28, %s11862_s13 }
 0x733   : > { %9060 = vst.msk [vmem:[#allocation2 + $0x68] sm:$0xff] %vm8059_vm4, %v9028_v43  ;;  %v9412_v32 = vadd.f32 %v9324_v37, %v9284_v61  ;;  %8293 = vst.msk [vmem:[#allocation2 + $0x99] sm:$0xff] %vm8059_vm4, %v8261_v16 }
 0x734   : > { %v8558_v45 = vpop.permute.xlu0 %8557  ;;  %v8367_v3 = vpop.permute.xlu1 %8366 }
 0x735   : > { %9444 = vst.msk [vmem:[#allocation2 + $0x51] sm:$0xff] %vm8059_vm4, %v9412_v32  ;;  %v8645_v26 = vadd.f32 %v8558_v45, %v8517_v62 }
 0x736   : > { %v8324_v48 = vld [vmem:[#allocation2 + $0x90] sm:$0xff]  ;;  %8765 = vrot.lane.b32.xlu0 %v15712_v34, %s11864_s15  ;;  %8575 = vrot.lane.b32.xlu1 %v15722_v28, %s11863_s14 }
 0x737   : > { %v8452_v15 = vadd.f32 %v8365_v20, %v8324_v48  ;;  %8677 = vst.msk [vmem:[#allocation2 + $0x7a] sm:$0xff] %vm8059_vm4, %v8645_v26  ;;  %v8102_v26 = vld [vmem:[#allocation2 + $0xa9] sm:$0xff] }
 0x738   : > { %v9475_v9 = vld [vmem:[#allocation2 + $0x48] sm:$0xff]  ;;  %v8750_v38 = vpop.permute.xlu0 %8749  ;;  %v8560_v11 = vpop.permute.xlu1 %8559 }
 0x739   : > { %v9507_v54 = vadd.f32 %v9475_v9, %v15619_v40  ;;  %8484 = vst.msk [vmem:[#allocation2 + $0x90] sm:$0xff] %vm8059_vm4, %v8452_v15  ;;  %v8646_v44 = vadd.f32 %v8560_v11, %v8518_v36 }
 0x73a   : > { %v8325_v37 = vld [vmem:[#allocation2 + $0x98] sm:$0xff]  ;;  %8957 = vrot.lane.b32.xlu0 %v15712_v34, %s11865_s16  ;;  %8767 = vrot.lane.b32.xlu1 %v15722_v28, %s11864_s15  ;;  %v9093_v50 = vld [vmem:[#allocation2 + $0x62] sm:$0xff]  ;;  %v9094_v61 = vld [vmem:[#allocation2 + $0x6a] sm:$0xff] }
 0x73b   : > { %9539 = vst.msk [vmem:[#allocation2 + $0x48] sm:$0xff] %vm8059_vm4, %v9507_v54  ;;  %v8453_v58 = vadd.f32 %v8367_v3, %v8325_v37  ;;  %8678 = vst.msk [vmem:[#allocation2 + $0x82] sm:$0xff] %vm8059_vm4, %v8646_v44  ;;  %v8103_v54 = vld [vmem:[#allocation2 + $0xb1] sm:$0xff] }
 0x73c   : > { %v9476_v1 = vld [vmem:[#allocation2 + $0x50] sm:$0xff]  ;;  %v8942_v12 = vpop.permute.xlu0 %8941  ;;  %v8752_v21 = vpop.permute.xlu1 %8751 }
 0x73d   : > { %v9508_v40 = vadd.f32 %v9476_v1, %v15629_v10  ;;  %8485 = vst.msk [vmem:[#allocation2 + $0x98] sm:$0xff] %vm8059_vm4, %v8453_v58 }
 0x73e   : > { %v8709_v46 = vld [vmem:[#allocation2 + $0x79] sm:$0xff]  ;;  %9149 = vrot.lane.b32.xlu0 %v15712_v34, %s11866_s17  ;;  %8959 = vrot.lane.b32.xlu1 %v15722_v28, %s11865_s16 }
 0x73f   : > { %9540 = vst.msk [vmem:[#allocation2 + $0x50] sm:$0xff] %vm8059_vm4, %v9508_v40  ;;  %v8837_v39 = vadd.f32 %v8750_v38, %v8709_v46 }
 0x740   : > { %v9134_v20 = vpop.permute.xlu0 %9133  ;;  %v8944_v17 = vpop.permute.xlu1 %8943 }
 0x741   : > { %8869 = vst.msk [vmem:[#allocation2 + $0x79] sm:$0xff] %vm8059_vm4, %v8837_v39  ;;  %v9221_v24 = vadd.f32 %v9134_v20, %v9093_v50 }
 0x742   : > { %v8710_v43 = vld [vmem:[#allocation2 + $0x81] sm:$0xff]  ;;  %9341 = vrot.lane.b32.xlu0 %v15712_v34, %s11867_s19  ;;  %9151 = vrot.lane.b32.xlu1 %v15722_v28, %s11866_s17 }
 0x743   : > { %v8838_v10 = vadd.f32 %v8752_v21, %v8710_v43  ;;  %9253 = vst.msk [vmem:[#allocation2 + $0x62] sm:$0xff] %vm8059_vm4, %v9221_v24 }
 0x744   : > { %v9326_v16 = vpop.permute.xlu0 %9325  ;;  %v9136_v32 = vpop.permute.xlu1 %9135  ;;  %v8520_v24 = vld [vmem:[#allocation2 + $0x9a] sm:$0xff] }
 0x745   : > { %8870 = vst.msk [vmem:[#allocation2 + $0x81] sm:$0xff] %vm8059_vm4, %v8838_v10  ;;  %v9222_v62 = vadd.f32 %v9136_v32, %v9094_v61 }
 0x746   : > { %9343 = vrot.lane.b32.xlu1 %v15722_v28, %s11867_s19  ;;  %8192 = vrot.lane.b32.xlu0 %v15732_v60, %s11861_s12 }
 0x747   : > { %9254 = vst.msk [vmem:[#allocation2 + $0x6a] sm:$0xff] %vm8059_vm4, %v9222_v62 }
 0x748   : > { %v8901_v34 = vld [vmem:[#allocation2 + $0x78] sm:$0xff]  ;;  %v9328_v45 = vpop.permute.xlu1 %9327  ;;  %v8177_v3 = vpop.permute.xlu0 %8176 }
 0x749   : > { %v9029_v48 = vadd.f32 %v8942_v12, %v8901_v34  ;;  %v8262_v15 = vadd.f32 %v8177_v3, %v8102_v26  ;;  %v8519_v12 = vld [vmem:[#allocation2 + $0x92] sm:$0xff] }
 0x74a   : > { %v9285_v9 = vld [vmem:[#allocation2 + $0x61] sm:$0xff]  ;;  %8384 = vrot.lane.b32.xlu0 %v15732_v60, %s11862_s13  ;;  %8194 = vrot.lane.b32.xlu1 %v15742_v4, %s11861_s12 }
 0x74b   : > { %9061 = vst.msk [vmem:[#allocation2 + $0x78] sm:$0xff] %vm8059_vm4, %v9029_v48  ;;  %v9413_v28 = vadd.f32 %v9326_v16, %v9285_v9  ;;  %8294 = vst.msk [vmem:[#allocation2 + $0xa9] sm:$0xff] %vm8059_vm4, %v8262_v15 }
 0x74c   : > { %v8902_v38 = vld [vmem:[#allocation2 + $0x80] sm:$0xff]  ;;  %v8369_v36 = vpop.permute.xlu0 %8368  ;;  %v8179_v11 = vpop.permute.xlu1 %8178 }
 0x74d   : > { %v9030_v44 = vadd.f32 %v8944_v17, %v8902_v38  ;;  %9445 = vst.msk [vmem:[#allocation2 + $0x61] sm:$0xff] %vm8059_vm4, %v9413_v28  ;;  %v8263_v37 = vadd.f32 %v8179_v11, %v8103_v54 }
 0x74e   : > { %v9286_v58 = vld [vmem:[#allocation2 + $0x69] sm:$0xff]  ;;  %8577 = vrot.lane.b32.xlu0 %v15732_v60, %s11863_s14  ;;  %8386 = vrot.lane.b32.xlu1 %v15742_v4, %s11862_s13 }
 0x74f   : > { %9062 = vst.msk [vmem:[#allocation2 + $0x80] sm:$0xff] %vm8059_vm4, %v9030_v44  ;;  %v9414_v1 = vadd.f32 %v9328_v45, %v9286_v58  ;;  %8295 = vst.msk [vmem:[#allocation2 + $0xb1] sm:$0xff] %vm8059_vm4, %v8263_v37 }
 0x750   : > { %v8562_v21 = vpop.permute.xlu0 %8561  ;;  %v8371_v40 = vpop.permute.xlu1 %8370 }
 0x751   : > { %9446 = vst.msk [vmem:[#allocation2 + $0x69] sm:$0xff] %vm8059_vm4, %v9414_v1  ;;  %v8647_v46 = vadd.f32 %v8562_v21, %v8519_v12  ;;  %v8104_v1 = vld [vmem:[#allocation2 + $0xc1] sm:$0xff] }
 0x752   : > { %v8326_v39 = vld [vmem:[#allocation2 + $0xa8] sm:$0xff]  ;;  %8769 = vrot.lane.b32.xlu0 %v15732_v60, %s11864_s15  ;;  %8579 = vrot.lane.b32.xlu1 %v15742_v4, %s11863_s14 }
 0x753   : > { %v8454_v50 = vadd.f32 %v8369_v36, %v8326_v39  ;;  %8679 = vst.msk [vmem:[#allocation2 + $0x92] sm:$0xff] %vm8059_vm4, %v8647_v46 }
 0x754   : > { %v9477_v20 = vld [vmem:[#allocation2 + $0x60] sm:$0xff]  ;;  %v8754_v17 = vpop.permute.xlu0 %8753  ;;  %v8564_v43 = vpop.permute.xlu1 %8563 }
 0x755   : > { %v9509_v10 = vadd.f32 %v9477_v20, %v15639_v2  ;;  %8486 = vst.msk [vmem:[#allocation2 + $0xa8] sm:$0xff] %vm8059_vm4, %v8454_v50  ;;  %v8648_v16 = vadd.f32 %v8564_v43, %v8520_v24  ;;  %v8105_v20 = vld [vmem:[#allocation2 + $0xc9] sm:$0xff] }
 0x756   : > { %v8327_v61 = vld [vmem:[#allocation2 + $0xb0] sm:$0xff]  ;;  %8961 = vrot.lane.b32.xlu0 %v15732_v60, %s11865_s16  ;;  %8771 = vrot.lane.b32.xlu1 %v15742_v4, %s11864_s15  ;;  %v9095_v48 = vld [vmem:[#allocation2 + $0x7a] sm:$0xff]  ;;  %v9096_v11 = vld [vmem:[#allocation2 + $0x82] sm:$0xff] }
 0x757   : > { %9541 = vst.msk [vmem:[#allocation2 + $0x60] sm:$0xff] %vm8059_vm4, %v9509_v10  ;;  %v8455_v32 = vadd.f32 %v8371_v40, %v8327_v61  ;;  %8680 = vst.msk [vmem:[#allocation2 + $0x9a] sm:$0xff] %vm8059_vm4, %v8648_v16 }
 0x758   : > { %v9478_v62 = vld [vmem:[#allocation2 + $0x68] sm:$0xff]  ;;  %v8946_v34 = vpop.permute.xlu0 %8945  ;;  %v8756_v45 = vpop.permute.xlu1 %8755 }
 0x759   : > { %v9510_v2 = vadd.f32 %v9478_v62, %v15649_v52  ;;  %8487 = vst.msk [vmem:[#allocation2 + $0xb0] sm:$0xff] %vm8059_vm4, %v8455_v32 }
 0x75a   : > { %v8711_v3 = vld [vmem:[#allocation2 + $0x91] sm:$0xff]  ;;  %9153 = vrot.lane.b32.xlu0 %v15732_v60, %s11866_s17  ;;  %8963 = vrot.lane.b32.xlu1 %v15742_v4, %s11865_s16 }
 0x75b   : > { %9542 = vst.msk [vmem:[#allocation2 + $0x68] sm:$0xff] %vm8059_vm4, %v9510_v2  ;;  %v8839_v26 = vadd.f32 %v8754_v17, %v8711_v3 }
 0x75c   : > { %v9138_v15 = vpop.permute.xlu0 %9137  ;;  %v8948_v9 = vpop.permute.xlu1 %8947 }
 0x75d   : > { %8871 = vst.msk [vmem:[#allocation2 + $0x91] sm:$0xff] %vm8059_vm4, %v8839_v26  ;;  %v9223_v28 = vadd.f32 %v9138_v15, %v9095_v48 }
 0x75e   : > { %v8712_v38 = vld [vmem:[#allocation2 + $0x99] sm:$0xff]  ;;  %9345 = vrot.lane.b32.xlu0 %v15732_v60, %s11867_s19  ;;  %9155 = vrot.lane.b32.xlu1 %v15742_v4, %s11866_s17 }
 0x75f   : > { %v8840_v52 = vadd.f32 %v8756_v45, %v8712_v38  ;;  %9255 = vst.msk [vmem:[#allocation2 + $0x7a] sm:$0xff] %vm8059_vm4, %v9223_v28 }
 0x760   : > { %v9330_v36 = vpop.permute.xlu0 %9329  ;;  %v9140_v54 = vpop.permute.xlu1 %9139  ;;  %v8521_v16 = vld [vmem:[#allocation2 + $0xaa] sm:$0xff]  ;;  %v8522_v26 = vld [vmem:[#allocation2 + $0xb2] sm:$0xff] }
 0x761   : > { %8872 = vst.msk [vmem:[#allocation2 + $0x99] sm:$0xff] %vm8059_vm4, %v8840_v52  ;;  %v9224_v44 = vadd.f32 %v9140_v54, %v9096_v11 }
 0x762   : > { %9347 = vrot.lane.b32.xlu1 %v15742_v4, %s11867_s19  ;;  %8196 = vrot.lane.b32.xlu0 %v15752_v51, %s11861_s12 }
 0x763   : > { %9256 = vst.msk [vmem:[#allocation2 + $0x82] sm:$0xff] %vm8059_vm4, %v9224_v44 }
 0x764   : > { %v8903_v60 = vld [vmem:[#allocation2 + $0x90] sm:$0xff]  ;;  %v9332_v37 = vpop.permute.xlu1 %9331  ;;  %v8181_v58 = vpop.permute.xlu0 %8180 }
 0x765   : > { %v9031_v12 = vadd.f32 %v8946_v34, %v8903_v60  ;;  %v8264_v21 = vadd.f32 %v8181_v58, %v8104_v1 }
 0x766   : > { %v9287_v40 = vld [vmem:[#allocation2 + $0x79] sm:$0xff]  ;;  %8388 = vrot.lane.b32.xlu0 %v15752_v51, %s11862_s13  ;;  %8198 = vrot.lane.b32.xlu1 %v15762_v0, %s11861_s12 }
 0x767   : > { %9063 = vst.msk [vmem:[#allocation2 + $0x90] sm:$0xff] %vm8059_vm4, %v9031_v12  ;;  %v9415_v4 = vadd.f32 %v9330_v36, %v9287_v40  ;;  %8296 = vst.msk [vmem:[#allocation2 + $0xc1] sm:$0xff] %vm8059_vm4, %v8264_v21 }
 0x768   : > { %v8904_v46 = vld [vmem:[#allocation2 + $0x98] sm:$0xff]  ;;  %v8373_v39 = vpop.permute.xlu0 %8372  ;;  %v8183_v50 = vpop.permute.xlu1 %8182 }
 0x769   : > { %v9032_v17 = vadd.f32 %v8948_v9, %v8904_v46  ;;  %9447 = vst.msk [vmem:[#allocation2 + $0x79] sm:$0xff] %vm8059_vm4, %v9415_v4  ;;  %v8265_v24 = vadd.f32 %v8183_v50, %v8105_v20  ;;  %v8106_v20 = vld [vmem:[#allocation2 + $0xd9] sm:$0xff] }
 0x76a   : > { %v9288_v43 = vld [vmem:[#allocation2 + $0x81] sm:$0xff]  ;;  %8581 = vrot.lane.b32.xlu0 %v15752_v51, %s11863_s14  ;;  %8390 = vrot.lane.b32.xlu1 %v15762_v0, %s11862_s13 }
 0x76b   : > { %9064 = vst.msk [vmem:[#allocation2 + $0x98] sm:$0xff] %vm8059_vm4, %v9032_v17  ;;  %v9416_v10 = vadd.f32 %v9332_v37, %v9288_v43  ;;  %8297 = vst.msk [vmem:[#allocation2 + $0xc9] sm:$0xff] %vm8059_vm4, %v8265_v24 }
 0x76c   : > { %v8566_v61 = vpop.permute.xlu0 %8565  ;;  %v8375_v32 = vpop.permute.xlu1 %8374 }
 0x76d   : > { %9448 = vst.msk [vmem:[#allocation2 + $0x81] sm:$0xff] %vm8059_vm4, %v9416_v10  ;;  %v8649_v62 = vadd.f32 %v8566_v61, %v8521_v16 }
 0x76e   : > { %v8328_v34 = vld [vmem:[#allocation2 + $0xc0] sm:$0xff]  ;;  %8773 = vrot.lane.b32.xlu0 %v15752_v51, %s11864_s15  ;;  %8583 = vrot.lane.b32.xlu1 %v15762_v0, %s11863_s14 }
 0x76f   : > { %v8456_v45 = vadd.f32 %v8373_v39, %v8328_v34  ;;  %8681 = vst.msk [vmem:[#allocation2 + $0xaa] sm:$0xff] %vm8059_vm4, %v8649_v62 }
 0x770   : > { %v9479_v2 = vld [vmem:[#allocation2 + $0x78] sm:$0xff]  ;;  %v8758_v3 = vpop.permute.xlu0 %8757  ;;  %v8568_v48 = vpop.permute.xlu1 %8567 }
 0x771   : > { %v9511_v15 = vadd.f32 %v9479_v2, %v15659_v27  ;;  %8488 = vst.msk [vmem:[#allocation2 + $0xc0] sm:$0xff] %vm8059_vm4, %v8456_v45  ;;  %v8650_v9 = vadd.f32 %v8568_v48, %v8522_v26 }
 0x772   : > { %v8329_v28 = vld [vmem:[#allocation2 + $0xc8] sm:$0xff]  ;;  %8965 = vrot.lane.b32.xlu0 %v15752_v51, %s11865_s16  ;;  %8775 = vrot.lane.b32.xlu1 %v15762_v0, %s11864_s15  ;;  %v9097_v60 = vld [vmem:[#allocation2 + $0x92] sm:$0xff]  ;;  %v9098_v40 = vld [vmem:[#allocation2 + $0x9a] sm:$0xff] }
 0x773   : > { %9543 = vst.msk [vmem:[#allocation2 + $0x78] sm:$0xff] %vm8059_vm4, %v9511_v15  ;;  %v8457_v38 = vadd.f32 %v8375_v32, %v8329_v28  ;;  %8682 = vst.msk [vmem:[#allocation2 + $0xb2] sm:$0xff] %vm8059_vm4, %v8650_v9  ;;  %v8107_v32 = vld [vmem:[#allocation2 + $0xe1] sm:$0xff] }
 0x774   : > { %v9480_v52 = vld [vmem:[#allocation2 + $0x80] sm:$0xff]  ;;  %v8950_v36 = vpop.permute.xlu0 %8949  ;;  %v8760_v11 = vpop.permute.xlu1 %8759 }
 0x775   : > { %v9512_v27 = vadd.f32 %v9480_v52, %v15669_v57  ;;  %8489 = vst.msk [vmem:[#allocation2 + $0xc8] sm:$0xff] %vm8059_vm4, %v8457_v38 }
 0x776   : > { %v8713_v54 = vld [vmem:[#allocation2 + $0xa9] sm:$0xff]  ;;  %9157 = vrot.lane.b32.xlu0 %v15752_v51, %s11866_s17  ;;  %8967 = vrot.lane.b32.xlu1 %v15762_v0, %s11865_s16 }
 0x777   : > { %9544 = vst.msk [vmem:[#allocation2 + $0x80] sm:$0xff] %vm8059_vm4, %v9512_v27  ;;  %v8841_v44 = vadd.f32 %v8758_v3, %v8713_v54 }
 0x778   : > { %v9142_v37 = vpop.permute.xlu0 %9141  ;;  %v8952_v58 = vpop.permute.xlu1 %8951 }
 0x779   : > { %8873 = vst.msk [vmem:[#allocation2 + $0xa9] sm:$0xff] %vm8059_vm4, %v8841_v44  ;;  %v9225_v1 = vadd.f32 %v9142_v37, %v9097_v60 }
 0x77a   : > { %v8714_v12 = vld [vmem:[#allocation2 + $0xb1] sm:$0xff]  ;;  %9349 = vrot.lane.b32.xlu0 %v15752_v51, %s11867_s19  ;;  %9159 = vrot.lane.b32.xlu1 %v15762_v0, %s11866_s17 }
 0x77b   : > { %v8842_v57 = vadd.f32 %v8760_v11, %v8714_v12  ;;  %9257 = vst.msk [vmem:[#allocation2 + $0x92] sm:$0xff] %vm8059_vm4, %v9225_v1 }
 0x77c   : > { %v9334_v21 = vpop.permute.xlu0 %9333  ;;  %v9144_v4 = vpop.permute.xlu1 %9143  ;;  %v8523_v3 = vld [vmem:[#allocation2 + $0xc2] sm:$0xff] }
 0x77d   : > { %8874 = vst.msk [vmem:[#allocation2 + $0xb1] sm:$0xff] %vm8059_vm4, %v8842_v57  ;;  %v9226_v46 = vadd.f32 %v9144_v4, %v9098_v40 }
 0x77e   : > { %9351 = vrot.lane.b32.xlu1 %v15762_v0, %s11867_s19  ;;  %8200 = vrot.lane.b32.xlu0 %v15772_v35, %s11861_s12 }
 0x77f   : > { %9258 = vst.msk [vmem:[#allocation2 + $0x9a] sm:$0xff] %vm8059_vm4, %v9226_v46 }
 0x780   : > { %v8905_v51 = vld [vmem:[#allocation2 + $0xa8] sm:$0xff]  ;;  %v9336_v39 = vpop.permute.xlu1 %9335  ;;  %v8185_v50 = vpop.permute.xlu0 %8184 }
 0x781   : > { %v9033_v17 = vadd.f32 %v8950_v36, %v8905_v51  ;;  %v8266_v24 = vadd.f32 %v8185_v50, %v8106_v20  ;;  %v8524_v36 = vld [vmem:[#allocation2 + $0xca] sm:$0xff] }
 0x782   : > { %v9289_v43 = vld [vmem:[#allocation2 + $0x91] sm:$0xff]  ;;  %8392 = vrot.lane.b32.xlu0 %v15772_v35, %s11862_s13  ;;  %8202 = vrot.lane.b32.xlu1 %v15782_v18, %s11861_s12 }
 0x783   : > { %9065 = vst.msk [vmem:[#allocation2 + $0xa8] sm:$0xff] %vm8059_vm4, %v9033_v17  ;;  %v9417_v0 = vadd.f32 %v9334_v21, %v9289_v43  ;;  %8298 = vst.msk [vmem:[#allocation2 + $0xd9] sm:$0xff] %vm8059_vm4, %v8266_v24 }
 0x784   : > { %v8906_v10 = vld [vmem:[#allocation2 + $0xb0] sm:$0xff]  ;;  %v8377_v16 = vpop.permute.xlu0 %8376  ;;  %v8187_v61 = vpop.permute.xlu1 %8186 }
 0x785   : > { %v9034_v62 = vadd.f32 %v8952_v58, %v8906_v10  ;;  %9449 = vst.msk [vmem:[#allocation2 + $0x91] sm:$0xff] %vm8059_vm4, %v9417_v0  ;;  %v8267_v34 = vadd.f32 %v8187_v61, %v8107_v32  ;;  %v8108_v0 = vld [vmem:[#allocation2 + $0xf1] sm:$0xff] }
 0x786   : > { %v9290_v45 = vld [vmem:[#allocation2 + $0x99] sm:$0xff]  ;;  %8585 = vrot.lane.b32.xlu0 %v15772_v35, %s11863_s14  ;;  %8394 = vrot.lane.b32.xlu1 %v15782_v18, %s11862_s13 }
 0x787   : > { %9066 = vst.msk [vmem:[#allocation2 + $0xb0] sm:$0xff] %vm8059_vm4, %v9034_v62  ;;  %v9418_v2 = vadd.f32 %v9336_v39, %v9290_v45  ;;  %8299 = vst.msk [vmem:[#allocation2 + $0xe1] sm:$0xff] %vm8059_vm4, %v8267_v34  ;;  %v8109_v45 = vld [vmem:[#allocation2 + $0xf9] sm:$0xff] }
 0x788   : > { %v8570_v26 = vpop.permute.xlu0 %8569  ;;  %v8379_v48 = vpop.permute.xlu1 %8378 }
 0x789   : > { %9450 = vst.msk [vmem:[#allocation2 + $0x99] sm:$0xff] %vm8059_vm4, %v9418_v2  ;;  %v8651_v15 = vadd.f32 %v8570_v26, %v8523_v3 }
 0x78a   : > { %v8330_v9 = vld [vmem:[#allocation2 + $0xd8] sm:$0xff]  ;;  %8777 = vrot.lane.b32.xlu0 %v15772_v35, %s11864_s15  ;;  %8587 = vrot.lane.b32.xlu1 %v15782_v18, %s11863_s14 }
 0x78b   : > { %v8458_v28 = vadd.f32 %v8377_v16, %v8330_v9  ;;  %8683 = vst.msk [vmem:[#allocation2 + $0xc2] sm:$0xff] %vm8059_vm4, %v8651_v15 }
 0x78c   : > { %v9481_v38 = vld [vmem:[#allocation2 + $0x90] sm:$0xff]  ;;  %v8762_v52 = vpop.permute.xlu0 %8761  ;;  %v8572_v11 = vpop.permute.xlu1 %8571 }
 0x78d   : > { %v9513_v27 = vadd.f32 %v9481_v38, %v15679_v14  ;;  %8490 = vst.msk [vmem:[#allocation2 + $0xd8] sm:$0xff] %vm8059_vm4, %v8458_v28  ;;  %v8652_v54 = vadd.f32 %v8572_v11, %v8524_v36 }
 0x78e   : > { %v8331_v44 = vld [vmem:[#allocation2 + $0xe0] sm:$0xff]  ;;  %8969 = vrot.lane.b32.xlu0 %v15772_v35, %s11865_s16  ;;  %8779 = vrot.lane.b32.xlu1 %v15782_v18, %s11864_s15  ;;  %v9099_v21 = vld [vmem:[#allocation2 + $0xaa] sm:$0xff]  ;;  %v9100_v50 = vld [vmem:[#allocation2 + $0xb2] sm:$0xff] }
 0x78f   : > { %9545 = vst.msk [vmem:[#allocation2 + $0x90] sm:$0xff] %vm8059_vm4, %v9513_v27  ;;  %v8459_v60 = vadd.f32 %v8379_v48, %v8331_v44  ;;  %8684 = vst.msk [vmem:[#allocation2 + $0xca] sm:$0xff] %vm8059_vm4, %v8652_v54 }
 0x790   : > { %v9482_v37 = vld [vmem:[#allocation2 + $0x98] sm:$0xff]  ;;  %v8954_v58 = vpop.permute.xlu0 %8953  ;;  %v8764_v1 = vpop.permute.xlu1 %8763 }
 0x791   : > { %v9514_v14 = vadd.f32 %v9482_v37, %v15689_v33  ;;  %8491 = vst.msk [vmem:[#allocation2 + $0xe0] sm:$0xff] %vm8059_vm4, %v8459_v60 }
 0x792   : > { %v8715_v12 = vld [vmem:[#allocation2 + $0xc1] sm:$0xff]  ;;  %9161 = vrot.lane.b32.xlu0 %v15772_v35, %s11866_s17  ;;  %8971 = vrot.lane.b32.xlu1 %v15782_v18, %s11865_s16 }
 0x793   : > { %9546 = vst.msk [vmem:[#allocation2 + $0x98] sm:$0xff] %vm8059_vm4, %v9514_v14  ;;  %v8843_v57 = vadd.f32 %v8762_v52, %v8715_v12 }
 0x794   : > { %v9146_v40 = vpop.permute.xlu0 %9145  ;;  %v8956_v4 = vpop.permute.xlu1 %8955 }
 0x795   : > { %8875 = vst.msk [vmem:[#allocation2 + $0xc1] sm:$0xff] %vm8059_vm4, %v8843_v57  ;;  %v9227_v46 = vadd.f32 %v9146_v40, %v9099_v21 }
 0x796   : > { %v8716_v51 = vld [vmem:[#allocation2 + $0xc9] sm:$0xff]  ;;  %9353 = vrot.lane.b32.xlu0 %v15772_v35, %s11867_s19  ;;  %9163 = vrot.lane.b32.xlu1 %v15782_v18, %s11866_s17 }
 0x797   : > { %v8844_v33 = vadd.f32 %v8764_v1, %v8716_v51  ;;  %9259 = vst.msk [vmem:[#allocation2 + $0xaa] sm:$0xff] %vm8059_vm4, %v9227_v46 }
 0x798   : > { %v9338_v39 = vpop.permute.xlu0 %9337  ;;  %v9148_v20 = vpop.permute.xlu1 %9147  ;;  %v8525_v15 = vld [vmem:[#allocation2 + $0xda] sm:$0xff]  ;;  %v8526_v54 = vld [vmem:[#allocation2 + $0xe2] sm:$0xff] }
 0x799   : > { %8876 = vst.msk [vmem:[#allocation2 + $0xc9] sm:$0xff] %vm8059_vm4, %v8844_v33  ;;  %v9228_v17 = vadd.f32 %v9148_v20, %v9100_v50 }
 0x79a   : > { %9355 = vrot.lane.b32.xlu1 %v15782_v18, %s11867_s19  ;;  %8204 = vrot.lane.b32.xlu0 %v15792_v30, %s11861_s12 }
 0x79b   : > { %9260 = vst.msk [vmem:[#allocation2 + $0xb2] sm:$0xff] %vm8059_vm4, %v9228_v17 }
 0x79c   : > { %v8907_v35 = vld [vmem:[#allocation2 + $0xc0] sm:$0xff]  ;;  %v9340_v24 = vpop.permute.xlu1 %9339  ;;  %v8189_v43 = vpop.permute.xlu0 %8188 }
 0x79d   : > { %v9035_v10 = vadd.f32 %v8954_v58, %v8907_v35  ;;  %v8268_v16 = vadd.f32 %v8189_v43, %v8108_v0  ;;  %v8110_v0 = vld [vmem:[#allocation2 + $0x109] sm:$0xff] }
 0x79e   : > { %v9291_v61 = vld [vmem:[#allocation2 + $0xa9] sm:$0xff]  ;;  %8396 = vrot.lane.b32.xlu0 %v15792_v30, %s11862_s13  ;;  %8206 = vrot.lane.b32.xlu1 %v15802_v8, %s11861_s12 }
 0x79f   : > { %9067 = vst.msk [vmem:[#allocation2 + $0xc0] sm:$0xff] %vm8059_vm4, %v9035_v10  ;;  %v9419_v18 = vadd.f32 %v9338_v39, %v9291_v61  ;;  %8300 = vst.msk [vmem:[#allocation2 + $0xf1] sm:$0xff] %vm8059_vm4, %v8268_v16 }
 0x7a0   : > { %v8908_v32 = vld [vmem:[#allocation2 + $0xc8] sm:$0xff]  ;;  %v8381_v62 = vpop.permute.xlu0 %8380  ;;  %v8191_v34 = vpop.permute.xlu1 %8190 }
 0x7a1   : > { %v9036_v2 = vadd.f32 %v8956_v4, %v8908_v32  ;;  %9451 = vst.msk [vmem:[#allocation2 + $0xa9] sm:$0xff] %vm8059_vm4, %v9419_v18  ;;  %v8269_v3 = vadd.f32 %v8191_v34, %v8109_v45  ;;  %v8111_v34 = vld [vmem:[#allocation2 + $0x111] sm:$0xff] }
 0x7a2   : > { %v9292_v26 = vld [vmem:[#allocation2 + $0xb1] sm:$0xff]  ;;  %8589 = vrot.lane.b32.xlu0 %v15792_v30, %s11863_s14  ;;  %8398 = vrot.lane.b32.xlu1 %v15802_v8, %s11862_s13 }
 0x7a3   : > { %9068 = vst.msk [vmem:[#allocation2 + $0xc8] sm:$0xff] %vm8059_vm4, %v9036_v2  ;;  %v9420_v48 = vadd.f32 %v9340_v24, %v9292_v26  ;;  %8301 = vst.msk [vmem:[#allocation2 + $0xf9] sm:$0xff] %vm8059_vm4, %v8269_v3 }
 0x7a4   : > { %v8574_v9 = vpop.permute.xlu0 %8573  ;;  %v8383_v28 = vpop.permute.xlu1 %8382 }
 0x7a5   : > { %9452 = vst.msk [vmem:[#allocation2 + $0xb1] sm:$0xff] %vm8059_vm4, %v9420_v48  ;;  %v8653_v38 = vadd.f32 %v8574_v9, %v8525_v15 }
 0x7a6   : > { %v8332_v52 = vld [vmem:[#allocation2 + $0xf0] sm:$0xff]  ;;  %8781 = vrot.lane.b32.xlu0 %v15792_v30, %s11864_s15  ;;  %8591 = vrot.lane.b32.xlu1 %v15802_v8, %s11863_s14 }
 0x7a7   : > { %v8460_v36 = vadd.f32 %v8381_v62, %v8332_v52  ;;  %8685 = vst.msk [vmem:[#allocation2 + $0xda] sm:$0xff] %vm8059_vm4, %v8653_v38 }
 0x7a8   : > { %v9483_v11 = vld [vmem:[#allocation2 + $0xa8] sm:$0xff]  ;;  %v8766_v27 = vpop.permute.xlu0 %8765  ;;  %v8576_v44 = vpop.permute.xlu1 %8575 }
 0x7a9   : > { %v9515_v60 = vadd.f32 %v9483_v11, %v15699_v47  ;;  %8492 = vst.msk [vmem:[#allocation2 + $0xf0] sm:$0xff] %vm8059_vm4, %v8460_v36  ;;  %v8654_v37 = vadd.f32 %v8576_v44, %v8526_v54 }
 0x7aa   : > { %v8333_v58 = vld [vmem:[#allocation2 + $0xf8] sm:$0xff]  ;;  %8973 = vrot.lane.b32.xlu0 %v15792_v30, %s11865_s16  ;;  %8783 = vrot.lane.b32.xlu1 %v15802_v8, %s11864_s15  ;;  %v9101_v4 = vld [vmem:[#allocation2 + $0xc2] sm:$0xff]  ;;  %v9102_v20 = vld [vmem:[#allocation2 + $0xca] sm:$0xff] }
 0x7ab   : > { %9547 = vst.msk [vmem:[#allocation2 + $0xa8] sm:$0xff] %vm8059_vm4, %v9515_v60  ;;  %v8461_v1 = vadd.f32 %v8383_v28, %v8333_v58  ;;  %8686 = vst.msk [vmem:[#allocation2 + $0xe2] sm:$0xff] %vm8059_vm4, %v8654_v37 }
 0x7ac   : > { %v9484_v14 = vld [vmem:[#allocation2 + $0xb0] sm:$0xff]  ;;  %v8958_v12 = vpop.permute.xlu0 %8957  ;;  %v8768_v57 = vpop.permute.xlu1 %8767 }
 0x7ad   : > { %v9516_v47 = vadd.f32 %v9484_v14, %v15709_v42  ;;  %8493 = vst.msk [vmem:[#allocation2 + $0xf8] sm:$0xff] %vm8059_vm4, %v8461_v1 }
 0x7ae   : > { %v8717_v21 = vld [vmem:[#allocation2 + $0xd9] sm:$0xff]  ;;  %9165 = vrot.lane.b32.xlu0 %v15792_v30, %s11866_s17  ;;  %8975 = vrot.lane.b32.xlu1 %v15802_v8, %s11865_s16 }
 0x7af   : > { %9548 = vst.msk [vmem:[#allocation2 + $0xb0] sm:$0xff] %vm8059_vm4, %v9516_v47  ;;  %v8845_v40 = vadd.f32 %v8766_v27, %v8717_v21 }
 0x7b0   : > { %v9150_v46 = vpop.permute.xlu0 %9149  ;;  %v8960_v51 = vpop.permute.xlu1 %8959 }
 0x7b1   : > { %8877 = vst.msk [vmem:[#allocation2 + $0xd9] sm:$0xff] %vm8059_vm4, %v8845_v40  ;;  %v9229_v33 = vadd.f32 %v9150_v46, %v9101_v4 }
 0x7b2   : > { %v8718_v39 = vld [vmem:[#allocation2 + $0xe1] sm:$0xff]  ;;  %9357 = vrot.lane.b32.xlu0 %v15792_v30, %s11867_s19  ;;  %9167 = vrot.lane.b32.xlu1 %v15802_v8, %s11866_s17 }
 0x7b3   : > { %v8846_v42 = vadd.f32 %v8768_v57, %v8718_v39  ;;  %9261 = vst.msk [vmem:[#allocation2 + $0xc2] sm:$0xff] %vm8059_vm4, %v9229_v33 }
 0x7b4   : > { %v9342_v50 = vpop.permute.xlu0 %9341  ;;  %v9152_v17 = vpop.permute.xlu1 %9151  ;;  %v8527_v48 = vld [vmem:[#allocation2 + $0xf2] sm:$0xff]  ;;  %v8528_v27 = vld [vmem:[#allocation2 + $0xfa] sm:$0xff] }
 0x7b5   : > { %8878 = vst.msk [vmem:[#allocation2 + $0xe1] sm:$0xff] %vm8059_vm4, %v8846_v42  ;;  %v9230_v35 = vadd.f32 %v9152_v17, %v9102_v20 }
 0x7b6   : > { %9359 = vrot.lane.b32.xlu1 %v15802_v8, %s11867_s19  ;;  %8208 = vrot.lane.b32.xlu0 %v15812_v25, %s11861_s12 }
 0x7b7   : > { %9262 = vst.msk [vmem:[#allocation2 + $0xca] sm:$0xff] %vm8059_vm4, %v9230_v35  ;;  %v8112_v35 = vld [vmem:[#allocation2 + $0x121] sm:$0xff] }
 0x7b8   : > { %v8909_v30 = vld [vmem:[#allocation2 + $0xd8] sm:$0xff]  ;;  %v9344_v24 = vpop.permute.xlu1 %9343  ;;  %v8193_v43 = vpop.permute.xlu0 %8192 }
 0x7b9   : > { %v9037_v10 = vadd.f32 %v8958_v12, %v8909_v30  ;;  %v8270_v16 = vadd.f32 %v8193_v43, %v8110_v0 }
 0x7ba   : > { %v9293_v61 = vld [vmem:[#allocation2 + $0xc1] sm:$0xff]  ;;  %8400 = vrot.lane.b32.xlu0 %v15812_v25, %s11862_s13  ;;  %8210 = vrot.lane.b32.xlu1 %v15822_v59, %s11861_s12 }
 0x7bb   : > { %9069 = vst.msk [vmem:[#allocation2 + $0xd8] sm:$0xff] %vm8059_vm4, %v9037_v10  ;;  %v9421_v8 = vadd.f32 %v9342_v50, %v9293_v61  ;;  %8302 = vst.msk [vmem:[#allocation2 + $0x109] sm:$0xff] %vm8059_vm4, %v8270_v16  ;;  %v8113_v61 = vld [vmem:[#allocation2 + $0x129] sm:$0xff] }
 0x7bc   : > { %v8910_v18 = vld [vmem:[#allocation2 + $0xe0] sm:$0xff]  ;;  %v8385_v32 = vpop.permute.xlu0 %8384  ;;  %v8195_v62 = vpop.permute.xlu1 %8194 }
 0x7bd   : > { %v9038_v45 = vadd.f32 %v8960_v51, %v8910_v18  ;;  %9453 = vst.msk [vmem:[#allocation2 + $0xc1] sm:$0xff] %vm8059_vm4, %v9421_v8  ;;  %v8271_v2 = vadd.f32 %v8195_v62, %v8111_v34 }
 0x7be   : > { %v9294_v3 = vld [vmem:[#allocation2 + $0xc9] sm:$0xff]  ;;  %8593 = vrot.lane.b32.xlu0 %v15812_v25, %s11863_s14  ;;  %8402 = vrot.lane.b32.xlu1 %v15822_v59, %s11862_s13 }
 0x7bf   : > { %9070 = vst.msk [vmem:[#allocation2 + $0xe0] sm:$0xff] %vm8059_vm4, %v9038_v45  ;;  %v9422_v26 = vadd.f32 %v9344_v24, %v9294_v3  ;;  %8303 = vst.msk [vmem:[#allocation2 + $0x111] sm:$0xff] %vm8059_vm4, %v8271_v2 }
 0x7c0   : > { %v8578_v15 = vpop.permute.xlu0 %8577  ;;  %v8387_v9 = vpop.permute.xlu1 %8386 }
 0x7c1   : > { %9454 = vst.msk [vmem:[#allocation2 + $0xc9] sm:$0xff] %vm8059_vm4, %v9422_v26  ;;  %v8655_v28 = vadd.f32 %v8578_v15, %v8527_v48 }
 0x7c2   : > { %v8334_v38 = vld [vmem:[#allocation2 + $0x108] sm:$0xff]  ;;  %8785 = vrot.lane.b32.xlu0 %v15812_v25, %s11864_s15  ;;  %8595 = vrot.lane.b32.xlu1 %v15822_v59, %s11863_s14 }
 0x7c3   : > { %v8462_v52 = vadd.f32 %v8385_v32, %v8334_v38  ;;  %8687 = vst.msk [vmem:[#allocation2 + $0xf2] sm:$0xff] %vm8059_vm4, %v8655_v28 }
 0x7c4   : > { %v9485_v36 = vld [vmem:[#allocation2 + $0xc0] sm:$0xff]  ;;  %v8770_v11 = vpop.permute.xlu0 %8769  ;;  %v8580_v54 = vpop.permute.xlu1 %8579 }
 0x7c5   : > { %v9517_v44 = vadd.f32 %v9485_v36, %v15719_v5  ;;  %8494 = vst.msk [vmem:[#allocation2 + $0x108] sm:$0xff] %vm8059_vm4, %v8462_v52  ;;  %v8656_v60 = vadd.f32 %v8580_v54, %v8528_v27 }
 0x7c6   : > { %v8335_v37 = vld [vmem:[#allocation2 + $0x110] sm:$0xff]  ;;  %8977 = vrot.lane.b32.xlu0 %v15812_v25, %s11865_s16  ;;  %8787 = vrot.lane.b32.xlu1 %v15822_v59, %s11864_s15  ;;  %v9103_v21 = vld [vmem:[#allocation2 + $0xda] sm:$0xff]  ;;  %v9104_v39 = vld [vmem:[#allocation2 + $0xe2] sm:$0xff] }
 0x7c7   : > { %9549 = vst.msk [vmem:[#allocation2 + $0xc0] sm:$0xff] %vm8059_vm4, %v9517_v44  ;;  %v8463_v58 = vadd.f32 %v8387_v9, %v8335_v37  ;;  %8688 = vst.msk [vmem:[#allocation2 + $0xfa] sm:$0xff] %vm8059_vm4, %v8656_v60 }
 0x7c8   : > { %v9486_v1 = vld [vmem:[#allocation2 + $0xc8] sm:$0xff]  ;;  %v8962_v14 = vpop.permute.xlu0 %8961  ;;  %v8772_v12 = vpop.permute.xlu1 %8771 }
 0x7c9   : > { %v9518_v5 = vadd.f32 %v9486_v1, %v15729_v19  ;;  %8495 = vst.msk [vmem:[#allocation2 + $0x110] sm:$0xff] %vm8059_vm4, %v8463_v58 }
 0x7ca   : > { %v8719_v57 = vld [vmem:[#allocation2 + $0xf1] sm:$0xff]  ;;  %9169 = vrot.lane.b32.xlu0 %v15812_v25, %s11866_s17  ;;  %8979 = vrot.lane.b32.xlu1 %v15822_v59, %s11865_s16 }
 0x7cb   : > { %9550 = vst.msk [vmem:[#allocation2 + $0xc8] sm:$0xff] %vm8059_vm4, %v9518_v5  ;;  %v8847_v47 = vadd.f32 %v8770_v11, %v8719_v57 }
 0x7cc   : > { %v9154_v40 = vpop.permute.xlu0 %9153  ;;  %v8964_v4 = vpop.permute.xlu1 %8963 }
 0x7cd   : > { %8879 = vst.msk [vmem:[#allocation2 + $0xf1] sm:$0xff] %vm8059_vm4, %v8847_v47  ;;  %v9231_v46 = vadd.f32 %v9154_v40, %v9103_v21 }
 0x7ce   : > { %v8720_v51 = vld [vmem:[#allocation2 + $0xf9] sm:$0xff]  ;;  %9361 = vrot.lane.b32.xlu0 %v15812_v25, %s11867_s19  ;;  %9171 = vrot.lane.b32.xlu1 %v15822_v59, %s11866_s17 }
 0x7cf   : > { %v8848_v19 = vadd.f32 %v8772_v12, %v8720_v51  ;;  %9263 = vst.msk [vmem:[#allocation2 + $0xda] sm:$0xff] %vm8059_vm4, %v9231_v46 }
 0x7d0   : > { %v9346_v33 = vpop.permute.xlu0 %9345  ;;  %v9156_v42 = vpop.permute.xlu1 %9155  ;;  %v8529_v34 = vld [vmem:[#allocation2 + $0x10a] sm:$0xff]  ;;  %v8530_v28 = vld [vmem:[#allocation2 + $0x112] sm:$0xff] }
 0x7d1   : > { %8880 = vst.msk [vmem:[#allocation2 + $0xf9] sm:$0xff] %vm8059_vm4, %v8848_v19  ;;  %v9232_v50 = vadd.f32 %v9156_v42, %v9104_v39  ;;  %v8114_v19 = vld [vmem:[#allocation2 + $0x139] sm:$0xff] }
 0x7d2   : > { %9363 = vrot.lane.b32.xlu1 %v15822_v59, %s11867_s19  ;;  %8212 = vrot.lane.b32.xlu0 %v15832_v63, %s11861_s12 }
 0x7d3   : > { %9264 = vst.msk [vmem:[#allocation2 + $0xe2] sm:$0xff] %vm8059_vm4, %v9232_v50 }
 0x7d4   : > { %v8911_v25 = vld [vmem:[#allocation2 + $0xf0] sm:$0xff]  ;;  %v9348_v20 = vpop.permute.xlu1 %9347  ;;  %v8197_v17 = vpop.permute.xlu0 %8196 }
 0x7d5   : > { %v9039_v30 = vadd.f32 %v8962_v14, %v8911_v25  ;;  %v8272_v24 = vadd.f32 %v8197_v17, %v8112_v35  ;;  %v8115_v17 = vld [vmem:[#allocation2 + $0x141] sm:$0xff] }
 0x7d6   : > { %v9295_v43 = vld [vmem:[#allocation2 + $0xd9] sm:$0xff]  ;;  %8404 = vrot.lane.b32.xlu0 %v15832_v63, %s11862_s13  ;;  %8214 = vrot.lane.b32.xlu1 %v15842_v56, %s11861_s12 }
 0x7d7   : > { %9071 = vst.msk [vmem:[#allocation2 + $0xf0] sm:$0xff] %vm8059_vm4, %v9039_v30  ;;  %v9423_v59 = vadd.f32 %v9346_v33, %v9295_v43  ;;  %8304 = vst.msk [vmem:[#allocation2 + $0x121] sm:$0xff] %vm8059_vm4, %v8272_v24 }
 0x7d8   : > { %v8912_v0 = vld [vmem:[#allocation2 + $0xf8] sm:$0xff]  ;;  %v8389_v10 = vpop.permute.xlu0 %8388  ;;  %v8199_v16 = vpop.permute.xlu1 %8198 }
 0x7d9   : > { %v9040_v8 = vadd.f32 %v8964_v4, %v8912_v0  ;;  %9455 = vst.msk [vmem:[#allocation2 + $0xd9] sm:$0xff] %vm8059_vm4, %v9423_v59  ;;  %v8273_v18 = vadd.f32 %v8199_v16, %v8113_v61 }
 0x7da   : > { %v9296_v32 = vld [vmem:[#allocation2 + $0xe1] sm:$0xff]  ;;  %8597 = vrot.lane.b32.xlu0 %v15832_v63, %s11863_s14  ;;  %8406 = vrot.lane.b32.xlu1 %v15842_v56, %s11862_s13 }
 0x7db   : > { %9072 = vst.msk [vmem:[#allocation2 + $0xf8] sm:$0xff] %vm8059_vm4, %v9040_v8  ;;  %v9424_v62 = vadd.f32 %v9348_v20, %v9296_v32  ;;  %8305 = vst.msk [vmem:[#allocation2 + $0x129] sm:$0xff] %vm8059_vm4, %v8273_v18 }
 0x7dc   : > { %v8582_v45 = vpop.permute.xlu0 %8581  ;;  %v8391_v2 = vpop.permute.xlu1 %8390 }
 0x7dd   : > { %9456 = vst.msk [vmem:[#allocation2 + $0xe1] sm:$0xff] %vm8059_vm4, %v9424_v62  ;;  %v8657_v3 = vadd.f32 %v8582_v45, %v8529_v34 }
 0x7de   : > { %v8336_v26 = vld [vmem:[#allocation2 + $0x120] sm:$0xff]  ;;  %8789 = vrot.lane.b32.xlu0 %v15832_v63, %s11864_s15  ;;  %8599 = vrot.lane.b32.xlu1 %v15842_v56, %s11863_s14 }
 0x7df   : > { %v8464_v48 = vadd.f32 %v8389_v10, %v8336_v26  ;;  %8689 = vst.msk [vmem:[#allocation2 + $0x10a] sm:$0xff] %vm8059_vm4, %v8657_v3 }
 0x7e0   : > { %v9487_v15 = vld [vmem:[#allocation2 + $0xd8] sm:$0xff]  ;;  %v8774_v9 = vpop.permute.xlu0 %8773  ;;  %v8584_v38 = vpop.permute.xlu1 %8583 }
 0x7e1   : > { %v9519_v52 = vadd.f32 %v9487_v15, %v15739_v29  ;;  %8496 = vst.msk [vmem:[#allocation2 + $0x120] sm:$0xff] %vm8059_vm4, %v8464_v48  ;;  %v8658_v36 = vadd.f32 %v8584_v38, %v8530_v28 }
 0x7e2   : > { %v8337_v11 = vld [vmem:[#allocation2 + $0x128] sm:$0xff]  ;;  %8981 = vrot.lane.b32.xlu0 %v15832_v63, %s11865_s16  ;;  %8791 = vrot.lane.b32.xlu1 %v15842_v56, %s11864_s15  ;;  %v9105_v1 = vld [vmem:[#allocation2 + $0xf2] sm:$0xff]  ;;  %v9106_v21 = vld [vmem:[#allocation2 + $0xfa] sm:$0xff] }
 0x7e3   : > { %9551 = vst.msk [vmem:[#allocation2 + $0xd8] sm:$0xff] %vm8059_vm4, %v9519_v52  ;;  %v8465_v27 = vadd.f32 %v8391_v2, %v8337_v11  ;;  %8690 = vst.msk [vmem:[#allocation2 + $0x112] sm:$0xff] %vm8059_vm4, %v8658_v36 }
 0x7e4   : > { %v9488_v54 = vld [vmem:[#allocation2 + $0xe0] sm:$0xff]  ;;  %v8966_v44 = vpop.permute.xlu0 %8965  ;;  %v8776_v60 = vpop.permute.xlu1 %8775 }
 0x7e5   : > { %v9520_v29 = vadd.f32 %v9488_v54, %v15749_v7  ;;  %8497 = vst.msk [vmem:[#allocation2 + $0x128] sm:$0xff] %vm8059_vm4, %v8465_v27 }
 0x7e6   : > { %v8721_v37 = vld [vmem:[#allocation2 + $0x109] sm:$0xff]  ;;  %9173 = vrot.lane.b32.xlu0 %v15832_v63, %s11866_s17  ;;  %8983 = vrot.lane.b32.xlu1 %v15842_v56, %s11865_s16 }
 0x7e7   : > { %9552 = vst.msk [vmem:[#allocation2 + $0xe0] sm:$0xff] %vm8059_vm4, %v9520_v29  ;;  %v8849_v58 = vadd.f32 %v8774_v9, %v8721_v37 }
 0x7e8   : > { %v9158_v14 = vpop.permute.xlu0 %9157  ;;  %v8968_v12 = vpop.permute.xlu1 %8967 }
 0x7e9   : > { %8881 = vst.msk [vmem:[#allocation2 + $0x109] sm:$0xff] %vm8059_vm4, %v8849_v58  ;;  %v9233_v5 = vadd.f32 %v9158_v14, %v9105_v1  ;;  %v8116_v14 = vld [vmem:[#allocation2 + $0x151] sm:$0xff] }
 0x7ea   : > { %v8722_v57 = vld [vmem:[#allocation2 + $0x111] sm:$0xff]  ;;  %9365 = vrot.lane.b32.xlu0 %v15832_v63, %s11867_s19  ;;  %9175 = vrot.lane.b32.xlu1 %v15842_v56, %s11866_s17 }
 0x7eb   : > { %v8850_v7 = vadd.f32 %v8776_v60, %v8722_v57  ;;  %9265 = vst.msk [vmem:[#allocation2 + $0xf2] sm:$0xff] %vm8059_vm4, %v9233_v5 }
 0x7ec   : > { %v9350_v47 = vpop.permute.xlu0 %9349  ;;  %v9160_v40 = vpop.permute.xlu1 %9159  ;;  %v8531_v59 = vld [vmem:[#allocation2 + $0x122] sm:$0xff]  ;;  %v8532_v62 = vld [vmem:[#allocation2 + $0x12a] sm:$0xff] }
 0x7ed   : > { %8882 = vst.msk [vmem:[#allocation2 + $0x111] sm:$0xff] %vm8059_vm4, %v8850_v7  ;;  %v9234_v4 = vadd.f32 %v9160_v40, %v9106_v21 }
 0x7ee   : > { %9367 = vrot.lane.b32.xlu1 %v15842_v56, %s11867_s19  ;;  %8216 = vrot.lane.b32.xlu0 %v15855_v55, %s11861_s12 }
 0x7ef   : > { %9266 = vst.msk [vmem:[#allocation2 + $0xfa] sm:$0xff] %vm8059_vm4, %v9234_v4  ;;  %v8117_v4 = vld [vmem:[#allocation2 + $0x159] sm:$0xff] }
 0x7f0   : > { %v8913_v63 = vld [vmem:[#allocation2 + $0x108] sm:$0xff]  ;;  %v9352_v46 = vpop.permute.xlu1 %9351  ;;  %v8201_v51 = vpop.permute.xlu0 %8200 }
 0x7f1   : > { %v9041_v33 = vadd.f32 %v8966_v44, %v8913_v63  ;;  %v8274_v39 = vadd.f32 %v8201_v51, %v8114_v19 }
 0x7f2   : > { %v9297_v42 = vld [vmem:[#allocation2 + $0xf1] sm:$0xff]  ;;  %8408 = vrot.lane.b32.xlu0 %v15855_v55, %s11862_s13  ;;  %8218 = vrot.lane.b32.xlu1 %v15865_v6, %s11861_s12 }
 0x7f3   : > { %9073 = vst.msk [vmem:[#allocation2 + $0x108] sm:$0xff] %vm8059_vm4, %v9041_v33  ;;  %v9425_v56 = vadd.f32 %v9350_v47, %v9297_v42  ;;  %8306 = vst.msk [vmem:[#allocation2 + $0x139] sm:$0xff] %vm8059_vm4, %v8274_v39 }
 0x7f4   : > { %v8914_v50 = vld [vmem:[#allocation2 + $0x110] sm:$0xff]  ;;  %v8393_v25 = vpop.permute.xlu0 %8392  ;;  %v8203_v20 = vpop.permute.xlu1 %8202 }
 0x7f5   : > { %v9042_v35 = vadd.f32 %v8968_v12, %v8914_v50  ;;  %9457 = vst.msk [vmem:[#allocation2 + $0xf1] sm:$0xff] %vm8059_vm4, %v9425_v56  ;;  %v8275_v30 = vadd.f32 %v8203_v20, %v8115_v17 }
 0x7f6   : > { %v9298_v24 = vld [vmem:[#allocation2 + $0xf9] sm:$0xff]  ;;  %8601 = vrot.lane.b32.xlu0 %v15855_v55, %s11863_s14  ;;  %8410 = vrot.lane.b32.xlu1 %v15865_v6, %s11862_s13 }
 0x7f7   : > { %9074 = vst.msk [vmem:[#allocation2 + $0x110] sm:$0xff] %vm8059_vm4, %v9042_v35  ;;  %v9426_v43 = vadd.f32 %v9352_v46, %v9298_v24  ;;  %8307 = vst.msk [vmem:[#allocation2 + $0x141] sm:$0xff] %vm8059_vm4, %v8275_v30 }
 0x7f8   : > { %v8586_v0 = vpop.permute.xlu0 %8585  ;;  %v8395_v10 = vpop.permute.xlu1 %8394 }
 0x7f9   : > { %9458 = vst.msk [vmem:[#allocation2 + $0xf9] sm:$0xff] %vm8059_vm4, %v9426_v43  ;;  %v8659_v16 = vadd.f32 %v8586_v0, %v8531_v59 }
 0x7fa   : > { %v8338_v61 = vld [vmem:[#allocation2 + $0x138] sm:$0xff]  ;;  %8793 = vrot.lane.b32.xlu0 %v15855_v55, %s11864_s15  ;;  %8603 = vrot.lane.b32.xlu1 %v15865_v6, %s11863_s14 }
 0x7fb   : > { %v8466_v8 = vadd.f32 %v8393_v25, %v8338_v61  ;;  %8691 = vst.msk [vmem:[#allocation2 + $0x122] sm:$0xff] %vm8059_vm4, %v8659_v16 }
 0x7fc   : > { %v9489_v18 = vld [vmem:[#allocation2 + $0xf0] sm:$0xff]  ;;  %v8778_v32 = vpop.permute.xlu0 %8777  ;;  %v8588_v34 = vpop.permute.xlu1 %8587 }
 0x7fd   : > { %v9521_v45 = vadd.f32 %v9489_v18, %v15759_v41  ;;  %8498 = vst.msk [vmem:[#allocation2 + $0x138] sm:$0xff] %vm8059_vm4, %v8466_v8  ;;  %v8660_v2 = vadd.f32 %v8588_v34, %v8532_v62  ;;  %v9565_v18 = vld [vmem:[#allocation2 + $0x19] sm:$0xff] }
 0x7fe   : > { %v8339_v3 = vld [vmem:[#allocation2 + $0x140] sm:$0xff]  ;;  %9177 = vrot.lane.b32.xlu0 %v15855_v55, %s11866_s17  ;;  %8795 = vrot.lane.b32.xlu1 %v15865_v6, %s11864_s15  ;;  %v9107_v52 = vld [vmem:[#allocation2 + $0x10a] sm:$0xff]  ;;  %v9108_v60 = vld [vmem:[#allocation2 + $0x112] sm:$0xff] }
 0x7ff   : > { %9553 = vst.msk [vmem:[#allocation2 + $0xf0] sm:$0xff] %vm8059_vm4, %v9521_v45  ;;  %v8467_v26 = vadd.f32 %v8395_v10, %v8339_v3  ;;  %8692 = vst.msk [vmem:[#allocation2 + $0x12a] sm:$0xff] %vm8059_vm4, %v8660_v2 }
 0x800   : > { %v9490_v48 = vld [vmem:[#allocation2 + $0xf8] sm:$0xff]  ;;  %v8970_v15 = vpop.permute.xlu0 %8969  ;;  %v8780_v9 = vpop.permute.xlu1 %8779 }
 0x801   : > { %v9522_v41 = vadd.f32 %v9490_v48, %v15769_v49  ;;  %8499 = vst.msk [vmem:[#allocation2 + $0x140] sm:$0xff] %vm8059_vm4, %v8467_v26  ;;  %v9566_v48 = vld [vmem:[#allocation2 + $0x21] sm:$0xff] }
 0x802   : > { %v8723_v28 = vld [vmem:[#allocation2 + $0x121] sm:$0xff]  ;;  %9369 = vrot.lane.b32.xlu0 %v15855_v55, %s11867_s19  ;;  %9179 = vrot.lane.b32.xlu1 %v15865_v6, %s11866_s17 }
 0x803   : > { %9554 = vst.msk [vmem:[#allocation2 + $0xf8] sm:$0xff] %vm8059_vm4, %v9522_v41  ;;  %v8851_v38 = vadd.f32 %v8778_v32, %v8723_v28  ;;  %v16413_v32 = vld [vmem:[%s16551_s7] ss:$0 sm:$0xff] }
 0x804   : > { %v9162_v36 = vpop.permute.xlu0 %9161  ;;  %v8972_v11 = vpop.permute.xlu1 %8971 }
 0x805   : > { %8883 = vst.msk [vmem:[#allocation2 + $0x121] sm:$0xff] %vm8059_vm4, %v8851_v38  ;;  %v9235_v27 = vadd.f32 %v9162_v36, %v9107_v52  ;;  %v9605_v38 = vadd.f32 %v16413_v32, %v9566_v48  ;;  %v9567_v52 = vld [vmem:[#allocation2 + $0x31] sm:$0xff] }
 0x806   : > { %v8724_v54 = vld [vmem:[#allocation2 + $0x129] sm:$0xff]  ;;  %8985 = vrot.lane.b32.xlu0 %v15855_v55, %s11865_s16  ;;  %9371 = vrot.lane.b32.xlu1 %v15865_v6, %s11867_s19 }
 0x807   : > { %v8852_v49 = vadd.f32 %v8780_v9, %v8724_v54  ;;  %9267 = vst.msk [vmem:[#allocation2 + $0x10a] sm:$0xff] %vm8059_vm4, %v9235_v27  ;;  %v8118_v54 = vld [vmem:[#allocation2 + $0x169] sm:$0xff] }
 0x808   : > { %v9354_v44 = vpop.permute.xlu0 %9353  ;;  %v9164_v29 = vpop.permute.xlu1 %9163  ;;  %v8533_v19 = vld [vmem:[#allocation2 + $0x13a] sm:$0xff]  ;;  %v8534_v17 = vld [vmem:[#allocation2 + $0x142] sm:$0xff] }
 0x809   : > { %8884 = vst.msk [vmem:[#allocation2 + $0x129] sm:$0xff] %vm8059_vm4, %v8852_v49  ;;  %v9236_v37 = vadd.f32 %v9164_v29, %v9108_v60  ;;  %v9606_v29 = vadd.f32 %v16413_v32, %v9567_v52 }
 0x80a   : > { %8987 = vrot.lane.b32.xlu1 %v15865_v6, %s11865_s16 }
 0x80b   : > { %9268 = vst.msk [vmem:[#allocation2 + $0x112] sm:$0xff] %vm8059_vm4, %v9236_v37 }
 0x80c   : > { %v8915_v58 = vld [vmem:[#allocation2 + $0x120] sm:$0xff]  ;;  %v9356_v1 = vpop.permute.xlu1 %9355  ;;  %v8205_v55 = vpop.permute.xlu0 %8204 }
 0x80d   : > { %v9043_v12 = vadd.f32 %v8970_v15, %v8915_v58  ;;  %v8276_v5 = vadd.f32 %v8205_v55, %v8116_v14  ;;  %v9568_v58 = vld [vmem:[#allocation2 + $0x39] sm:$0xff] }
 0x80e   : > { %v9299_v57 = vld [vmem:[#allocation2 + $0x109] sm:$0xff] }
 0x80f   : > { %9075 = vst.msk [vmem:[#allocation2 + $0x120] sm:$0xff] %vm8059_vm4, %v9043_v12  ;;  %v9427_v7 = vadd.f32 %v9354_v44, %v9299_v57  ;;  %8308 = vst.msk [vmem:[#allocation2 + $0x151] sm:$0xff] %vm8059_vm4, %v8276_v5  ;;  %v8119_v12 = vld [vmem:[#allocation2 + $0x171] sm:$0xff] }
 0x810   : > { %v8916_v47 = vld [vmem:[#allocation2 + $0x128] sm:$0xff]  ;;  %v8397_v21 = vpop.permute.xlu0 %8396  ;;  %v8207_v40 = vpop.permute.xlu1 %8206 }
 0x811   : > { %v9044_v63 = vadd.f32 %v8972_v11, %v8916_v47  ;;  %9459 = vst.msk [vmem:[#allocation2 + $0x109] sm:$0xff] %vm8059_vm4, %v9427_v7  ;;  %v8277_v6 = vadd.f32 %v8207_v40, %v8117_v4  ;;  %v9607_v47 = vadd.f32 %v16413_v32, %v9568_v58  ;;  %v9569_v4 = vld [vmem:[#allocation2 + $0x49] sm:$0xff] }
 0x812   : > { %v9300_v46 = vld [vmem:[#allocation2 + $0x111] sm:$0xff] }
 0x813   : > { %9076 = vst.msk [vmem:[#allocation2 + $0x128] sm:$0xff] %vm8059_vm4, %v9044_v63  ;;  %v9428_v51 = vadd.f32 %v9356_v1, %v9300_v46  ;;  %8309 = vst.msk [vmem:[#allocation2 + $0x159] sm:$0xff] %vm8059_vm4, %v8277_v6 }
 0x814   : > { %v8590_v33 = vpop.permute.xlu0 %8589  ;;  %v8399_v39 = vpop.permute.xlu1 %8398 }
 0x815   : > { %9460 = vst.msk [vmem:[#allocation2 + $0x111] sm:$0xff] %vm8059_vm4, %v9428_v51  ;;  %v8661_v42 = vadd.f32 %v8590_v33, %v8533_v19 }
 0x816   : > { %v8340_v56 = vld [vmem:[#allocation2 + $0x150] sm:$0xff] }
 0x817   : > { %v8468_v50 = vadd.f32 %v8397_v21, %v8340_v56  ;;  %8693 = vst.msk [vmem:[#allocation2 + $0x13a] sm:$0xff] %vm8059_vm4, %v8661_v42  ;;  %v9581_v21 = vld [vmem:[#allocation2 + $0xd9] sm:$0xff]  ;;  %v9582_v42 = vld [vmem:[#allocation2 + $0xe1] sm:$0xff] }
 0x818   : > { %v9491_v25 = vld [vmem:[#allocation2 + $0x108] sm:$0xff]  ;;  %v8782_v20 = vpop.permute.xlu0 %8781  ;;  %v8592_v35 = vpop.permute.xlu1 %8591  ;;  %v9620_v19 = vadd.f32 %v16413_v32, %v9581_v21 }
 0x819   : > { %v9523_v30 = vadd.f32 %v9491_v25, %v15779_v13  ;;  %8500 = vst.msk [vmem:[#allocation2 + $0x150] sm:$0xff] %vm8059_vm4, %v8468_v50  ;;  %v8662_v24 = vadd.f32 %v8592_v35, %v8534_v17  ;;  %v9570_v50 = vld [vmem:[#allocation2 + $0x51] sm:$0xff] }
 0x81a   : > { %v8341_v43 = vld [vmem:[#allocation2 + $0x158] sm:$0xff]  ;;  %v9109_v62 = vld [vmem:[#allocation2 + $0x122] sm:$0xff]  ;;  %v9110_v9 = vld [vmem:[#allocation2 + $0x12a] sm:$0xff] }
 0x81b   : > { %9555 = vst.msk [vmem:[#allocation2 + $0x108] sm:$0xff] %vm8059_vm4, %v9523_v30  ;;  %v8469_v59 = vadd.f32 %v8399_v39, %v8341_v43  ;;  %8694 = vst.msk [vmem:[#allocation2 + $0x142] sm:$0xff] %vm8059_vm4, %v8662_v24  ;;  %v9608_v39 = vadd.f32 %v16413_v32, %v9569_v4  ;;  %v9621_v43 = vadd.f32 %v16413_v32, %v9582_v42  ;;  %v9575_v4 = vld [vmem:[#allocation2 + $0x91] sm:$0xff] }
 0x81c   : > { %v9492_v0 = vld [vmem:[#allocation2 + $0x110] sm:$0xff]  ;;  %v8974_v10 = vpop.permute.xlu0 %8973  ;;  %v8784_v16 = vpop.permute.xlu1 %8783 }
 0x81d   : > { %v9524_v61 = vadd.f32 %v9492_v0, %v15789_v31  ;;  %8501 = vst.msk [vmem:[#allocation2 + $0x158] sm:$0xff] %vm8059_vm4, %v8469_v59  ;;  %v9604_v31 = vadd.f32 %v16413_v32, %v9565_v18  ;;  %v9609_v0 = vadd.f32 %v16413_v32, %v9570_v50 }
 0x81e   : > { %v8725_v8 = vld [vmem:[#allocation2 + $0x139] sm:$0xff] }
 0x81f   : > { %9556 = vst.msk [vmem:[#allocation2 + $0x110] sm:$0xff] %vm8059_vm4, %v9524_v61  ;;  %v8853_v13 = vadd.f32 %v8782_v20, %v8725_v8  ;;  %v9571_v61 = vld [vmem:[#allocation2 + $0x61] sm:$0xff] }
 0x820   : > { %v9166_v34 = vpop.permute.xlu0 %9165  ;;  %v8976_v45 = vpop.permute.xlu1 %8975 }
 0x821   : > { %8885 = vst.msk [vmem:[#allocation2 + $0x139] sm:$0xff] %vm8059_vm4, %v8853_v13  ;;  %v9237_v2 = vadd.f32 %v9166_v34, %v9109_v62 }
 0x822   : > { %v8726_v3 = vld [vmem:[#allocation2 + $0x141] sm:$0xff] }
 0x823   : > { %v8854_v26 = vadd.f32 %v8784_v16, %v8726_v3  ;;  %9269 = vst.msk [vmem:[#allocation2 + $0x122] sm:$0xff] %vm8059_vm4, %v9237_v2  ;;  %v9584_v2 = vld [vmem:[#allocation2 + $0xf9] sm:$0xff] }
 0x824   : > { %v9358_v15 = vpop.permute.xlu0 %9357  ;;  %v9168_v41 = vpop.permute.xlu1 %9167  ;;  %9636 = vxpose.xlu0.b32.start [1/16] (narrow) %v9604_v31, 16  ;;  %v8535_v63 = vld [vmem:[#allocation2 + $0x152] sm:$0xff]  ;;  %v8536_v17 = vld [vmem:[#allocation2 + $0x15a] sm:$0xff]  ;;  %v9572_v31 = vld [vmem:[#allocation2 + $0x69] sm:$0xff] }
 0x825   : > { %8886 = vst.msk [vmem:[#allocation2 + $0x141] sm:$0xff] %vm8059_vm4, %v8854_v26  ;;  %v9238_v28 = vadd.f32 %v9168_v41, %v9110_v9  ;;  %v9623_v9 = vadd.f32 %v16413_v32, %v9584_v2 }
 0x827   : > { %9270 = vst.msk [vmem:[#allocation2 + $0x12a] sm:$0xff] %vm8059_vm4, %v9238_v28  ;;  %v9611_v28 = vadd.f32 %v16413_v32, %v9572_v31 }
 0x828   : > { %v8917_v36 = vld [vmem:[#allocation2 + $0x138] sm:$0xff]  ;;  %v9360_v11 = vpop.permute.xlu1 %9359  ;;  %v8209_v27 = vpop.permute.xlu0 %8208  ;;  %9637 = vxpose.xlu0.b32.cont [2/16] (narrow) %v9605_v38, 16  ;;  %v9585_v38 = vld [vmem:[#allocation2 + $0x109] sm:$0xff] }
 0x829   : > { %v9045_v49 = vadd.f32 %v8974_v10, %v8917_v36  ;;  %v8278_v44 = vadd.f32 %v8209_v27, %v8118_v54  ;;  %v9583_v10 = vld [vmem:[#allocation2 + $0xf1] sm:$0xff]  ;;  %v9573_v36 = vld [vmem:[#allocation2 + $0x79] sm:$0xff] }
 0x82a   : > { %v9301_v60 = vld [vmem:[#allocation2 + $0x121] sm:$0xff]  ;;  %v9622_v62 = vadd.f32 %v16413_v32, %v9583_v10 }
 0x82b   : > { %9077 = vst.msk [vmem:[#allocation2 + $0x138] sm:$0xff] %vm8059_vm4, %v9045_v49  ;;  %v9429_v37 = vadd.f32 %v9358_v15, %v9301_v60  ;;  %8310 = vst.msk [vmem:[#allocation2 + $0x169] sm:$0xff] %vm8059_vm4, %v8278_v44  ;;  %v9624_v44 = vadd.f32 %v16413_v32, %v9585_v38  ;;  %v9612_v60 = vadd.f32 %v16413_v32, %v9573_v36 }
 0x82c   : > { %v8918_v1 = vld [vmem:[#allocation2 + $0x140] sm:$0xff]  ;;  %v8401_v55 = vpop.permute.xlu0 %8400  ;;  %v8211_v14 = vpop.permute.xlu1 %8210  ;;  %9638 = vxpose.xlu0.b32.cont [3/16] (narrow) %v9606_v29, 16  ;;  %v9586_v29 = vld [vmem:[#allocation2 + $0x111] sm:$0xff] }
 0x82d   : > { %v9046_v5 = vadd.f32 %v8976_v45, %v8918_v1  ;;  %9461 = vst.msk [vmem:[#allocation2 + $0x121] sm:$0xff] %vm8059_vm4, %v9429_v37  ;;  %v8279_v57 = vadd.f32 %v8211_v14, %v8119_v12  ;;  %v9610_v45 = vadd.f32 %v16413_v32, %v9571_v61  ;;  %v9574_v37 = vld [vmem:[#allocation2 + $0x81] sm:$0xff] }
 0x82e   : > { %v9302_v7 = vld [vmem:[#allocation2 + $0x129] sm:$0xff]  ;;  %v8120_v14 = vld [vmem:[#allocation2 + $0x181] sm:$0xff] }
 0x82f   : > { %9078 = vst.msk [vmem:[#allocation2 + $0x140] sm:$0xff] %vm8059_vm4, %v9046_v5  ;;  %v9430_v40 = vadd.f32 %v9360_v11, %v9302_v7  ;;  %8311 = vst.msk [vmem:[#allocation2 + $0x171] sm:$0xff] %vm8059_vm4, %v8279_v57  ;;  %v9625_v57 = vadd.f32 %v16413_v32, %v9586_v29 }
 0x830   : > { %v8594_v6 = vpop.permute.xlu0 %8593  ;;  %v8403_v46 = vpop.permute.xlu1 %8402  ;;  %9639 = vxpose.xlu0.b32.cont [4/16] (narrow) %v9607_v47, 16  ;;  %v9613_v47 = vadd.f32 %v16413_v32, %v9574_v37 }
 0x831   : > { %9462 = vst.msk [vmem:[#allocation2 + $0x129] sm:$0xff] %vm8059_vm4, %v9430_v40  ;;  %v8663_v51 = vadd.f32 %v8594_v6, %v8535_v63 }
 0x832   : > { %v8342_v33 = vld [vmem:[#allocation2 + $0x168] sm:$0xff] }
 0x833   : > { %v8470_v56 = vadd.f32 %v8401_v55, %v8342_v33  ;;  %8695 = vst.msk [vmem:[#allocation2 + $0x152] sm:$0xff] %vm8059_vm4, %v8663_v51  ;;  %9668 = vxpose.xlu1.b32.start [1/16] (narrow) %v9620_v19, 16  ;;  %v8121_v51 = vld [vmem:[#allocation2 + $0x189] sm:$0xff] }
 0x834   : > { %v9493_v25 = vld [vmem:[#allocation2 + $0x120] sm:$0xff]  ;;  %v8786_v20 = vpop.permute.xlu0 %8785  ;;  %v8596_v35 = vpop.permute.xlu1 %8595  ;;  %9640 = vxpose.xlu0.b32.cont [5/16] (narrow) %v9608_v39, 16 }
 0x835   : > { %v9525_v30 = vadd.f32 %v9493_v25, %v15799_v53  ;;  %8502 = vst.msk [vmem:[#allocation2 + $0x168] sm:$0xff] %vm8059_vm4, %v8470_v56  ;;  %v8664_v24 = vadd.f32 %v8596_v35, %v8536_v17  ;;  %v9614_v56 = vadd.f32 %v16413_v32, %v9575_v4 }
 0x836   : > { %v8343_v59 = vld [vmem:[#allocation2 + $0x170] sm:$0xff]  ;;  %v9111_v26 = vld [vmem:[#allocation2 + $0x13a] sm:$0xff]  ;;  %v9112_v27 = vld [vmem:[#allocation2 + $0x142] sm:$0xff] }
 0x837   : > { %9557 = vst.msk [vmem:[#allocation2 + $0x120] sm:$0xff] %vm8059_vm4, %v9525_v30  ;;  %v8471_v16 = vadd.f32 %v8403_v46, %v8343_v59  ;;  %8696 = vst.msk [vmem:[#allocation2 + $0x15a] sm:$0xff] %vm8059_vm4, %v8664_v24  ;;  %9669 = vxpose.xlu1.b32.cont [2/16] (narrow) %v9621_v43, 16 }
 0x838   : > { %v9494_v8 = vld [vmem:[#allocation2 + $0x128] sm:$0xff]  ;;  %v8978_v13 = vpop.permute.xlu0 %8977  ;;  %v8788_v18 = vpop.permute.xlu1 %8787  ;;  %9641 = vxpose.xlu0.b32.cont [6/16] (narrow) %v9609_v0, 16 }
 0x839   : > { %v9526_v53 = vadd.f32 %v9494_v8, %v15809_v23  ;;  %8503 = vst.msk [vmem:[#allocation2 + $0x170] sm:$0xff] %vm8059_vm4, %v8471_v16  ;;  %v9577_v16 = vld [vmem:[#allocation2 + $0xa9] sm:$0xff] }
 0x83a   : > { %v8727_v34 = vld [vmem:[#allocation2 + $0x151] sm:$0xff] }
 0x83b   : > { %9558 = vst.msk [vmem:[#allocation2 + $0x128] sm:$0xff] %vm8059_vm4, %v9526_v53  ;;  %v8855_v3 = vadd.f32 %v8786_v20, %v8727_v34  ;;  %9670 = vxpose.xlu1.b32.cont [3/16] (narrow) %v9622_v62, 16  ;;  %v9576_v20 = vld [vmem:[#allocation2 + $0x99] sm:$0xff] }
 0x83c   : > { %v9170_v48 = vpop.permute.xlu0 %9169  ;;  %v8980_v15 = vpop.permute.xlu1 %8979  ;;  %9642 = vxpose.xlu0.b32.cont [7/16] (narrow) %v9610_v45, 16  ;;  %v9615_v0 = vadd.f32 %v16413_v32, %v9576_v20  ;;  %v9616_v45 = vadd.f32 %v16413_v32, %v9577_v16  ;;  %v16945_v16 = vld [vmem:[#allocation7_spill] sm:$0xff] }
 0x83d   : > { %8887 = vst.msk [vmem:[#allocation2 + $0x151] sm:$0xff] %vm8059_vm4, %v8855_v3  ;;  %v9239_v23 = vadd.f32 %v9170_v48, %v9111_v26  ;;  %v9578_v3 = vld [vmem:[#allocation2 + $0xb1] sm:$0xff] }
 0x83e   : > { %v8728_v41 = vld [vmem:[#allocation2 + $0x159] sm:$0xff] }
 0x83f   : > { %v8856_v52 = vadd.f32 %v8788_v18, %v8728_v41  ;;  %9271 = vst.msk [vmem:[#allocation2 + $0x13a] sm:$0xff] %vm8059_vm4, %v9239_v23  ;;  %9671 = vxpose.xlu1.b32.cont [4/16] (narrow) %v9623_v9, 16  ;;  %v9617_v9 = vadd.f32 %v16413_v32, %v9578_v3 }
 0x840   : > { %v9362_v11 = vpop.permute.xlu0 %9361  ;;  %v9172_v54 = vpop.permute.xlu1 %9171  ;;  %9643 = vxpose.xlu0.b32.cont [8/16] (narrow) %v9611_v28, 16  ;;  %v8537_v17 = vld [vmem:[#allocation2 + $0x16a] sm:$0xff]  ;;  %v9579_v28 = vld [vmem:[#allocation2 + $0xc1] sm:$0xff] }
 0x841   : > { %8888 = vst.msk [vmem:[#allocation2 + $0x159] sm:$0xff] %vm8059_vm4, %v8856_v52  ;;  %v9240_v49 = vadd.f32 %v9172_v54, %v9112_v27  ;;  %v9618_v54 = vadd.f32 %v16413_v32, %v9579_v28 }
 0x842   : > { %v9587_v21 = vld [vmem:[#allocation2 + $0x121] sm:$0xff]  ;;  %v9588_v50 = vld [vmem:[#allocation2 + $0x129] sm:$0xff] }
 0x843   : > { %9272 = vst.msk [vmem:[#allocation2 + $0x142] sm:$0xff] %vm8059_vm4, %v9240_v49  ;;  %9672 = vxpose.xlu1.b32.cont [5/16] (narrow) %v9624_v44, 16  ;;  %v9626_v39 = vadd.f32 %v16413_v32, %v9587_v21  ;;  %v9627_v43 = vadd.f32 %v16413_v32, %v9588_v50  ;;  %v9580_v44 = vld [vmem:[#allocation2 + $0xc9] sm:$0xff] }
 0x844   : > { %v8919_v58 = vld [vmem:[#allocation2 + $0x150] sm:$0xff]  ;;  %v9364_v1 = vpop.permute.xlu1 %9363  ;;  %v8213_v55 = vpop.permute.xlu0 %8212  ;;  %9644 = vxpose.xlu0.b32.cont [9/16] (narrow) %v9612_v60, 16 }
 0x845   : > { %v9047_v12 = vadd.f32 %v8978_v13, %v8919_v58  ;;  %v8280_v5 = vadd.f32 %v8213_v55, %v8120_v14  ;;  %v8538_v13 = vld [vmem:[#allocation2 + $0x172] sm:$0xff] }
 0x846   : > { %v9303_v7 = vld [vmem:[#allocation2 + $0x139] sm:$0xff] }
 0x847   : > { %9079 = vst.msk [vmem:[#allocation2 + $0x150] sm:$0xff] %vm8059_vm4, %v9047_v12  ;;  %v9431_v40 = vadd.f32 %v9362_v11, %v9303_v7  ;;  %8312 = vst.msk [vmem:[#allocation2 + $0x181] sm:$0xff] %vm8059_vm4, %v8280_v5  ;;  %9673 = vxpose.xlu1.b32.cont [6/16] (narrow) %v9625_v57, 16  ;;  %v8122_v7 = vld [vmem:[#allocation2 + $0x199] sm:$0xff] }
 0x848   : > { %v8920_v63 = vld [vmem:[#allocation2 + $0x158] sm:$0xff]  ;;  %v8405_v6 = vpop.permute.xlu0 %8404  ;;  %v8215_v46 = vpop.permute.xlu1 %8214  ;;  %9645 = vxpose.xlu0.b32.cont [10/16] (narrow) %v9613_v47, 16 }
 0x849   : > { %v9048_v19 = vadd.f32 %v8980_v15, %v8920_v63  ;;  %9463 = vst.msk [vmem:[#allocation2 + $0x139] sm:$0xff] %vm8059_vm4, %v9431_v40  ;;  %v8281_v33 = vadd.f32 %v8215_v46, %v8121_v51  ;;  %v16944_v15 = vld [vmem:[#allocation15_spill] sm:$0xff] }
 0x84a   : > { %v9304_v42 = vld [vmem:[#allocation2 + $0x141] sm:$0xff] }
 0x84b   : > { %9080 = vst.msk [vmem:[#allocation2 + $0x158] sm:$0xff] %vm8059_vm4, %v9048_v19  ;;  %v9432_v25 = vadd.f32 %v9364_v1, %v9304_v42  ;;  %8313 = vst.msk [vmem:[#allocation2 + $0x189] sm:$0xff] %vm8059_vm4, %v8281_v33  ;;  %9674 = vxpose.xlu1.b32.cont [7/16] (narrow) %v9626_v39, 16  ;;  %v9619_v1 = vadd.f32 %v16413_v32, %v9580_v44  ;;  %v8123_v33 = vld [vmem:[#allocation2 + $0x1a1] sm:$0xff] }
 0x84c   : > { %v8598_v35 = vpop.permute.xlu0 %8597  ;;  %v8407_v30 = vpop.permute.xlu1 %8406  ;;  %9646 = vxpose.xlu0.b32.cont [11/16] (narrow) %v9614_v56, 16 }
 0x84d   : > { %9464 = vst.msk [vmem:[#allocation2 + $0x141] sm:$0xff] %vm8059_vm4, %v9432_v25  ;;  %v8665_v24 = vadd.f32 %v8598_v35, %v8537_v17 }
 0x84e   : > { %v8344_v59 = vld [vmem:[#allocation2 + $0x180] sm:$0xff] }
 0x84f   : > { %v8472_v10 = vadd.f32 %v8405_v6, %v8344_v59  ;;  %8697 = vst.msk [vmem:[#allocation2 + $0x16a] sm:$0xff] %vm8059_vm4, %v8665_v24  ;;  %9675 = vxpose.xlu1.b32.cont [8/16] (narrow) %v9627_v43, 16 }
 0x850   : > { %v9495_v61 = vld [vmem:[#allocation2 + $0x138] sm:$0xff]  ;;  %v8790_v8 = vpop.permute.xlu0 %8789  ;;  %v8600_v18 = vpop.permute.xlu1 %8599  ;;  %9647 = vxpose.xlu0.b32.cont [12/16] (narrow) %v9615_v0, 16 }
 0x851   : > { %v9527_v53 = vadd.f32 %v9495_v61, %v15819_v22  ;;  %8504 = vst.msk [vmem:[#allocation2 + $0x180] sm:$0xff] %vm8059_vm4, %v8472_v10  ;;  %v8666_v62 = vadd.f32 %v8600_v18, %v8538_v13 }
 0x852   : > { %v8345_v34 = vld [vmem:[#allocation2 + $0x188] sm:$0xff]  ;;  %v9113_v38 = vld [vmem:[#allocation2 + $0x152] sm:$0xff]  ;;  %v9114_v29 = vld [vmem:[#allocation2 + $0x15a] sm:$0xff] }
 0x853   : > { %9559 = vst.msk [vmem:[#allocation2 + $0x138] sm:$0xff] %vm8059_vm4, %v9527_v53  ;;  %v8473_v2 = vadd.f32 %v8407_v30, %v8345_v34  ;;  %8698 = vst.msk [vmem:[#allocation2 + $0x172] sm:$0xff] %vm8059_vm4, %v8666_v62 }
 0x854   : > { %v9496_v31 = vld [vmem:[#allocation2 + $0x140] sm:$0xff]  ;;  %v8982_v26 = vpop.permute.xlu0 %8981  ;;  %v8792_v48 = vpop.permute.xlu1 %8791  ;;  %9648 = vxpose.xlu0.b32.cont [13/16] (narrow) %v9616_v45, 16 }
 0x855   : > { %v9528_v23 = vadd.f32 %v9496_v31, %v16944_v15  ;;  %8505 = vst.msk [vmem:[#allocation2 + $0x188] sm:$0xff] %vm8059_vm4, %v8473_v2  ;;  %v16946_v2 = vld [vmem:[#allocation16_spill] sm:$0xff] }
 0x856   : > { %v8729_v22 = vld [vmem:[#allocation2 + $0x169] sm:$0xff] }
 0x857   : > { %9560 = vst.msk [vmem:[#allocation2 + $0x140] sm:$0xff] %vm8059_vm4, %v9528_v23  ;;  %v8857_v41 = vadd.f32 %v8790_v8, %v8729_v22 }
 0x858   : > { %v9174_v52 = vpop.permute.xlu0 %9173  ;;  %v8984_v36 = vpop.permute.xlu1 %8983  ;;  %9649 = vxpose.xlu0.b32.cont [14/16] (narrow) %v9617_v9, 16 }
 0x859   : > { %8889 = vst.msk [vmem:[#allocation2 + $0x169] sm:$0xff] %vm8059_vm4, %v8857_v41  ;;  %v9241_v11 = vadd.f32 %v9174_v52, %v9113_v38 }
 0x85a   : > { %v8730_v27 = vld [vmem:[#allocation2 + $0x171] sm:$0xff] }
 0x85b   : > { %v8858_v49 = vadd.f32 %v8792_v48, %v8730_v27  ;;  %9273 = vst.msk [vmem:[#allocation2 + $0x152] sm:$0xff] %vm8059_vm4, %v9241_v11 }
 0x85c   : > { %v9366_v60 = vpop.permute.xlu0 %9365  ;;  %v9176_v37 = vpop.permute.xlu1 %9175  ;;  %9650 = vxpose.xlu0.b32.cont [15/16] (narrow) %v9618_v54, 16  ;;  %v8539_v25 = vld [vmem:[#allocation2 + $0x182] sm:$0xff]  ;;  %v8540_v0 = vld [vmem:[#allocation2 + $0x18a] sm:$0xff] }
 0x85d   : > { %8890 = vst.msk [vmem:[#allocation2 + $0x171] sm:$0xff] %vm8059_vm4, %v8858_v49  ;;  %v9242_v58 = vadd.f32 %v9176_v37, %v9114_v29 }
 0x85e   : > { %v9589_v55 = vld [vmem:[#allocation2 + $0x139] sm:$0xff]  ;;  %v9590_v47 = vld [vmem:[#allocation2 + $0x141] sm:$0xff] }
 0x85f   : > { %9274 = vst.msk [vmem:[#allocation2 + $0x15a] sm:$0xff] %vm8059_vm4, %v9242_v58  ;;  %v9628_v14 = vadd.f32 %v16413_v32, %v9589_v55  ;;  %v9629_v6 = vadd.f32 %v16413_v32, %v9590_v47 }
 0x860   : > { %v8921_v12 = vld [vmem:[#allocation2 + $0x168] sm:$0xff]  ;;  %v9368_v5 = vpop.permute.xlu1 %9367  ;;  %9651 = vxpose.xlu0.b32.end [16/16] (narrow) %v9619_v1, 16  ;;  %v8217_v57 = vpop.permute.xlu0 %8216 }
 0x861   : > { %v9049_v21 = vadd.f32 %v8982_v26, %v8921_v12  ;;  %v8282_v40 = vadd.f32 %v8217_v57, %v8122_v7  ;;  %9676 = vxpose.xlu1.b32.cont [9/16] (narrow) %v9628_v14, 16  ;;  %v7937_v7 = vpop.f32.mrf.mxu1 }
 0x862   : > { %v9305_v4 = vld [vmem:[#allocation2 + $0x151] sm:$0xff] }
 0x863   : > { %9081 = vst.msk [vmem:[#allocation2 + $0x168] sm:$0xff] %vm8059_vm4, %v9049_v21  ;;  %v9433_v63 = vadd.f32 %v9366_v60, %v9305_v4  ;;  %8314 = vst.msk [vmem:[#allocation2 + $0x199] sm:$0xff] %vm8059_vm4, %v8282_v40  ;;  %v16948_v40 = vld [vmem:[#allocation48_spill] sm:$0xff] }
 0x864   : > { %v8922_v46 = vld [vmem:[#allocation2 + $0x170] sm:$0xff]  ;;  %v8409_v51 = vpop.permute.xlu0 %8408  ;;  %v8219_v19 = vpop.permute.xlu1 %8218 }
 0x865   : > { %v9050_v39 = vadd.f32 %v8984_v36, %v8922_v46  ;;  %9465 = vst.msk [vmem:[#allocation2 + $0x151] sm:$0xff] %vm8059_vm4, %v9433_v63  ;;  %v8283_v42 = vadd.f32 %v8219_v19, %v8123_v33  ;;  %9677 = vxpose.xlu1.b32.cont [10/16] (narrow) %v9629_v6, 16 }
 0x866   : > { %v9306_v56 = vld [vmem:[#allocation2 + $0x159] sm:$0xff] }
 0x867   : > { %9082 = vst.msk [vmem:[#allocation2 + $0x170] sm:$0xff] %vm8059_vm4, %v9050_v39  ;;  %v9434_v50 = vadd.f32 %v9368_v5, %v9306_v56  ;;  %8315 = vst.msk [vmem:[#allocation2 + $0x1a1] sm:$0xff] %vm8059_vm4, %v8283_v42  ;;  %v16947_v5 = vld [vmem:[#allocation18_spill] sm:$0xff] }
 0x868   : > { %v8602_v20 = vpop.permute.xlu0 %8601  ;;  %v8411_v17 = vpop.permute.xlu1 %8410  ;;  %v16949_v42 = vld [vmem:[#allocation50_spill] sm:$0xff] }
 0x869   : > { %9466 = vst.msk [vmem:[#allocation2 + $0x159] sm:$0xff] %vm8059_vm4, %v9434_v50  ;;  %v8667_v35 = vadd.f32 %v8602_v20, %v8539_v25 }
 0x86a   : > { %v8346_v30 = vld [vmem:[#allocation2 + $0x198] sm:$0xff] }
 0x86b   : > { %v8474_v24 = vadd.f32 %v8409_v51, %v8346_v30  ;;  %8699 = vst.msk [vmem:[#allocation2 + $0x182] sm:$0xff] %vm8059_vm4, %v8667_v35 }
 0x86c   : > { %v9497_v43 = vld [vmem:[#allocation2 + $0x150] sm:$0xff]  ;;  %v8794_v59 = vpop.permute.xlu0 %8793  ;;  %v8604_v10 = vpop.permute.xlu1 %8603 }
 0x86d   : > { %v9529_v61 = vadd.f32 %v9497_v43, %v16945_v16  ;;  %8506 = vst.msk [vmem:[#allocation2 + $0x198] sm:$0xff] %vm8059_vm4, %v8474_v24  ;;  %v8668_v8 = vadd.f32 %v8604_v10, %v8540_v0 }
 0x86e   : > { %v8347_v13 = vld [vmem:[#allocation2 + $0x1a0] sm:$0xff]  ;;  %v9115_v62 = vld [vmem:[#allocation2 + $0x16a] sm:$0xff]  ;;  %v9116_v15 = vld [vmem:[#allocation2 + $0x172] sm:$0xff] }
 0x86f   : > { %9561 = vst.msk [vmem:[#allocation2 + $0x150] sm:$0xff] %vm8059_vm4, %v9529_v61  ;;  %v8475_v18 = vadd.f32 %v8411_v17, %v8347_v13  ;;  %8700 = vst.msk [vmem:[#allocation2 + $0x18a] sm:$0xff] %vm8059_vm4, %v8668_v8 }
 0x870   : > { %v9498_v53 = vld [vmem:[#allocation2 + $0x158] sm:$0xff]  ;;  %v9178_v34 = vpop.permute.xlu0 %9177  ;;  %v8796_v45 = vpop.permute.xlu1 %8795 }
 0x871   : > { %v9530_v3 = vadd.f32 %v9498_v53, %v16946_v2  ;;  %8507 = vst.msk [vmem:[#allocation2 + $0x1a0] sm:$0xff] %vm8059_vm4, %v8475_v18  ;;  %v9243_v31 = vadd.f32 %v9178_v34, %v9115_v62 }
 0x872   : > { %v8731_v26 = vld [vmem:[#allocation2 + $0x181] sm:$0xff] }
 0x873   : > { %9562 = vst.msk [vmem:[#allocation2 + $0x158] sm:$0xff] %vm8059_vm4, %v9530_v3  ;;  %v8859_v48 = vadd.f32 %v8794_v59, %v8731_v26  ;;  %9275 = vst.msk [vmem:[#allocation2 + $0x16a] sm:$0xff] %vm8059_vm4, %v9243_v31 }
 0x874   : > { %v9180_v23 = vpop.permute.xlu1 %9179  ;;  %v9370_v41 = vpop.permute.xlu0 %9369 }
 0x875   : > { %8891 = vst.msk [vmem:[#allocation2 + $0x181] sm:$0xff] %vm8059_vm4, %v8859_v48  ;;  %v9244_v22 = vadd.f32 %v9180_v23, %v9116_v15 }
 0x876   : > { %v8732_v9 = vld [vmem:[#allocation2 + $0x189] sm:$0xff] }
 0x877   : > { %v8860_v28 = vadd.f32 %v8796_v45, %v8732_v9  ;;  %9276 = vst.msk [vmem:[#allocation2 + $0x172] sm:$0xff] %vm8059_vm4, %v9244_v22  ;;  %v9277_v9 = vld [vmem:[#allocation2 + $0x1] sm:$0xff] }
 0x878   : > { %v9372_v52 = vpop.permute.xlu1 %9371  ;;  %v8986_v49 = vpop.permute.xlu0 %8985 }
 0x879   : > { %8892 = vst.msk [vmem:[#allocation2 + $0x189] sm:$0xff] %vm8059_vm4, %v8860_v28 }
 0x87a   : > { %v9307_v38 = vld [vmem:[#allocation2 + $0x169] sm:$0xff]  ;;  %v9591_v36 = vld [vmem:[#allocation2 + $0x151] sm:$0xff]  ;;  %v9592_v44 = vld [vmem:[#allocation2 + $0x159] sm:$0xff] }
 0x87b   : > { %v9435_v11 = vadd.f32 %v9370_v41, %v9307_v38  ;;  %v9630_v27 = vadd.f32 %v16413_v32, %v9591_v36  ;;  %v9631_v58 = vadd.f32 %v16413_v32, %v9592_v44 }
 0x87c   : > { %v8923_v54 = vld [vmem:[#allocation2 + $0x180] sm:$0xff]  ;;  %v8988_v55 = vpop.permute.xlu1 %8987 }
 0x87d   : > { %9467 = vst.msk [vmem:[#allocation2 + $0x169] sm:$0xff] %vm8059_vm4, %v9435_v11  ;;  %v9051_v60 = vadd.f32 %v8986_v49, %v8923_v54  ;;  %9678 = vxpose.xlu1.b32.cont [11/16] (narrow) %v9630_v27, 16  ;;  %v16950_v27 = vld [vmem:[#allocation52_spill] sm:$0xff] }
 0x87e   : > { %v9308_v29 = vld [vmem:[#allocation2 + $0x171] sm:$0xff] }
 0x87f   : > { %9083 = vst.msk [vmem:[#allocation2 + $0x180] sm:$0xff] %vm8059_vm4, %v9051_v60  ;;  %v9436_v37 = vadd.f32 %v9372_v52, %v9308_v29 }
 0x880   : > { %v8924_v1 = vld [vmem:[#allocation2 + $0x188] sm:$0xff] }
 0x881   : > { %9468 = vst.msk [vmem:[#allocation2 + $0x171] sm:$0xff] %vm8059_vm4, %v9436_v37  ;;  %v9052_v14 = vadd.f32 %v8988_v55, %v8924_v1  ;;  %9679 = vxpose.xlu1.b32.cont [12/16] (narrow) %v9631_v58, 16  ;;  %v9700_v37 = vld [vmem:[%s320_s24] sm:$0xff] }
 0x883   : > { %9084 = vst.msk [vmem:[#allocation2 + $0x188] sm:$0xff] %vm8059_vm4, %v9052_v14 }
 0x884   : > { %v9499_v12 = vld [vmem:[#allocation2 + $0x168] sm:$0xff] }
 0x885   : > { %v9531_v57 = vadd.f32 %v9499_v12, %v16947_v5 }
 0x887   : > { %9563 = vst.msk [vmem:[#allocation2 + $0x168] sm:$0xff] %vm8059_vm4, %v9531_v57  ;;  %v9749_v57 = vcombine.high %v9700_v37, %v9700_v37 }
 0x888   : > { %v9500_v47 = vld [vmem:[#allocation2 + $0x170] sm:$0xff] }
 0x889   : > { %v9532_v21 = vadd.f32 %v9500_v47, %v7937_v7  ;;  %9309 = vrot.lane.b32.xlu0 %v16948_v40, %s11867_s19 }
 0x88a   : > { %v9595_v51 = vld [vmem:[#allocation2 + $0x181] sm:$0xff]  ;;  %v9596_v33 = vld [vmem:[#allocation2 + $0x189] sm:$0xff] }
 0x88b   : > { %9564 = vst.msk [vmem:[#allocation2 + $0x170] sm:$0xff] %vm8059_vm4, %v9532_v21  ;;  %v9634_v19 = vadd.f32 %v16413_v32, %v9595_v51  ;;  %v9635_v39 = vadd.f32 %v16413_v32, %v9596_v33 }
 0x892   : > { %v9593_v4 = vld [vmem:[#allocation2 + $0x169] sm:$0xff]  ;;  %v9594_v6 = vld [vmem:[#allocation2 + $0x171] sm:$0xff] }
 0x893   : > { %v9632_v63 = vadd.f32 %v16413_v32, %v9593_v4  ;;  %v9633_v46 = vadd.f32 %v16413_v32, %v9594_v6 }
 0x895   : > { %9680 = vxpose.xlu1.b32.cont [13/16] (narrow) %v9632_v63, 16 }
 0x899   : > { %9681 = vxpose.xlu1.b32.cont [14/16] (narrow) %v9633_v46, 16 }
 0x89d   : > { %9682 = vxpose.xlu1.b32.cont [15/16] (narrow) %v9634_v19, 16 }
 0x8a0   : > { %v16516_v56 = vpop.trf.xlu0 }
 0x8a1   : > { %9683 = vxpose.xlu1.b32.end [16/16] (narrow) %v9635_v39, 16  ;;  %v9701_v50 = vadd.f32 2.0, %v16516_v56  ;;  %v9758_v6 = vrot.slane %v16516_v56, 4 }
 0x8a3   : > { %v9703_v25 = vsub.f32 0.0, %v9701_v50 }
 0x8a4   : > { %v9653_v20 = vpop.trf.xlu0 }
 0x8a5   : > { %v9730_v17 = vadd.f32 2.0, %v9653_v20  ;;  %v9705_v35 = vmul.f32 1.442695, %v9703_v25 }
 0x8a7   : > { %v9732_v30 = vsub.f32 0.0, %v9730_v17  ;;  %11719 = vpow2.f32 %v9705_v35  ;;  %v16951_v17 = vld [vmem:[#allocation43_spill] sm:$0xff] }
 0x8a9   : > { %v9734_v24 = vmul.f32 1.442695, %v9732_v30 }
 0x8ab   : > { %11721 = vpow2.f32 %v9734_v24 }
 0x8b4   : > { %v11720_v8 = vpop.eup %11719 }
 0x8b5   : > { %v9709_v18 = vadd.f32 1.0, %v11720_v8 }
 0x8b7   : > { %v9711_v62 = vmul.f32 0.0001, %v9709_v18 }
 0x8b8   : > { %v11722_v53 = vpop.eup %11721 }
 0x8b9   : > { %v9738_v34 = vadd.f32 1.0, %v11722_v53  ;;  %v9713_v45 = vadd.f32 1.0, %v9711_v62 }
 0x8bb   : > { %v9740_v31 = vmul.f32 0.0001, %v9738_v34 }
 0x8bd   : > { %v9742_v22 = vadd.f32 1.0, %v9740_v31 }
 0x8bf   : > { %9311 = vrot.lane.b32.xlu1 %v16949_v42, %s11867_s19  ;;  %v9278_v42 = vld [vmem:[#allocation2 + $0x9] sm:$0xff] }
 0x8e1   : > { %v16519_v43 = vpop.trf.xlu1 }
 0x8e2   : > { %v9702_v59 = vadd.f32 2.0, %v16519_v43  ;;  %v9726_v29 = vcombine.low %v16516_v56, %v16519_v43  ;;  %v9759_v46 = vrot.slane %v16519_v43, 4 }
 0x8e4   : > { %v9704_v32 = vsub.f32 0.0, %v9702_v59  ;;  %v9727_v12 = vrot.slane %v9726_v29, 6 }
 0x8e5   : > { %v9685_v0 = vpop.trf.xlu1 }
 0x8e6   : > { %v9707_v10 = vmul.f32 1.442695, %v9704_v32  ;;  %v9731_v16 = vadd.f32 2.0, %v9685_v0 }
 0x8e8   : > { %11723 = vpow2.f32 %v9707_v10  ;;  %v9733_v61 = vsub.f32 0.0, %v9731_v16 }
 0x8ea   : > { %v9736_v13 = vmul.f32 1.442695, %v9733_v61 }
 0x8ec   : > { %11725 = vpow2.f32 %v9736_v13 }
 0x8ed   : > { %11727 = vrcp.f32 %v9713_v45 }
 0x8f5   : > { %v11724_v2 = vpop.eup %11723 }
 0x8f6   : > { %v9710_v3 = vadd.f32 1.0, %v11724_v2 }
 0x8f8   : > { %v9712_v26 = vmul.f32 0.0001, %v9710_v3 }
 0x8f9   : > { %v11726_v48 = vpop.eup %11725 }
 0x8fa   : > { %v9714_v15 = vadd.f32 1.0, %v9712_v26  ;;  %v9739_v23 = vadd.f32 1.0, %v11726_v48  ;;  %v11728_v36 = vpop.eup %11727 }
 0x8fb   : > { %v9310_v41 = vpop.permute.xlu0 %9309  ;;  %v9717_v49 = vmul.f32 %v11728_v36, %v9709_v18 }
 0x8fc   : > { %11729 = vrcp.f32 %v9714_v15  ;;  %v9741_v28 = vmul.f32 0.0001, %v9739_v23  ;;  %v9405_v38 = vadd.f32 %v9310_v41, %v9277_v9 }
 0x8fd   : > { %11731 = vrcp.f32 %v9742_v22 }
 0x8fe   : > { %v9743_v52 = vadd.f32 1.0, %v9741_v28  ;;  %9437 = vst.msk [vmem:[#allocation2 + $0x1] sm:$0xff] %vm8059_vm4, %v9405_v38 }
 0x900   : > { %11733 = vrcp.f32 %v9743_v52 }
 0x905   : > { %v9469_v11 = vld [vmem:[#allocation2] sm:$0xff] }
 0x906   : > { %v9501_v54 = vadd.f32 %v9469_v11, %v16950_v27 }
 0x908   : > { %9533 = vst.msk [vmem:[#allocation2] sm:$0xff] %vm8059_vm4, %v9501_v54 }
 0x909   : > { %v11730_v44 = vpop.eup %11729 }
 0x90a   : > { %v9718_v60 = vmul.f32 %v11730_v44, %v9710_v3  ;;  %v11732_v58 = vpop.eup %11731 }
 0x90b   : > { %v9746_v5 = vmul.f32 %v11732_v58, %v9738_v34 }
 0x90c   : > { %v9721_v1 = vcombine.low %v9717_v49, %v9718_v60 }
 0x90d   : > { %v11734_v55 = vpop.eup %11733 }
 0x90e   : > { %v9723_v14 = vmul.f32 %v9721_v1, %v9700_v37  ;;  %v9747_v47 = vmul.f32 %v11734_v55, %v9739_v23 }
 0x910   : > { %v9729_v7 = vsub.f32 %v9723_v14, %v9727_v12 }
 0x912   : > { %v9752_v21 = vcombine.high %v9729_v7, %v9729_v7  ;;  %v9754_v40 = vsel %vm1266_vm0, %v9700_v37, %v9729_v7 }
 0x913   : > { %v9756_v4 = vmul.f32 %v9754_v40, %v9746_v5 }
 0x914   : > { %v9755_v63 = vsel %vm1266_vm0, %v9749_v57, %v9752_v21 }
 0x915   : > { %v9757_v51 = vmul.f32 %v9755_v63, %v9747_v47  ;;  %v9762_v19 = vsub.f32 %v9756_v4, %v9758_v6 }
 0x917   : > { %v9763_v33 = vsub.f32 %v9757_v51, %v9759_v46 }
 0x919   : > { %v9766_v39 = vcombine.low %v9762_v19, %v9763_v33 }
 0x91b   : > { %9768 = vst [vmem:[%s325_s26] sm:$0xff] %v9766_v39 }
 0x931   : > { %v9312_v50 = vpop.permute.xlu1 %9311 }
 0x932   : > { %v9406_v25 = vadd.f32 %v9312_v50, %v9278_v42 }
 0x934   : > { %9438 = vst.msk [vmem:[#allocation2 + $0x9] sm:$0xff] %vm8059_vm4, %v9406_v25 }
 0x93b   : > { %v9470_v20 = vld [vmem:[#allocation2 + $0x8] sm:$0xff] }
 0x93c   : > { %v9502_v35 = vadd.f32 %v9470_v20, %v16951_v17 }
 0x93e   : > { %9534 = vst.msk [vmem:[#allocation2 + $0x8] sm:$0xff] %vm8059_vm4, %v9502_v35 }
 0x93f PF: > { %s18_s27 = sadd.s32 1, %s11857_s27  }
 0x940   : > { %p15_p4 = scmp.ge.s32.totalorder %s18_s27, 4  }
 0x942   :  { %17 = sbr.rel (!%p15_p4) target bundleno = 1 (0x1), region = 91 }

</bundles_post_ra>
